<compile_context>
chip_gen: v5e
topology: v5e:2x2
jax: 0.10.0
libtpu: 0.0.40
codegen_flags: <defaults>
</compile_context>

<pallas_src>
import jax
import jax.numpy as jnp
from jax import lax
from jax.experimental import pallas as pl
from jax.experimental.pallas import tpu as pltpu

LANES = 128  # lane-dense output width


def _round_up(n, m):
    return ((n + m - 1) // m) * m


def _cdiv(a, b):
    return (a + b - 1) // b


def _choose_block_b(batch, max_block=128):
    """Largest block <= max_block (one block for small batches: best on the
    single-TC v5e/v6e); for batches > max_block use an even number of blocks so
    the v7x megacore can shard them across both TensorCores."""
    b_pad = _round_up(batch, 8)
    if b_pad <= max_block:
        return b_pad
    n_blocks = _round_up(_cdiv(b_pad, max_block), 2)  # even, >= 2
    return _round_up(_cdiv(b_pad, n_blocks), 8)


def lstm_fc_kernel(x_ref, wih_ref, whh_ref, bias_ref, wfc_ref, bfc_ref,
                   out_ref, xproj_ref):
    """One batch-block of sequences, fully resident in VMEM.

    x_ref     : (BB, T, E)     batch-major block of BB sequences
    wih_ref   : (E, 4H)        W_ih^T, gate order [i, f, o, g] (f32 or bf16)
    whh_ref   : (H, 4H)        W_hh^T, gate order [i, f, o, g] (f32 or bf16)
    bias_ref  : (1, 4H)        b_ih + b_hh, same gate order (f32)
    wfc_ref   : (H, LANES)     fc weight^T in column 0, rest zero (f32)
    bfc_ref   : (1, LANES)     fc bias in [0, 0], rest zero (f32)
    out_ref   : (BB, LANES)    column 0 = per-sequence scalar output
    xproj_ref : (T*BB, 4H) f32 VMEM scratch, time-major input projection
    """
    BB, T, E = x_ref.shape
    H = whh_ref.shape[0]
    mm_dtype = wih_ref.dtype  # bf16 by default; f32 if prep chose it

    # ---- Input projection, staged time-major into VMEM scratch -------------
    # xproj[t*BB:(t+1)*BB, :] = x[:, t, :] @ W_ih^T + (b_ih + b_hh)
    # Reading the (BB, E) slab for step t straight from the batch-major input
    # block avoids any wrapper-side HBM transpose, and writing into a scratch
    # ref bounds live ranges to one slab (no x_proj pinned in vregs across the
    # unrolled recurrence).
    for t in range(T):
        xt = x_ref[:, t, :].astype(mm_dtype)                       # (BB, E)
        xproj_ref[pl.ds(t * BB, BB), :] = (
            jnp.dot(xt, wih_ref[...], preferred_element_type=jnp.float32)
            + bias_ref[...])

    # ---- Recurrence (T is a small static trip count -> fully unrolled) -----
    h = jnp.zeros((BB, H), jnp.float32)
    c = jnp.zeros((BB, H), jnp.float32)
    for t in range(T):
        gates = xproj_ref[pl.ds(t * BB, BB), :] + jnp.dot(
            h.astype(mm_dtype), whh_ref[...],
            preferred_element_type=jnp.float32)                    # (BB, 4H) f32
        sig = jax.nn.sigmoid(gates[:, 0:3 * H])                    # i | f | o
        g = jnp.tanh(gates[:, 3 * H:4 * H])
        i = sig[:, 0:H]
        f = sig[:, H:2 * H]
        o = sig[:, 2 * H:3 * H]
        c = f * c + i * g
        h = o * jnp.tanh(c)

    # ---- Lane-dense fc head: (BB, H) @ (H, 128); only column 0 meaningful ---
    out_ref[...] = jnp.dot(h, wfc_ref[...],
                           preferred_element_type=jnp.float32) + bfc_ref[...]


def baseline_lstm_forward_batch(x, kparams, *, block_b=None, max_block=128):
    """x: (B, T, E) float32 -> (B,) float32 (one LSTM+fc scalar per sequence)."""
    wih_t, whh_t, bias, wfc_pad, bfc_pad = kparams
    B, T, E = x.shape
    H = whh_t.shape[0]

    if block_b is None:
        block_b = _choose_block_b(B, max_block=max_block)
    assert block_b % 8 == 0 and block_b > 0, "block_b must be a multiple of 8"

    num_blocks = _cdiv(B, block_b)
    b_pad = num_blocks * block_b
    if b_pad != B:
        x = jnp.pad(x, ((0, b_pad - B), (0, 0), (0, 0)))  # padded rows: wasted
        # compute only; their outputs are sliced off below.

    out = pl.pallas_call(
        lstm_fc_kernel,
        out_shape=jax.ShapeDtypeStruct((b_pad, LANES), jnp.float32),
        grid_spec=pltpu.PrefetchScalarGridSpec(
            num_scalar_prefetch=0,
            grid=(num_blocks,),
            in_specs=[
                pl.BlockSpec((block_b, T, E), lambda i: (i, 0, 0)),  # batch-major
                pl.BlockSpec((E, 4 * H), lambda i: (0, 0)),          # weights:
                pl.BlockSpec((H, 4 * H), lambda i: (0, 0)),          # constant
                pl.BlockSpec((1, 4 * H), lambda i: (0, 0)),          # index map ->
                pl.BlockSpec((H, LANES), lambda i: (0, 0)),          # single DMA,
                pl.BlockSpec((1, LANES), lambda i: (0, 0)),          # VMEM-resident
            ],
            out_specs=pl.BlockSpec((block_b, LANES), lambda i: (i, 0)),
            scratch_shapes=[pltpu.VMEM((T * block_b, 4 * H), jnp.float32)],
        ),
        compiler_params=pltpu.CompilerParams(
            dimension_semantics=("parallel",)),  # megacore-shardable on v7x
    )(x, wih_t, whh_t, bias, wfc_pad, bfc_pad)
    return out[:B, 0]


def baseline_lstm_forward(x, kparams, *, block_b=None):
    """x: (T, E) -> 0-d scalar; matches BaselineLSTM.forward(sequence).squeeze()."""
    return baseline_lstm_forward_batch(x[None], kparams, block_b=block_b)[0]


def init_torch_params(key, emb_dim, hidden_dim, output_dim=1):
    """Raw parameters with exact PyTorch shapes/init ranges."""
    k = 1.0 / jnp.sqrt(jnp.float32(hidden_dim))
    keys = jax.random.split(key, 6)
    w_ih = jax.random.uniform(keys[0], (4 * hidden_dim, emb_dim), jnp.float32, -k, k)
    w_hh = jax.random.uniform(keys[1], (4 * hidden_dim, hidden_dim), jnp.float32, -k, k)
    b_ih = jax.random.uniform(keys[2], (4 * hidden_dim,), jnp.float32, -k, k)
    b_hh = jax.random.uniform(keys[3], (4 * hidden_dim,), jnp.float32, -k, k)
    w_fc = jax.random.uniform(keys[4], (output_dim, hidden_dim), jnp.float32, -k, k)
    b_fc = jax.random.uniform(keys[5], (output_dim,), jnp.float32, -k, k)
    return (w_ih, w_hh, b_ih, b_hh, w_fc, b_fc)


def prep_kernel_params(raw, matmul_dtype=jnp.bfloat16):
    """Transpose, merge biases, reorder gates [i,f,g,o]->[i,f,o,g], pad fc head.

    matmul_dtype controls only the MXU operand dtype (W_ih / W_hh, and the
    in-kernel cast of x / h); gates, state and activations stay float32.
    Pass jnp.float32 for a bit-exact-vs-reference check.
    """
    w_ih, w_hh, b_ih, b_hh, w_fc, b_fc = raw
    H = w_hh.shape[1]
    assert w_fc.shape[0] == 1, "kernel implements output_dim == 1 (module default)"
    perm = jnp.concatenate([
        jnp.arange(0 * H, 1 * H),   # i
        jnp.arange(1 * H, 2 * H),   # f
        jnp.arange(3 * H, 4 * H),   # o
        jnp.arange(2 * H, 3 * H),   # g
    ])
    wih_t = jnp.transpose(w_ih[perm, :]).astype(matmul_dtype)       # (E, 4H)
    whh_t = jnp.transpose(w_hh[perm, :]).astype(matmul_dtype)       # (H, 4H)
    bias = (b_ih + b_hh)[perm].reshape(1, 4 * H).astype(jnp.float32)
    wfc_pad = jnp.zeros((H, LANES), jnp.float32).at[:, 0].set(w_fc[0])
    bfc_pad = jnp.zeros((1, LANES), jnp.float32).at[0, 0].set(b_fc[0])
    return (wih_t, whh_t, bias, wfc_pad, bfc_pad)


def reference_forward_batch(x, raw):
    """Pure-JAX reference with PyTorch gate order/shapes: (B, T, E) -> (B,)."""
    w_ih, w_hh, b_ih, b_hh, w_fc, b_fc = raw
    H = w_hh.shape[1]
    B = x.shape[0]

    def step(carry, xt):
        h, c = carry
        gates = xt @ w_ih.T + b_ih + h @ w_hh.T + b_hh   # (B, 4H), order [i,f,g,o]
        i = jax.nn.sigmoid(gates[:, 0 * H:1 * H])
        f = jax.nn.sigmoid(gates[:, 1 * H:2 * H])
        g = jnp.tanh(gates[:, 2 * H:3 * H])
        o = jax.nn.sigmoid(gates[:, 3 * H:4 * H])
        c = f * c + i * g
        h = o * jnp.tanh(c)
        return (h, c), None

    xt = jnp.transpose(x, (1, 0, 2))
    (h, _), _ = lax.scan(step, (jnp.zeros((B, H)), jnp.zeros((B, H))), xt)
    return (h @ w_fc.T + b_fc)[:, 0]


if __name__ == "__main__":
    # Shapes consistent with the module: T=8 timesteps, emb_dim=256,
    # hidden_dim=128, output_dim=1; 16 sequences batched through one call
    # (auto block_b -> one block of 16).
    T, EMB, HID = 8, 256, 128
    B = 16

    key = jax.random.PRNGKey(0)
    kx, kp = jax.random.split(key)
    raw = init_torch_params(kp, EMB, HID, output_dim=1)
    xb = jax.random.normal(kx, (B, T, EMB), jnp.float32)

    ref_b = reference_forward_batch(xb, raw)

    fwd_batch = jax.jit(baseline_lstm_forward_batch)
    fwd_single = jax.jit(baseline_lstm_forward)

    # 1) Exact check: f32 MXU operands, tight tolerance.
    kparams_f32 = prep_kernel_params(raw, matmul_dtype=jnp.float32)
    out_f32 = jax.block_until_ready(fwd_batch(xb, kparams_f32))
    assert out_f32.shape == (B,), out_f32.shape
    assert jnp.allclose(out_f32, ref_b, atol=1e-4, rtol=1e-4), (out_f32, ref_b)

    # 2) Production path: bf16 MXU operands (default), f32 accumulation/state.
    kparams = prep_kernel_params(raw)
    out_b = jax.block_until_ready(fwd_batch(xb, kparams))
    assert out_b.shape == (B,), out_b.shape
    assert jnp.allclose(out_b, ref_b, atol=5e-2, rtol=5e-2), (out_b, ref_b)

    # 3) Ragged batch (exercises the pad-to-block path).
    out_r = jax.block_until_ready(fwd_batch(xb[:5], kparams))
    assert jnp.allclose(out_r, ref_b[:5], atol=5e-2, rtol=5e-2), (out_r, ref_b[:5])

    # 4) Single-sequence path: exact BaselineLSTM.forward semantics (scalar out).
    out_1 = jax.block_until_ready(fwd_single(xb[0], kparams))
    assert out_1.shape == (), out_1.shape
    assert jnp.allclose(out_1, ref_b[0], atol=5e-2, rtol=5e-2), (out_1, ref_b[0])

    print("KERNEL_OK")
</pallas_src>

<mosaic_0001>
module attributes {stable_mosaic.version = 11 : i64} {
  func.func @lstm_fc_kernel(%arg0: i32, %arg1: memref<16x8x256xf32, #tpu.memory_space<vmem>>, %arg2: memref<256x512xf32, #tpu.memory_space<vmem>>, %arg3: memref<128x512xf32, #tpu.memory_space<vmem>>, %arg4: memref<1x512xf32, #tpu.memory_space<vmem>>, %arg5: memref<128x128xf32, #tpu.memory_space<vmem>>, %arg6: memref<1x128xf32, #tpu.memory_space<vmem>>, %arg7: memref<16x128xf32, #tpu.memory_space<vmem>>, %arg8: memref<128x512xf32, #tpu.memory_space<vmem>>) attributes {dimension_semantics = [#tpu.dimension_semantics<parallel>], iteration_bounds = array<i64: 1>, scalar_prefetch = 0 : i64, scratch_operands = 1 : i64, tpu.core_type = #tpu.core_type<tc>, window_params = [{transform_indices = @transform_0, window_bounds = array<i64: 16, 8, 256>}, {pipeline_mode = #tpu.pipeline_mode<synchronous>, transform_indices = @transform_1, window_bounds = array<i64: 256, 512>}, {pipeline_mode = #tpu.pipeline_mode<synchronous>, transform_indices = @transform_2, window_bounds = array<i64: 128, 512>}, {pipeline_mode = #tpu.pipeline_mode<synchronous>, transform_indices = @transform_3, window_bounds = array<i64: 1, 512>}, {pipeline_mode = #tpu.pipeline_mode<synchronous>, transform_indices = @transform_4, window_bounds = array<i64: 128, 128>}, {pipeline_mode = #tpu.pipeline_mode<synchronous>, transform_indices = @transform_5, window_bounds = array<i64: 1, 128>}, {transform_indices = @transform_6, window_bounds = array<i64: 16, 128>}]} {
    %c0 = arith.constant 0 : index
    %c0_0 = arith.constant 0 : index
    %c0_1 = arith.constant 0 : index
    %0 = vector.load %arg1[%c0, %c0_0, %c0_1] : memref<16x8x256xf32, #tpu.memory_space<vmem>>, vector<16x1x256xf32>
    %1 = vector.shape_cast %0 : vector<16x1x256xf32> to vector<16x256xf32>
    %c0_2 = arith.constant 0 : index
    %c0_3 = arith.constant 0 : index
    %2 = vector.load %arg2[%c0_2, %c0_3] : memref<256x512xf32, #tpu.memory_space<vmem>>, vector<256x512xf32>
    %cst = arith.constant dense<0.000000e+00> : vector<16x512xf32>
    %3 = tpu.matmul %1, %2, %cst {dimension_numbers = #tpu.dot_dimension_numbers<[1], [0], [0], [1], [0, 0, 1, 1], [], []>} : vector<16x256xf32>, vector<256x512xf32>, vector<16x512xf32> -> vector<16x512xf32>
    %c0_4 = arith.constant 0 : index
    %c0_5 = arith.constant 0 : index
    %4 = vector.load %arg4[%c0_4, %c0_5] : memref<1x512xf32, #tpu.memory_space<vmem>>, vector<1x512xf32>
    %5 = vector.broadcast %4 : vector<1x512xf32> to vector<16x512xf32>
    %6 = arith.addf %3, %5 : vector<16x512xf32>
    %c0_6 = arith.constant 0 : index
    %c0_7 = arith.constant 0 : index
    %7 = vector.load %arg8[%c0_6, %c0_7] : memref<128x512xf32, #tpu.memory_space<vmem>>, vector<16x512xf32>
    tpu.vector_store %arg8[%c0_6, %c0_7], %6 {strides = array<i32>} : memref<128x512xf32, #tpu.memory_space<vmem>>, vector<16x512xf32>,
    %c0_8 = arith.constant 0 : index
    %c1 = arith.constant 1 : index
    %c0_9 = arith.constant 0 : index
    %8 = vector.load %arg1[%c0_8, %c1, %c0_9] : memref<16x8x256xf32, #tpu.memory_space<vmem>>, vector<16x1x256xf32>
    %9 = vector.shape_cast %8 : vector<16x1x256xf32> to vector<16x256xf32>
    %c0_10 = arith.constant 0 : index
    %c0_11 = arith.constant 0 : index
    %10 = vector.load %arg2[%c0_10, %c0_11] : memref<256x512xf32, #tpu.memory_space<vmem>>, vector<256x512xf32>
    %cst_12 = arith.constant dense<0.000000e+00> : vector<16x512xf32>
    %11 = tpu.matmul %9, %10, %cst_12 {dimension_numbers = #tpu.dot_dimension_numbers<[1], [0], [0], [1], [0, 0, 1, 1], [], []>} : vector<16x256xf32>, vector<256x512xf32>, vector<16x512xf32> -> vector<16x512xf32>
    %c0_13 = arith.constant 0 : index
    %c0_14 = arith.constant 0 : index
    %12 = vector.load %arg4[%c0_13, %c0_14] : memref<1x512xf32, #tpu.memory_space<vmem>>, vector<1x512xf32>
    %13 = vector.broadcast %12 : vector<1x512xf32> to vector<16x512xf32>
    %14 = arith.addf %11, %13 : vector<16x512xf32>
    %c16 = arith.constant 16 : index
    %c0_15 = arith.constant 0 : index
    %15 = vector.load %arg8[%c16, %c0_15] : memref<128x512xf32, #tpu.memory_space<vmem>>, vector<16x512xf32>
    tpu.vector_store %arg8[%c16, %c0_15], %14 {strides = array<i32>} : memref<128x512xf32, #tpu.memory_space<vmem>>, vector<16x512xf32>,
    %c0_16 = arith.constant 0 : index
    %c2 = arith.constant 2 : index
    %c0_17 = arith.constant 0 : index
    %16 = vector.load %arg1[%c0_16, %c2, %c0_17] : memref<16x8x256xf32, #tpu.memory_space<vmem>>, vector<16x1x256xf32>
    %17 = vector.shape_cast %16 : vector<16x1x256xf32> to vector<16x256xf32>
    %c0_18 = arith.constant 0 : index
    %c0_19 = arith.constant 0 : index
    %18 = vector.load %arg2[%c0_18, %c0_19] : memref<256x512xf32, #tpu.memory_space<vmem>>, vector<256x512xf32>
    %cst_20 = arith.constant dense<0.000000e+00> : vector<16x512xf32>
    %19 = tpu.matmul %17, %18, %cst_20 {dimension_numbers = #tpu.dot_dimension_numbers<[1], [0], [0], [1], [0, 0, 1, 1], [], []>} : vector<16x256xf32>, vector<256x512xf32>, vector<16x512xf32> -> vector<16x512xf32>
    %c0_21 = arith.constant 0 : index
    %c0_22 = arith.constant 0 : index
    %20 = vector.load %arg4[%c0_21, %c0_22] : memref<1x512xf32, #tpu.memory_space<vmem>>, vector<1x512xf32>
    %21 = vector.broadcast %20 : vector<1x512xf32> to vector<16x512xf32>
    %22 = arith.addf %19, %21 : vector<16x512xf32>
    %c32 = arith.constant 32 : index
    %c0_23 = arith.constant 0 : index
    %23 = vector.load %arg8[%c32, %c0_23] : memref<128x512xf32, #tpu.memory_space<vmem>>, vector<16x512xf32>
    tpu.vector_store %arg8[%c32, %c0_23], %22 {strides = array<i32>} : memref<128x512xf32, #tpu.memory_space<vmem>>, vector<16x512xf32>,
    %c0_24 = arith.constant 0 : index
    %c3 = arith.constant 3 : index
    %c0_25 = arith.constant 0 : index
    %24 = vector.load %arg1[%c0_24, %c3, %c0_25] : memref<16x8x256xf32, #tpu.memory_space<vmem>>, vector<16x1x256xf32>
    %25 = vector.shape_cast %24 : vector<16x1x256xf32> to vector<16x256xf32>
    %c0_26 = arith.constant 0 : index
    %c0_27 = arith.constant 0 : index
    %26 = vector.load %arg2[%c0_26, %c0_27] : memref<256x512xf32, #tpu.memory_space<vmem>>, vector<256x512xf32>
    %cst_28 = arith.constant dense<0.000000e+00> : vector<16x512xf32>
    %27 = tpu.matmul %25, %26, %cst_28 {dimension_numbers = #tpu.dot_dimension_numbers<[1], [0], [0], [1], [0, 0, 1, 1], [], []>} : vector<16x256xf32>, vector<256x512xf32>, vector<16x512xf32> -> vector<16x512xf32>
    %c0_29 = arith.constant 0 : index
    %c0_30 = arith.constant 0 : index
    %28 = vector.load %arg4[%c0_29, %c0_30] : memref<1x512xf32, #tpu.memory_space<vmem>>, vector<1x512xf32>
    %29 = vector.broadcast %28 : vector<1x512xf32> to vector<16x512xf32>
    %30 = arith.addf %27, %29 : vector<16x512xf32>
    %c48 = arith.constant 48 : index
    %c0_31 = arith.constant 0 : index
    %31 = vector.load %arg8[%c48, %c0_31] : memref<128x512xf32, #tpu.memory_space<vmem>>, vector<16x512xf32>
    tpu.vector_store %arg8[%c48, %c0_31], %30 {strides = array<i32>} : memref<128x512xf32, #tpu.memory_space<vmem>>, vector<16x512xf32>,
    %c0_32 = arith.constant 0 : index
    %c4 = arith.constant 4 : index
    %c0_33 = arith.constant 0 : index
    %32 = vector.load %arg1[%c0_32, %c4, %c0_33] : memref<16x8x256xf32, #tpu.memory_space<vmem>>, vector<16x1x256xf32>
    %33 = vector.shape_cast %32 : vector<16x1x256xf32> to vector<16x256xf32>
    %c0_34 = arith.constant 0 : index
    %c0_35 = arith.constant 0 : index
    %34 = vector.load %arg2[%c0_34, %c0_35] : memref<256x512xf32, #tpu.memory_space<vmem>>, vector<256x512xf32>
    %cst_36 = arith.constant dense<0.000000e+00> : vector<16x512xf32>
    %35 = tpu.matmul %33, %34, %cst_36 {dimension_numbers = #tpu.dot_dimension_numbers<[1], [0], [0], [1], [0, 0, 1, 1], [], []>} : vector<16x256xf32>, vector<256x512xf32>, vector<16x512xf32> -> vector<16x512xf32>
    %c0_37 = arith.constant 0 : index
    %c0_38 = arith.constant 0 : index
    %36 = vector.load %arg4[%c0_37, %c0_38] : memref<1x512xf32, #tpu.memory_space<vmem>>, vector<1x512xf32>
    %37 = vector.broadcast %36 : vector<1x512xf32> to vector<16x512xf32>
    %38 = arith.addf %35, %37 : vector<16x512xf32>
    %c64 = arith.constant 64 : index
    %c0_39 = arith.constant 0 : index
    %39 = vector.load %arg8[%c64, %c0_39] : memref<128x512xf32, #tpu.memory_space<vmem>>, vector<16x512xf32>
    tpu.vector_store %arg8[%c64, %c0_39], %38 {strides = array<i32>} : memref<128x512xf32, #tpu.memory_space<vmem>>, vector<16x512xf32>,
    %c0_40 = arith.constant 0 : index
    %c5 = arith.constant 5 : index
    %c0_41 = arith.constant 0 : index
    %40 = vector.load %arg1[%c0_40, %c5, %c0_41] : memref<16x8x256xf32, #tpu.memory_space<vmem>>, vector<16x1x256xf32>
    %41 = vector.shape_cast %40 : vector<16x1x256xf32> to vector<16x256xf32>
    %c0_42 = arith.constant 0 : index
    %c0_43 = arith.constant 0 : index
    %42 = vector.load %arg2[%c0_42, %c0_43] : memref<256x512xf32, #tpu.memory_space<vmem>>, vector<256x512xf32>
    %cst_44 = arith.constant dense<0.000000e+00> : vector<16x512xf32>
    %43 = tpu.matmul %41, %42, %cst_44 {dimension_numbers = #tpu.dot_dimension_numbers<[1], [0], [0], [1], [0, 0, 1, 1], [], []>} : vector<16x256xf32>, vector<256x512xf32>, vector<16x512xf32> -> vector<16x512xf32>
    %c0_45 = arith.constant 0 : index
    %c0_46 = arith.constant 0 : index
    %44 = vector.load %arg4[%c0_45, %c0_46] : memref<1x512xf32, #tpu.memory_space<vmem>>, vector<1x512xf32>
    %45 = vector.broadcast %44 : vector<1x512xf32> to vector<16x512xf32>
    %46 = arith.addf %43, %45 : vector<16x512xf32>
    %c80 = arith.constant 80 : index
    %c0_47 = arith.constant 0 : index
    %47 = vector.load %arg8[%c80, %c0_47] : memref<128x512xf32, #tpu.memory_space<vmem>>, vector<16x512xf32>
    tpu.vector_store %arg8[%c80, %c0_47], %46 {strides = array<i32>} : memref<128x512xf32, #tpu.memory_space<vmem>>, vector<16x512xf32>,
    %c0_48 = arith.constant 0 : index
    %c6 = arith.constant 6 : index
    %c0_49 = arith.constant 0 : index
    %48 = vector.load %arg1[%c0_48, %c6, %c0_49] : memref<16x8x256xf32, #tpu.memory_space<vmem>>, vector<16x1x256xf32>
    %49 = vector.shape_cast %48 : vector<16x1x256xf32> to vector<16x256xf32>
    %c0_50 = arith.constant 0 : index
    %c0_51 = arith.constant 0 : index
    %50 = vector.load %arg2[%c0_50, %c0_51] : memref<256x512xf32, #tpu.memory_space<vmem>>, vector<256x512xf32>
    %cst_52 = arith.constant dense<0.000000e+00> : vector<16x512xf32>
    %51 = tpu.matmul %49, %50, %cst_52 {dimension_numbers = #tpu.dot_dimension_numbers<[1], [0], [0], [1], [0, 0, 1, 1], [], []>} : vector<16x256xf32>, vector<256x512xf32>, vector<16x512xf32> -> vector<16x512xf32>
    %c0_53 = arith.constant 0 : index
    %c0_54 = arith.constant 0 : index
    %52 = vector.load %arg4[%c0_53, %c0_54] : memref<1x512xf32, #tpu.memory_space<vmem>>, vector<1x512xf32>
    %53 = vector.broadcast %52 : vector<1x512xf32> to vector<16x512xf32>
    %54 = arith.addf %51, %53 : vector<16x512xf32>
    %c96 = arith.constant 96 : index
    %c0_55 = arith.constant 0 : index
    %55 = vector.load %arg8[%c96, %c0_55] : memref<128x512xf32, #tpu.memory_space<vmem>>, vector<16x512xf32>
    tpu.vector_store %arg8[%c96, %c0_55], %54 {strides = array<i32>} : memref<128x512xf32, #tpu.memory_space<vmem>>, vector<16x512xf32>,
    %c0_56 = arith.constant 0 : index
    %c7 = arith.constant 7 : index
    %c0_57 = arith.constant 0 : index
    %56 = vector.load %arg1[%c0_56, %c7, %c0_57] : memref<16x8x256xf32, #tpu.memory_space<vmem>>, vector<16x1x256xf32>
    %57 = vector.shape_cast %56 : vector<16x1x256xf32> to vector<16x256xf32>
    %c0_58 = arith.constant 0 : index
    %c0_59 = arith.constant 0 : index
    %58 = vector.load %arg2[%c0_58, %c0_59] : memref<256x512xf32, #tpu.memory_space<vmem>>, vector<256x512xf32>
    %cst_60 = arith.constant dense<0.000000e+00> : vector<16x512xf32>
    %59 = tpu.matmul %57, %58, %cst_60 {dimension_numbers = #tpu.dot_dimension_numbers<[1], [0], [0], [1], [0, 0, 1, 1], [], []>} : vector<16x256xf32>, vector<256x512xf32>, vector<16x512xf32> -> vector<16x512xf32>
    %c0_61 = arith.constant 0 : index
    %c0_62 = arith.constant 0 : index
    %60 = vector.load %arg4[%c0_61, %c0_62] : memref<1x512xf32, #tpu.memory_space<vmem>>, vector<1x512xf32>
    %61 = vector.broadcast %60 : vector<1x512xf32> to vector<16x512xf32>
    %62 = arith.addf %59, %61 : vector<16x512xf32>
    %c112 = arith.constant 112 : index
    %c0_63 = arith.constant 0 : index
    %63 = vector.load %arg8[%c112, %c0_63] : memref<128x512xf32, #tpu.memory_space<vmem>>, vector<16x512xf32>
    tpu.vector_store %arg8[%c112, %c0_63], %62 {strides = array<i32>} : memref<128x512xf32, #tpu.memory_space<vmem>>, vector<16x512xf32>,
    %cst_64 = arith.constant 0.000000e+00 : f32
    %64 = vector.broadcast %cst_64 : f32 to vector<16x128xf32>
    %cst_65 = arith.constant 0.000000e+00 : f32
    %65 = vector.broadcast %cst_65 : f32 to vector<16x128xf32>
    %c0_66 = arith.constant 0 : index
    %c0_67 = arith.constant 0 : index
    %66 = vector.load %arg8[%c0_66, %c0_67] : memref<128x512xf32, #tpu.memory_space<vmem>>, vector<16x512xf32>
    %c0_68 = arith.constant 0 : index
    %c0_69 = arith.constant 0 : index
    %67 = vector.load %arg3[%c0_68, %c0_69] : memref<128x512xf32, #tpu.memory_space<vmem>>, vector<128x512xf32>
    %cst_70 = arith.constant dense<0.000000e+00> : vector<16x512xf32>
    %68 = tpu.matmul %64, %67, %cst_70 {dimension_numbers = #tpu.dot_dimension_numbers<[1], [0], [0], [1], [0, 0, 1, 1], [], []>} : vector<16x128xf32>, vector<128x512xf32>, vector<16x512xf32> -> vector<16x512xf32>
    %69 = arith.addf %66, %68 : vector<16x512xf32>
    %70 = vector.extract_strided_slice %69 {offsets = [0, 0], sizes = [16, 384], strides = [1, 1]} : vector<16x512xf32> to vector<16x384xf32>
    %71 = arith.negf %70 : vector<16x384xf32>
    %72 = math.exp %71 : vector<16x384xf32>
    %cst_71 = arith.constant 1.000000e+00 : f32
    %73 = vector.broadcast %cst_71 : f32 to vector<16x384xf32>
    %74 = arith.addf %73, %72 : vector<16x384xf32>
    %75 = arith.divf %73, %74 : vector<16x384xf32>
    %76 = vector.extract_strided_slice %69 {offsets = [0, 384], sizes = [16, 128], strides = [1, 1]} : vector<16x512xf32> to vector<16x128xf32>
    %77 = math.tanh %76 : vector<16x128xf32>
    %78 = vector.extract_strided_slice %75 {offsets = [0, 0], sizes = [16, 128], strides = [1, 1]} : vector<16x384xf32> to vector<16x128xf32>
    %79 = vector.extract_strided_slice %75 {offsets = [0, 128], sizes = [16, 128], strides = [1, 1]} : vector<16x384xf32> to vector<16x128xf32>
    %80 = vector.extract_strided_slice %75 {offsets = [0, 256], sizes = [16, 128], strides = [1, 1]} : vector<16x384xf32> to vector<16x128xf32>
    %81 = arith.mulf %79, %65 : vector<16x128xf32>
    %82 = arith.mulf %78, %77 : vector<16x128xf32>
    %83 = arith.addf %81, %82 : vector<16x128xf32>
    %84 = math.tanh %83 : vector<16x128xf32>
    %85 = arith.mulf %80, %84 : vector<16x128xf32>
    %c16_72 = arith.constant 16 : index
    %c0_73 = arith.constant 0 : index
    %86 = vector.load %arg8[%c16_72, %c0_73] : memref<128x512xf32, #tpu.memory_space<vmem>>, vector<16x512xf32>
    %c0_74 = arith.constant 0 : index
    %c0_75 = arith.constant 0 : index
    %87 = vector.load %arg3[%c0_74, %c0_75] : memref<128x512xf32, #tpu.memory_space<vmem>>, vector<128x512xf32>
    %cst_76 = arith.constant dense<0.000000e+00> : vector<16x512xf32>
    %88 = tpu.matmul %85, %87, %cst_76 {dimension_numbers = #tpu.dot_dimension_numbers<[1], [0], [0], [1], [0, 0, 1, 1], [], []>} : vector<16x128xf32>, vector<128x512xf32>, vector<16x512xf32> -> vector<16x512xf32>
    %89 = arith.addf %86, %88 : vector<16x512xf32>
    %90 = vector.extract_strided_slice %89 {offsets = [0, 0], sizes = [16, 384], strides = [1, 1]} : vector<16x512xf32> to vector<16x384xf32>
    %91 = arith.negf %90 : vector<16x384xf32>
    %92 = math.exp %91 : vector<16x384xf32>
    %cst_77 = arith.constant 1.000000e+00 : f32
    %93 = vector.broadcast %cst_77 : f32 to vector<16x384xf32>
    %94 = arith.addf %93, %92 : vector<16x384xf32>
    %95 = arith.divf %93, %94 : vector<16x384xf32>
    %96 = vector.extract_strided_slice %89 {offsets = [0, 384], sizes = [16, 128], strides = [1, 1]} : vector<16x512xf32> to vector<16x128xf32>
    %97 = math.tanh %96 : vector<16x128xf32>
    %98 = vector.extract_strided_slice %95 {offsets = [0, 0], sizes = [16, 128], strides = [1, 1]} : vector<16x384xf32> to vector<16x128xf32>
    %99 = vector.extract_strided_slice %95 {offsets = [0, 128], sizes = [16, 128], strides = [1, 1]} : vector<16x384xf32> to vector<16x128xf32>
    %100 = vector.extract_strided_slice %95 {offsets = [0, 256], sizes = [16, 128], strides = [1, 1]} : vector<16x384xf32> to vector<16x128xf32>
    %101 = arith.mulf %99, %83 : vector<16x128xf32>
    %102 = arith.mulf %98, %97 : vector<16x128xf32>
    %103 = arith.addf %101, %102 : vector<16x128xf32>
    %104 = math.tanh %103 : vector<16x128xf32>
    %105 = arith.mulf %100, %104 : vector<16x128xf32>
    %c32_78 = arith.constant 32 : index
    %c0_79 = arith.constant 0 : index
    %106 = vector.load %arg8[%c32_78, %c0_79] : memref<128x512xf32, #tpu.memory_space<vmem>>, vector<16x512xf32>
    %c0_80 = arith.constant 0 : index
    %c0_81 = arith.constant 0 : index
    %107 = vector.load %arg3[%c0_80, %c0_81] : memref<128x512xf32, #tpu.memory_space<vmem>>, vector<128x512xf32>
    %cst_82 = arith.constant dense<0.000000e+00> : vector<16x512xf32>
    %108 = tpu.matmul %105, %107, %cst_82 {dimension_numbers = #tpu.dot_dimension_numbers<[1], [0], [0], [1], [0, 0, 1, 1], [], []>} : vector<16x128xf32>, vector<128x512xf32>, vector<16x512xf32> -> vector<16x512xf32>
    %109 = arith.addf %106, %108 : vector<16x512xf32>
    %110 = vector.extract_strided_slice %109 {offsets = [0, 0], sizes = [16, 384], strides = [1, 1]} : vector<16x512xf32> to vector<16x384xf32>
    %111 = arith.negf %110 : vector<16x384xf32>
    %112 = math.exp %111 : vector<16x384xf32>
    %cst_83 = arith.constant 1.000000e+00 : f32
    %113 = vector.broadcast %cst_83 : f32 to vector<16x384xf32>
    %114 = arith.addf %113, %112 : vector<16x384xf32>
    %115 = arith.divf %113, %114 : vector<16x384xf32>
    %116 = vector.extract_strided_slice %109 {offsets = [0, 384], sizes = [16, 128], strides = [1, 1]} : vector<16x512xf32> to vector<16x128xf32>
    %117 = math.tanh %116 : vector<16x128xf32>
    %118 = vector.extract_strided_slice %115 {offsets = [0, 0], sizes = [16, 128], strides = [1, 1]} : vector<16x384xf32> to vector<16x128xf32>
    %119 = vector.extract_strided_slice %115 {offsets = [0, 128], sizes = [16, 128], strides = [1, 1]} : vector<16x384xf32> to vector<16x128xf32>
    %120 = vector.extract_strided_slice %115 {offsets = [0, 256], sizes = [16, 128], strides = [1, 1]} : vector<16x384xf32> to vector<16x128xf32>
    %121 = arith.mulf %119, %103 : vector<16x128xf32>
    %122 = arith.mulf %118, %117 : vector<16x128xf32>
    %123 = arith.addf %121, %122 : vector<16x128xf32>
    %124 = math.tanh %123 : vector<16x128xf32>
    %125 = arith.mulf %120, %124 : vector<16x128xf32>
    %c48_84 = arith.constant 48 : index
    %c0_85 = arith.constant 0 : index
    %126 = vector.load %arg8[%c48_84, %c0_85] : memref<128x512xf32, #tpu.memory_space<vmem>>, vector<16x512xf32>
    %c0_86 = arith.constant 0 : index
    %c0_87 = arith.constant 0 : index
    %127 = vector.load %arg3[%c0_86, %c0_87] : memref<128x512xf32, #tpu.memory_space<vmem>>, vector<128x512xf32>
    %cst_88 = arith.constant dense<0.000000e+00> : vector<16x512xf32>
    %128 = tpu.matmul %125, %127, %cst_88 {dimension_numbers = #tpu.dot_dimension_numbers<[1], [0], [0], [1], [0, 0, 1, 1], [], []>} : vector<16x128xf32>, vector<128x512xf32>, vector<16x512xf32> -> vector<16x512xf32>
    %129 = arith.addf %126, %128 : vector<16x512xf32>
    %130 = vector.extract_strided_slice %129 {offsets = [0, 0], sizes = [16, 384], strides = [1, 1]} : vector<16x512xf32> to vector<16x384xf32>
    %131 = arith.negf %130 : vector<16x384xf32>
    %132 = math.exp %131 : vector<16x384xf32>
    %cst_89 = arith.constant 1.000000e+00 : f32
    %133 = vector.broadcast %cst_89 : f32 to vector<16x384xf32>
    %134 = arith.addf %133, %132 : vector<16x384xf32>
    %135 = arith.divf %133, %134 : vector<16x384xf32>
    %136 = vector.extract_strided_slice %129 {offsets = [0, 384], sizes = [16, 128], strides = [1, 1]} : vector<16x512xf32> to vector<16x128xf32>
    %137 = math.tanh %136 : vector<16x128xf32>
    %138 = vector.extract_strided_slice %135 {offsets = [0, 0], sizes = [16, 128], strides = [1, 1]} : vector<16x384xf32> to vector<16x128xf32>
    %139 = vector.extract_strided_slice %135 {offsets = [0, 128], sizes = [16, 128], strides = [1, 1]} : vector<16x384xf32> to vector<16x128xf32>
    %140 = vector.extract_strided_slice %135 {offsets = [0, 256], sizes = [16, 128], strides = [1, 1]} : vector<16x384xf32> to vector<16x128xf32>
    %141 = arith.mulf %139, %123 : vector<16x128xf32>
    %142 = arith.mulf %138, %137 : vector<16x128xf32>
    %143 = arith.addf %141, %142 : vector<16x128xf32>
    %144 = math.tanh %143 : vector<16x128xf32>
    %145 = arith.mulf %140, %144 : vector<16x128xf32>
    %c64_90 = arith.constant 64 : index
    %c0_91 = arith.constant 0 : index
    %146 = vector.load %arg8[%c64_90, %c0_91] : memref<128x512xf32, #tpu.memory_space<vmem>>, vector<16x512xf32>
    %c0_92 = arith.constant 0 : index
    %c0_93 = arith.constant 0 : index
    %147 = vector.load %arg3[%c0_92, %c0_93] : memref<128x512xf32, #tpu.memory_space<vmem>>, vector<128x512xf32>
    %cst_94 = arith.constant dense<0.000000e+00> : vector<16x512xf32>
    %148 = tpu.matmul %145, %147, %cst_94 {dimension_numbers = #tpu.dot_dimension_numbers<[1], [0], [0], [1], [0, 0, 1, 1], [], []>} : vector<16x128xf32>, vector<128x512xf32>, vector<16x512xf32> -> vector<16x512xf32>
    %149 = arith.addf %146, %148 : vector<16x512xf32>
    %150 = vector.extract_strided_slice %149 {offsets = [0, 0], sizes = [16, 384], strides = [1, 1]} : vector<16x512xf32> to vector<16x384xf32>
    %151 = arith.negf %150 : vector<16x384xf32>
    %152 = math.exp %151 : vector<16x384xf32>
    %cst_95 = arith.constant 1.000000e+00 : f32
    %153 = vector.broadcast %cst_95 : f32 to vector<16x384xf32>
    %154 = arith.addf %153, %152 : vector<16x384xf32>
    %155 = arith.divf %153, %154 : vector<16x384xf32>
    %156 = vector.extract_strided_slice %149 {offsets = [0, 384], sizes = [16, 128], strides = [1, 1]} : vector<16x512xf32> to vector<16x128xf32>
    %157 = math.tanh %156 : vector<16x128xf32>
    %158 = vector.extract_strided_slice %155 {offsets = [0, 0], sizes = [16, 128], strides = [1, 1]} : vector<16x384xf32> to vector<16x128xf32>
    %159 = vector.extract_strided_slice %155 {offsets = [0, 128], sizes = [16, 128], strides = [1, 1]} : vector<16x384xf32> to vector<16x128xf32>
    %160 = vector.extract_strided_slice %155 {offsets = [0, 256], sizes = [16, 128], strides = [1, 1]} : vector<16x384xf32> to vector<16x128xf32>
    %161 = arith.mulf %159, %143 : vector<16x128xf32>
    %162 = arith.mulf %158, %157 : vector<16x128xf32>
    %163 = arith.addf %161, %162 : vector<16x128xf32>
    %164 = math.tanh %163 : vector<16x128xf32>
    %165 = arith.mulf %160, %164 : vector<16x128xf32>
    %c80_96 = arith.constant 80 : index
    %c0_97 = arith.constant 0 : index
    %166 = vector.load %arg8[%c80_96, %c0_97] : memref<128x512xf32, #tpu.memory_space<vmem>>, vector<16x512xf32>
    %c0_98 = arith.constant 0 : index
    %c0_99 = arith.constant 0 : index
    %167 = vector.load %arg3[%c0_98, %c0_99] : memref<128x512xf32, #tpu.memory_space<vmem>>, vector<128x512xf32>
    %cst_100 = arith.constant dense<0.000000e+00> : vector<16x512xf32>
    %168 = tpu.matmul %165, %167, %cst_100 {dimension_numbers = #tpu.dot_dimension_numbers<[1], [0], [0], [1], [0, 0, 1, 1], [], []>} : vector<16x128xf32>, vector<128x512xf32>, vector<16x512xf32> -> vector<16x512xf32>
    %169 = arith.addf %166, %168 : vector<16x512xf32>
    %170 = vector.extract_strided_slice %169 {offsets = [0, 0], sizes = [16, 384], strides = [1, 1]} : vector<16x512xf32> to vector<16x384xf32>
    %171 = arith.negf %170 : vector<16x384xf32>
    %172 = math.exp %171 : vector<16x384xf32>
    %cst_101 = arith.constant 1.000000e+00 : f32
    %173 = vector.broadcast %cst_101 : f32 to vector<16x384xf32>
    %174 = arith.addf %173, %172 : vector<16x384xf32>
    %175 = arith.divf %173, %174 : vector<16x384xf32>
    %176 = vector.extract_strided_slice %169 {offsets = [0, 384], sizes = [16, 128], strides = [1, 1]} : vector<16x512xf32> to vector<16x128xf32>
    %177 = math.tanh %176 : vector<16x128xf32>
    %178 = vector.extract_strided_slice %175 {offsets = [0, 0], sizes = [16, 128], strides = [1, 1]} : vector<16x384xf32> to vector<16x128xf32>
    %179 = vector.extract_strided_slice %175 {offsets = [0, 128], sizes = [16, 128], strides = [1, 1]} : vector<16x384xf32> to vector<16x128xf32>
    %180 = vector.extract_strided_slice %175 {offsets = [0, 256], sizes = [16, 128], strides = [1, 1]} : vector<16x384xf32> to vector<16x128xf32>
    %181 = arith.mulf %179, %163 : vector<16x128xf32>
    %182 = arith.mulf %178, %177 : vector<16x128xf32>
    %183 = arith.addf %181, %182 : vector<16x128xf32>
    %184 = math.tanh %183 : vector<16x128xf32>
    %185 = arith.mulf %180, %184 : vector<16x128xf32>
    %c96_102 = arith.constant 96 : index
    %c0_103 = arith.constant 0 : index
    %186 = vector.load %arg8[%c96_102, %c0_103] : memref<128x512xf32, #tpu.memory_space<vmem>>, vector<16x512xf32>
    %c0_104 = arith.constant 0 : index
    %c0_105 = arith.constant 0 : index
    %187 = vector.load %arg3[%c0_104, %c0_105] : memref<128x512xf32, #tpu.memory_space<vmem>>, vector<128x512xf32>
    %cst_106 = arith.constant dense<0.000000e+00> : vector<16x512xf32>
    %188 = tpu.matmul %185, %187, %cst_106 {dimension_numbers = #tpu.dot_dimension_numbers<[1], [0], [0], [1], [0, 0, 1, 1], [], []>} : vector<16x128xf32>, vector<128x512xf32>, vector<16x512xf32> -> vector<16x512xf32>
    %189 = arith.addf %186, %188 : vector<16x512xf32>
    %190 = vector.extract_strided_slice %189 {offsets = [0, 0], sizes = [16, 384], strides = [1, 1]} : vector<16x512xf32> to vector<16x384xf32>
    %191 = arith.negf %190 : vector<16x384xf32>
    %192 = math.exp %191 : vector<16x384xf32>
    %cst_107 = arith.constant 1.000000e+00 : f32
    %193 = vector.broadcast %cst_107 : f32 to vector<16x384xf32>
    %194 = arith.addf %193, %192 : vector<16x384xf32>
    %195 = arith.divf %193, %194 : vector<16x384xf32>
    %196 = vector.extract_strided_slice %189 {offsets = [0, 384], sizes = [16, 128], strides = [1, 1]} : vector<16x512xf32> to vector<16x128xf32>
    %197 = math.tanh %196 : vector<16x128xf32>
    %198 = vector.extract_strided_slice %195 {offsets = [0, 0], sizes = [16, 128], strides = [1, 1]} : vector<16x384xf32> to vector<16x128xf32>
    %199 = vector.extract_strided_slice %195 {offsets = [0, 128], sizes = [16, 128], strides = [1, 1]} : vector<16x384xf32> to vector<16x128xf32>
    %200 = vector.extract_strided_slice %195 {offsets = [0, 256], sizes = [16, 128], strides = [1, 1]} : vector<16x384xf32> to vector<16x128xf32>
    %201 = arith.mulf %199, %183 : vector<16x128xf32>
    %202 = arith.mulf %198, %197 : vector<16x128xf32>
    %203 = arith.addf %201, %202 : vector<16x128xf32>
    %204 = math.tanh %203 : vector<16x128xf32>
    %205 = arith.mulf %200, %204 : vector<16x128xf32>
    %c112_108 = arith.constant 112 : index
    %c0_109 = arith.constant 0 : index
    %206 = vector.load %arg8[%c112_108, %c0_109] : memref<128x512xf32, #tpu.memory_space<vmem>>, vector<16x512xf32>
    %c0_110 = arith.constant 0 : index
    %c0_111 = arith.constant 0 : index
    %207 = vector.load %arg3[%c0_110, %c0_111] : memref<128x512xf32, #tpu.memory_space<vmem>>, vector<128x512xf32>
    %cst_112 = arith.constant dense<0.000000e+00> : vector<16x512xf32>
    %208 = tpu.matmul %205, %207, %cst_112 {dimension_numbers = #tpu.dot_dimension_numbers<[1], [0], [0], [1], [0, 0, 1, 1], [], []>} : vector<16x128xf32>, vector<128x512xf32>, vector<16x512xf32> -> vector<16x512xf32>
    %209 = arith.addf %206, %208 : vector<16x512xf32>
    %210 = vector.extract_strided_slice %209 {offsets = [0, 0], sizes = [16, 384], strides = [1, 1]} : vector<16x512xf32> to vector<16x384xf32>
    %211 = arith.negf %210 : vector<16x384xf32>
    %212 = math.exp %211 : vector<16x384xf32>
    %cst_113 = arith.constant 1.000000e+00 : f32
    %213 = vector.broadcast %cst_113 : f32 to vector<16x384xf32>
    %214 = arith.addf %213, %212 : vector<16x384xf32>
    %215 = arith.divf %213, %214 : vector<16x384xf32>
    %216 = vector.extract_strided_slice %209 {offsets = [0, 384], sizes = [16, 128], strides = [1, 1]} : vector<16x512xf32> to vector<16x128xf32>
    %217 = math.tanh %216 : vector<16x128xf32>
    %218 = vector.extract_strided_slice %215 {offsets = [0, 0], sizes = [16, 128], strides = [1, 1]} : vector<16x384xf32> to vector<16x128xf32>
    %219 = vector.extract_strided_slice %215 {offsets = [0, 128], sizes = [16, 128], strides = [1, 1]} : vector<16x384xf32> to vector<16x128xf32>
    %220 = vector.extract_strided_slice %215 {offsets = [0, 256], sizes = [16, 128], strides = [1, 1]} : vector<16x384xf32> to vector<16x128xf32>
    %221 = arith.mulf %219, %203 : vector<16x128xf32>
    %222 = arith.mulf %218, %217 : vector<16x128xf32>
    %223 = arith.addf %221, %222 : vector<16x128xf32>
    %224 = math.tanh %223 : vector<16x128xf32>
    %225 = arith.mulf %220, %224 : vector<16x128xf32>
    %c0_114 = arith.constant 0 : index
    %c0_115 = arith.constant 0 : index
    %226 = vector.load %arg5[%c0_114, %c0_115] : memref<128x128xf32, #tpu.memory_space<vmem>>, vector<128x128xf32>
    %cst_116 = arith.constant dense<0.000000e+00> : vector<16x128xf32>
    %227 = tpu.matmul %225, %226, %cst_116 {dimension_numbers = #tpu.dot_dimension_numbers<[1], [0], [0], [1], [0, 0, 1, 1], [], []>} : vector<16x128xf32>, vector<128x128xf32>, vector<16x128xf32> -> vector<16x128xf32>
    %c0_117 = arith.constant 0 : index
    %c0_118 = arith.constant 0 : index
    %228 = vector.load %arg6[%c0_117, %c0_118] : memref<1x128xf32, #tpu.memory_space<vmem>>, vector<1x128xf32>
    %229 = vector.broadcast %228 : vector<1x128xf32> to vector<16x128xf32>
    %230 = arith.addf %227, %229 : vector<16x128xf32>
    %c0_119 = arith.constant 0 : index
    %c0_120 = arith.constant 0 : index
    %231 = vector.load %arg7[%c0_119, %c0_120] : memref<16x128xf32, #tpu.memory_space<vmem>>, vector<16x128xf32>
    tpu.vector_store %arg7[%c0_119, %c0_120], %230 {strides = array<i32>} : memref<16x128xf32, #tpu.memory_space<vmem>>, vector<16x128xf32>,
    return
  }
  func.func @transform_0(%arg0: i32) -> (i32, i32, i32) {
    %c0_i32 = arith.constant 0 : i32
    %c0_i32_0 = arith.constant 0 : i32
    %c0_i32_1 = arith.constant 0 : i32
    return %arg0, %c0_i32, %c0_i32_0 : i32, i32, i32
  }
  func.func @transform_1(%arg0: i32) -> (i32, i32) {
    %c0_i32 = arith.constant 0 : i32
    %c0_i32_0 = arith.constant 0 : i32
    %c0_i32_1 = arith.constant 0 : i32
    return %c0_i32, %c0_i32_0 : i32, i32
  }
  func.func @transform_2(%arg0: i32) -> (i32, i32) {
    %c0_i32 = arith.constant 0 : i32
    %c0_i32_0 = arith.constant 0 : i32
    %c0_i32_1 = arith.constant 0 : i32
    return %c0_i32, %c0_i32_0 : i32, i32
  }
  func.func @transform_3(%arg0: i32) -> (i32, i32) {
    %c0_i32 = arith.constant 0 : i32
    %c0_i32_0 = arith.constant 0 : i32
    %c0_i32_1 = arith.constant 0 : i32
    return %c0_i32, %c0_i32_0 : i32, i32
  }
  func.func @transform_4(%arg0: i32) -> (i32, i32) {
    %c0_i32 = arith.constant 0 : i32
    %c0_i32_0 = arith.constant 0 : i32
    %c0_i32_1 = arith.constant 0 : i32
    return %c0_i32, %c0_i32_0 : i32, i32
  }
  func.func @transform_5(%arg0: i32) -> (i32, i32) {
    %c0_i32 = arith.constant 0 : i32
    %c0_i32_0 = arith.constant 0 : i32
    %c0_i32_1 = arith.constant 0 : i32
    return %c0_i32, %c0_i32_0 : i32, i32
  }
  func.func @transform_6(%arg0: i32) -> (i32, i32) {
    %c0_i32 = arith.constant 0 : i32
    %c0_i32_0 = arith.constant 0 : i32
    return %arg0, %c0_i32 : i32, i32
  }
}

</mosaic_0001>

<bundles_post_ra>
// kernel: baseline_lstm_forward_batch.1
= control target key start
LH: loop header
LB: loop body
LE: loop exit
PB: predicated region body
PF: predicated region fallthrough
CT: control target
= control target key end

     0   :  { %11 = vsyncpa [#allocation4], 0  ;;  %s9830_s0 = inlined_call_operand.hbm [shape: f32[16,8,256], index: 0, kind: input, shape index: {}]   ;;  %s9831_s1 = inlined_call_operand.hbm [shape: f32[256,512], index: 1, kind: input, shape index: {}]   ;;  %s9832_s2 = inlined_call_operand.hbm [shape: f32[128,512], index: 2, kind: input, shape index: {}]   ;;  %s9833_s3 = inlined_call_operand.hbm [shape: f32[1,512], index: 3, kind: input, shape index: {}]   ;;  %s9834_s4 = inlined_call_operand.hbm [shape: f32[128,128], index: 4, kind: input, shape index: {}]   ;;  %s9835_s5 = inlined_call_operand.vmem [shape: f32[1,128], index: 5, kind: input, shape index: {}]   ;;  %s9836_s6 = inlined_call_operand.vmem [shape: f32[16,128], index: 6, kind: output, shape index: {}]  }
   0x1   :  { %12 = vsyncpa [#allocation6], 0  ;;  %s31_s23 = sshll.u32 %s9831_s1, 4  ;;  %s32_s23 = int_to_ptr.hbm [resolvable:$true] %s31_s23 }
   0x2   :  { %13 = vsyncpa [#allocation9], 0  ;;  %s5945_s24 = smov [#allocation5]   ;;  %s58_s28 = sshll.u32 %s9833_s3, 4  ;;  %s59_s28 = int_to_ptr.hbm [resolvable:$true] %s58_s28 }
   0x3   :  { %s33_s25 = sshll.u32 %s5945_s24, 4  ;;  %s5946_s29 = smov 512   ;;  %s34_s25 = int_to_ptr.vmem [resolvable:$true] %s33_s25 }
   0x4   :  { %s5947_s30 = smov 32   ;;  %s5948_s7 = smov [#allocation8]  }
   0x5   :  { %39 = dma.hbm_to_vmem [thread:$0]  %s32_s23, 16384, %s34_s25, [#allocation6], %s5946_s29, %s5946_s29, %s5947_s30  }
   0x6   :  { %s60_s8 = sshll.u32 %s5948_s7, 4  ;;  %s18_s11 = sshll.u32 %s9830_s0, 4  ;;  %s61_s8 = int_to_ptr.vmem [resolvable:$true] %s60_s8  ;;  %s19_s11 = int_to_ptr.hbm [resolvable:$true] %s18_s11 }
   0x7   :  { %63 = dma.hbm_to_vmem [thread:$0]  %s59_s28, 64, %s61_s8, [#allocation9]  }
   0x8   :  { %s5949_s1 = smov [#allocation3]   ;;  %s44_s3 = sshll.u32 %s9832_s2, 4  ;;  %s45_s3 = int_to_ptr.hbm [resolvable:$true] %s44_s3 }
   0x9   :  { %s20_s12 = sshll.u32 %s5949_s1, 4  ;;  %s5950_s15 = smov 256   ;;  %s21_s12 = int_to_ptr.vmem [resolvable:$true] %s20_s12 }
   0xa   :  { %s5951_s16 = smov 16   ;;  %s5952_s17 = smov [#allocation7]  }
   0xb   :  { %26 = dma.hbm_to_vmem [thread:$0]  %s19_s11, 4096, %s21_s12, [#allocation4], %s5950_s15, %s5950_s15, %s5951_s16  }
   0xc   :  { %s46_s18 = sshll.u32 %s5952_s17, 4  ;;  %s68_s0 = sshll.u32 %s9834_s4, 4  ;;  %s47_s18 = int_to_ptr.vmem [resolvable:$true] %s46_s18  ;;  %s69_s0 = int_to_ptr.hbm [resolvable:$true] %s68_s0 }
   0xd   :  { %52 = dma.hbm_to_vmem [thread:$0]  %s45_s3, 8192, %s47_s18, [#allocation6], %s5946_s29, %s5946_s29, %s5947_s30  }
   0xe   :  { %s5953_s21 = smov [#allocation10]   ;;  %s5954_s23 = smov 128  }
   0xf   :  { %s70_s22 = sshll.u32 %s5953_s21, 4  ;;  %s5955_s24 = smov 8   ;;  %s71_s22 = int_to_ptr.vmem [resolvable:$true] %s70_s22 }
  0x10   :  { %76 = dma.hbm_to_vmem [thread:$0]  %s69_s0, 2048, %s71_s22, [#allocation9], %s5954_s23, %s5954_s23, %s5955_s24  }
  0x11   :  { %5939 = dma.done.wait [#allocation4], 4096  }
  0x12   :  { %5940 = vsyncadd [#allocation4], 4294963200 }
  0x13   :  { %5941 = dma.done.wait [#allocation6], 24576  }
  0x14   :  { %5942 = vsyncadd [#allocation6], 4294942720 }
  0x15   :  { %5943 = dma.done.wait [#allocation9], 2112  }
  0x16   :  { %5944 = vsyncadd [#allocation9], 4294965184  ;;  %v6007_v0 = vld [vmem:[#allocation5 + $0x1e0] sm:$0xff]  ;;  %v6011_v2 = vld [vmem:[#allocation5 + $0x1e8] sm:$0xff] }
  0x17   :  { %v6009_v1 = vld [vmem:[#allocation5 + $0x3e0] sm:$0xff]  ;;  %315 = vmatpush.msra.mxu0 %v6007_v0  ;;  %v6015_v3 = vld [vmem:[#allocation5 + $0x3e8] sm:$0xff]  ;;  %361 = vmatpush.msra.mxu2 %v6011_v2 }
  0x18   :  { %338 = vmatpush.msra.mxu1 %v6009_v1  ;;  %v6017_v4 = vld [vmem:[#allocation5 + $0x1c0] sm:$0xff]  ;;  %384 = vmatpush.msra.mxu3 %v6015_v3  ;;  %v6023_v6 = vld [vmem:[#allocation5 + $0x1c8] sm:$0xff] }
  0x19   :  { %v6019_v5 = vld [vmem:[#allocation5 + $0x3c0] sm:$0xff]  ;;  %v6025_v7 = vld [vmem:[#allocation5 + $0x3c8] sm:$0xff]  ;;  %316 = vmatpush.msra.mxu0 %v6017_v4  ;;  %362 = vmatpush.msra.mxu2 %v6023_v6 }
  0x1a   :  { %v6027_v8 = vld [vmem:[#allocation5 + $0x1a0] sm:$0xff]  ;;  %339 = vmatpush.msra.mxu1 %v6019_v5  ;;  %v6033_v10 = vld [vmem:[#allocation5 + $0x1a8] sm:$0xff]  ;;  %385 = vmatpush.msra.mxu3 %v6025_v7 }
  0x1b   :  { %v6031_v9 = vld [vmem:[#allocation5 + $0x3a0] sm:$0xff]  ;;  %v6035_v11 = vld [vmem:[#allocation5 + $0x3a8] sm:$0xff]  ;;  %317 = vmatpush.msra.mxu0 %v6027_v8  ;;  %363 = vmatpush.msra.mxu2 %v6033_v10 }
  0x1c   :  { %v6039_v12 = vld [vmem:[#allocation5 + $0x180] sm:$0xff]  ;;  %340 = vmatpush.msra.mxu1 %v6031_v9  ;;  %v6045_v14 = vld [vmem:[#allocation5 + $0x188] sm:$0xff]  ;;  %386 = vmatpush.msra.mxu3 %v6035_v11 }
  0x1d   :  { %v6041_v13 = vld [vmem:[#allocation5 + $0x380] sm:$0xff]  ;;  %v6047_v15 = vld [vmem:[#allocation5 + $0x388] sm:$0xff]  ;;  %318 = vmatpush.msra.mxu0 %v6039_v12  ;;  %364 = vmatpush.msra.mxu2 %v6045_v14 }
  0x1e   :  { %v6051_v16 = vld [vmem:[#allocation5 + $0x160] sm:$0xff]  ;;  %341 = vmatpush.msra.mxu1 %v6041_v13  ;;  %v6057_v18 = vld [vmem:[#allocation5 + $0x168] sm:$0xff]  ;;  %387 = vmatpush.msra.mxu3 %v6047_v15 }
  0x1f   :  { %v6053_v17 = vld [vmem:[#allocation5 + $0x360] sm:$0xff]  ;;  %v6059_v19 = vld [vmem:[#allocation5 + $0x368] sm:$0xff]  ;;  %319 = vmatpush.msra.mxu0 %v6051_v16  ;;  %365 = vmatpush.msra.mxu2 %v6057_v18 }
  0x20   :  { %v6063_v20 = vld [vmem:[#allocation5 + $0x140] sm:$0xff]  ;;  %342 = vmatpush.msra.mxu1 %v6053_v17  ;;  %v6069_v22 = vld [vmem:[#allocation5 + $0x148] sm:$0xff]  ;;  %388 = vmatpush.msra.mxu3 %v6059_v19 }
  0x21   :  { %v6065_v21 = vld [vmem:[#allocation5 + $0x340] sm:$0xff]  ;;  %v6071_v23 = vld [vmem:[#allocation5 + $0x348] sm:$0xff]  ;;  %320 = vmatpush.msra.mxu0 %v6063_v20  ;;  %366 = vmatpush.msra.mxu2 %v6069_v22 }
  0x22   :  { %v6075_v24 = vld [vmem:[#allocation5 + $0x120] sm:$0xff]  ;;  %343 = vmatpush.msra.mxu1 %v6065_v21  ;;  %v6081_v26 = vld [vmem:[#allocation5 + $0x128] sm:$0xff]  ;;  %389 = vmatpush.msra.mxu3 %v6071_v23 }
  0x23   :  { %v6077_v25 = vld [vmem:[#allocation5 + $0x320] sm:$0xff]  ;;  %v6083_v27 = vld [vmem:[#allocation5 + $0x328] sm:$0xff]  ;;  %321 = vmatpush.msra.mxu0 %v6075_v24  ;;  %367 = vmatpush.msra.mxu2 %v6081_v26 }
  0x24   :  { %v6087_v28 = vld [vmem:[#allocation5 + $0x100] sm:$0xff]  ;;  %344 = vmatpush.msra.mxu1 %v6077_v25  ;;  %v6093_v30 = vld [vmem:[#allocation5 + $0x108] sm:$0xff]  ;;  %390 = vmatpush.msra.mxu3 %v6083_v27 }
  0x25   :  { %v6089_v29 = vld [vmem:[#allocation5 + $0x300] sm:$0xff]  ;;  %v6095_v31 = vld [vmem:[#allocation5 + $0x308] sm:$0xff]  ;;  %322 = vmatpush.msra.mxu0 %v6087_v28  ;;  %368 = vmatpush.msra.mxu2 %v6093_v30 }
  0x26   :  { %v6099_v32 = vld [vmem:[#allocation5 + $0xe0] sm:$0xff]  ;;  %345 = vmatpush.msra.mxu1 %v6089_v29  ;;  %v6105_v34 = vld [vmem:[#allocation5 + $0xe8] sm:$0xff]  ;;  %391 = vmatpush.msra.mxu3 %v6095_v31 }
  0x27   :  { %v6101_v33 = vld [vmem:[#allocation5 + $0x2e0] sm:$0xff]  ;;  %v6107_v35 = vld [vmem:[#allocation5 + $0x2e8] sm:$0xff]  ;;  %323 = vmatpush.msra.mxu0 %v6099_v32  ;;  %369 = vmatpush.msra.mxu2 %v6105_v34 }
  0x28   :  { %v6111_v36 = vld [vmem:[#allocation5 + $0xc0] sm:$0xff]  ;;  %346 = vmatpush.msra.mxu1 %v6101_v33  ;;  %v6117_v38 = vld [vmem:[#allocation5 + $0xc8] sm:$0xff]  ;;  %392 = vmatpush.msra.mxu3 %v6107_v35 }
  0x29   :  { %v6113_v37 = vld [vmem:[#allocation5 + $0x2c0] sm:$0xff]  ;;  %v6119_v39 = vld [vmem:[#allocation5 + $0x2c8] sm:$0xff]  ;;  %324 = vmatpush.msra.mxu0 %v6111_v36  ;;  %370 = vmatpush.msra.mxu2 %v6117_v38 }
  0x2a   :  { %v6123_v40 = vld [vmem:[#allocation5 + $0xa0] sm:$0xff]  ;;  %347 = vmatpush.msra.mxu1 %v6113_v37  ;;  %v6129_v42 = vld [vmem:[#allocation5 + $0xa8] sm:$0xff]  ;;  %393 = vmatpush.msra.mxu3 %v6119_v39 }
  0x2b   :  { %v6125_v41 = vld [vmem:[#allocation5 + $0x2a0] sm:$0xff]  ;;  %v6131_v43 = vld [vmem:[#allocation5 + $0x2a8] sm:$0xff]  ;;  %325 = vmatpush.msra.mxu0 %v6123_v40  ;;  %371 = vmatpush.msra.mxu2 %v6129_v42 }
  0x2c   :  { %v6135_v44 = vld [vmem:[#allocation5 + $0x80] sm:$0xff]  ;;  %348 = vmatpush.msra.mxu1 %v6125_v41  ;;  %v6141_v46 = vld [vmem:[#allocation5 + $0x88] sm:$0xff]  ;;  %394 = vmatpush.msra.mxu3 %v6131_v43 }
  0x2d   :  { %v6137_v45 = vld [vmem:[#allocation5 + $0x280] sm:$0xff]  ;;  %10202 = vst [vmem:[#allocation14_spill] sm:$0xff] %v6141_v46  ;;  %v6143_v47 = vld [vmem:[#allocation5 + $0x288] sm:$0xff]  ;;  %326 = vmatpush.msra.mxu0 %v6135_v44  ;;  %372 = vmatpush.msra.mxu2 %v6141_v46  ;;  %v105_v46 = vld [vmem:[#allocation3 + $0x30] ss:$8 sm:$0x3] }
  0x2e   :  { %10203 = vst [vmem:[#allocation15_spill] sm:$0xff] %v6143_v47  ;;  %v6147_v48 = vld [vmem:[#allocation5 + $0x60] sm:$0xff]  ;;  %349 = vmatpush.msra.mxu1 %v6137_v45  ;;  %v6153_v50 = vld [vmem:[#allocation5 + $0x68] sm:$0xff]  ;;  %395 = vmatpush.msra.mxu3 %v6143_v47 }
  0x2f   :  { %10204 = vst [vmem:[#allocation16_spill] sm:$0xff] %v6147_v48  ;;  %v6149_v49 = vld [vmem:[#allocation5 + $0x260] sm:$0xff]  ;;  %v6155_v51 = vld [vmem:[#allocation5 + $0x268] sm:$0xff]  ;;  %327 = vmatpush.msra.mxu0 %v6147_v48  ;;  %373 = vmatpush.msra.mxu2 %v6153_v50  ;;  %v101_v48 = vld [vmem:[#allocation3 + $0x10] ss:$8 sm:$0x3] }
  0x30   :  { %10205 = vst [vmem:[#allocation17_spill] sm:$0xff] %v6149_v49  ;;  %v6159_v52 = vld [vmem:[#allocation5 + $0x40] sm:$0xff]  ;;  %350 = vmatpush.msra.mxu1 %v6149_v49  ;;  %v6165_v54 = vld [vmem:[#allocation5 + $0x48] sm:$0xff]  ;;  %396 = vmatpush.msra.mxu3 %v6155_v51 }
  0x31   :  { %10206 = vst [vmem:[#allocation18_spill] sm:$0xff] %v6153_v50  ;;  %v6161_v53 = vld [vmem:[#allocation5 + $0x240] sm:$0xff]  ;;  %v6167_v55 = vld [vmem:[#allocation5 + $0x248] sm:$0xff]  ;;  %328 = vmatpush.msra.mxu0 %v6159_v52  ;;  %374 = vmatpush.msra.mxu2 %v6165_v54  ;;  %v6271_v50 = vld [vmem:[#allocation5 + $0x338] sm:$0xff] }
  0x32   :  { %10207 = vst [vmem:[#allocation19_spill] sm:$0xff] %v6155_v51  ;;  %v6171_v56 = vld [vmem:[#allocation5 + $0x20] sm:$0xff]  ;;  %351 = vmatpush.msra.mxu1 %v6161_v53  ;;  %v6177_v58 = vld [vmem:[#allocation5 + $0x28] sm:$0xff]  ;;  %397 = vmatpush.msra.mxu3 %v6167_v55  ;;  %v6263_v51 = vld [vmem:[#allocation5 + $0x130] sm:$0xff] }
  0x33   :  { %10208 = vst [vmem:[#allocation20_spill] sm:$0xff] %v6159_v52  ;;  %v6173_v57 = vld [vmem:[#allocation5 + $0x220] sm:$0xff]  ;;  %v6179_v59 = vld [vmem:[#allocation5 + $0x228] sm:$0xff]  ;;  %329 = vmatpush.msra.mxu0 %v6171_v56  ;;  %375 = vmatpush.msra.mxu2 %v6177_v58  ;;  %v6255_v52 = vld [vmem:[#allocation5 + $0x350] sm:$0xff] }
  0x34   :  { %10209 = vst [vmem:[#allocation21_spill] sm:$0xff] %v6161_v53  ;;  %v6183_v60 = vld [vmem:[#allocation5] sm:$0xff]  ;;  %352 = vmatpush.msra.mxu1 %v6173_v57  ;;  %v6189_v62 = vld [vmem:[#allocation5 + $0x8] sm:$0xff]  ;;  %398 = vmatpush.msra.mxu3 %v6179_v59  ;;  %v6195_v53 = vld [vmem:[#allocation5 + $0x1f0] sm:$0xff] }
  0x35   :  { %10210 = vst [vmem:[#allocation22_spill] sm:$0xff] %v6165_v54  ;;  %v6185_v61 = vld [vmem:[#allocation5 + $0x200] sm:$0xff]  ;;  %v6191_v63 = vld [vmem:[#allocation5 + $0x208] sm:$0xff]  ;;  %v6197_v54 = vld [vmem:[#allocation5 + $0x3f0] sm:$0xff]  ;;  %330 = vmatpush.msra.mxu0 %v6183_v60  ;;  %376 = vmatpush.msra.mxu2 %v6189_v62 }
  0x36   :  { %10211 = vst [vmem:[#allocation23_spill] sm:$0xff] %v6167_v55  ;;  %353 = vmatpush.msra.mxu1 %v6185_v61  ;;  %v6201_v55 = vld [vmem:[#allocation5 + $0x1f8] sm:$0xff]  ;;  %399 = vmatpush.msra.mxu3 %v6191_v63  ;;  %v99_v49 = vld [vmem:[#allocation3] ss:$8 sm:$0x3] }
  0x37   :  { %10212 = vst [vmem:[#allocation24_spill] sm:$0xff] %v6171_v56  ;;  %v6203_v56 = vld [vmem:[#allocation5 + $0x3f8] sm:$0xff]  ;;  %407 = vmatpush.msrb.mxu0 %v6195_v53  ;;  %453 = vmatpush.msrb.mxu2 %v6201_v55  ;;  %v103_v47 = vld [vmem:[#allocation3 + $0x20] ss:$8 sm:$0x3] }
  0x38   :  { %10213 = vst [vmem:[#allocation25_spill] sm:$0xff] %v6173_v57  ;;  %v6207_v57 = vld [vmem:[#allocation5 + $0x1d0] sm:$0xff]  ;;  %430 = vmatpush.msrb.mxu1 %v6197_v54  ;;  %476 = vmatpush.msrb.mxu3 %v6203_v56 }
  0x39   :  { %10214 = vst [vmem:[#allocation26_spill] sm:$0xff] %v6177_v58  ;;  %v6209_v58 = vld [vmem:[#allocation5 + $0x3d0] sm:$0xff]  ;;  %408 = vmatpush.msrb.mxu0 %v6207_v57 }
  0x3a   :  { %10215 = vst [vmem:[#allocation27_spill] sm:$0xff] %v6179_v59  ;;  %v6213_v59 = vld [vmem:[#allocation5 + $0x1d8] sm:$0xff]  ;;  %431 = vmatpush.msrb.mxu1 %v6209_v58 }
  0x3b   :  { %10216 = vst [vmem:[#allocation28_spill] sm:$0xff] %v6183_v60  ;;  %v6215_v60 = vld [vmem:[#allocation5 + $0x3d8] sm:$0xff]  ;;  %454 = vmatpush.msrb.mxu2 %v6213_v59 }
  0x3c   :  { %10217 = vst [vmem:[#allocation29_spill] sm:$0xff] %v6185_v61  ;;  %v6219_v61 = vld [vmem:[#allocation5 + $0x1b0] sm:$0xff]  ;;  %477 = vmatpush.msrb.mxu3 %v6215_v60 }
  0x3d   :  { %10218 = vst [vmem:[#allocation30_spill] sm:$0xff] %v6189_v62  ;;  %v6221_v62 = vld [vmem:[#allocation5 + $0x3b0] sm:$0xff]  ;;  %409 = vmatpush.msrb.mxu0 %v6219_v61 }
  0x3e   :  { %10219 = vst [vmem:[#allocation31_spill] sm:$0xff] %v6191_v63  ;;  %v6225_v63 = vld [vmem:[#allocation5 + $0x1b8] sm:$0xff]  ;;  %432 = vmatpush.msrb.mxu1 %v6221_v62 }
  0x3f   :  { %10220 = vst [vmem:[#allocation32_spill] sm:$0xff] %v6195_v53  ;;  %v6227_v53 = vld [vmem:[#allocation5 + $0x3b8] sm:$0xff]  ;;  %455 = vmatpush.msrb.mxu2 %v6225_v63 }
  0x40   :  { %10221 = vst [vmem:[#allocation33_spill] sm:$0xff] %v6197_v54  ;;  %v6231_v54 = vld [vmem:[#allocation5 + $0x190] sm:$0xff]  ;;  %478 = vmatpush.msrb.mxu3 %v6227_v53 }
  0x41   :  { %10222 = vst [vmem:[#allocation34_spill] sm:$0xff] %v6201_v55  ;;  %v6233_v55 = vld [vmem:[#allocation5 + $0x390] sm:$0xff]  ;;  %410 = vmatpush.msrb.mxu0 %v6231_v54 }
  0x42   :  { %10223 = vst [vmem:[#allocation35_spill] sm:$0xff] %v6203_v56  ;;  %v6237_v56 = vld [vmem:[#allocation5 + $0x198] sm:$0xff]  ;;  %433 = vmatpush.msrb.mxu1 %v6233_v55 }
  0x43   :  { %10224 = vst [vmem:[#allocation36_spill] sm:$0xff] %v6207_v57  ;;  %v6239_v57 = vld [vmem:[#allocation5 + $0x398] sm:$0xff]  ;;  %456 = vmatpush.msrb.mxu2 %v6237_v56 }
  0x44   :  { %10225 = vst [vmem:[#allocation37_spill] sm:$0xff] %v6209_v58  ;;  %v6243_v58 = vld [vmem:[#allocation5 + $0x170] sm:$0xff]  ;;  %479 = vmatpush.msrb.mxu3 %v6239_v57 }
  0x45   :  { %10226 = vst [vmem:[#allocation38_spill] sm:$0xff] %v6213_v59  ;;  %v6245_v59 = vld [vmem:[#allocation5 + $0x370] sm:$0xff]  ;;  %411 = vmatpush.msrb.mxu0 %v6243_v58 }
  0x46   :  { %10227 = vst [vmem:[#allocation39_spill] sm:$0xff] %v6215_v60  ;;  %v6247_v60 = vld [vmem:[#allocation5 + $0x178] sm:$0xff]  ;;  %434 = vmatpush.msrb.mxu1 %v6245_v59 }
  0x47   :  { %10228 = vst [vmem:[#allocation40_spill] sm:$0xff] %v6219_v61  ;;  %v6251_v61 = vld [vmem:[#allocation5 + $0x378] sm:$0xff]  ;;  %457 = vmatpush.msrb.mxu2 %v6247_v60 }
  0x48   :  { %10229 = vst [vmem:[#allocation41_spill] sm:$0xff] %v6221_v62  ;;  %v6253_v62 = vld [vmem:[#allocation5 + $0x150] sm:$0xff]  ;;  %480 = vmatpush.msrb.mxu3 %v6251_v61  ;;  %435 = vmatpush.msrb.mxu1 %v6255_v52 }
  0x49   :  { %10230 = vst [vmem:[#allocation42_spill] sm:$0xff] %v6225_v63  ;;  %v6261_v63 = vld [vmem:[#allocation5 + $0x358] sm:$0xff]  ;;  %412 = vmatpush.msrb.mxu0 %v6253_v62 }
  0x4a   :  { %10231 = vst [vmem:[#allocation43_spill] sm:$0xff] %v6227_v53  ;;  %v6259_v53 = vld [vmem:[#allocation5 + $0x158] sm:$0xff]  ;;  %481 = vmatpush.msrb.mxu3 %v6261_v63 }
  0x4b   :  { %10232 = vst [vmem:[#allocation44_spill] sm:$0xff] %v6231_v54  ;;  %v6269_v54 = vld [vmem:[#allocation5 + $0x138] sm:$0xff]  ;;  %458 = vmatpush.msrb.mxu2 %v6259_v53  ;;  %413 = vmatpush.msrb.mxu0 %v6263_v51 }
  0x4c   :  { %10233 = vst [vmem:[#allocation45_spill] sm:$0xff] %v6233_v55  ;;  %v6267_v55 = vld [vmem:[#allocation5 + $0x330] sm:$0xff]  ;;  %482 = vmatpush.msrb.mxu3 %v6271_v50 }
  0x4d   :  { %10234 = vst [vmem:[#allocation46_spill] sm:$0xff] %v6237_v56  ;;  %v6277_v56 = vld [vmem:[#allocation5 + $0x310] sm:$0xff]  ;;  %436 = vmatpush.msrb.mxu1 %v6267_v55  ;;  %459 = vmatpush.msrb.mxu2 %v6269_v54 }
  0x4e   :  { %10235 = vst [vmem:[#allocation47_spill] sm:$0xff] %v6239_v57  ;;  %v6275_v57 = vld [vmem:[#allocation5 + $0x110] sm:$0xff] }
  0x4f   :  { %10236 = vst [vmem:[#allocation48_spill] sm:$0xff] %v6243_v58  ;;  %v6283_v58 = vld [vmem:[#allocation5 + $0x318] sm:$0xff]  ;;  %414 = vmatpush.msrb.mxu0 %v6275_v57  ;;  %437 = vmatpush.msrb.mxu1 %v6277_v56 }
  0x50   :  { %10237 = vst [vmem:[#allocation49_spill] sm:$0xff] %v6245_v59  ;;  %v6281_v59 = vld [vmem:[#allocation5 + $0x118] sm:$0xff]  ;;  %483 = vmatpush.msrb.mxu3 %v6283_v58 }
  0x51   :  { %10238 = vst [vmem:[#allocation50_spill] sm:$0xff] %v6247_v60  ;;  %v6287_v60 = vld [vmem:[#allocation5 + $0xf0] sm:$0xff]  ;;  %460 = vmatpush.msrb.mxu2 %v6281_v59 }
  0x52   :  { %10239 = vst [vmem:[#allocation51_spill] sm:$0xff] %v6251_v61  ;;  %v6289_v61 = vld [vmem:[#allocation5 + $0x2f0] sm:$0xff]  ;;  %415 = vmatpush.msrb.mxu0 %v6287_v60 }
  0x53   :  { %10240 = vst [vmem:[#allocation52_spill] sm:$0xff] %v6253_v62  ;;  %v107_v62 = vld [vmem:[#allocation3 + $0x40] ss:$8 sm:$0x3]  ;;  %438 = vmatpush.msrb.mxu1 %v6289_v61 }
  0x54   :  { %10241 = vst [vmem:[#allocation53_spill] sm:$0xff] %v6255_v52  ;;  %v6293_v52 = vld [vmem:[#allocation5 + $0xf8] sm:$0xff] }
  0x55   :  { %10242 = vst [vmem:[#allocation54_spill] sm:$0xff] %v6259_v53  ;;  %v6297_v53 = vld [vmem:[#allocation5 + $0x2f8] sm:$0xff]  ;;  %461 = vmatpush.msrb.mxu2 %v6293_v52 }
  0x56   :  { %10243 = vst [vmem:[#allocation55_spill] sm:$0xff] %v6261_v63  ;;  %v6299_v63 = vld [vmem:[#allocation5 + $0xd0] sm:$0xff]  ;;  %484 = vmatpush.msrb.mxu3 %v6297_v53 }
  0x57   :  { %10244 = vst [vmem:[#allocation56_spill] sm:$0xff] %v6263_v51  ;;  %v6303_v51 = vld [vmem:[#allocation5 + $0x2d0] sm:$0xff]  ;;  %416 = vmatpush.msrb.mxu0 %v6299_v63 }
  0x58   :  { %10245 = vst [vmem:[#allocation57_spill] sm:$0xff] %v6267_v55  ;;  %v109_v55 = vld [vmem:[#allocation3 + $0x50] ss:$8 sm:$0x3]  ;;  %439 = vmatpush.msrb.mxu1 %v6303_v51 }
  0x59   :  { %10246 = vst [vmem:[#allocation58_spill] sm:$0xff] %v6271_v50  ;;  %v111_v50 = vld [vmem:[#allocation3 + $0x60] ss:$8 sm:$0x3] }
  0x5a   :  { %10247 = vst [vmem:[#allocation59_spill] sm:$0xff] %v6275_v57  ;;  %v113_v57 = vld [vmem:[#allocation3 + $0x70] ss:$8 sm:$0x3] }
  0x5b   :  { %10248 = vst [vmem:[#allocation60_spill] sm:$0xff] %v6277_v56  ;;  %v6389_v56 = vld [vmem:[#allocation5 + $0x218] sm:$0xff] }
  0x5c   :  { %10249 = vst [vmem:[#allocation61_spill] sm:$0xff] %v6281_v59  ;;  %v6317_v59 = vld [vmem:[#allocation5 + $0x2b0] sm:$0xff] }
  0x5d   :  { %10250 = vst [vmem:[#allocation62_spill] sm:$0xff] %v6283_v58  ;;  %440 = vmatpush.msrb.mxu1 %v6317_v59  ;;  %v119_v58 = vld [vmem:[#allocation3 + $0xa0] ss:$8 sm:$0x3] }
  0x5e   :  { %10251 = vst [vmem:[#allocation63_spill] sm:$0xff] %v6287_v60 }
  0x5f   :  { %10252 = vst [vmem:[#allocation64_spill] sm:$0xff] %v6289_v61  ;;  %v6323_v61 = vld [vmem:[#allocation5 + $0x2b8] sm:$0xff] }
  0x60   :  { %10253 = vst [vmem:[#allocation65_spill] sm:$0xff] %v6293_v52  ;;  %v117_v52 = vld [vmem:[#allocation3 + $0x90] ss:$8 sm:$0x3] }
  0x61   :  { %284 = vst [vmem:[#allocation1] ss:$9 sm:$0xff] %v99_v49  ;;  %v6307_v49 = vld [vmem:[#allocation5 + $0xd8] sm:$0xff] }
  0x62   :  { %10254 = vst [vmem:[#allocation66_spill] sm:$0xff] %v6297_v53  ;;  %462 = vmatpush.msrb.mxu2 %v6307_v49  ;;  %v6329_v53 = vld [vmem:[#allocation5 + $0x290] sm:$0xff] }
  0x63   :  { %10255 = vst [vmem:[#allocation67_spill] sm:$0xff] %v6299_v63  ;;  %441 = vmatpush.msrb.mxu1 %v6329_v53  ;;  %v115_v63 = vld [vmem:[#allocation3 + $0x80] ss:$8 sm:$0x3] }
  0x64   :  { %286 = vst [vmem:[#allocation1 + $0x1] ss:$9 sm:$0xff] %v101_v48  ;;  %v6311_v48 = vld [vmem:[#allocation5 + $0x2d8] sm:$0xff] }
  0x65   :  { %10256 = vst [vmem:[#allocation68_spill] sm:$0xff] %v6303_v51  ;;  %485 = vmatpush.msrb.mxu3 %v6311_v48  ;;  %v6335_v51 = vld [vmem:[#allocation5 + $0x298] sm:$0xff] }
  0x66   :  { %288 = vst [vmem:[#allocation1 + $0x2] ss:$9 sm:$0xff] %v103_v47  ;;  %v6315_v47 = vld [vmem:[#allocation5 + $0xb0] sm:$0xff] }
  0x67   :  { %10257 = vst [vmem:[#allocation69_spill] sm:$0xff] %v6307_v49  ;;  %417 = vmatpush.msrb.mxu0 %v6315_v47  ;;  %486 = vmatpush.msrb.mxu3 %v6323_v61  ;;  %v6357_v49 = vld [vmem:[#allocation5 + $0x258] sm:$0xff] }
  0x68   :  { %290 = vst [vmem:[#allocation1 + $0x3] ss:$9 sm:$0xff] %v105_v46  ;;  %v6321_v46 = vld [vmem:[#allocation5 + $0xb8] sm:$0xff] }
  0x69   :  { %10258 = vst [vmem:[#allocation70_spill] sm:$0xff] %v6311_v48  ;;  %463 = vmatpush.msrb.mxu2 %v6321_v46  ;;  %v6341_v48 = vld [vmem:[#allocation5 + $0x270] sm:$0xff]  ;;  %487 = vmatpush.msrb.mxu3 %v6335_v51 }
  0x6a   :  { %292 = vst [vmem:[#allocation1 + $0x4] ss:$9 sm:$0xff] %v107_v62  ;;  %v6327_v62 = vld [vmem:[#allocation5 + $0x90] sm:$0xff]  ;;  %442 = vmatpush.msrb.mxu1 %v6341_v48 }
  0x6b   :  { %10259 = vst [vmem:[#allocation71_spill] sm:$0xff] %v6315_v47  ;;  %418 = vmatpush.msrb.mxu0 %v6327_v62  ;;  %v6347_v47 = vld [vmem:[#allocation5 + $0x278] sm:$0xff] }
  0x6c   :  { %10260 = vst [vmem:[#allocation72_spill] sm:$0xff] %v6317_v59  ;;  %v6349_v59 = vld [vmem:[#allocation5 + $0x50] sm:$0xff]  ;;  %488 = vmatpush.msrb.mxu3 %v6347_v47 }
  0x6d   :  { %294 = vst [vmem:[#allocation1 + $0x5] ss:$9 sm:$0xff] %v109_v55  ;;  %v6333_v55 = vld [vmem:[#allocation5 + $0x98] sm:$0xff] }
  0x6e   :  { %10261 = vst [vmem:[#allocation73_spill] sm:$0xff] %v6321_v46  ;;  %464 = vmatpush.msrb.mxu2 %v6333_v55  ;;  %v6353_v46 = vld [vmem:[#allocation5 + $0x250] sm:$0xff]  ;;  %489 = vmatpush.msrb.mxu3 %v6357_v49 }
  0x6f   :  { %10262 = vst [vmem:[#allocation74_spill] sm:$0xff] %v6323_v61  ;;  %v6355_v61 = vld [vmem:[#allocation5 + $0x58] sm:$0xff]  ;;  %443 = vmatpush.msrb.mxu1 %v6353_v46 }
  0x70   :  { %296 = vst [vmem:[#allocation1 + $0x6] ss:$9 sm:$0xff] %v111_v50  ;;  %v6339_v50 = vld [vmem:[#allocation5 + $0x70] sm:$0xff] }
  0x71   :  { %10263 = vst [vmem:[#allocation75_spill] sm:$0xff] %v6327_v62  ;;  %419 = vmatpush.msrb.mxu0 %v6339_v50  ;;  %v6361_v62 = vld [vmem:[#allocation5 + $0x30] sm:$0xff] }
  0x72   :  { %10264 = vst [vmem:[#allocation76_spill] sm:$0xff] %v6329_v53  ;;  %v6363_v53 = vld [vmem:[#allocation5 + $0x230] sm:$0xff] }
  0x73   :  { %298 = vst [vmem:[#allocation1 + $0x7] ss:$9 sm:$0xff] %v113_v57  ;;  %v6345_v57 = vld [vmem:[#allocation5 + $0x78] sm:$0xff]  ;;  %420 = vmatpush.msrb.mxu0 %v6349_v59  ;;  %444 = vmatpush.msrb.mxu1 %v6363_v53 }
  0x74   :  { %10265 = vst [vmem:[#allocation77_spill] sm:$0xff] %v6333_v55  ;;  %465 = vmatpush.msrb.mxu2 %v6345_v57  ;;  %v6369_v55 = vld [vmem:[#allocation5 + $0x238] sm:$0xff] }
  0x75   :  { %10266 = vst [vmem:[#allocation78_spill] sm:$0xff] %v6335_v51  ;;  %v6367_v51 = vld [vmem:[#allocation5 + $0x38] sm:$0xff]  ;;  %421 = vmatpush.msrb.mxu0 %v6361_v62  ;;  %490 = vmatpush.msrb.mxu3 %v6369_v55 }
  0x76   :  { %10267 = vst [vmem:[#allocation79_spill] sm:$0xff] %v6339_v50  ;;  %466 = vmatpush.msrb.mxu2 %v6355_v61 }
  0x77   :  { %10268 = vst [vmem:[#allocation80_spill] sm:$0xff] %v6341_v48  ;;  %v6375_v48 = vld [vmem:[#allocation5 + $0x10] sm:$0xff]  ;;  %491 = vmatpush.msrb.mxu3 %v6389_v56 }
  0x78   :  { %10269 = vst [vmem:[#allocation81_spill] sm:$0xff] %v6345_v57  ;;  %v121_v57 = vld [vmem:[#allocation3 + $0xb0] ss:$8 sm:$0x3]  ;;  %467 = vmatpush.msrb.mxu2 %v6367_v51  ;;  %422 = vmatpush.msrb.mxu0 %v6375_v48 }
  0x79   :  { %10270 = vst [vmem:[#allocation82_spill] sm:$0xff] %v6347_v47  ;;  %v6381_v47 = vld [vmem:[#allocation5 + $0x210] sm:$0xff] }
  0x7a   :  { %10271 = vst [vmem:[#allocation83_spill] sm:$0xff] %v6349_v59  ;;  %v6373_v50 = vld [vmem:[#allocation1] sm:$0xff]  ;;  %v6377_v60 = vld [vmem:[#allocation1 + $0x9] sm:$0xff]  ;;  %445 = vmatpush.msrb.mxu1 %v6381_v47 }
  0x7b   :  { %10272 = vst [vmem:[#allocation84_spill] sm:$0xff] %v6353_v46  ;;  %v6385_v46 = vld [vmem:[#allocation5 + $0x18] sm:$0xff]  ;;  %v123_v59 = vld [vmem:[#allocation3 + $0xc0] ss:$8 sm:$0x3]  ;;  %331 = vmatmul.f32.vlgmr.msra.gmra.mxu0 %v6373_v50  ;;  %354 = vmatmul.f32.vlgmr.msra.gmra.mxu1 %v6377_v60 }
  0x7c   :  { %10273 = vst [vmem:[#allocation85_spill] sm:$0xff] %v6355_v61  ;;  %v125_v61 = vld [vmem:[#allocation3 + $0xd0] ss:$8 sm:$0x3]  ;;  %468 = vmatpush.msrb.mxu2 %v6385_v46  ;;  %400 = vmatmul.f32.vlgmr.msra.gmra.mxu3 %v6377_v60 }
  0x7d   :  { %10274 = vst [vmem:[#allocation86_spill] sm:$0xff] %v6363_v53  ;;  %v129_v53 = vld [vmem:[#allocation3 + $0xf0] ss:$8 sm:$0x3]  ;;  %377 = vmatmul.f32.vlgmr.msra.gmra.mxu2 %v6373_v50  ;;  %724 = vmatpush.msra.mxu0 %v6007_v0 }
  0x7e   :  { %301 = vst [vmem:[#allocation1] ss:$9 sm:$0xff] %v115_v63  ;;  %v127_v63 = vld [vmem:[#allocation3 + $0xe0] ss:$8 sm:$0x3]  ;;  %747 = vmatpush.msra.mxu1 %v6009_v1  ;;  %770 = vmatpush.msra.mxu2 %v6011_v2 }
  0x7f   :  { %302 = vst [vmem:[#allocation1 + $0x1] ss:$9 sm:$0xff] %v117_v52  ;;  %793 = vmatpush.msra.mxu3 %v6015_v3  ;;  %725 = vmatpush.msra.mxu0 %v6017_v4  ;;  %v10275_v2 = vld [vmem:[#allocation14_spill] sm:$0xff]  ;;  %v10276_v3 = vld [vmem:[#allocation15_spill] sm:$0xff]  ;;  %v10277_v4 = vld [vmem:[#allocation16_spill] sm:$0xff] }
  0x80   :  { %303 = vst [vmem:[#allocation1 + $0x2] ss:$9 sm:$0xff] %v119_v58  ;;  %748 = vmatpush.msra.mxu1 %v6019_v5  ;;  %771 = vmatpush.msra.mxu2 %v6023_v6  ;;  %v10278_v5 = vld [vmem:[#allocation17_spill] sm:$0xff]  ;;  %v10279_v6 = vld [vmem:[#allocation18_spill] sm:$0xff]  ;;  %v10313_v58 = vld [vmem:[#allocation52_spill] sm:$0xff] }
  0x81   :  { %304 = vst [vmem:[#allocation1 + $0x3] ss:$9 sm:$0xff] %v121_v57  ;;  %794 = vmatpush.msra.mxu3 %v6025_v7  ;;  %726 = vmatpush.msra.mxu0 %v6027_v8  ;;  %v10280_v7 = vld [vmem:[#allocation19_spill] sm:$0xff]  ;;  %v10281_v8 = vld [vmem:[#allocation20_spill] sm:$0xff]  ;;  %v10311_v52 = vld [vmem:[#allocation50_spill] sm:$0xff] }
  0x82   :  { %305 = vst [vmem:[#allocation1 + $0x4] ss:$9 sm:$0xff] %v123_v59  ;;  %749 = vmatpush.msra.mxu1 %v6031_v9  ;;  %772 = vmatpush.msra.mxu2 %v6033_v10  ;;  %v10282_v9 = vld [vmem:[#allocation21_spill] sm:$0xff] }
  0x83   :  { %306 = vst [vmem:[#allocation1 + $0x5] ss:$9 sm:$0xff] %v125_v61  ;;  %795 = vmatpush.msra.mxu3 %v6035_v11  ;;  %727 = vmatpush.msra.mxu0 %v6039_v12  ;;  %v508_v10 = vld [vmem:[#allocation3 + $0x1] ss:$8 sm:$0x3]  ;;  %v10284_v12 = vld [vmem:[#allocation23_spill] sm:$0xff] }
  0x84   :  { %307 = vst [vmem:[#allocation1 + $0x6] ss:$9 sm:$0xff] %v127_v63  ;;  %750 = vmatpush.msra.mxu1 %v6041_v13  ;;  %773 = vmatpush.msra.mxu2 %v6045_v14  ;;  %v10283_v11 = vld [vmem:[#allocation22_spill] sm:$0xff]  ;;  %v510_v13 = vld [vmem:[#allocation3 + $0x11] ss:$8 sm:$0x3] }
  0x85   :  { %308 = vst [vmem:[#allocation1 + $0x7] ss:$9 sm:$0xff] %v129_v53  ;;  %796 = vmatpush.msra.mxu3 %v6047_v15  ;;  %728 = vmatpush.msra.mxu0 %v6051_v16  ;;  %v10285_v14 = vld [vmem:[#allocation24_spill] sm:$0xff]  ;;  %v10286_v15 = vld [vmem:[#allocation25_spill] sm:$0xff]  ;;  %v10312_v53 = vld [vmem:[#allocation51_spill] sm:$0xff] }
  0x86   :  { %751 = vmatpush.msra.mxu1 %v6053_v17  ;;  %774 = vmatpush.msra.mxu2 %v6057_v18  ;;  %v512_v16 = vld [vmem:[#allocation3 + $0x21] ss:$8 sm:$0x3]  ;;  %v10288_v18 = vld [vmem:[#allocation27_spill] sm:$0xff] }
  0x87   :  { %797 = vmatpush.msra.mxu3 %v6059_v19  ;;  %729 = vmatpush.msra.mxu0 %v6063_v20  ;;  %v10287_v17 = vld [vmem:[#allocation26_spill] sm:$0xff]  ;;  %v514_v19 = vld [vmem:[#allocation3 + $0x31] ss:$8 sm:$0x3]  ;;  %v10289_v20 = vld [vmem:[#allocation29_spill] sm:$0xff] }
  0x88   :  { %752 = vmatpush.msra.mxu1 %v6065_v21  ;;  %775 = vmatpush.msra.mxu2 %v6069_v22  ;;  %v516_v21 = vld [vmem:[#allocation3 + $0x41] ss:$8 sm:$0x3]  ;;  %v10290_v22 = vld [vmem:[#allocation28_spill] sm:$0xff]  ;;  %v10316_v61 = vld [vmem:[#allocation55_spill] sm:$0xff] }
  0x89   :  { %798 = vmatpush.msra.mxu3 %v6071_v23  ;;  %730 = vmatpush.msra.mxu0 %v6075_v24  ;;  %v10291_v23 = vld [vmem:[#allocation30_spill] sm:$0xff]  ;;  %v518_v24 = vld [vmem:[#allocation3 + $0x51] ss:$8 sm:$0x3]  ;;  %v10314_v59 = vld [vmem:[#allocation53_spill] sm:$0xff] }
  0x8a   :  { %753 = vmatpush.msra.mxu1 %v6077_v25  ;;  %776 = vmatpush.msra.mxu2 %v6081_v26  ;;  %v10292_v25 = vld [vmem:[#allocation31_spill] sm:$0xff]  ;;  %v520_v26 = vld [vmem:[#allocation3 + $0x61] ss:$8 sm:$0x3] }
  0x8b   :  { %799 = vmatpush.msra.mxu3 %v6083_v27  ;;  %731 = vmatpush.msra.mxu0 %v6087_v28  ;;  %v522_v27 = vld [vmem:[#allocation3 + $0x71] ss:$8 sm:$0x3]  ;;  %v10318_v57 = vld [vmem:[#allocation57_spill] sm:$0xff]  ;;  %v10319_v63 = vld [vmem:[#allocation58_spill] sm:$0xff] }
  0x8c   :  { %754 = vmatpush.msra.mxu1 %v6089_v29  ;;  %777 = vmatpush.msra.mxu2 %v6093_v30  ;;  %v6439_v0 = vld [vmem:[#allocation1] sm:$0xff]  ;;  %v6445_v1 = vld [vmem:[#allocation1 + $0x9] sm:$0xff] }
  0x8d   :  { %800 = vmatpush.msra.mxu3 %v6095_v31  ;;  %732 = vmatpush.msra.mxu0 %v6099_v32  ;;  %693 = vst [vmem:[#allocation1] ss:$9 sm:$0xff] %v508_v10  ;;  %v10293_v28 = vld [vmem:[#allocation32_spill] sm:$0xff]  ;;  %v10294_v29 = vld [vmem:[#allocation33_spill] sm:$0xff]  ;;  %v10295_v30 = vld [vmem:[#allocation34_spill] sm:$0xff] }
  0x8e   :  { %755 = vmatpush.msra.mxu1 %v6101_v33  ;;  %778 = vmatpush.msra.mxu2 %v6105_v34  ;;  %695 = vst [vmem:[#allocation1 + $0x1] ss:$9 sm:$0xff] %v510_v13  ;;  %v10296_v31 = vld [vmem:[#allocation35_spill] sm:$0xff]  ;;  %v10297_v32 = vld [vmem:[#allocation36_spill] sm:$0xff]  ;;  %v10298_v33 = vld [vmem:[#allocation37_spill] sm:$0xff] }
  0x8f   :  { %801 = vmatpush.msra.mxu3 %v6107_v35  ;;  %733 = vmatpush.msra.mxu0 %v6111_v36  ;;  %697 = vst [vmem:[#allocation1 + $0x2] ss:$9 sm:$0xff] %v512_v16  ;;  %v10299_v34 = vld [vmem:[#allocation38_spill] sm:$0xff]  ;;  %v10300_v35 = vld [vmem:[#allocation39_spill] sm:$0xff]  ;;  %v10301_v36 = vld [vmem:[#allocation40_spill] sm:$0xff] }
  0x90   :  { %756 = vmatpush.msra.mxu1 %v6113_v37  ;;  %779 = vmatpush.msra.mxu2 %v6117_v38  ;;  %699 = vst [vmem:[#allocation1 + $0x3] ss:$9 sm:$0xff] %v514_v19  ;;  %v10302_v37 = vld [vmem:[#allocation41_spill] sm:$0xff]  ;;  %v10303_v38 = vld [vmem:[#allocation42_spill] sm:$0xff]  ;;  %v10329_v13 = vld [vmem:[#allocation68_spill] sm:$0xff] }
  0x91   :  { %802 = vmatpush.msra.mxu3 %v6119_v39  ;;  %734 = vmatpush.msra.mxu0 %v6123_v40  ;;  %701 = vst [vmem:[#allocation1 + $0x4] ss:$9 sm:$0xff] %v516_v21  ;;  %v10304_v39 = vld [vmem:[#allocation43_spill] sm:$0xff]  ;;  %v10305_v40 = vld [vmem:[#allocation44_spill] sm:$0xff]  ;;  %v10334_v19 = vld [vmem:[#allocation73_spill] sm:$0xff] }
  0x92   :  { %757 = vmatpush.msra.mxu1 %v6125_v41  ;;  %780 = vmatpush.msra.mxu2 %v6129_v42  ;;  %703 = vst [vmem:[#allocation1 + $0x5] ss:$9 sm:$0xff] %v518_v24  ;;  %v10306_v41 = vld [vmem:[#allocation45_spill] sm:$0xff]  ;;  %v10307_v42 = vld [vmem:[#allocation46_spill] sm:$0xff] }
  0x93   :  { %803 = vmatpush.msra.mxu3 %v6131_v43  ;;  %334 = vmatmul.f32.gmra.mxu0 %v6439_v0  ;;  %705 = vst [vmem:[#allocation1 + $0x6] ss:$9 sm:$0xff] %v520_v26  ;;  %v10308_v43 = vld [vmem:[#allocation47_spill] sm:$0xff]  ;;  %v528_v21 = vld [vmem:[#allocation3 + $0xa1] ss:$8 sm:$0x3] }
  0x94   :  { %758 = vmatpush.msra.mxu1 %v6137_v45  ;;  %735 = vmatpush.msra.mxu0 %v6135_v44  ;;  %707 = vst [vmem:[#allocation1 + $0x7] ss:$9 sm:$0xff] %v522_v27  ;;  %v10309_v44 = vld [vmem:[#allocation48_spill] sm:$0xff]  ;;  %v10310_v45 = vld [vmem:[#allocation49_spill] sm:$0xff]  ;;  %v10339_v26 = vld [vmem:[#allocation78_spill] sm:$0xff] }
  0x95   :  { %781 = vmatpush.msra.mxu2 %v10275_v2  ;;  %804 = vmatpush.msra.mxu3 %v10276_v3  ;;  %v10320_v2 = vld [vmem:[#allocation59_spill] sm:$0xff]  ;;  %v10321_v3 = vld [vmem:[#allocation60_spill] sm:$0xff]  ;;  %v10338_v24 = vld [vmem:[#allocation77_spill] sm:$0xff] }
  0x96   :  { %357 = vmatmul.f32.gmra.mxu1 %v6445_v1  ;;  %380 = vmatmul.f32.gmra.mxu2 %v6439_v0  ;;  %v526_v16 = vld [vmem:[#allocation3 + $0x91] ss:$8 sm:$0x3]  ;;  %v532_v27 = vld [vmem:[#allocation3 + $0xc1] ss:$8 sm:$0x3] }
  0x97   :  { %403 = vmatmul.f32.gmra.mxu3 %v6445_v1  ;;  %736 = vmatpush.msra.mxu0 %v10277_v4  ;;  %v10322_v4 = vld [vmem:[#allocation61_spill] sm:$0xff] }
  0x98   :  { %759 = vmatpush.msra.mxu1 %v10278_v5  ;;  %782 = vmatpush.msra.mxu2 %v10279_v6  ;;  %v10323_v5 = vld [vmem:[#allocation62_spill] sm:$0xff]  ;;  %v10324_v6 = vld [vmem:[#allocation63_spill] sm:$0xff] }
  0x99   :  { %805 = vmatpush.msra.mxu3 %v10280_v7  ;;  %737 = vmatpush.msra.mxu0 %v10281_v8  ;;  %v10325_v7 = vld [vmem:[#allocation64_spill] sm:$0xff]  ;;  %v10326_v8 = vld [vmem:[#allocation65_spill] sm:$0xff] }
  0x9a   :  { %760 = vmatpush.msra.mxu1 %v10282_v9  ;;  %783 = vmatpush.msra.mxu2 %v10283_v11  ;;  %v10327_v9 = vld [vmem:[#allocation66_spill] sm:$0xff] }
  0x9b   :  { %806 = vmatpush.msra.mxu3 %v10284_v12  ;;  %738 = vmatpush.msra.mxu0 %v10285_v14  ;;  %v6511_v10 = vld [vmem:[#allocation1] sm:$0xff]  ;;  %v524_v11 = vld [vmem:[#allocation3 + $0x81] ss:$8 sm:$0x3]  ;;  %v10328_v12 = vld [vmem:[#allocation67_spill] sm:$0xff] }
  0x9c   :  { %761 = vmatpush.msra.mxu1 %v10286_v15  ;;  %784 = vmatpush.msra.mxu2 %v10287_v17  ;;  %v10330_v14 = vld [vmem:[#allocation69_spill] sm:$0xff]  ;;  %v10331_v15 = vld [vmem:[#allocation70_spill] sm:$0xff]  ;;  %v10332_v17 = vld [vmem:[#allocation71_spill] sm:$0xff] }
  0x9d   :  { %807 = vmatpush.msra.mxu3 %v10288_v18  ;;  %423 = vmatmul.f32.vlgmr.msrb.gmra.mxu0 %v6373_v50  ;;  %v10333_v18 = vld [vmem:[#allocation72_spill] sm:$0xff] }
  0x9e   :  { %762 = vmatpush.msra.mxu1 %v10289_v20  ;;  %739 = vmatpush.msra.mxu0 %v10290_v22  ;;  %v10335_v20 = vld [vmem:[#allocation74_spill] sm:$0xff]  ;;  %v10336_v22 = vld [vmem:[#allocation76_spill] sm:$0xff] }
  0x9f   :  { %785 = vmatpush.msra.mxu2 %v10291_v23  ;;  %808 = vmatpush.msra.mxu3 %v10292_v25  ;;  %v10337_v23 = vld [vmem:[#allocation75_spill] sm:$0xff] }
  0xa0   :  { %446 = vmatmul.f32.vlgmr.msrb.gmra.mxu1 %v6377_v60  ;;  %469 = vmatmul.f32.vlgmr.msrb.gmra.mxu2 %v6373_v50  ;;  %v10317_v50 = vld [vmem:[#allocation56_spill] sm:$0xff] }
  0xa1   :  { %492 = vmatmul.f32.vlgmr.msrb.gmra.mxu3 %v6377_v60  ;;  %816 = vmatpush.msrb.mxu0 %v10293_v28  ;;  %v10315_v60 = vld [vmem:[#allocation54_spill] sm:$0xff]  ;;  %v530_v25 = vld [vmem:[#allocation3 + $0xb1] ss:$8 sm:$0x3] }
  0xa2   :  { %839 = vmatpush.msrb.mxu1 %v10294_v29  ;;  %862 = vmatpush.msrb.mxu2 %v10295_v30  ;;  %v534_v28 = vld [vmem:[#allocation3 + $0xd1] ss:$8 sm:$0x3] }
  0xa3   :  { %885 = vmatpush.msrb.mxu3 %v10296_v31  ;;  %817 = vmatpush.msrb.mxu0 %v10297_v32  ;;  %v10340_v29 = vld [vmem:[#allocation79_spill] sm:$0xff]  ;;  %v10341_v30 = vld [vmem:[#allocation80_spill] sm:$0xff]  ;;  %v536_v31 = vld [vmem:[#allocation3 + $0xe1] ss:$8 sm:$0x3] }
  0xa4   :  { %840 = vmatpush.msrb.mxu1 %v10298_v33  ;;  %863 = vmatpush.msrb.mxu2 %v10299_v34  ;;  %v10342_v32 = vld [vmem:[#allocation81_spill] sm:$0xff]  ;;  %v10343_v33 = vld [vmem:[#allocation82_spill] sm:$0xff]  ;;  %v538_v34 = vld [vmem:[#allocation3 + $0xf1] ss:$8 sm:$0x3] }
  0xa5   :  { %886 = vmatpush.msrb.mxu3 %v10300_v35  ;;  %818 = vmatpush.msrb.mxu0 %v10301_v36  ;;  %v10344_v35 = vld [vmem:[#allocation83_spill] sm:$0xff]  ;;  %v10345_v36 = vld [vmem:[#allocation84_spill] sm:$0xff] }
  0xa6   :  { %841 = vmatpush.msrb.mxu1 %v10302_v37  ;;  %864 = vmatpush.msrb.mxu2 %v10303_v38  ;;  %v6547_v37 = vld [vmem:[#allocation5 + $0x1e0] sm:$0xff] }
  0xa7   :  { %887 = vmatpush.msrb.mxu3 %v10304_v39  ;;  %819 = vmatpush.msrb.mxu0 %v10305_v40  ;;  %v6573_v38 = vld [vmem:[#allocation5 + $0x3a0] sm:$0xff]  ;;  %v6577_v39 = vld [vmem:[#allocation5 + $0x1a8] sm:$0xff] }
  0xa8   :  { %842 = vmatpush.msrb.mxu1 %v10306_v41  ;;  %865 = vmatpush.msrb.mxu2 %v10307_v42  ;;  %v6579_v40 = vld [vmem:[#allocation5 + $0x3a8] sm:$0xff]  ;;  %v6583_v41 = vld [vmem:[#allocation5 + $0x180] sm:$0xff] }
  0xa9   :  { %888 = vmatpush.msrb.mxu3 %v10308_v43  ;;  %820 = vmatpush.msrb.mxu0 %v10309_v44  ;;  %v6585_v42 = vld [vmem:[#allocation5 + $0x380] sm:$0xff]  ;;  %v6589_v43 = vld [vmem:[#allocation5 + $0x188] sm:$0xff] }
  0xaa   :  { %843 = vmatpush.msrb.mxu1 %v10310_v45  ;;  %866 = vmatpush.msrb.mxu2 %v10311_v52  ;;  %v6591_v44 = vld [vmem:[#allocation5 + $0x388] sm:$0xff]  ;;  %v6595_v45 = vld [vmem:[#allocation5 + $0x160] sm:$0xff] }
  0xab   :  { %889 = vmatpush.msrb.mxu3 %v10312_v53  ;;  %821 = vmatpush.msrb.mxu0 %v10313_v58  ;;  %v6597_v52 = vld [vmem:[#allocation5 + $0x360] sm:$0xff]  ;;  %v6601_v53 = vld [vmem:[#allocation5 + $0x168] sm:$0xff] }
  0xac   :  { %844 = vmatpush.msrb.mxu1 %v10314_v59  ;;  %867 = vmatpush.msrb.mxu2 %v10315_v60  ;;  %v6603_v58 = vld [vmem:[#allocation5 + $0x368] sm:$0xff]  ;;  %v6607_v59 = vld [vmem:[#allocation5 + $0x140] sm:$0xff] }
  0xad   :  { %890 = vmatpush.msrb.mxu3 %v10316_v61  ;;  %822 = vmatpush.msrb.mxu0 %v10317_v50  ;;  %v6609_v60 = vld [vmem:[#allocation5 + $0x340] sm:$0xff]  ;;  %v6613_v61 = vld [vmem:[#allocation5 + $0x148] sm:$0xff] }
  0xae   :  { %845 = vmatpush.msrb.mxu1 %v10318_v57  ;;  %868 = vmatpush.msrb.mxu2 %v6269_v54  ;;  %v6513_v54 = vld [vmem:[#allocation1 + $0x9] sm:$0xff] }
  0xaf   :  { %891 = vmatpush.msrb.mxu3 %v10319_v63  ;;  %823 = vmatpush.msrb.mxu0 %v10320_v2  ;;  %710 = vst [vmem:[#allocation1] ss:$9 sm:$0xff] %v524_v11  ;;  %v6615_v50 = vld [vmem:[#allocation5 + $0x348] sm:$0xff]  ;;  %v6619_v57 = vld [vmem:[#allocation5 + $0x120] sm:$0xff] }
  0xb0   :  { %846 = vmatpush.msrb.mxu1 %v10321_v3  ;;  %869 = vmatpush.msrb.mxu2 %v10322_v4  ;;  %711 = vst [vmem:[#allocation1 + $0x1] ss:$9 sm:$0xff] %v526_v16  ;;  %v6621_v63 = vld [vmem:[#allocation5 + $0x320] sm:$0xff]  ;;  %v6625_v2 = vld [vmem:[#allocation5 + $0x128] sm:$0xff] }
  0xb1   :  { %892 = vmatpush.msrb.mxu3 %v10323_v5  ;;  %824 = vmatpush.msrb.mxu0 %v10324_v6  ;;  %712 = vst [vmem:[#allocation1 + $0x2] ss:$9 sm:$0xff] %v528_v21  ;;  %v6627_v3 = vld [vmem:[#allocation5 + $0x328] sm:$0xff]  ;;  %v6631_v4 = vld [vmem:[#allocation5 + $0x100] sm:$0xff] }
  0xb2   :  { %847 = vmatpush.msrb.mxu1 %v10325_v7  ;;  %870 = vmatpush.msrb.mxu2 %v10326_v8  ;;  %713 = vst [vmem:[#allocation1 + $0x3] ss:$9 sm:$0xff] %v530_v25  ;;  %v6633_v5 = vld [vmem:[#allocation5 + $0x300] sm:$0xff]  ;;  %v6637_v6 = vld [vmem:[#allocation5 + $0x108] sm:$0xff] }
  0xb3   :  { %893 = vmatpush.msrb.mxu3 %v10327_v9  ;;  %825 = vmatpush.msrb.mxu0 %v10328_v12  ;;  %714 = vst [vmem:[#allocation1 + $0x4] ss:$9 sm:$0xff] %v532_v27  ;;  %v6639_v7 = vld [vmem:[#allocation5 + $0x308] sm:$0xff]  ;;  %v6643_v8 = vld [vmem:[#allocation5 + $0xe0] sm:$0xff] }
  0xb4   :  { %848 = vmatpush.msrb.mxu1 %v10329_v13  ;;  %871 = vmatpush.msrb.mxu2 %v10330_v14  ;;  %715 = vst [vmem:[#allocation1 + $0x5] ss:$9 sm:$0xff] %v534_v28  ;;  %v6645_v9 = vld [vmem:[#allocation5 + $0x2e0] sm:$0xff]  ;;  %v6649_v11 = vld [vmem:[#allocation5 + $0xe8] sm:$0xff] }
  0xb5   :  { %894 = vmatpush.msrb.mxu3 %v10331_v15  ;;  %826 = vmatpush.msrb.mxu0 %v10332_v17  ;;  %716 = vst [vmem:[#allocation1 + $0x6] ss:$9 sm:$0xff] %v536_v31  ;;  %v6651_v12 = vld [vmem:[#allocation5 + $0x2e8] sm:$0xff]  ;;  %v6655_v13 = vld [vmem:[#allocation5 + $0xc0] sm:$0xff] }
  0xb6   :  { %849 = vmatpush.msrb.mxu1 %v10333_v18  ;;  %872 = vmatpush.msrb.mxu2 %v10334_v19  ;;  %717 = vst [vmem:[#allocation1 + $0x7] ss:$9 sm:$0xff] %v538_v34  ;;  %v6657_v14 = vld [vmem:[#allocation5 + $0x2c0] sm:$0xff]  ;;  %v6661_v15 = vld [vmem:[#allocation5 + $0xc8] sm:$0xff] }
  0xb7   :  { %895 = vmatpush.msrb.mxu3 %v10335_v20  ;;  %426 = vmatmul.f32.gmra.mxu0 %v6439_v0  ;;  %v6663_v16 = vld [vmem:[#allocation5 + $0x2c8] sm:$0xff]  ;;  %v6667_v17 = vld [vmem:[#allocation5 + $0xa0] sm:$0xff] }
  0xb8   :  { %850 = vmatpush.msrb.mxu1 %v10336_v22  ;;  %827 = vmatpush.msrb.mxu0 %v10337_v23  ;;  %v6669_v18 = vld [vmem:[#allocation5 + $0x2a0] sm:$0xff]  ;;  %v6673_v19 = vld [vmem:[#allocation5 + $0xa8] sm:$0xff] }
  0xb9   :  { %873 = vmatpush.msrb.mxu2 %v10338_v24  ;;  %896 = vmatpush.msrb.mxu3 %v10339_v26  ;;  %v6675_v20 = vld [vmem:[#allocation5 + $0x2a8] sm:$0xff]  ;;  %v6681_v22 = vld [vmem:[#allocation5 + $0x280] sm:$0xff] }
  0xba   :  { %449 = vmatmul.f32.gmra.mxu1 %v6445_v1  ;;  %472 = vmatmul.f32.gmra.mxu2 %v6439_v0  ;;  %v10346_v0 = vld [vmem:[#allocation85_spill] sm:$0xff]  ;;  %v6687_v24 = vld [vmem:[#allocation5 + $0x88] sm:$0xff] }
  0xbb   :  { %495 = vmatmul.f32.gmra.mxu3 %v6445_v1  ;;  %828 = vmatpush.msrb.mxu0 %v10340_v29  ;;  %v10347_v1 = vld [vmem:[#allocation86_spill] sm:$0xff]  ;;  %10349 = vst [vmem:[#allocation15_spill] sm:$0xff] %v6687_v24 }
  0xbc   :  { %851 = vmatpush.msrb.mxu1 %v10341_v30  ;;  %874 = vmatpush.msrb.mxu2 %v10342_v32  ;;  %v6685_v23 = vld [vmem:[#allocation5 + $0x80] sm:$0xff]  ;;  %v6691_v25 = vld [vmem:[#allocation5 + $0x288] sm:$0xff] }
  0xbd   :  { %897 = vmatpush.msrb.mxu3 %v10343_v33  ;;  %829 = vmatpush.msrb.mxu0 %v10344_v35  ;;  %v6679_v21 = vld [vmem:[#allocation1] sm:$0xff]  ;;  %10348 = vst [vmem:[#allocation14_spill] sm:$0xff] %v6685_v23  ;;  %v6693_v26 = vld [vmem:[#allocation1 + $0x9] sm:$0xff] }
  0xbe   :  { %852 = vmatpush.msrb.mxu1 %v10345_v36  ;;  %875 = vmatpush.msrb.mxu2 %v10346_v0  ;;  %10350 = vst [vmem:[#allocation16_spill] sm:$0xff] %v6691_v25  ;;  %v6699_v27 = vld [vmem:[#allocation5 + $0x60] sm:$0xff]  ;;  %v6705_v29 = vld [vmem:[#allocation5 + $0x68] sm:$0xff] }
  0xbf   :  { %898 = vmatpush.msrb.mxu3 %v6357_v49  ;;  %830 = vmatpush.msrb.mxu0 %v6361_v62  ;;  %v6549_v49 = vld [vmem:[#allocation5 + $0x3e0] sm:$0xff]  ;;  %v6553_v62 = vld [vmem:[#allocation5 + $0x1e8] sm:$0xff]  ;;  %10351 = vst [vmem:[#allocation17_spill] sm:$0xff] %v6699_v27 }
  0xc0   :  { %853 = vmatpush.msrb.mxu1 %v10347_v1  ;;  %876 = vmatpush.msrb.mxu2 %v6367_v51  ;;  %v6555_v51 = vld [vmem:[#allocation5 + $0x3e8] sm:$0xff]  ;;  %v6701_v28 = vld [vmem:[#allocation5 + $0x260] sm:$0xff]  ;;  %10353 = vst [vmem:[#allocation19_spill] sm:$0xff] %v6705_v29 }
  0xc1   :  { %899 = vmatpush.msrb.mxu3 %v6369_v55  ;;  %740 = vmatmul.f32.vlgmr.msra.gmra.mxu0 %v6511_v10  ;;  %v6571_v55 = vld [vmem:[#allocation5 + $0x1a0] sm:$0xff]  ;;  %10352 = vst [vmem:[#allocation18_spill] sm:$0xff] %v6701_v28  ;;  %v6707_v30 = vld [vmem:[#allocation5 + $0x268] sm:$0xff] }
  0xc2   :  { %854 = vmatpush.msrb.mxu1 %v6381_v47  ;;  %831 = vmatpush.msrb.mxu0 %v6375_v48  ;;  %v6559_v47 = vld [vmem:[#allocation5 + $0x1c0] sm:$0xff]  ;;  %10354 = vst [vmem:[#allocation20_spill] sm:$0xff] %v6707_v30  ;;  %v6715_v33 = vld [vmem:[#allocation5 + $0x48] sm:$0xff] }
  0xc3   :  { %877 = vmatpush.msrb.mxu2 %v6385_v46  ;;  %900 = vmatpush.msrb.mxu3 %v6389_v56  ;;  %v6561_v48 = vld [vmem:[#allocation5 + $0x3c0] sm:$0xff]  ;;  %v6565_v46 = vld [vmem:[#allocation5 + $0x1c8] sm:$0xff]  ;;  %10357 = vst [vmem:[#allocation23_spill] sm:$0xff] %v6715_v33 }
  0xc4   :  { %763 = vmatmul.f32.vlgmr.msra.gmra.mxu1 %v6513_v54  ;;  %786 = vmatmul.f32.vlgmr.msra.gmra.mxu2 %v6511_v10  ;;  %v6567_v56 = vld [vmem:[#allocation5 + $0x3c8] sm:$0xff]  ;;  %v6711_v31 = vld [vmem:[#allocation5 + $0x40] sm:$0xff] }
  0xc5   :  { %809 = vmatmul.f32.vlgmr.msra.gmra.mxu3 %v6513_v54  ;;  %1133 = vmatpush.msra.mxu0 %v6547_v37  ;;  %10355 = vst [vmem:[#allocation21_spill] sm:$0xff] %v6711_v31  ;;  %v6713_v32 = vld [vmem:[#allocation5 + $0x240] sm:$0xff]  ;;  %v6719_v34 = vld [vmem:[#allocation5 + $0x248] sm:$0xff] }
  0xc6   :  { %1156 = vmatpush.msra.mxu1 %v6549_v49  ;;  %1179 = vmatpush.msra.mxu2 %v6553_v62  ;;  %10356 = vst [vmem:[#allocation22_spill] sm:$0xff] %v6713_v32  ;;  %v6721_v35 = vld [vmem:[#allocation5 + $0x20] sm:$0xff]  ;;  %v6727_v0 = vld [vmem:[#allocation5 + $0x28] sm:$0xff] }
  0xc7   :  { %1202 = vmatpush.msra.mxu3 %v6555_v51  ;;  %1134 = vmatpush.msra.mxu0 %v6559_v47  ;;  %10358 = vst [vmem:[#allocation24_spill] sm:$0xff] %v6719_v34  ;;  %v6723_v36 = vld [vmem:[#allocation5 + $0x220] sm:$0xff]  ;;  %v6729_v1 = vld [vmem:[#allocation5 + $0x228] sm:$0xff] }
  0xc8   :  { %1157 = vmatpush.msra.mxu1 %v6561_v48  ;;  %1180 = vmatpush.msra.mxu2 %v6565_v46  ;;  %10359 = vst [vmem:[#allocation25_spill] sm:$0xff] %v6721_v35 }
  0xc9   :  { %1203 = vmatpush.msra.mxu3 %v6567_v56  ;;  %1135 = vmatpush.msra.mxu0 %v6571_v55  ;;  %10360 = vst [vmem:[#allocation26_spill] sm:$0xff] %v6723_v36 }
  0xca   :  { %1158 = vmatpush.msra.mxu1 %v6573_v38  ;;  %1181 = vmatpush.msra.mxu2 %v6577_v39  ;;  %10361 = vst [vmem:[#allocation27_spill] sm:$0xff] %v6727_v0 }
  0xcb   :  { %1204 = vmatpush.msra.mxu3 %v6579_v40  ;;  %1136 = vmatpush.msra.mxu0 %v6583_v41  ;;  %10362 = vst [vmem:[#allocation29_spill] sm:$0xff] %v6729_v1 }
  0xcc   :  { %1159 = vmatpush.msra.mxu1 %v6585_v42  ;;  %1182 = vmatpush.msra.mxu2 %v6589_v43 }
  0xcd   :  { %1205 = vmatpush.msra.mxu3 %v6591_v44  ;;  %1137 = vmatpush.msra.mxu0 %v6595_v45 }
  0xce   :  { %1160 = vmatpush.msra.mxu1 %v6597_v52  ;;  %1183 = vmatpush.msra.mxu2 %v6601_v53 }
  0xcf   :  { %1206 = vmatpush.msra.mxu3 %v6603_v58  ;;  %1138 = vmatpush.msra.mxu0 %v6607_v59 }
  0xd0   :  { %1161 = vmatpush.msra.mxu1 %v6609_v60  ;;  %1184 = vmatpush.msra.mxu2 %v6613_v61 }
  0xd1   :  { %1207 = vmatpush.msra.mxu3 %v6615_v50  ;;  %1139 = vmatpush.msra.mxu0 %v6619_v57 }
  0xd2   :  { %1162 = vmatpush.msra.mxu1 %v6621_v63  ;;  %1185 = vmatpush.msra.mxu2 %v6625_v2 }
  0xd3   :  { %1208 = vmatpush.msra.mxu3 %v6627_v3  ;;  %1140 = vmatpush.msra.mxu0 %v6631_v4 }
  0xd4   :  { %1163 = vmatpush.msra.mxu1 %v6633_v5  ;;  %1186 = vmatpush.msra.mxu2 %v6637_v6 }
  0xd5   :  { %1209 = vmatpush.msra.mxu3 %v6639_v7  ;;  %1141 = vmatpush.msra.mxu0 %v6643_v8 }
  0xd6   :  { %1164 = vmatpush.msra.mxu1 %v6645_v9  ;;  %1187 = vmatpush.msra.mxu2 %v6649_v11 }
  0xd7   :  { %1210 = vmatpush.msra.mxu3 %v6651_v12  ;;  %1142 = vmatpush.msra.mxu0 %v6655_v13 }
  0xd8   :  { %1165 = vmatpush.msra.mxu1 %v6657_v14  ;;  %1188 = vmatpush.msra.mxu2 %v6661_v15 }
  0xd9   :  { %1211 = vmatpush.msra.mxu3 %v6663_v16  ;;  %1143 = vmatpush.msra.mxu0 %v6667_v17 }
  0xda   :  { %1166 = vmatpush.msra.mxu1 %v6669_v18  ;;  %1189 = vmatpush.msra.mxu2 %v6673_v19 }
  0xdb   :  { %1212 = vmatpush.msra.mxu3 %v6675_v20  ;;  %743 = vmatmul.f32.gmra.mxu0 %v6679_v21 }
  0xdc   :  { %1167 = vmatpush.msra.mxu1 %v6681_v22  ;;  %1144 = vmatpush.msra.mxu0 %v6685_v23  ;;  %v945_v23 = vld [vmem:[#allocation3 + $0xe2] ss:$8 sm:$0x3] }
  0xdd   :  { %1190 = vmatpush.msra.mxu2 %v6687_v24  ;;  %1213 = vmatpush.msra.mxu3 %v6691_v25  ;;  %v917_v25 = vld [vmem:[#allocation3 + $0x2] ss:$8 sm:$0x3] }
  0xde   :  { %766 = vmatmul.f32.gmra.mxu1 %v6693_v26  ;;  %789 = vmatmul.f32.gmra.mxu2 %v6679_v21  ;;  %v6735_v24 = vld [vmem:[#allocation5] sm:$0xff]  ;;  %1102 = vst [vmem:[#allocation1] ss:$9 sm:$0xff] %v917_v25  ;;  %v6749_v25 = vld [vmem:[#allocation5 + $0x1f0] sm:$0xff] }
  0xdf   :  { %812 = vmatmul.f32.gmra.mxu3 %v6693_v26  ;;  %1145 = vmatpush.msra.mxu0 %v6699_v27  ;;  %v921_v27 = vld [vmem:[#allocation3 + $0x22] ss:$8 sm:$0x3]  ;;  %10363 = vst [vmem:[#allocation28_spill] sm:$0xff] %v6735_v24 }
  0xe0   :  { %1168 = vmatpush.msra.mxu1 %v6701_v28  ;;  %1191 = vmatpush.msra.mxu2 %v6705_v29  ;;  %v919_v28 = vld [vmem:[#allocation3 + $0x12] ss:$8 sm:$0x3]  ;;  %v6737_v29 = vld [vmem:[#allocation5 + $0x200] sm:$0xff]  ;;  %1106 = vst [vmem:[#allocation1 + $0x2] ss:$9 sm:$0xff] %v921_v27 }
  0xe1   :  { %1214 = vmatpush.msra.mxu3 %v6707_v30  ;;  %1146 = vmatpush.msra.mxu0 %v6711_v31  ;;  %10364 = vst [vmem:[#allocation30_spill] sm:$0xff] %v6737_v29  ;;  %v6741_v30 = vld [vmem:[#allocation5 + $0x8] sm:$0xff]  ;;  %v923_v31 = vld [vmem:[#allocation3 + $0x32] ss:$8 sm:$0x3] }
  0xe2   :  { %1169 = vmatpush.msra.mxu1 %v6713_v32  ;;  %1192 = vmatpush.msra.mxu2 %v6715_v33  ;;  %10365 = vst [vmem:[#allocation31_spill] sm:$0xff] %v6741_v30  ;;  %v6745_v33 = vld [vmem:[#allocation5 + $0x208] sm:$0xff]  ;;  %v6759_v27 = vld [vmem:[#allocation5 + $0x3f8] sm:$0xff] }
  0xe3   :  { %1215 = vmatpush.msra.mxu3 %v6719_v34  ;;  %1147 = vmatpush.msra.mxu0 %v6721_v35  ;;  %1104 = vst [vmem:[#allocation1 + $0x1] ss:$9 sm:$0xff] %v919_v28  ;;  %v925_v34 = vld [vmem:[#allocation3 + $0x42] ss:$8 sm:$0x3]  ;;  %v6751_v35 = vld [vmem:[#allocation5 + $0x3f0] sm:$0xff] }
  0xe4   :  { %1170 = vmatpush.msra.mxu1 %v6723_v36  ;;  %1193 = vmatpush.msra.mxu2 %v6727_v0  ;;  %10366 = vst [vmem:[#allocation32_spill] sm:$0xff] %v6745_v33  ;;  %v6755_v28 = vld [vmem:[#allocation5 + $0x1f8] sm:$0xff]  ;;  %v6763_v0 = vld [vmem:[#allocation5 + $0x3d0] sm:$0xff]  ;;  %v937_v36 = vld [vmem:[#allocation3 + $0xa2] ss:$8 sm:$0x3] }
  0xe5   :  { %1216 = vmatpush.msra.mxu3 %v6729_v1  ;;  %832 = vmatmul.f32.vlgmr.msrb.gmra.mxu0 %v6511_v10  ;;  %10367 = vst [vmem:[#allocation33_spill] sm:$0xff] %v6749_v25  ;;  %v927_v1 = vld [vmem:[#allocation3 + $0x52] ss:$8 sm:$0x3] }
  0xe6   :  { %1171 = vmatpush.msra.mxu1 %v6737_v29  ;;  %10368 = vst [vmem:[#allocation34_spill] sm:$0xff] %v6751_v35  ;;  %1148 = vmatpush.msra.mxu0 %v6735_v24  ;;  %v6761_v29 = vld [vmem:[#allocation5 + $0x1d0] sm:$0xff] }
  0xe7   :  { %1108 = vst [vmem:[#allocation1 + $0x3] ss:$9 sm:$0xff] %v923_v31  ;;  %1194 = vmatpush.msra.mxu2 %v6741_v30  ;;  %1217 = vmatpush.msra.mxu3 %v6745_v33  ;;  %v929_v31 = vld [vmem:[#allocation3 + $0x62] ss:$8 sm:$0x3]  ;;  %v6771_v33 = vld [vmem:[#allocation5 + $0x3d8] sm:$0xff] }
  0xe8   :  { %10369 = vst [vmem:[#allocation35_spill] sm:$0xff] %v6755_v28  ;;  %855 = vmatmul.f32.vlgmr.msrb.gmra.mxu1 %v6513_v54  ;;  %878 = vmatmul.f32.vlgmr.msrb.gmra.mxu2 %v6511_v10  ;;  %v931_v30 = vld [vmem:[#allocation3 + $0x72] ss:$8 sm:$0x3] }
  0xe9   :  { %1110 = vst [vmem:[#allocation1 + $0x4] ss:$9 sm:$0xff] %v925_v34  ;;  %901 = vmatmul.f32.vlgmr.msrb.gmra.mxu3 %v6513_v54  ;;  %1225 = vmatpush.msrb.mxu0 %v6749_v25  ;;  %v6769_v34 = vld [vmem:[#allocation5 + $0x1d8] sm:$0xff]  ;;  %v6777_v10 = vld [vmem:[#allocation5 + $0x3b0] sm:$0xff] }
  0xea   :  { %10370 = vst [vmem:[#allocation36_spill] sm:$0xff] %v6759_v27  ;;  %1248 = vmatpush.msrb.mxu1 %v6751_v35  ;;  %1271 = vmatpush.msrb.mxu2 %v6755_v28  ;;  %v6781_v54 = vld [vmem:[#allocation5 + $0x1b8] sm:$0xff]  ;;  %v933_v25 = vld [vmem:[#allocation3 + $0x82] ss:$8 sm:$0x3] }
  0xeb   :  { %10371 = vst [vmem:[#allocation37_spill] sm:$0xff] %v6761_v29  ;;  %1294 = vmatpush.msrb.mxu3 %v6759_v27  ;;  %1226 = vmatpush.msrb.mxu0 %v6761_v29  ;;  %v6783_v35 = vld [vmem:[#allocation5 + $0x3b8] sm:$0xff]  ;;  %v6789_v27 = vld [vmem:[#allocation5 + $0x390] sm:$0xff] }
  0xec   :  { %10372 = vst [vmem:[#allocation38_spill] sm:$0xff] %v6763_v0  ;;  %1249 = vmatpush.msrb.mxu1 %v6763_v0  ;;  %1272 = vmatpush.msrb.mxu2 %v6769_v34  ;;  %v6795_v29 = vld [vmem:[#allocation5 + $0x398] sm:$0xff]  ;;  %v6799_v0 = vld [vmem:[#allocation5 + $0x170] sm:$0xff] }
  0xed   :  { %1112 = vst [vmem:[#allocation1 + $0x5] ss:$9 sm:$0xff] %v927_v1  ;;  %v6775_v1 = vld [vmem:[#allocation5 + $0x1b0] sm:$0xff]  ;;  %1295 = vmatpush.msrb.mxu3 %v6771_v33  ;;  %v6877_v28 = vld [vmem:[#allocation5 + $0x2b8] sm:$0xff]  ;;  %835 = vmatmul.f32.gmra.mxu0 %v6679_v21 }
  0xee   :  { %10373 = vst [vmem:[#allocation39_spill] sm:$0xff] %v6769_v34  ;;  %1227 = vmatpush.msrb.mxu0 %v6775_v1  ;;  %1250 = vmatpush.msrb.mxu1 %v6777_v10  ;;  %v6801_v34 = vld [vmem:[#allocation5 + $0x370] sm:$0xff] }
  0xef   :  { %10374 = vst [vmem:[#allocation40_spill] sm:$0xff] %v6771_v33  ;;  %1273 = vmatpush.msrb.mxu2 %v6781_v54  ;;  %1296 = vmatpush.msrb.mxu3 %v6783_v35  ;;  %v6805_v33 = vld [vmem:[#allocation5 + $0x178] sm:$0xff] }
  0xf0   :  { %1114 = vst [vmem:[#allocation1 + $0x6] ss:$9 sm:$0xff] %v929_v31  ;;  %v6787_v31 = vld [vmem:[#allocation5 + $0x190] sm:$0xff]  ;;  %1251 = vmatpush.msrb.mxu1 %v6789_v27  ;;  %881 = vmatmul.f32.gmra.mxu2 %v6679_v21 }
  0xf1   :  { %10375 = vst [vmem:[#allocation41_spill] sm:$0xff] %v6775_v1  ;;  %1228 = vmatpush.msrb.mxu0 %v6787_v31  ;;  %v6807_v1 = vld [vmem:[#allocation5 + $0x378] sm:$0xff]  ;;  %1297 = vmatpush.msrb.mxu3 %v6795_v29  ;;  %v6927_v21 = vld [vmem:[#allocation5 + $0x30] sm:$0xff] }
  0xf2   :  { %10376 = vst [vmem:[#allocation42_spill] sm:$0xff] %v6777_v10  ;;  %v6811_v10 = vld [vmem:[#allocation5 + $0x150] sm:$0xff]  ;;  %1252 = vmatpush.msrb.mxu1 %v6801_v34  ;;  %904 = vmatmul.f32.gmra.mxu3 %v6693_v26 }
  0xf3   :  { %1116 = vst [vmem:[#allocation1 + $0x7] ss:$9 sm:$0xff] %v931_v30  ;;  %v6793_v30 = vld [vmem:[#allocation5 + $0x198] sm:$0xff]  ;;  %1229 = vmatpush.msrb.mxu0 %v6799_v0  ;;  %1298 = vmatpush.msrb.mxu3 %v6807_v1 }
  0xf4   :  { %10377 = vst [vmem:[#allocation43_spill] sm:$0xff] %v6781_v54  ;;  %1274 = vmatpush.msrb.mxu2 %v6793_v30  ;;  %v6813_v54 = vld [vmem:[#allocation5 + $0x350] sm:$0xff]  ;;  %858 = vmatmul.f32.gmra.mxu1 %v6693_v26 }
  0xf5   :  { %10378 = vst [vmem:[#allocation44_spill] sm:$0xff] %v6783_v35  ;;  %v6817_v35 = vld [vmem:[#allocation5 + $0x158] sm:$0xff]  ;;  %1230 = vmatpush.msrb.mxu0 %v6811_v10  ;;  %1253 = vmatpush.msrb.mxu1 %v6813_v54  ;;  %v6929_v26 = vld [vmem:[#allocation5 + $0x230] sm:$0xff] }
  0xf6   :  { %10379 = vst [vmem:[#allocation45_spill] sm:$0xff] %v6787_v31  ;;  %v6819_v31 = vld [vmem:[#allocation5 + $0x358] sm:$0xff]  ;;  %1275 = vmatpush.msrb.mxu2 %v6805_v33 }
  0xf7   :  { %10380 = vst [vmem:[#allocation46_spill] sm:$0xff] %v6789_v27  ;;  %v6823_v27 = vld [vmem:[#allocation5 + $0x130] sm:$0xff]  ;;  %1299 = vmatpush.msrb.mxu3 %v6819_v31 }
  0xf8   :  { %10381 = vst [vmem:[#allocation47_spill] sm:$0xff] %v6793_v30  ;;  %v6825_v30 = vld [vmem:[#allocation5 + $0x330] sm:$0xff]  ;;  %1276 = vmatpush.msrb.mxu2 %v6817_v35  ;;  %1231 = vmatpush.msrb.mxu0 %v6823_v27 }
  0xf9   :  { %10382 = vst [vmem:[#allocation48_spill] sm:$0xff] %v6795_v29  ;;  %v6829_v29 = vld [vmem:[#allocation5 + $0x138] sm:$0xff]  ;;  %1254 = vmatpush.msrb.mxu1 %v6825_v30 }
  0xfa   :  { %10383 = vst [vmem:[#allocation49_spill] sm:$0xff] %v6799_v0  ;;  %v6831_v0 = vld [vmem:[#allocation5 + $0x338] sm:$0xff]  ;;  %1277 = vmatpush.msrb.mxu2 %v6829_v29 }
  0xfb   :  { %10384 = vst [vmem:[#allocation50_spill] sm:$0xff] %v6801_v34  ;;  %v6835_v34 = vld [vmem:[#allocation5 + $0x110] sm:$0xff]  ;;  %1300 = vmatpush.msrb.mxu3 %v6831_v0 }
  0xfc   :  { %10385 = vst [vmem:[#allocation51_spill] sm:$0xff] %v6805_v33  ;;  %v6837_v33 = vld [vmem:[#allocation5 + $0x310] sm:$0xff]  ;;  %1232 = vmatpush.msrb.mxu0 %v6835_v34 }
  0xfd   :  { %10386 = vst [vmem:[#allocation52_spill] sm:$0xff] %v6807_v1  ;;  %v6841_v1 = vld [vmem:[#allocation5 + $0x118] sm:$0xff]  ;;  %1255 = vmatpush.msrb.mxu1 %v6837_v33 }
  0xfe   :  { %10387 = vst [vmem:[#allocation53_spill] sm:$0xff] %v6811_v10  ;;  %v6843_v10 = vld [vmem:[#allocation5 + $0x318] sm:$0xff]  ;;  %1278 = vmatpush.msrb.mxu2 %v6841_v1 }
  0xff   :  { %10388 = vst [vmem:[#allocation54_spill] sm:$0xff] %v6813_v54  ;;  %v6847_v54 = vld [vmem:[#allocation5 + $0xf0] sm:$0xff]  ;;  %1301 = vmatpush.msrb.mxu3 %v6843_v10 }
 0x100   :  { %10389 = vst [vmem:[#allocation55_spill] sm:$0xff] %v6817_v35  ;;  %v6849_v35 = vld [vmem:[#allocation5 + $0x2f0] sm:$0xff]  ;;  %1233 = vmatpush.msrb.mxu0 %v6847_v54 }
 0x101   :  { %10390 = vst [vmem:[#allocation56_spill] sm:$0xff] %v6819_v31  ;;  %v6853_v31 = vld [vmem:[#allocation5 + $0xf8] sm:$0xff]  ;;  %1256 = vmatpush.msrb.mxu1 %v6849_v35 }
 0x102   :  { %10391 = vst [vmem:[#allocation57_spill] sm:$0xff] %v6823_v27  ;;  %v6855_v27 = vld [vmem:[#allocation5 + $0x2f8] sm:$0xff]  ;;  %1279 = vmatpush.msrb.mxu2 %v6853_v31 }
 0x103   :  { %10392 = vst [vmem:[#allocation58_spill] sm:$0xff] %v6825_v30  ;;  %v6859_v30 = vld [vmem:[#allocation5 + $0xd0] sm:$0xff]  ;;  %1302 = vmatpush.msrb.mxu3 %v6855_v27 }
 0x104   :  { %10393 = vst [vmem:[#allocation59_spill] sm:$0xff] %v6829_v29  ;;  %v6861_v29 = vld [vmem:[#allocation5 + $0x2d0] sm:$0xff]  ;;  %1234 = vmatpush.msrb.mxu0 %v6859_v30 }
 0x105   :  { %10394 = vst [vmem:[#allocation60_spill] sm:$0xff] %v6831_v0  ;;  %v6865_v0 = vld [vmem:[#allocation5 + $0xd8] sm:$0xff]  ;;  %1257 = vmatpush.msrb.mxu1 %v6861_v29 }
 0x106   :  { %10395 = vst [vmem:[#allocation61_spill] sm:$0xff] %v6835_v34  ;;  %v6867_v34 = vld [vmem:[#allocation5 + $0x2d8] sm:$0xff]  ;;  %1280 = vmatpush.msrb.mxu2 %v6865_v0 }
 0x107   :  { %10396 = vst [vmem:[#allocation62_spill] sm:$0xff] %v6837_v33  ;;  %v6869_v33 = vld [vmem:[#allocation5 + $0xb0] sm:$0xff]  ;;  %1303 = vmatpush.msrb.mxu3 %v6867_v34 }
 0x108   :  { %10397 = vst [vmem:[#allocation63_spill] sm:$0xff] %v6841_v1  ;;  %v6873_v1 = vld [vmem:[#allocation5 + $0x2b0] sm:$0xff]  ;;  %1235 = vmatpush.msrb.mxu0 %v6869_v33 }
 0x109   :  { %10398 = vst [vmem:[#allocation64_spill] sm:$0xff] %v6843_v10  ;;  %v6875_v10 = vld [vmem:[#allocation5 + $0xb8] sm:$0xff]  ;;  %1258 = vmatpush.msrb.mxu1 %v6873_v1  ;;  %1304 = vmatpush.msrb.mxu3 %v6877_v28 }
 0x10a   :  { %10399 = vst [vmem:[#allocation65_spill] sm:$0xff] %v6847_v54  ;;  %v6883_v54 = vld [vmem:[#allocation5 + $0x290] sm:$0xff]  ;;  %1281 = vmatpush.msrb.mxu2 %v6875_v10 }
 0x10b   :  { %10400 = vst [vmem:[#allocation66_spill] sm:$0xff] %v6849_v35  ;;  %v6881_v35 = vld [vmem:[#allocation5 + $0x90] sm:$0xff]  ;;  %1259 = vmatpush.msrb.mxu1 %v6883_v54 }
 0x10c   :  { %10401 = vst [vmem:[#allocation67_spill] sm:$0xff] %v6853_v31  ;;  %v6889_v31 = vld [vmem:[#allocation5 + $0x298] sm:$0xff]  ;;  %1236 = vmatpush.msrb.mxu0 %v6881_v35 }
 0x10d   :  { %10402 = vst [vmem:[#allocation68_spill] sm:$0xff] %v6855_v27  ;;  %v6887_v27 = vld [vmem:[#allocation5 + $0x98] sm:$0xff]  ;;  %1305 = vmatpush.msrb.mxu3 %v6889_v31 }
 0x10e   :  { %10403 = vst [vmem:[#allocation69_spill] sm:$0xff] %v6859_v30  ;;  %v935_v24 = vld [vmem:[#allocation3 + $0x92] ss:$8 sm:$0x3]  ;;  %1282 = vmatpush.msrb.mxu2 %v6887_v27 }
 0x10f   :  { %10404 = vst [vmem:[#allocation70_spill] sm:$0xff] %v6861_v29  ;;  %v6893_v30 = vld [vmem:[#allocation1] sm:$0xff]  ;;  %v6895_v29 = vld [vmem:[#allocation1 + $0x9] sm:$0xff] }
 0x110   :  { %10405 = vst [vmem:[#allocation71_spill] sm:$0xff] %v6865_v0  ;;  %v6899_v0 = vld [vmem:[#allocation5 + $0x70] sm:$0xff]  ;;  %1149 = vmatmul.f32.vlgmr.msra.gmra.mxu0 %v6893_v30  ;;  %1172 = vmatmul.f32.vlgmr.msra.gmra.mxu1 %v6895_v29 }
 0x111   :  { %10406 = vst [vmem:[#allocation72_spill] sm:$0xff] %v6867_v34  ;;  %v6901_v34 = vld [vmem:[#allocation5 + $0x270] sm:$0xff]  ;;  %1237 = vmatpush.msrb.mxu0 %v6899_v0  ;;  %1195 = vmatmul.f32.vlgmr.msra.gmra.mxu2 %v6893_v30 }
 0x112   :  { %10407 = vst [vmem:[#allocation73_spill] sm:$0xff] %v6869_v33  ;;  %v939_v32 = vld [vmem:[#allocation3 + $0xb2] ss:$8 sm:$0x3]  ;;  %1260 = vmatpush.msrb.mxu1 %v6901_v34  ;;  %1218 = vmatmul.f32.vlgmr.msra.gmra.mxu3 %v6895_v29 }
 0x113   :  { %10408 = vst [vmem:[#allocation74_spill] sm:$0xff] %v6873_v1  ;;  %v6905_v1 = vld [vmem:[#allocation5 + $0x78] sm:$0xff]  ;;  %v941_v33 = vld [vmem:[#allocation3 + $0xc2] ss:$8 sm:$0x3] }
 0x114   :  { %10409 = vst [vmem:[#allocation76_spill] sm:$0xff] %v6875_v10  ;;  %v6909_v10 = vld [vmem:[#allocation5 + $0x278] sm:$0xff]  ;;  %1283 = vmatpush.msrb.mxu2 %v6905_v1 }
 0x115   :  { %10410 = vst [vmem:[#allocation75_spill] sm:$0xff] %v6877_v28  ;;  %v943_v28 = vld [vmem:[#allocation3 + $0xd2] ss:$8 sm:$0x3]  ;;  %1306 = vmatpush.msrb.mxu3 %v6909_v10 }
 0x116   :  { %10411 = vst [vmem:[#allocation77_spill] sm:$0xff] %v6881_v35  ;;  %v947_v35 = vld [vmem:[#allocation3 + $0xf2] ss:$8 sm:$0x3] }
 0x117   :  { %10412 = vst [vmem:[#allocation78_spill] sm:$0xff] %v6889_v31  ;;  %v6923_v31 = vld [vmem:[#allocation5 + $0x258] sm:$0xff] }
 0x118   :  { %1119 = vst [vmem:[#allocation1] ss:$9 sm:$0xff] %v933_v25  ;;  %v6913_v25 = vld [vmem:[#allocation5 + $0x50] sm:$0xff]  ;;  %1307 = vmatpush.msrb.mxu3 %v6923_v31 }
 0x119   :  { %1120 = vst [vmem:[#allocation1 + $0x1] ss:$9 sm:$0xff] %v935_v24  ;;  %v6917_v24 = vld [vmem:[#allocation5 + $0x250] sm:$0xff]  ;;  %1238 = vmatpush.msrb.mxu0 %v6913_v25 }
 0x11a   :  { %1121 = vst [vmem:[#allocation1 + $0x2] ss:$9 sm:$0xff] %v937_v36  ;;  %v6921_v36 = vld [vmem:[#allocation5 + $0x58] sm:$0xff]  ;;  %1261 = vmatpush.msrb.mxu1 %v6917_v24 }
 0x11b   :  { %10413 = vst [vmem:[#allocation79_spill] sm:$0xff] %v6913_v25  ;;  %1284 = vmatpush.msrb.mxu2 %v6921_v36  ;;  %1239 = vmatpush.msrb.mxu0 %v6927_v21  ;;  %v6945_v25 = vld [vmem:[#allocation5 + $0x18] sm:$0xff] }
 0x11c   :  { %1122 = vst [vmem:[#allocation1 + $0x3] ss:$9 sm:$0xff] %v939_v32  ;;  %v6933_v32 = vld [vmem:[#allocation5 + $0x38] sm:$0xff]  ;;  %1262 = vmatpush.msrb.mxu1 %v6929_v26 }
 0x11d   :  { %10414 = vst [vmem:[#allocation80_spill] sm:$0xff] %v6917_v24  ;;  %1285 = vmatpush.msrb.mxu2 %v6933_v32  ;;  %v6949_v24 = vld [vmem:[#allocation5 + $0x218] sm:$0xff] }
 0x11e   :  { %1123 = vst [vmem:[#allocation1 + $0x4] ss:$9 sm:$0xff] %v941_v33  ;;  %v6935_v33 = vld [vmem:[#allocation5 + $0x238] sm:$0xff] }
 0x11f   :  { %1124 = vst [vmem:[#allocation1 + $0x5] ss:$9 sm:$0xff] %v943_v28  ;;  %v6939_v28 = vld [vmem:[#allocation5 + $0x210] sm:$0xff]  ;;  %1308 = vmatpush.msrb.mxu3 %v6935_v33  ;;  %1286 = vmatpush.msrb.mxu2 %v6945_v25 }
 0x120   :  { %1125 = vst [vmem:[#allocation1 + $0x6] ss:$9 sm:$0xff] %v945_v23  ;;  %v6943_v23 = vld [vmem:[#allocation5 + $0x10] sm:$0xff]  ;;  %1263 = vmatpush.msrb.mxu1 %v6939_v28 }
 0x121   :  { %1126 = vst [vmem:[#allocation1 + $0x7] ss:$9 sm:$0xff] %v947_v35  ;;  %1240 = vmatpush.msrb.mxu0 %v6943_v23  ;;  %1309 = vmatpush.msrb.mxu3 %v6949_v24  ;;  %v10451_v35 = vld [vmem:[#allocation50_spill] sm:$0xff] }
 0x122   :  { %1565 = vmatpush.msra.mxu1 %v6549_v49  ;;  %1588 = vmatpush.msra.mxu2 %v6553_v62  ;;  %v10415_v62 = vld [vmem:[#allocation14_spill] sm:$0xff] }
 0x123   :  { %1542 = vmatpush.msra.mxu0 %v6547_v37  ;;  %1611 = vmatpush.msra.mxu3 %v6555_v51  ;;  %v10416_v51 = vld [vmem:[#allocation15_spill] sm:$0xff] }
 0x124   :  { %1566 = vmatpush.msra.mxu1 %v6561_v48  ;;  %1589 = vmatpush.msra.mxu2 %v6565_v46  ;;  %v10418_v48 = vld [vmem:[#allocation17_spill] sm:$0xff]  ;;  %v10419_v46 = vld [vmem:[#allocation18_spill] sm:$0xff] }
 0x125   :  { %1543 = vmatpush.msra.mxu0 %v6559_v47  ;;  %1612 = vmatpush.msra.mxu3 %v6567_v56  ;;  %v10417_v47 = vld [vmem:[#allocation16_spill] sm:$0xff]  ;;  %v10420_v56 = vld [vmem:[#allocation19_spill] sm:$0xff] }
 0x126   :  { %1567 = vmatpush.msra.mxu1 %v6573_v38  ;;  %1590 = vmatpush.msra.mxu2 %v6577_v39  ;;  %v10422_v38 = vld [vmem:[#allocation21_spill] sm:$0xff]  ;;  %v10423_v39 = vld [vmem:[#allocation22_spill] sm:$0xff] }
 0x127   :  { %1544 = vmatpush.msra.mxu0 %v6571_v55  ;;  %1613 = vmatpush.msra.mxu3 %v6579_v40  ;;  %v10421_v55 = vld [vmem:[#allocation20_spill] sm:$0xff]  ;;  %v1326_v40 = vld [vmem:[#allocation3 + $0x3] ss:$8 sm:$0x3] }
 0x128   :  { %1568 = vmatpush.msra.mxu1 %v6585_v42  ;;  %1591 = vmatpush.msra.mxu2 %v6589_v43  ;;  %v6999_v37 = vld [vmem:[#allocation1] sm:$0xff]  ;;  %v7005_v49 = vld [vmem:[#allocation1 + $0x9] sm:$0xff] }
 0x129   :  { %1545 = vmatpush.msra.mxu0 %v6583_v41  ;;  %1614 = vmatpush.msra.mxu3 %v6591_v44  ;;  %v10424_v41 = vld [vmem:[#allocation23_spill] sm:$0xff]  ;;  %v10425_v42 = vld [vmem:[#allocation24_spill] sm:$0xff]  ;;  %v10426_v44 = vld [vmem:[#allocation25_spill] sm:$0xff]  ;;  %1511 = vst [vmem:[#allocation1] ss:$9 sm:$0xff] %v1326_v40 }
 0x12a   :  { %1569 = vmatpush.msra.mxu1 %v6597_v52  ;;  %1592 = vmatpush.msra.mxu2 %v6601_v53  ;;  %v1328_v43 = vld [vmem:[#allocation3 + $0x13] ss:$8 sm:$0x3]  ;;  %v1330_v52 = vld [vmem:[#allocation3 + $0x23] ss:$8 sm:$0x3] }
 0x12b   :  { %1546 = vmatpush.msra.mxu0 %v6595_v45  ;;  %1615 = vmatpush.msra.mxu3 %v6603_v58  ;;  %v10427_v45 = vld [vmem:[#allocation26_spill] sm:$0xff]  ;;  %v10428_v53 = vld [vmem:[#allocation27_spill] sm:$0xff]  ;;  %v10429_v58 = vld [vmem:[#allocation29_spill] sm:$0xff]  ;;  %1513 = vst [vmem:[#allocation1 + $0x1] ss:$9 sm:$0xff] %v1328_v43 }
 0x12c   :  { %1570 = vmatpush.msra.mxu1 %v6609_v60  ;;  %1593 = vmatpush.msra.mxu2 %v6613_v61  ;;  %v10430_v60 = vld [vmem:[#allocation30_spill] sm:$0xff]  ;;  %1515 = vst [vmem:[#allocation1 + $0x2] ss:$9 sm:$0xff] %v1330_v52  ;;  %v10462_v40 = vld [vmem:[#allocation61_spill] sm:$0xff]  ;;  %v10465_v43 = vld [vmem:[#allocation64_spill] sm:$0xff] }
 0x12d   :  { %1547 = vmatpush.msra.mxu0 %v6607_v59  ;;  %1616 = vmatpush.msra.mxu3 %v6615_v50  ;;  %v1332_v59 = vld [vmem:[#allocation3 + $0x33] ss:$8 sm:$0x3]  ;;  %v1334_v61 = vld [vmem:[#allocation3 + $0x43] ss:$8 sm:$0x3] }
 0x12e   :  { %1571 = vmatpush.msra.mxu1 %v6621_v63  ;;  %1594 = vmatpush.msra.mxu2 %v6625_v2  ;;  %v10431_v50 = vld [vmem:[#allocation28_spill] sm:$0xff]  ;;  %1517 = vst [vmem:[#allocation1 + $0x3] ss:$9 sm:$0xff] %v1332_v59  ;;  %v10468_v52 = vld [vmem:[#allocation67_spill] sm:$0xff] }
 0x12f   :  { %1548 = vmatpush.msra.mxu0 %v6619_v57  ;;  %1617 = vmatpush.msra.mxu3 %v6627_v3  ;;  %v10432_v57 = vld [vmem:[#allocation31_spill] sm:$0xff]  ;;  %v10433_v2 = vld [vmem:[#allocation32_spill] sm:$0xff]  ;;  %v1338_v3 = vld [vmem:[#allocation3 + $0x63] ss:$8 sm:$0x3] }
 0x130   :  { %1572 = vmatpush.msra.mxu1 %v6633_v5  ;;  %1595 = vmatpush.msra.mxu2 %v6637_v6  ;;  %v1336_v63 = vld [vmem:[#allocation3 + $0x53] ss:$8 sm:$0x3]  ;;  %1519 = vst [vmem:[#allocation1 + $0x4] ss:$9 sm:$0xff] %v1334_v61  ;;  %v10434_v5 = vld [vmem:[#allocation33_spill] sm:$0xff] }
 0x131   :  { %1549 = vmatpush.msra.mxu0 %v6631_v4  ;;  %1618 = vmatpush.msra.mxu3 %v6639_v7  ;;  %v1340_v4 = vld [vmem:[#allocation3 + $0x73] ss:$8 sm:$0x3]  ;;  %v10435_v6 = vld [vmem:[#allocation34_spill] sm:$0xff]  ;;  %1521 = vst [vmem:[#allocation1 + $0x5] ss:$9 sm:$0xff] %v1336_v63 }
 0x132   :  { %1573 = vmatpush.msra.mxu1 %v6645_v9  ;;  %1596 = vmatpush.msra.mxu2 %v6649_v11  ;;  %v10436_v7 = vld [vmem:[#allocation35_spill] sm:$0xff]  ;;  %1523 = vst [vmem:[#allocation1 + $0x6] ss:$9 sm:$0xff] %v1338_v3  ;;  %v10438_v9 = vld [vmem:[#allocation37_spill] sm:$0xff]  ;;  %v10439_v11 = vld [vmem:[#allocation38_spill] sm:$0xff] }
 0x133   :  { %1550 = vmatpush.msra.mxu0 %v6643_v8  ;;  %1619 = vmatpush.msra.mxu3 %v6651_v12  ;;  %v10437_v8 = vld [vmem:[#allocation36_spill] sm:$0xff]  ;;  %1525 = vst [vmem:[#allocation1 + $0x7] ss:$9 sm:$0xff] %v1340_v4  ;;  %v10440_v12 = vld [vmem:[#allocation39_spill] sm:$0xff]  ;;  %v10470_v61 = vld [vmem:[#allocation69_spill] sm:$0xff] }
 0x134   :  { %1574 = vmatpush.msra.mxu1 %v6657_v14  ;;  %1597 = vmatpush.msra.mxu2 %v6661_v15  ;;  %v10442_v14 = vld [vmem:[#allocation41_spill] sm:$0xff]  ;;  %v10443_v15 = vld [vmem:[#allocation42_spill] sm:$0xff]  ;;  %v10473_v63 = vld [vmem:[#allocation72_spill] sm:$0xff] }
 0x135   :  { %1551 = vmatpush.msra.mxu0 %v6655_v13  ;;  %1620 = vmatpush.msra.mxu3 %v6663_v16  ;;  %v10441_v13 = vld [vmem:[#allocation40_spill] sm:$0xff]  ;;  %v10444_v16 = vld [vmem:[#allocation43_spill] sm:$0xff]  ;;  %v10474_v3 = vld [vmem:[#allocation73_spill] sm:$0xff] }
 0x136   :  { %1575 = vmatpush.msra.mxu1 %v6669_v18  ;;  %1598 = vmatpush.msra.mxu2 %v6673_v19  ;;  %v10446_v18 = vld [vmem:[#allocation45_spill] sm:$0xff]  ;;  %v10447_v19 = vld [vmem:[#allocation46_spill] sm:$0xff] }
 0x137   :  { %1552 = vmatpush.msra.mxu0 %v6667_v17  ;;  %1621 = vmatpush.msra.mxu3 %v6675_v20  ;;  %v10445_v17 = vld [vmem:[#allocation44_spill] sm:$0xff]  ;;  %v10448_v20 = vld [vmem:[#allocation47_spill] sm:$0xff]  ;;  %v10475_v4 = vld [vmem:[#allocation74_spill] sm:$0xff] }
 0x138   :  { %1152 = vmatmul.f32.gmra.mxu0 %v6999_v37  ;;  %1576 = vmatpush.msra.mxu1 %v6681_v22  ;;  %v10449_v22 = vld [vmem:[#allocation48_spill] sm:$0xff] }
 0x139   :  { %1553 = vmatpush.msra.mxu0 %v10415_v62  ;;  %1599 = vmatpush.msra.mxu2 %v10416_v51  ;;  %v10453_v62 = vld [vmem:[#allocation52_spill] sm:$0xff]  ;;  %v10454_v51 = vld [vmem:[#allocation53_spill] sm:$0xff] }
 0x13a   :  { %1622 = vmatpush.msra.mxu3 %v10417_v47  ;;  %1175 = vmatmul.f32.gmra.mxu1 %v7005_v49  ;;  %v10455_v47 = vld [vmem:[#allocation54_spill] sm:$0xff] }
 0x13b   :  { %1198 = vmatmul.f32.gmra.mxu2 %v6999_v37  ;;  %1221 = vmatmul.f32.gmra.mxu3 %v7005_v49  ;;  %v7073_v59 = vld [vmem:[#allocation1 + $0x9] sm:$0xff] }
 0x13c   :  { %1554 = vmatpush.msra.mxu0 %v10418_v48  ;;  %1577 = vmatpush.msra.mxu1 %v10419_v46  ;;  %v10456_v48 = vld [vmem:[#allocation55_spill] sm:$0xff]  ;;  %v10457_v46 = vld [vmem:[#allocation56_spill] sm:$0xff] }
 0x13d   :  { %1600 = vmatpush.msra.mxu2 %v10420_v56  ;;  %1623 = vmatpush.msra.mxu3 %v10421_v55  ;;  %v10458_v56 = vld [vmem:[#allocation57_spill] sm:$0xff]  ;;  %v10459_v55 = vld [vmem:[#allocation58_spill] sm:$0xff] }
 0x13e   :  { %1555 = vmatpush.msra.mxu0 %v10422_v38  ;;  %1578 = vmatpush.msra.mxu1 %v10423_v39  ;;  %v10460_v38 = vld [vmem:[#allocation59_spill] sm:$0xff]  ;;  %v10461_v39 = vld [vmem:[#allocation60_spill] sm:$0xff] }
 0x13f   :  { %1601 = vmatpush.msra.mxu2 %v10424_v41  ;;  %1624 = vmatpush.msra.mxu3 %v10425_v42  ;;  %v10463_v41 = vld [vmem:[#allocation62_spill] sm:$0xff]  ;;  %v10464_v42 = vld [vmem:[#allocation63_spill] sm:$0xff] }
 0x140   :  { %1556 = vmatpush.msra.mxu0 %v10426_v44  ;;  %1579 = vmatpush.msra.mxu1 %v10427_v45  ;;  %v10466_v44 = vld [vmem:[#allocation65_spill] sm:$0xff]  ;;  %v10467_v45 = vld [vmem:[#allocation66_spill] sm:$0xff] }
 0x141   :  { %1602 = vmatpush.msra.mxu2 %v10428_v53  ;;  %1625 = vmatpush.msra.mxu3 %v10429_v58  ;;  %v10469_v53 = vld [vmem:[#allocation68_spill] sm:$0xff] }
 0x142   :  { %1241 = vmatmul.f32.vlgmr.msrb.gmra.mxu0 %v6893_v30  ;;  %1580 = vmatpush.msra.mxu1 %v10430_v60  ;;  %v7071_v58 = vld [vmem:[#allocation1] sm:$0xff]  ;;  %v1342_v60 = vld [vmem:[#allocation3 + $0x83] ss:$8 sm:$0x3] }
 0x143   :  { %1557 = vmatpush.msra.mxu0 %v10431_v50  ;;  %1603 = vmatpush.msra.mxu2 %v10432_v57  ;;  %v10471_v50 = vld [vmem:[#allocation70_spill] sm:$0xff]  ;;  %1528 = vst [vmem:[#allocation1] ss:$9 sm:$0xff] %v1342_v60  ;;  %v10472_v57 = vld [vmem:[#allocation71_spill] sm:$0xff] }
 0x144   :  { %1626 = vmatpush.msra.mxu3 %v10433_v2  ;;  %1264 = vmatmul.f32.vlgmr.msrb.gmra.mxu1 %v6895_v29  ;;  %v1344_v2 = vld [vmem:[#allocation3 + $0x93] ss:$8 sm:$0x3]  ;;  %v7233_v60 = vld [vmem:[#allocation5 + $0xa8] sm:$0xff] }
 0x145   :  { %1287 = vmatmul.f32.vlgmr.msrb.gmra.mxu2 %v6893_v30  ;;  %1310 = vmatmul.f32.vlgmr.msrb.gmra.mxu3 %v6895_v29  ;;  %v10450_v29 = vld [vmem:[#allocation49_spill] sm:$0xff]  ;;  %v10452_v30 = vld [vmem:[#allocation51_spill] sm:$0xff]  ;;  %1529 = vst [vmem:[#allocation1 + $0x1] ss:$9 sm:$0xff] %v1344_v2 }
 0x146   :  { %1634 = vmatpush.msrb.mxu0 %v10434_v5  ;;  %1657 = vmatpush.msrb.mxu1 %v10435_v6  ;;  %v10476_v5 = vld [vmem:[#allocation76_spill] sm:$0xff]  ;;  %v10477_v6 = vld [vmem:[#allocation75_spill] sm:$0xff] }
 0x147   :  { %1680 = vmatpush.msrb.mxu2 %v10436_v7  ;;  %1703 = vmatpush.msrb.mxu3 %v10437_v8  ;;  %v1346_v7 = vld [vmem:[#allocation3 + $0xa3] ss:$8 sm:$0x3] }
 0x148   :  { %1635 = vmatpush.msrb.mxu0 %v10438_v9  ;;  %1658 = vmatpush.msrb.mxu1 %v10439_v11  ;;  %1530 = vst [vmem:[#allocation1 + $0x2] ss:$9 sm:$0xff] %v1346_v7  ;;  %v10478_v8 = vld [vmem:[#allocation77_spill] sm:$0xff]  ;;  %v1348_v9 = vld [vmem:[#allocation3 + $0xb3] ss:$8 sm:$0x3] }
 0x149   :  { %1681 = vmatpush.msrb.mxu2 %v10440_v12  ;;  %1704 = vmatpush.msrb.mxu3 %v10441_v13  ;;  %v10479_v11 = vld [vmem:[#allocation78_spill] sm:$0xff]  ;;  %1531 = vst [vmem:[#allocation1 + $0x3] ss:$9 sm:$0xff] %v1348_v9  ;;  %v1352_v13 = vld [vmem:[#allocation3 + $0xd3] ss:$8 sm:$0x3] }
 0x14a   :  { %1636 = vmatpush.msrb.mxu0 %v10442_v14  ;;  %1659 = vmatpush.msrb.mxu1 %v10443_v15  ;;  %v1350_v12 = vld [vmem:[#allocation3 + $0xc3] ss:$8 sm:$0x3]  ;;  %v10480_v14 = vld [vmem:[#allocation79_spill] sm:$0xff]  ;;  %v10481_v15 = vld [vmem:[#allocation80_spill] sm:$0xff] }
 0x14b   :  { %1682 = vmatpush.msrb.mxu2 %v10444_v16  ;;  %1705 = vmatpush.msrb.mxu3 %v10445_v17  ;;  %1532 = vst [vmem:[#allocation1 + $0x4] ss:$9 sm:$0xff] %v1350_v12  ;;  %v7155_v16 = vld [vmem:[#allocation5 + $0x160] sm:$0xff]  ;;  %v7247_v2 = vld [vmem:[#allocation5 + $0x88] sm:$0xff] }
 0x14c   :  { %1637 = vmatpush.msrb.mxu0 %v10446_v18  ;;  %1660 = vmatpush.msrb.mxu1 %v10447_v19  ;;  %1533 = vst [vmem:[#allocation1 + $0x5] ss:$9 sm:$0xff] %v1352_v13  ;;  %v7157_v17 = vld [vmem:[#allocation5 + $0x360] sm:$0xff]  ;;  %v7161_v18 = vld [vmem:[#allocation5 + $0x168] sm:$0xff] }
 0x14d   :  { %1683 = vmatpush.msrb.mxu2 %v10448_v20  ;;  %1706 = vmatpush.msrb.mxu3 %v10449_v22  ;;  %v7163_v19 = vld [vmem:[#allocation5 + $0x368] sm:$0xff]  ;;  %v7167_v20 = vld [vmem:[#allocation5 + $0x140] sm:$0xff]  ;;  %10483 = vst [vmem:[#allocation82_spill] sm:$0xff] %v7247_v2 }
 0x14e   :  { %1638 = vmatpush.msrb.mxu0 %v10450_v29  ;;  %1661 = vmatpush.msrb.mxu1 %v10451_v35  ;;  %v7169_v22 = vld [vmem:[#allocation5 + $0x340] sm:$0xff]  ;;  %v7173_v29 = vld [vmem:[#allocation5 + $0x148] sm:$0xff] }
 0x14f   :  { %1684 = vmatpush.msrb.mxu2 %v10452_v30  ;;  %1707 = vmatpush.msrb.mxu3 %v10453_v62  ;;  %v7175_v35 = vld [vmem:[#allocation5 + $0x348] sm:$0xff]  ;;  %v7179_v30 = vld [vmem:[#allocation5 + $0x120] sm:$0xff] }
 0x150   :  { %1639 = vmatpush.msrb.mxu0 %v10454_v51  ;;  %1662 = vmatpush.msrb.mxu1 %v10455_v47  ;;  %v7181_v62 = vld [vmem:[#allocation5 + $0x320] sm:$0xff]  ;;  %v7185_v51 = vld [vmem:[#allocation5 + $0x128] sm:$0xff] }
 0x151   :  { %1685 = vmatpush.msrb.mxu2 %v10456_v48  ;;  %1708 = vmatpush.msrb.mxu3 %v10457_v46  ;;  %v7187_v47 = vld [vmem:[#allocation5 + $0x328] sm:$0xff]  ;;  %v7191_v48 = vld [vmem:[#allocation5 + $0x100] sm:$0xff] }
 0x152   :  { %1640 = vmatpush.msrb.mxu0 %v10458_v56  ;;  %1663 = vmatpush.msrb.mxu1 %v10459_v55  ;;  %v7193_v46 = vld [vmem:[#allocation5 + $0x300] sm:$0xff]  ;;  %v7197_v56 = vld [vmem:[#allocation5 + $0x108] sm:$0xff] }
 0x153   :  { %1686 = vmatpush.msrb.mxu2 %v10460_v38  ;;  %1709 = vmatpush.msrb.mxu3 %v10461_v39  ;;  %v7199_v55 = vld [vmem:[#allocation5 + $0x308] sm:$0xff]  ;;  %v7203_v38 = vld [vmem:[#allocation5 + $0xe0] sm:$0xff] }
 0x154   :  { %1641 = vmatpush.msrb.mxu0 %v10462_v40  ;;  %1664 = vmatpush.msrb.mxu1 %v10463_v41  ;;  %v7205_v39 = vld [vmem:[#allocation5 + $0x2e0] sm:$0xff]  ;;  %v7209_v40 = vld [vmem:[#allocation5 + $0xe8] sm:$0xff] }
 0x155   :  { %1687 = vmatpush.msrb.mxu2 %v10464_v42  ;;  %1710 = vmatpush.msrb.mxu3 %v10465_v43  ;;  %v7211_v41 = vld [vmem:[#allocation5 + $0x2e8] sm:$0xff]  ;;  %v7215_v42 = vld [vmem:[#allocation5 + $0xc0] sm:$0xff] }
 0x156   :  { %1642 = vmatpush.msrb.mxu0 %v10466_v44  ;;  %1665 = vmatpush.msrb.mxu1 %v10467_v45  ;;  %v7217_v43 = vld [vmem:[#allocation5 + $0x2c0] sm:$0xff]  ;;  %v7221_v44 = vld [vmem:[#allocation5 + $0xc8] sm:$0xff] }
 0x157   :  { %1688 = vmatpush.msrb.mxu2 %v10468_v52  ;;  %1711 = vmatpush.msrb.mxu3 %v10469_v53  ;;  %v7223_v45 = vld [vmem:[#allocation5 + $0x2c8] sm:$0xff]  ;;  %v7227_v52 = vld [vmem:[#allocation5 + $0xa0] sm:$0xff] }
 0x158   :  { %1643 = vmatpush.msrb.mxu0 %v10470_v61  ;;  %1666 = vmatpush.msrb.mxu1 %v10471_v50  ;;  %v7229_v53 = vld [vmem:[#allocation5 + $0x2a0] sm:$0xff]  ;;  %v7235_v61 = vld [vmem:[#allocation5 + $0x2a8] sm:$0xff] }
 0x159   :  { %1689 = vmatpush.msrb.mxu2 %v10472_v57  ;;  %1712 = vmatpush.msrb.mxu3 %v10473_v63  ;;  %v7241_v57 = vld [vmem:[#allocation5 + $0x280] sm:$0xff]  ;;  %v7265_v7 = vld [vmem:[#allocation5 + $0x68] sm:$0xff] }
 0x15a   :  { %1644 = vmatpush.msrb.mxu0 %v10474_v3  ;;  %1667 = vmatpush.msrb.mxu1 %v10475_v4  ;;  %v7245_v63 = vld [vmem:[#allocation5 + $0x80] sm:$0xff]  ;;  %v7251_v3 = vld [vmem:[#allocation5 + $0x288] sm:$0xff]  ;;  %10487 = vst [vmem:[#allocation86_spill] sm:$0xff] %v7265_v7 }
 0x15b   :  { %1690 = vmatpush.msrb.mxu2 %v10476_v5  ;;  %1713 = vmatpush.msrb.mxu3 %v10477_v6  ;;  %10482 = vst [vmem:[#allocation81_spill] sm:$0xff] %v7245_v63  ;;  %v7259_v5 = vld [vmem:[#allocation5 + $0x60] sm:$0xff]  ;;  %v7275_v12 = vld [vmem:[#allocation5 + $0x48] sm:$0xff] }
 0x15c   :  { %1244 = vmatmul.f32.gmra.mxu0 %v6999_v37  ;;  %1668 = vmatpush.msrb.mxu1 %v6883_v54  ;;  %v1354_v54 = vld [vmem:[#allocation3 + $0xe3] ss:$8 sm:$0x3]  ;;  %10484 = vst [vmem:[#allocation83_spill] sm:$0xff] %v7251_v3 }
 0x15d   :  { %1645 = vmatpush.msrb.mxu0 %v10478_v8  ;;  %1691 = vmatpush.msrb.mxu2 %v6887_v27  ;;  %v1356_v27 = vld [vmem:[#allocation3 + $0xf3] ss:$8 sm:$0x3]  ;;  %1534 = vst [vmem:[#allocation1 + $0x6] ss:$9 sm:$0xff] %v1354_v54  ;;  %v7261_v6 = vld [vmem:[#allocation5 + $0x260] sm:$0xff] }
 0x15e   :  { %1714 = vmatpush.msrb.mxu3 %v10479_v11  ;;  %1267 = vmatmul.f32.gmra.mxu1 %v7005_v49  ;;  %1535 = vst [vmem:[#allocation1 + $0x7] ss:$9 sm:$0xff] %v1356_v27  ;;  %v7267_v8 = vld [vmem:[#allocation5 + $0x268] sm:$0xff]  ;;  %v7271_v9 = vld [vmem:[#allocation5 + $0x40] sm:$0xff] }
 0x15f   :  { %1290 = vmatmul.f32.gmra.mxu2 %v6999_v37  ;;  %1313 = vmatmul.f32.gmra.mxu3 %v7005_v49  ;;  %v7149_v37 = vld [vmem:[#allocation5 + $0x188] sm:$0xff]  ;;  %10485 = vst [vmem:[#allocation84_spill] sm:$0xff] %v7259_v5  ;;  %v7273_v11 = vld [vmem:[#allocation5 + $0x240] sm:$0xff] }
 0x160   :  { %1646 = vmatpush.msrb.mxu0 %v6899_v0  ;;  %1669 = vmatpush.msrb.mxu1 %v6901_v34  ;;  %v7107_v0 = vld [vmem:[#allocation5 + $0x1e0] sm:$0xff]  ;;  %v7151_v49 = vld [vmem:[#allocation5 + $0x388] sm:$0xff]  ;;  %10486 = vst [vmem:[#allocation85_spill] sm:$0xff] %v7261_v6 }
 0x161   :  { %1692 = vmatpush.msrb.mxu2 %v6905_v1  ;;  %1715 = vmatpush.msrb.mxu3 %v6909_v10  ;;  %v7109_v34 = vld [vmem:[#allocation5 + $0x3e0] sm:$0xff]  ;;  %v7113_v1 = vld [vmem:[#allocation5 + $0x1e8] sm:$0xff]  ;;  %10488 = vst [vmem:[#allocation14_spill] sm:$0xff] %v7267_v8 }
 0x162   :  { %1647 = vmatpush.msrb.mxu0 %v10480_v14  ;;  %1670 = vmatpush.msrb.mxu1 %v10481_v15  ;;  %v7115_v10 = vld [vmem:[#allocation5 + $0x3e8] sm:$0xff]  ;;  %10489 = vst [vmem:[#allocation15_spill] sm:$0xff] %v7271_v9  ;;  %v7281_v54 = vld [vmem:[#allocation5 + $0x20] sm:$0xff] }
 0x163   :  { %1693 = vmatpush.msrb.mxu2 %v6921_v36  ;;  %1716 = vmatpush.msrb.mxu3 %v6923_v31  ;;  %v7119_v31 = vld [vmem:[#allocation5 + $0x1c0] sm:$0xff]  ;;  %10490 = vst [vmem:[#allocation16_spill] sm:$0xff] %v7273_v11  ;;  %v7279_v13 = vld [vmem:[#allocation5 + $0x248] sm:$0xff] }
 0x164   :  { %1648 = vmatpush.msrb.mxu0 %v6927_v21  ;;  %1671 = vmatpush.msrb.mxu1 %v6929_v26  ;;  %v7121_v36 = vld [vmem:[#allocation5 + $0x3c0] sm:$0xff]  ;;  %10491 = vst [vmem:[#allocation17_spill] sm:$0xff] %v7275_v12  ;;  %v7287_v14 = vld [vmem:[#allocation5 + $0x28] sm:$0xff] }
 0x165   :  { %1694 = vmatpush.msrb.mxu2 %v6933_v32  ;;  %1717 = vmatpush.msrb.mxu3 %v6935_v33  ;;  %v7131_v21 = vld [vmem:[#allocation5 + $0x1a0] sm:$0xff]  ;;  %v7137_v32 = vld [vmem:[#allocation5 + $0x1a8] sm:$0xff]  ;;  %v7239_v50 = vld [vmem:[#allocation1] sm:$0xff]  ;;  %10492 = vst [vmem:[#allocation18_spill] sm:$0xff] %v7279_v13 }
 0x166   :  { %1558 = vmatmul.f32.vlgmr.msra.gmra.mxu0 %v7071_v58  ;;  %1672 = vmatpush.msrb.mxu1 %v6939_v28  ;;  %v7133_v26 = vld [vmem:[#allocation5 + $0x3a0] sm:$0xff]  ;;  %v7139_v33 = vld [vmem:[#allocation5 + $0x3a8] sm:$0xff]  ;;  %10493 = vst [vmem:[#allocation19_spill] sm:$0xff] %v7281_v54 }
 0x167   :  { %1649 = vmatpush.msrb.mxu0 %v6943_v23  ;;  %1695 = vmatpush.msrb.mxu2 %v6945_v25  ;;  %v7125_v25 = vld [vmem:[#allocation5 + $0x1c8] sm:$0xff]  ;;  %v7143_v28 = vld [vmem:[#allocation5 + $0x180] sm:$0xff]  ;;  %10495 = vst [vmem:[#allocation21_spill] sm:$0xff] %v7287_v14 }
 0x168   :  { %1718 = vmatpush.msrb.mxu3 %v6949_v24  ;;  %1581 = vmatmul.f32.vlgmr.msra.gmra.mxu1 %v7073_v59  ;;  %v7127_v24 = vld [vmem:[#allocation5 + $0x3c8] sm:$0xff]  ;;  %v7145_v23 = vld [vmem:[#allocation5 + $0x380] sm:$0xff] }
 0x169   :  { %1604 = vmatmul.f32.vlgmr.msra.gmra.mxu2 %v7071_v58  ;;  %1627 = vmatmul.f32.vlgmr.msra.gmra.mxu3 %v7073_v59  ;;  %v7253_v4 = vld [vmem:[#allocation1 + $0x9] sm:$0xff] }
 0x16a   :  { %1951 = vmatpush.msra.mxu0 %v7107_v0  ;;  %1974 = vmatpush.msra.mxu1 %v7109_v34  ;;  %v7283_v27 = vld [vmem:[#allocation5 + $0x220] sm:$0xff]  ;;  %v7289_v15 = vld [vmem:[#allocation5 + $0x228] sm:$0xff] }
 0x16b   :  { %1997 = vmatpush.msra.mxu2 %v7113_v1  ;;  %2020 = vmatpush.msra.mxu3 %v7115_v10  ;;  %10494 = vst [vmem:[#allocation20_spill] sm:$0xff] %v7283_v27 }
 0x16c   :  { %1952 = vmatpush.msra.mxu0 %v7119_v31  ;;  %1975 = vmatpush.msra.mxu1 %v7121_v36  ;;  %10496 = vst [vmem:[#allocation22_spill] sm:$0xff] %v7289_v15 }
 0x16d   :  { %1998 = vmatpush.msra.mxu2 %v7125_v25  ;;  %2021 = vmatpush.msra.mxu3 %v7127_v24 }
 0x16e   :  { %1953 = vmatpush.msra.mxu0 %v7131_v21  ;;  %1976 = vmatpush.msra.mxu1 %v7133_v26 }
 0x16f   :  { %1999 = vmatpush.msra.mxu2 %v7137_v32  ;;  %2022 = vmatpush.msra.mxu3 %v7139_v33 }
 0x170   :  { %1954 = vmatpush.msra.mxu0 %v7143_v28  ;;  %1977 = vmatpush.msra.mxu1 %v7145_v23 }
 0x171   :  { %2000 = vmatpush.msra.mxu2 %v7149_v37  ;;  %2023 = vmatpush.msra.mxu3 %v7151_v49 }
 0x172   :  { %1955 = vmatpush.msra.mxu0 %v7155_v16  ;;  %1978 = vmatpush.msra.mxu1 %v7157_v17 }
 0x173   :  { %2001 = vmatpush.msra.mxu2 %v7161_v18  ;;  %2024 = vmatpush.msra.mxu3 %v7163_v19 }
 0x174   :  { %1956 = vmatpush.msra.mxu0 %v7167_v20  ;;  %1979 = vmatpush.msra.mxu1 %v7169_v22 }
 0x175   :  { %2002 = vmatpush.msra.mxu2 %v7173_v29  ;;  %2025 = vmatpush.msra.mxu3 %v7175_v35 }
 0x176   :  { %1957 = vmatpush.msra.mxu0 %v7179_v30  ;;  %1980 = vmatpush.msra.mxu1 %v7181_v62 }
 0x177   :  { %2003 = vmatpush.msra.mxu2 %v7185_v51  ;;  %2026 = vmatpush.msra.mxu3 %v7187_v47 }
 0x178   :  { %1958 = vmatpush.msra.mxu0 %v7191_v48  ;;  %1981 = vmatpush.msra.mxu1 %v7193_v46 }
 0x179   :  { %2004 = vmatpush.msra.mxu2 %v7197_v56  ;;  %2027 = vmatpush.msra.mxu3 %v7199_v55 }
 0x17a   :  { %1959 = vmatpush.msra.mxu0 %v7203_v38  ;;  %1982 = vmatpush.msra.mxu1 %v7205_v39 }
 0x17b   :  { %2005 = vmatpush.msra.mxu2 %v7209_v40  ;;  %2028 = vmatpush.msra.mxu3 %v7211_v41 }
 0x17c   :  { %1960 = vmatpush.msra.mxu0 %v7215_v42  ;;  %1983 = vmatpush.msra.mxu1 %v7217_v43 }
 0x17d   :  { %2006 = vmatpush.msra.mxu2 %v7221_v44  ;;  %2029 = vmatpush.msra.mxu3 %v7223_v45 }
 0x17e   :  { %1961 = vmatpush.msra.mxu0 %v7227_v52  ;;  %1984 = vmatpush.msra.mxu1 %v7229_v53 }
 0x17f   :  { %2007 = vmatpush.msra.mxu2 %v7233_v60  ;;  %2030 = vmatpush.msra.mxu3 %v7235_v61 }
 0x180   :  { %1561 = vmatmul.f32.gmra.mxu0 %v7239_v50  ;;  %1985 = vmatpush.msra.mxu1 %v7241_v57 }
 0x181   :  { %1962 = vmatpush.msra.mxu0 %v7245_v63  ;;  %2008 = vmatpush.msra.mxu2 %v7247_v2  ;;  %v7295_v2 = vld [vmem:[#allocation5] sm:$0xff] }
 0x182   :  { %2031 = vmatpush.msra.mxu3 %v7251_v3  ;;  %1584 = vmatmul.f32.gmra.mxu1 %v7253_v4  ;;  %v1735_v3 = vld [vmem:[#allocation3 + $0x4] ss:$8 sm:$0x3]  ;;  %10497 = vst [vmem:[#allocation23_spill] sm:$0xff] %v7295_v2 }
 0x183   :  { %1607 = vmatmul.f32.gmra.mxu2 %v7239_v50  ;;  %1630 = vmatmul.f32.gmra.mxu3 %v7253_v4  ;;  %1920 = vst [vmem:[#allocation1] ss:$9 sm:$0xff] %v1735_v3  ;;  %v7309_v3 = vld [vmem:[#allocation5 + $0x1f0] sm:$0xff]  ;;  %v1763_v63 = vld [vmem:[#allocation3 + $0xe4] ss:$8 sm:$0x3] }
 0x184   :  { %1963 = vmatpush.msra.mxu0 %v7259_v5  ;;  %1986 = vmatpush.msra.mxu1 %v7261_v6  ;;  %v1737_v6 = vld [vmem:[#allocation3 + $0x14] ss:$8 sm:$0x3]  ;;  %v1739_v5 = vld [vmem:[#allocation3 + $0x24] ss:$8 sm:$0x3] }
 0x185   :  { %2009 = vmatpush.msra.mxu2 %v7265_v7  ;;  %2032 = vmatpush.msra.mxu3 %v7267_v8  ;;  %v7297_v7 = vld [vmem:[#allocation5 + $0x200] sm:$0xff]  ;;  %v7301_v8 = vld [vmem:[#allocation5 + $0x8] sm:$0xff]  ;;  %1922 = vst [vmem:[#allocation1 + $0x1] ss:$9 sm:$0xff] %v1737_v6  ;;  %v7315_v6 = vld [vmem:[#allocation5 + $0x1f8] sm:$0xff] }
 0x186   :  { %1964 = vmatpush.msra.mxu0 %v7271_v9  ;;  %1987 = vmatpush.msra.mxu1 %v7273_v11  ;;  %10498 = vst [vmem:[#allocation24_spill] sm:$0xff] %v7297_v7  ;;  %v1741_v9 = vld [vmem:[#allocation3 + $0x34] ss:$8 sm:$0x3] }
 0x187   :  { %2010 = vmatpush.msra.mxu2 %v7275_v12  ;;  %2033 = vmatpush.msra.mxu3 %v7279_v13  ;;  %10499 = vst [vmem:[#allocation25_spill] sm:$0xff] %v7301_v8  ;;  %v7305_v12 = vld [vmem:[#allocation5 + $0x208] sm:$0xff]  ;;  %v1757_v11 = vld [vmem:[#allocation3 + $0xb4] ss:$8 sm:$0x3] }
 0x188   :  { %1965 = vmatpush.msra.mxu0 %v7281_v54  ;;  %1988 = vmatpush.msra.mxu1 %v7283_v27  ;;  %10500 = vst [vmem:[#allocation26_spill] sm:$0xff] %v7305_v12  ;;  %v1743_v13 = vld [vmem:[#allocation3 + $0x44] ss:$8 sm:$0x3]  ;;  %v7311_v54 = vld [vmem:[#allocation5 + $0x3f0] sm:$0xff] }
 0x189   :  { %2011 = vmatpush.msra.mxu2 %v7287_v14  ;;  %2034 = vmatpush.msra.mxu3 %v7289_v15  ;;  %1924 = vst [vmem:[#allocation1 + $0x2] ss:$9 sm:$0xff] %v1739_v5  ;;  %v1745_v15 = vld [vmem:[#allocation3 + $0x54] ss:$8 sm:$0x3] }
 0x18a   :  { %1650 = vmatmul.f32.vlgmr.msrb.gmra.mxu0 %v7071_v58  ;;  %1989 = vmatpush.msra.mxu1 %v7297_v7  ;;  %10501 = vst [vmem:[#allocation27_spill] sm:$0xff] %v7309_v3  ;;  %v7319_v5 = vld [vmem:[#allocation5 + $0x3f8] sm:$0xff]  ;;  %v7321_v7 = vld [vmem:[#allocation5 + $0x1d0] sm:$0xff]  ;;  %v1755_v27 = vld [vmem:[#allocation3 + $0xa4] ss:$8 sm:$0x3] }
 0x18b   :  { %10502 = vst [vmem:[#allocation29_spill] sm:$0xff] %v7311_v54  ;;  %1966 = vmatpush.msra.mxu0 %v7295_v2  ;;  %2012 = vmatpush.msra.mxu2 %v7301_v8  ;;  %v7323_v14 = vld [vmem:[#allocation5 + $0x3d0] sm:$0xff] }
 0x18c   :  { %1926 = vst [vmem:[#allocation1 + $0x3] ss:$9 sm:$0xff] %v1741_v9  ;;  %2035 = vmatpush.msra.mxu3 %v7305_v12  ;;  %1673 = vmatmul.f32.vlgmr.msrb.gmra.mxu1 %v7073_v59  ;;  %v1747_v9 = vld [vmem:[#allocation3 + $0x64] ss:$8 sm:$0x3]  ;;  %v7331_v12 = vld [vmem:[#allocation5 + $0x3d8] sm:$0xff] }
 0x18d   :  { %10503 = vst [vmem:[#allocation30_spill] sm:$0xff] %v7315_v6  ;;  %1696 = vmatmul.f32.vlgmr.msrb.gmra.mxu2 %v7071_v58  ;;  %1719 = vmatmul.f32.vlgmr.msrb.gmra.mxu3 %v7073_v59  ;;  %v1749_v8 = vld [vmem:[#allocation3 + $0x74] ss:$8 sm:$0x3] }
 0x18e   :  { %1928 = vst [vmem:[#allocation1 + $0x4] ss:$9 sm:$0xff] %v1743_v13  ;;  %2043 = vmatpush.msrb.mxu0 %v7309_v3  ;;  %2066 = vmatpush.msrb.mxu1 %v7311_v54  ;;  %v7329_v13 = vld [vmem:[#allocation5 + $0x1d8] sm:$0xff]  ;;  %v7337_v58 = vld [vmem:[#allocation5 + $0x3b0] sm:$0xff] }
 0x18f   :  { %10504 = vst [vmem:[#allocation28_spill] sm:$0xff] %v7319_v5  ;;  %2089 = vmatpush.msrb.mxu2 %v7315_v6  ;;  %2112 = vmatpush.msrb.mxu3 %v7319_v5  ;;  %v7341_v59 = vld [vmem:[#allocation5 + $0x1b8] sm:$0xff]  ;;  %v7349_v5 = vld [vmem:[#allocation5 + $0x390] sm:$0xff]  ;;  %v1751_v3 = vld [vmem:[#allocation3 + $0x84] ss:$8 sm:$0x3] }
 0x190   :  { %10505 = vst [vmem:[#allocation31_spill] sm:$0xff] %v7321_v7  ;;  %2044 = vmatpush.msrb.mxu0 %v7321_v7  ;;  %2067 = vmatpush.msrb.mxu1 %v7323_v14  ;;  %v7343_v54 = vld [vmem:[#allocation5 + $0x3b8] sm:$0xff] }
 0x191   :  { %10506 = vst [vmem:[#allocation32_spill] sm:$0xff] %v7323_v14  ;;  %2090 = vmatpush.msrb.mxu2 %v7329_v13  ;;  %2113 = vmatpush.msrb.mxu3 %v7331_v12  ;;  %v7355_v7 = vld [vmem:[#allocation5 + $0x398] sm:$0xff]  ;;  %v7359_v14 = vld [vmem:[#allocation5 + $0x170] sm:$0xff] }
 0x192   :  { %1930 = vst [vmem:[#allocation1 + $0x5] ss:$9 sm:$0xff] %v1745_v15  ;;  %v7335_v15 = vld [vmem:[#allocation5 + $0x1b0] sm:$0xff]  ;;  %2068 = vmatpush.msrb.mxu1 %v7337_v58  ;;  %v7437_v6 = vld [vmem:[#allocation5 + $0x2b8] sm:$0xff]  ;;  %1653 = vmatmul.f32.gmra.mxu0 %v7239_v50 }
 0x193   :  { %10507 = vst [vmem:[#allocation33_spill] sm:$0xff] %v7329_v13  ;;  %2045 = vmatpush.msrb.mxu0 %v7335_v15  ;;  %2091 = vmatpush.msrb.mxu2 %v7341_v59  ;;  %v7361_v13 = vld [vmem:[#allocation5 + $0x370] sm:$0xff] }
 0x194   :  { %10508 = vst [vmem:[#allocation34_spill] sm:$0xff] %v7331_v12  ;;  %2114 = vmatpush.msrb.mxu3 %v7343_v54  ;;  %2069 = vmatpush.msrb.mxu1 %v7349_v5  ;;  %v7365_v12 = vld [vmem:[#allocation5 + $0x178] sm:$0xff] }
 0x195   :  { %1932 = vst [vmem:[#allocation1 + $0x6] ss:$9 sm:$0xff] %v1747_v9  ;;  %v7347_v9 = vld [vmem:[#allocation5 + $0x190] sm:$0xff]  ;;  %1676 = vmatmul.f32.gmra.mxu1 %v7253_v4  ;;  %1699 = vmatmul.f32.gmra.mxu2 %v7239_v50 }
 0x196   :  { %10509 = vst [vmem:[#allocation35_spill] sm:$0xff] %v7335_v15  ;;  %2046 = vmatpush.msrb.mxu0 %v7347_v9  ;;  %v7367_v15 = vld [vmem:[#allocation5 + $0x378] sm:$0xff]  ;;  %2115 = vmatpush.msrb.mxu3 %v7355_v7  ;;  %v7487_v50 = vld [vmem:[#allocation5 + $0x30] sm:$0xff] }
 0x197   :  { %10510 = vst [vmem:[#allocation36_spill] sm:$0xff] %v7337_v58  ;;  %v7371_v58 = vld [vmem:[#allocation5 + $0x150] sm:$0xff]  ;;  %2070 = vmatpush.msrb.mxu1 %v7361_v13  ;;  %1722 = vmatmul.f32.gmra.mxu3 %v7253_v4 }
 0x198   :  { %1934 = vst [vmem:[#allocation1 + $0x7] ss:$9 sm:$0xff] %v1749_v8  ;;  %v7353_v8 = vld [vmem:[#allocation5 + $0x198] sm:$0xff]  ;;  %2047 = vmatpush.msrb.mxu0 %v7359_v14  ;;  %2116 = vmatpush.msrb.mxu3 %v7367_v15  ;;  %v7489_v4 = vld [vmem:[#allocation5 + $0x230] sm:$0xff] }
 0x199   :  { %10511 = vst [vmem:[#allocation37_spill] sm:$0xff] %v7341_v59  ;;  %2092 = vmatpush.msrb.mxu2 %v7353_v8  ;;  %v7373_v59 = vld [vmem:[#allocation5 + $0x350] sm:$0xff] }
 0x19a   :  { %10512 = vst [vmem:[#allocation38_spill] sm:$0xff] %v7343_v54  ;;  %v7377_v54 = vld [vmem:[#allocation5 + $0x158] sm:$0xff]  ;;  %2048 = vmatpush.msrb.mxu0 %v7371_v58  ;;  %2071 = vmatpush.msrb.mxu1 %v7373_v59 }
 0x19b   :  { %10513 = vst [vmem:[#allocation39_spill] sm:$0xff] %v7347_v9  ;;  %v7379_v9 = vld [vmem:[#allocation5 + $0x358] sm:$0xff]  ;;  %2093 = vmatpush.msrb.mxu2 %v7365_v12 }
 0x19c   :  { %10514 = vst [vmem:[#allocation40_spill] sm:$0xff] %v7349_v5  ;;  %v7383_v5 = vld [vmem:[#allocation5 + $0x130] sm:$0xff]  ;;  %2117 = vmatpush.msrb.mxu3 %v7379_v9 }
 0x19d   :  { %10515 = vst [vmem:[#allocation41_spill] sm:$0xff] %v7353_v8  ;;  %v7385_v8 = vld [vmem:[#allocation5 + $0x330] sm:$0xff]  ;;  %2094 = vmatpush.msrb.mxu2 %v7377_v54  ;;  %2049 = vmatpush.msrb.mxu0 %v7383_v5 }
 0x19e   :  { %10516 = vst [vmem:[#allocation42_spill] sm:$0xff] %v7355_v7  ;;  %v7389_v7 = vld [vmem:[#allocation5 + $0x138] sm:$0xff]  ;;  %2072 = vmatpush.msrb.mxu1 %v7385_v8 }
 0x19f   :  { %10517 = vst [vmem:[#allocation43_spill] sm:$0xff] %v7359_v14  ;;  %v7391_v14 = vld [vmem:[#allocation5 + $0x338] sm:$0xff]  ;;  %2095 = vmatpush.msrb.mxu2 %v7389_v7 }
 0x1a0   :  { %10518 = vst [vmem:[#allocation44_spill] sm:$0xff] %v7361_v13  ;;  %v7395_v13 = vld [vmem:[#allocation5 + $0x110] sm:$0xff]  ;;  %2118 = vmatpush.msrb.mxu3 %v7391_v14 }
 0x1a1   :  { %10519 = vst [vmem:[#allocation45_spill] sm:$0xff] %v7365_v12  ;;  %v7397_v12 = vld [vmem:[#allocation5 + $0x310] sm:$0xff]  ;;  %2050 = vmatpush.msrb.mxu0 %v7395_v13 }
 0x1a2   :  { %10520 = vst [vmem:[#allocation46_spill] sm:$0xff] %v7367_v15  ;;  %v7401_v15 = vld [vmem:[#allocation5 + $0x118] sm:$0xff]  ;;  %2073 = vmatpush.msrb.mxu1 %v7397_v12 }
 0x1a3   :  { %10521 = vst [vmem:[#allocation47_spill] sm:$0xff] %v7371_v58  ;;  %v7403_v58 = vld [vmem:[#allocation5 + $0x318] sm:$0xff]  ;;  %2096 = vmatpush.msrb.mxu2 %v7401_v15 }
 0x1a4   :  { %10522 = vst [vmem:[#allocation48_spill] sm:$0xff] %v7373_v59  ;;  %v7407_v59 = vld [vmem:[#allocation5 + $0xf0] sm:$0xff]  ;;  %2119 = vmatpush.msrb.mxu3 %v7403_v58 }
 0x1a5   :  { %10523 = vst [vmem:[#allocation49_spill] sm:$0xff] %v7377_v54  ;;  %v7409_v54 = vld [vmem:[#allocation5 + $0x2f0] sm:$0xff]  ;;  %2051 = vmatpush.msrb.mxu0 %v7407_v59 }
 0x1a6   :  { %10524 = vst [vmem:[#allocation50_spill] sm:$0xff] %v7379_v9  ;;  %v7413_v9 = vld [vmem:[#allocation5 + $0xf8] sm:$0xff]  ;;  %2074 = vmatpush.msrb.mxu1 %v7409_v54 }
 0x1a7   :  { %10525 = vst [vmem:[#allocation51_spill] sm:$0xff] %v7383_v5  ;;  %v7415_v5 = vld [vmem:[#allocation5 + $0x2f8] sm:$0xff]  ;;  %2097 = vmatpush.msrb.mxu2 %v7413_v9 }
 0x1a8   :  { %10526 = vst [vmem:[#allocation52_spill] sm:$0xff] %v7385_v8  ;;  %v7419_v8 = vld [vmem:[#allocation5 + $0xd0] sm:$0xff]  ;;  %2120 = vmatpush.msrb.mxu3 %v7415_v5 }
 0x1a9   :  { %10527 = vst [vmem:[#allocation53_spill] sm:$0xff] %v7389_v7  ;;  %v7421_v7 = vld [vmem:[#allocation5 + $0x2d0] sm:$0xff]  ;;  %2052 = vmatpush.msrb.mxu0 %v7419_v8 }
 0x1aa   :  { %10528 = vst [vmem:[#allocation54_spill] sm:$0xff] %v7391_v14  ;;  %v7425_v14 = vld [vmem:[#allocation5 + $0xd8] sm:$0xff]  ;;  %2075 = vmatpush.msrb.mxu1 %v7421_v7 }
 0x1ab   :  { %10529 = vst [vmem:[#allocation55_spill] sm:$0xff] %v7395_v13  ;;  %v7427_v13 = vld [vmem:[#allocation5 + $0x2d8] sm:$0xff]  ;;  %2098 = vmatpush.msrb.mxu2 %v7425_v14 }
 0x1ac   :  { %10530 = vst [vmem:[#allocation56_spill] sm:$0xff] %v7397_v12  ;;  %v7429_v12 = vld [vmem:[#allocation5 + $0xb0] sm:$0xff]  ;;  %2121 = vmatpush.msrb.mxu3 %v7427_v13 }
 0x1ad   :  { %10531 = vst [vmem:[#allocation57_spill] sm:$0xff] %v7401_v15  ;;  %v7433_v15 = vld [vmem:[#allocation5 + $0x2b0] sm:$0xff]  ;;  %2053 = vmatpush.msrb.mxu0 %v7429_v12 }
 0x1ae   :  { %10532 = vst [vmem:[#allocation58_spill] sm:$0xff] %v7403_v58  ;;  %v7435_v58 = vld [vmem:[#allocation5 + $0xb8] sm:$0xff]  ;;  %2076 = vmatpush.msrb.mxu1 %v7433_v15  ;;  %2122 = vmatpush.msrb.mxu3 %v7437_v6 }
 0x1af   :  { %10533 = vst [vmem:[#allocation59_spill] sm:$0xff] %v7407_v59  ;;  %v7443_v59 = vld [vmem:[#allocation5 + $0x290] sm:$0xff]  ;;  %2099 = vmatpush.msrb.mxu2 %v7435_v58 }
 0x1b0   :  { %10534 = vst [vmem:[#allocation60_spill] sm:$0xff] %v7409_v54  ;;  %v7441_v54 = vld [vmem:[#allocation5 + $0x90] sm:$0xff]  ;;  %2077 = vmatpush.msrb.mxu1 %v7443_v59 }
 0x1b1   :  { %10535 = vst [vmem:[#allocation61_spill] sm:$0xff] %v7413_v9  ;;  %v7449_v9 = vld [vmem:[#allocation5 + $0x298] sm:$0xff]  ;;  %2054 = vmatpush.msrb.mxu0 %v7441_v54 }
 0x1b2   :  { %10536 = vst [vmem:[#allocation62_spill] sm:$0xff] %v7415_v5  ;;  %v7447_v5 = vld [vmem:[#allocation5 + $0x98] sm:$0xff]  ;;  %2123 = vmatpush.msrb.mxu3 %v7449_v9 }
 0x1b3   :  { %10537 = vst [vmem:[#allocation63_spill] sm:$0xff] %v7419_v8  ;;  %v1753_v2 = vld [vmem:[#allocation3 + $0x94] ss:$8 sm:$0x3]  ;;  %2100 = vmatpush.msrb.mxu2 %v7447_v5 }
 0x1b4   :  { %10538 = vst [vmem:[#allocation64_spill] sm:$0xff] %v7421_v7  ;;  %v7453_v8 = vld [vmem:[#allocation1] sm:$0xff]  ;;  %v7455_v7 = vld [vmem:[#allocation1 + $0x9] sm:$0xff] }
 0x1b5   :  { %10539 = vst [vmem:[#allocation65_spill] sm:$0xff] %v7425_v14  ;;  %v7459_v14 = vld [vmem:[#allocation5 + $0x70] sm:$0xff]  ;;  %1967 = vmatmul.f32.vlgmr.msra.gmra.mxu0 %v7453_v8  ;;  %1990 = vmatmul.f32.vlgmr.msra.gmra.mxu1 %v7455_v7 }
 0x1b6   :  { %10540 = vst [vmem:[#allocation66_spill] sm:$0xff] %v7427_v13  ;;  %v7461_v13 = vld [vmem:[#allocation5 + $0x270] sm:$0xff]  ;;  %2055 = vmatpush.msrb.mxu0 %v7459_v14  ;;  %2013 = vmatmul.f32.vlgmr.msra.gmra.mxu2 %v7453_v8 }
 0x1b7   :  { %10541 = vst [vmem:[#allocation67_spill] sm:$0xff] %v7429_v12  ;;  %v1759_v12 = vld [vmem:[#allocation3 + $0xc4] ss:$8 sm:$0x3]  ;;  %2078 = vmatpush.msrb.mxu1 %v7461_v13  ;;  %2036 = vmatmul.f32.vlgmr.msra.gmra.mxu3 %v7455_v7 }
 0x1b8   :  { %10542 = vst [vmem:[#allocation68_spill] sm:$0xff] %v7433_v15  ;;  %v7465_v15 = vld [vmem:[#allocation5 + $0x78] sm:$0xff] }
 0x1b9   :  { %10543 = vst [vmem:[#allocation69_spill] sm:$0xff] %v7435_v58  ;;  %v7469_v58 = vld [vmem:[#allocation5 + $0x278] sm:$0xff]  ;;  %2101 = vmatpush.msrb.mxu2 %v7465_v15 }
 0x1ba   :  { %10544 = vst [vmem:[#allocation70_spill] sm:$0xff] %v7437_v6  ;;  %v1761_v6 = vld [vmem:[#allocation3 + $0xd4] ss:$8 sm:$0x3]  ;;  %2124 = vmatpush.msrb.mxu3 %v7469_v58 }
 0x1bb   :  { %10545 = vst [vmem:[#allocation71_spill] sm:$0xff] %v7441_v54  ;;  %v1765_v54 = vld [vmem:[#allocation3 + $0xf4] ss:$8 sm:$0x3] }
 0x1bc   :  { %10546 = vst [vmem:[#allocation72_spill] sm:$0xff] %v7449_v9  ;;  %v7483_v9 = vld [vmem:[#allocation5 + $0x258] sm:$0xff] }
 0x1bd   :  { %1937 = vst [vmem:[#allocation1] ss:$9 sm:$0xff] %v1751_v3  ;;  %v7473_v3 = vld [vmem:[#allocation5 + $0x50] sm:$0xff]  ;;  %2125 = vmatpush.msrb.mxu3 %v7483_v9 }
 0x1be   :  { %1938 = vst [vmem:[#allocation1 + $0x1] ss:$9 sm:$0xff] %v1753_v2  ;;  %v7477_v2 = vld [vmem:[#allocation5 + $0x250] sm:$0xff]  ;;  %2056 = vmatpush.msrb.mxu0 %v7473_v3 }
 0x1bf   :  { %1939 = vst [vmem:[#allocation1 + $0x2] ss:$9 sm:$0xff] %v1755_v27  ;;  %v7481_v27 = vld [vmem:[#allocation5 + $0x58] sm:$0xff]  ;;  %2079 = vmatpush.msrb.mxu1 %v7477_v2 }
 0x1c0   :  { %10547 = vst [vmem:[#allocation73_spill] sm:$0xff] %v7473_v3  ;;  %2102 = vmatpush.msrb.mxu2 %v7481_v27  ;;  %2057 = vmatpush.msrb.mxu0 %v7487_v50  ;;  %v7505_v3 = vld [vmem:[#allocation5 + $0x18] sm:$0xff] }
 0x1c1   :  { %1940 = vst [vmem:[#allocation1 + $0x3] ss:$9 sm:$0xff] %v1757_v11  ;;  %v7493_v11 = vld [vmem:[#allocation5 + $0x38] sm:$0xff]  ;;  %2080 = vmatpush.msrb.mxu1 %v7489_v4 }
 0x1c2   :  { %10548 = vst [vmem:[#allocation74_spill] sm:$0xff] %v7477_v2  ;;  %2103 = vmatpush.msrb.mxu2 %v7493_v11  ;;  %v7509_v2 = vld [vmem:[#allocation5 + $0x218] sm:$0xff] }
 0x1c3   :  { %1941 = vst [vmem:[#allocation1 + $0x4] ss:$9 sm:$0xff] %v1759_v12  ;;  %v7495_v12 = vld [vmem:[#allocation5 + $0x238] sm:$0xff] }
 0x1c4   :  { %1942 = vst [vmem:[#allocation1 + $0x5] ss:$9 sm:$0xff] %v1761_v6  ;;  %v7499_v6 = vld [vmem:[#allocation5 + $0x210] sm:$0xff]  ;;  %2126 = vmatpush.msrb.mxu3 %v7495_v12  ;;  %2104 = vmatpush.msrb.mxu2 %v7505_v3 }
 0x1c5   :  { %1943 = vst [vmem:[#allocation1 + $0x6] ss:$9 sm:$0xff] %v1763_v63  ;;  %v7503_v63 = vld [vmem:[#allocation5 + $0x10] sm:$0xff]  ;;  %2081 = vmatpush.msrb.mxu1 %v7499_v6 }
 0x1c6   :  { %1944 = vst [vmem:[#allocation1 + $0x7] ss:$9 sm:$0xff] %v1765_v54  ;;  %2058 = vmatpush.msrb.mxu0 %v7503_v63  ;;  %2127 = vmatpush.msrb.mxu3 %v7509_v2  ;;  %v10585_v54 = vld [vmem:[#allocation44_spill] sm:$0xff] }
 0x1c7   :  { %2383 = vmatpush.msra.mxu1 %v7109_v34  ;;  %2406 = vmatpush.msra.mxu2 %v7113_v1  ;;  %v10549_v1 = vld [vmem:[#allocation81_spill] sm:$0xff] }
 0x1c8   :  { %2360 = vmatpush.msra.mxu0 %v7107_v0  ;;  %2429 = vmatpush.msra.mxu3 %v7115_v10  ;;  %v10550_v10 = vld [vmem:[#allocation82_spill] sm:$0xff] }
 0x1c9   :  { %2384 = vmatpush.msra.mxu1 %v7121_v36  ;;  %2407 = vmatpush.msra.mxu2 %v7125_v25  ;;  %v10552_v36 = vld [vmem:[#allocation84_spill] sm:$0xff]  ;;  %v10553_v25 = vld [vmem:[#allocation85_spill] sm:$0xff] }
 0x1ca   :  { %2361 = vmatpush.msra.mxu0 %v7119_v31  ;;  %2430 = vmatpush.msra.mxu3 %v7127_v24  ;;  %v10551_v31 = vld [vmem:[#allocation83_spill] sm:$0xff]  ;;  %v10554_v24 = vld [vmem:[#allocation86_spill] sm:$0xff] }
 0x1cb   :  { %2385 = vmatpush.msra.mxu1 %v7133_v26  ;;  %2408 = vmatpush.msra.mxu2 %v7137_v32  ;;  %v10556_v26 = vld [vmem:[#allocation15_spill] sm:$0xff]  ;;  %v10557_v32 = vld [vmem:[#allocation16_spill] sm:$0xff] }
 0x1cc   :  { %2362 = vmatpush.msra.mxu0 %v7131_v21  ;;  %2431 = vmatpush.msra.mxu3 %v7139_v33  ;;  %v10555_v21 = vld [vmem:[#allocation14_spill] sm:$0xff] }
 0x1cd   :  { %2386 = vmatpush.msra.mxu1 %v7145_v23  ;;  %2409 = vmatpush.msra.mxu2 %v7149_v37  ;;  %v7559_v0 = vld [vmem:[#allocation1] sm:$0xff]  ;;  %v7565_v34 = vld [vmem:[#allocation1 + $0x9] sm:$0xff] }
 0x1ce   :  { %2363 = vmatpush.msra.mxu0 %v7143_v28  ;;  %2432 = vmatpush.msra.mxu3 %v7151_v49  ;;  %v2144_v33 = vld [vmem:[#allocation3 + $0x5] ss:$8 sm:$0x3]  ;;  %v10558_v28 = vld [vmem:[#allocation17_spill] sm:$0xff] }
 0x1cf   :  { %2387 = vmatpush.msra.mxu1 %v7157_v17  ;;  %2410 = vmatpush.msra.mxu2 %v7161_v18  ;;  %v10559_v23 = vld [vmem:[#allocation18_spill] sm:$0xff]  ;;  %v2146_v37 = vld [vmem:[#allocation3 + $0x15] ss:$8 sm:$0x3]  ;;  %v10560_v49 = vld [vmem:[#allocation19_spill] sm:$0xff] }
 0x1d0   :  { %2364 = vmatpush.msra.mxu0 %v7155_v16  ;;  %2433 = vmatpush.msra.mxu3 %v7163_v19  ;;  %v10561_v16 = vld [vmem:[#allocation20_spill] sm:$0xff]  ;;  %v2148_v17 = vld [vmem:[#allocation3 + $0x25] ss:$8 sm:$0x3]  ;;  %v10562_v18 = vld [vmem:[#allocation21_spill] sm:$0xff] }
 0x1d1   :  { %2388 = vmatpush.msra.mxu1 %v7169_v22  ;;  %2411 = vmatpush.msra.mxu2 %v7173_v29  ;;  %v10563_v19 = vld [vmem:[#allocation22_spill] sm:$0xff]  ;;  %2329 = vst [vmem:[#allocation1] ss:$9 sm:$0xff] %v2144_v33  ;;  %v10564_v22 = vld [vmem:[#allocation24_spill] sm:$0xff]  ;;  %v10596_v33 = vld [vmem:[#allocation55_spill] sm:$0xff] }
 0x1d2   :  { %2365 = vmatpush.msra.mxu0 %v7167_v20  ;;  %2434 = vmatpush.msra.mxu3 %v7175_v35  ;;  %v2150_v20 = vld [vmem:[#allocation3 + $0x35] ss:$8 sm:$0x3]  ;;  %v2152_v29 = vld [vmem:[#allocation3 + $0x45] ss:$8 sm:$0x3] }
 0x1d3   :  { %2389 = vmatpush.msra.mxu1 %v7181_v62  ;;  %2412 = vmatpush.msra.mxu2 %v7185_v51  ;;  %2331 = vst [vmem:[#allocation1 + $0x1] ss:$9 sm:$0xff] %v2146_v37  ;;  %v10565_v35 = vld [vmem:[#allocation23_spill] sm:$0xff]  ;;  %v2154_v62 = vld [vmem:[#allocation3 + $0x55] ss:$8 sm:$0x3] }
 0x1d4   :  { %2366 = vmatpush.msra.mxu0 %v7179_v30  ;;  %2435 = vmatpush.msra.mxu3 %v7187_v47  ;;  %v10566_v30 = vld [vmem:[#allocation25_spill] sm:$0xff]  ;;  %2333 = vst [vmem:[#allocation1 + $0x2] ss:$9 sm:$0xff] %v2148_v17  ;;  %v10567_v51 = vld [vmem:[#allocation26_spill] sm:$0xff] }
 0x1d5   :  { %2390 = vmatpush.msra.mxu1 %v7193_v46  ;;  %2413 = vmatpush.msra.mxu2 %v7197_v56  ;;  %v2156_v47 = vld [vmem:[#allocation3 + $0x65] ss:$8 sm:$0x3]  ;;  %2335 = vst [vmem:[#allocation1 + $0x3] ss:$9 sm:$0xff] %v2150_v20  ;;  %v10569_v56 = vld [vmem:[#allocation29_spill] sm:$0xff] }
 0x1d6   :  { %2367 = vmatpush.msra.mxu0 %v7191_v48  ;;  %2436 = vmatpush.msra.mxu3 %v7199_v55  ;;  %v2158_v48 = vld [vmem:[#allocation3 + $0x75] ss:$8 sm:$0x3]  ;;  %2337 = vst [vmem:[#allocation1 + $0x4] ss:$9 sm:$0xff] %v2152_v29  ;;  %v10568_v46 = vld [vmem:[#allocation27_spill] sm:$0xff] }
 0x1d7   :  { %2391 = vmatpush.msra.mxu1 %v7205_v39  ;;  %2414 = vmatpush.msra.mxu2 %v7209_v40  ;;  %2339 = vst [vmem:[#allocation1 + $0x5] ss:$9 sm:$0xff] %v2154_v62  ;;  %v10570_v55 = vld [vmem:[#allocation30_spill] sm:$0xff]  ;;  %v10572_v39 = vld [vmem:[#allocation31_spill] sm:$0xff]  ;;  %v10573_v40 = vld [vmem:[#allocation32_spill] sm:$0xff] }
 0x1d8   :  { %2368 = vmatpush.msra.mxu0 %v7203_v38  ;;  %2437 = vmatpush.msra.mxu3 %v7211_v41  ;;  %v10571_v38 = vld [vmem:[#allocation28_spill] sm:$0xff]  ;;  %2341 = vst [vmem:[#allocation1 + $0x6] ss:$9 sm:$0xff] %v2156_v47  ;;  %v10574_v41 = vld [vmem:[#allocation33_spill] sm:$0xff]  ;;  %v10599_v37 = vld [vmem:[#allocation58_spill] sm:$0xff] }
 0x1d9   :  { %2392 = vmatpush.msra.mxu1 %v7217_v43  ;;  %2415 = vmatpush.msra.mxu2 %v7221_v44  ;;  %2343 = vst [vmem:[#allocation1 + $0x7] ss:$9 sm:$0xff] %v2158_v48  ;;  %v10576_v43 = vld [vmem:[#allocation35_spill] sm:$0xff]  ;;  %v10577_v44 = vld [vmem:[#allocation36_spill] sm:$0xff]  ;;  %v10602_v17 = vld [vmem:[#allocation61_spill] sm:$0xff] }
 0x1da   :  { %2369 = vmatpush.msra.mxu0 %v7215_v42  ;;  %2438 = vmatpush.msra.mxu3 %v7223_v45  ;;  %v10575_v42 = vld [vmem:[#allocation34_spill] sm:$0xff]  ;;  %v10578_v45 = vld [vmem:[#allocation37_spill] sm:$0xff]  ;;  %v10604_v29 = vld [vmem:[#allocation63_spill] sm:$0xff] }
 0x1db   :  { %2393 = vmatpush.msra.mxu1 %v7229_v53  ;;  %2416 = vmatpush.msra.mxu2 %v7233_v60  ;;  %v10580_v53 = vld [vmem:[#allocation39_spill] sm:$0xff]  ;;  %v10581_v60 = vld [vmem:[#allocation40_spill] sm:$0xff]  ;;  %v10607_v62 = vld [vmem:[#allocation66_spill] sm:$0xff] }
 0x1dc   :  { %2370 = vmatpush.msra.mxu0 %v7227_v52  ;;  %2439 = vmatpush.msra.mxu3 %v7235_v61  ;;  %v10579_v52 = vld [vmem:[#allocation38_spill] sm:$0xff]  ;;  %v10582_v61 = vld [vmem:[#allocation41_spill] sm:$0xff]  ;;  %v10608_v47 = vld [vmem:[#allocation67_spill] sm:$0xff] }
 0x1dd   :  { %1970 = vmatmul.f32.gmra.mxu0 %v7559_v0  ;;  %2394 = vmatpush.msra.mxu1 %v7241_v57  ;;  %v10583_v57 = vld [vmem:[#allocation42_spill] sm:$0xff]  ;;  %v10609_v48 = vld [vmem:[#allocation68_spill] sm:$0xff] }
 0x1de   :  { %2371 = vmatpush.msra.mxu0 %v10549_v1  ;;  %2417 = vmatpush.msra.mxu2 %v10550_v10  ;;  %v10587_v1 = vld [vmem:[#allocation46_spill] sm:$0xff]  ;;  %v10588_v10 = vld [vmem:[#allocation47_spill] sm:$0xff] }
 0x1df   :  { %2440 = vmatpush.msra.mxu3 %v10551_v31  ;;  %1993 = vmatmul.f32.gmra.mxu1 %v7565_v34  ;;  %v10589_v31 = vld [vmem:[#allocation48_spill] sm:$0xff] }
 0x1e0   :  { %2016 = vmatmul.f32.gmra.mxu2 %v7559_v0  ;;  %2039 = vmatmul.f32.gmra.mxu3 %v7565_v34  ;;  %v7633_v20 = vld [vmem:[#allocation1 + $0x9] sm:$0xff] }
 0x1e1   :  { %2372 = vmatpush.msra.mxu0 %v10552_v36  ;;  %2395 = vmatpush.msra.mxu1 %v10553_v25  ;;  %v10590_v36 = vld [vmem:[#allocation49_spill] sm:$0xff]  ;;  %v10591_v25 = vld [vmem:[#allocation50_spill] sm:$0xff] }
 0x1e2   :  { %2418 = vmatpush.msra.mxu2 %v10554_v24  ;;  %2441 = vmatpush.msra.mxu3 %v10555_v21  ;;  %v10592_v24 = vld [vmem:[#allocation51_spill] sm:$0xff]  ;;  %v10593_v21 = vld [vmem:[#allocation52_spill] sm:$0xff] }
 0x1e3   :  { %2373 = vmatpush.msra.mxu0 %v10556_v26  ;;  %2396 = vmatpush.msra.mxu1 %v10557_v32  ;;  %v10594_v26 = vld [vmem:[#allocation53_spill] sm:$0xff]  ;;  %v10595_v32 = vld [vmem:[#allocation54_spill] sm:$0xff] }
 0x1e4   :  { %2419 = vmatpush.msra.mxu2 %v10558_v28  ;;  %2442 = vmatpush.msra.mxu3 %v10559_v23  ;;  %v10597_v28 = vld [vmem:[#allocation56_spill] sm:$0xff]  ;;  %v10598_v23 = vld [vmem:[#allocation57_spill] sm:$0xff] }
 0x1e5   :  { %2374 = vmatpush.msra.mxu0 %v10560_v49  ;;  %2397 = vmatpush.msra.mxu1 %v10561_v16  ;;  %v10600_v49 = vld [vmem:[#allocation59_spill] sm:$0xff]  ;;  %v10601_v16 = vld [vmem:[#allocation60_spill] sm:$0xff] }
 0x1e6   :  { %2420 = vmatpush.msra.mxu2 %v10562_v18  ;;  %2443 = vmatpush.msra.mxu3 %v10563_v19  ;;  %v10603_v18 = vld [vmem:[#allocation62_spill] sm:$0xff]  ;;  %v7631_v19 = vld [vmem:[#allocation1] sm:$0xff] }
 0x1e7   :  { %2059 = vmatmul.f32.vlgmr.msrb.gmra.mxu0 %v7453_v8  ;;  %2398 = vmatpush.msra.mxu1 %v10564_v22  ;;  %v2160_v22 = vld [vmem:[#allocation3 + $0x85] ss:$8 sm:$0x3] }
 0x1e8   :  { %2375 = vmatpush.msra.mxu0 %v10565_v35  ;;  %2421 = vmatpush.msra.mxu2 %v10566_v30  ;;  %v10605_v35 = vld [vmem:[#allocation64_spill] sm:$0xff]  ;;  %2346 = vst [vmem:[#allocation1] ss:$9 sm:$0xff] %v2160_v22  ;;  %v10606_v30 = vld [vmem:[#allocation65_spill] sm:$0xff]  ;;  %v7781_v22 = vld [vmem:[#allocation5 + $0x108] sm:$0xff] }
 0x1e9   :  { %2444 = vmatpush.msra.mxu3 %v10567_v51  ;;  %2082 = vmatmul.f32.vlgmr.msrb.gmra.mxu1 %v7455_v7  ;;  %v2162_v51 = vld [vmem:[#allocation3 + $0x95] ss:$8 sm:$0x3] }
 0x1ea   :  { %2105 = vmatmul.f32.vlgmr.msrb.gmra.mxu2 %v7453_v8  ;;  %2128 = vmatmul.f32.vlgmr.msrb.gmra.mxu3 %v7455_v7  ;;  %v10584_v7 = vld [vmem:[#allocation43_spill] sm:$0xff]  ;;  %v10586_v8 = vld [vmem:[#allocation45_spill] sm:$0xff]  ;;  %2347 = vst [vmem:[#allocation1 + $0x1] ss:$9 sm:$0xff] %v2162_v51 }
 0x1eb   :  { %2452 = vmatpush.msrb.mxu0 %v10568_v46  ;;  %2475 = vmatpush.msrb.mxu1 %v10569_v56  ;;  %v10610_v46 = vld [vmem:[#allocation69_spill] sm:$0xff]  ;;  %v10611_v56 = vld [vmem:[#allocation70_spill] sm:$0xff] }
 0x1ec   :  { %2498 = vmatpush.msrb.mxu2 %v10570_v55  ;;  %2521 = vmatpush.msrb.mxu3 %v10571_v38  ;;  %v2164_v55 = vld [vmem:[#allocation3 + $0xa5] ss:$8 sm:$0x3]  ;;  %v7643_v38 = vpop.f32.mrf.mxu2 }
 0x1ed   :  { %2453 = vmatpush.msrb.mxu0 %v10572_v39  ;;  %2476 = vmatpush.msrb.mxu1 %v10573_v40  ;;  %10612 = vst [vmem:[#allocation76_spill] sm:$0xff] %v7643_v38  ;;  %v7645_v39 = vpop.f32.mrf.mxu3  ;;  %v10614_v40 = vld [vmem:[#allocation71_spill] sm:$0xff] }
 0x1ee   :  { %2499 = vmatpush.msrb.mxu2 %v10574_v41  ;;  %2522 = vmatpush.msrb.mxu3 %v10575_v42  ;;  %10613 = vst [vmem:[#allocation75_spill] sm:$0xff] %v7645_v39  ;;  %v2166_v41 = vld [vmem:[#allocation3 + $0xb5] ss:$8 sm:$0x3]  ;;  %v7795_v51 = vld [vmem:[#allocation5 + $0xe8] sm:$0xff]  ;;  %v7877_v39 = vld [vmem:[#allocation5 + $0x20] sm:$0xff] }
 0x1ef   :  { %2454 = vmatpush.msrb.mxu0 %v10576_v43  ;;  %2477 = vmatpush.msrb.mxu1 %v10577_v44  ;;  %2348 = vst [vmem:[#allocation1 + $0x2] ss:$9 sm:$0xff] %v2164_v55  ;;  %v10615_v42 = vld [vmem:[#allocation72_spill] sm:$0xff]  ;;  %v2168_v43 = vld [vmem:[#allocation3 + $0xc5] ss:$8 sm:$0x3] }
 0x1f0   :  { %2500 = vmatpush.msrb.mxu2 %v10578_v45  ;;  %2523 = vmatpush.msrb.mxu3 %v10579_v52  ;;  %2349 = vst [vmem:[#allocation1 + $0x3] ss:$9 sm:$0xff] %v2166_v41  ;;  %v2170_v44 = vld [vmem:[#allocation3 + $0xd5] ss:$8 sm:$0x3]  ;;  %v10617_v52 = vld [vmem:[#allocation74_spill] sm:$0xff] }
 0x1f1   :  { %2455 = vmatpush.msrb.mxu0 %v10580_v53  ;;  %2478 = vmatpush.msrb.mxu1 %v10581_v60  ;;  %2350 = vst [vmem:[#allocation1 + $0x4] ss:$9 sm:$0xff] %v2168_v43  ;;  %v10616_v45 = vld [vmem:[#allocation73_spill] sm:$0xff]  ;;  %v7809_v55 = vld [vmem:[#allocation5 + $0xc8] sm:$0xff] }
 0x1f2   :  { %2501 = vmatpush.msrb.mxu2 %v10582_v61  ;;  %2524 = vmatpush.msrb.mxu3 %v10583_v57  ;;  %2351 = vst [vmem:[#allocation1 + $0x5] ss:$9 sm:$0xff] %v2170_v44  ;;  %v7717_v60 = vld [vmem:[#allocation5 + $0x180] sm:$0xff]  ;;  %v7821_v43 = vld [vmem:[#allocation5 + $0xa8] sm:$0xff] }
 0x1f3   :  { %2456 = vmatpush.msrb.mxu0 %v10584_v7  ;;  %2479 = vmatpush.msrb.mxu1 %v10585_v54  ;;  %v7719_v61 = vld [vmem:[#allocation5 + $0x380] sm:$0xff]  ;;  %v7727_v54 = vld [vmem:[#allocation5 + $0x188] sm:$0xff]  ;;  %10646 = vst [vmem:[#allocation32_spill] sm:$0xff] %v7877_v39 }
 0x1f4   :  { %2502 = vmatpush.msrb.mxu2 %v10586_v8  ;;  %2525 = vmatpush.msrb.mxu3 %v10587_v1  ;;  %v7729_v8 = vld [vmem:[#allocation5 + $0x388] sm:$0xff]  ;;  %v7815_v41 = vld [vmem:[#allocation5 + $0xa0] sm:$0xff] }
 0x1f5   :  { %2457 = vmatpush.msrb.mxu0 %v10588_v10  ;;  %2480 = vmatpush.msrb.mxu1 %v10589_v31  ;;  %v7735_v10 = vld [vmem:[#allocation5 + $0x160] sm:$0xff]  ;;  %v7823_v44 = vld [vmem:[#allocation5 + $0x2a8] sm:$0xff] }
 0x1f6   :  { %2503 = vmatpush.msrb.mxu2 %v10590_v36  ;;  %2526 = vmatpush.msrb.mxu3 %v10591_v25  ;;  %v7737_v31 = vld [vmem:[#allocation5 + $0x360] sm:$0xff]  ;;  %v7741_v36 = vld [vmem:[#allocation5 + $0x168] sm:$0xff] }
 0x1f7   :  { %2458 = vmatpush.msrb.mxu0 %v10592_v24  ;;  %2481 = vmatpush.msrb.mxu1 %v10593_v21  ;;  %v7743_v25 = vld [vmem:[#allocation5 + $0x368] sm:$0xff]  ;;  %v7747_v24 = vld [vmem:[#allocation5 + $0x140] sm:$0xff] }
 0x1f8   :  { %2504 = vmatpush.msrb.mxu2 %v10594_v26  ;;  %2527 = vmatpush.msrb.mxu3 %v10595_v32  ;;  %v7749_v21 = vld [vmem:[#allocation5 + $0x340] sm:$0xff]  ;;  %v7753_v26 = vld [vmem:[#allocation5 + $0x148] sm:$0xff] }
 0x1f9   :  { %2459 = vmatpush.msrb.mxu0 %v10596_v33  ;;  %2482 = vmatpush.msrb.mxu1 %v10597_v28  ;;  %v7755_v32 = vld [vmem:[#allocation5 + $0x348] sm:$0xff]  ;;  %v7759_v33 = vld [vmem:[#allocation5 + $0x120] sm:$0xff] }
 0x1fa   :  { %2505 = vmatpush.msrb.mxu2 %v10598_v23  ;;  %2528 = vmatpush.msrb.mxu3 %v10599_v37  ;;  %v7761_v28 = vld [vmem:[#allocation5 + $0x320] sm:$0xff]  ;;  %v7765_v23 = vld [vmem:[#allocation5 + $0x128] sm:$0xff] }
 0x1fb   :  { %2460 = vmatpush.msrb.mxu0 %v10600_v49  ;;  %2483 = vmatpush.msrb.mxu1 %v10601_v16  ;;  %v7767_v37 = vld [vmem:[#allocation5 + $0x328] sm:$0xff]  ;;  %v7771_v49 = vld [vmem:[#allocation5 + $0x100] sm:$0xff] }
 0x1fc   :  { %2506 = vmatpush.msrb.mxu2 %v10602_v17  ;;  %2529 = vmatpush.msrb.mxu3 %v10603_v18  ;;  %v7773_v16 = vld [vmem:[#allocation5 + $0x300] sm:$0xff]  ;;  %v7883_v38 = vld [vmem:[#allocation5 + $0x28] sm:$0xff] }
 0x1fd   :  { %2461 = vmatpush.msrb.mxu0 %v10604_v29  ;;  %2484 = vmatpush.msrb.mxu1 %v10605_v35  ;;  %v7783_v29 = vld [vmem:[#allocation5 + $0x308] sm:$0xff]  ;;  %10648 = vst [vmem:[#allocation34_spill] sm:$0xff] %v7883_v38 }
 0x1fe   :  { %2507 = vmatpush.msrb.mxu2 %v10606_v30  ;;  %2530 = vmatpush.msrb.mxu3 %v10607_v62  ;;  %v7789_v30 = vld [vmem:[#allocation5 + $0xe0] sm:$0xff] }
 0x1ff   :  { %2462 = vmatpush.msrb.mxu0 %v10608_v47  ;;  %2485 = vmatpush.msrb.mxu1 %v10609_v48  ;;  %v7791_v62 = vld [vmem:[#allocation5 + $0x2e0] sm:$0xff]  ;;  %v7797_v47 = vld [vmem:[#allocation5 + $0x2e8] sm:$0xff] }
 0x200   :  { %2508 = vmatpush.msrb.mxu2 %v10610_v46  ;;  %2531 = vmatpush.msrb.mxu3 %v10611_v56  ;;  %v7803_v46 = vld [vmem:[#allocation5 + $0xc0] sm:$0xff] }
 0x201   :  { %2062 = vmatmul.f32.gmra.mxu0 %v7559_v0  ;;  %2486 = vmatpush.msrb.mxu1 %v7443_v59  ;;  %v2172_v59 = vld [vmem:[#allocation3 + $0xe5] ss:$8 sm:$0x3] }
 0x202   :  { %2463 = vmatpush.msrb.mxu0 %v10614_v40  ;;  %2509 = vmatpush.msrb.mxu2 %v7447_v5  ;;  %v2174_v5 = vld [vmem:[#allocation3 + $0xf5] ss:$8 sm:$0x3]  ;;  %2352 = vst [vmem:[#allocation1 + $0x6] ss:$9 sm:$0xff] %v2172_v59  ;;  %v7805_v56 = vld [vmem:[#allocation5 + $0x2c0] sm:$0xff] }
 0x203   :  { %2532 = vmatpush.msrb.mxu3 %v10615_v42  ;;  %2085 = vmatmul.f32.gmra.mxu1 %v7565_v34  ;;  %2353 = vst [vmem:[#allocation1 + $0x7] ss:$9 sm:$0xff] %v2174_v5  ;;  %v7811_v40 = vld [vmem:[#allocation5 + $0x2c8] sm:$0xff]  ;;  %v7817_v42 = vld [vmem:[#allocation5 + $0x2a0] sm:$0xff] }
 0x204   :  { %2108 = vmatmul.f32.gmra.mxu2 %v7559_v0  ;;  %2131 = vmatmul.f32.gmra.mxu3 %v7565_v34  ;;  %v7709_v0 = vld [vmem:[#allocation5 + $0x1a8] sm:$0xff]  ;;  %v7829_v5 = vld [vmem:[#allocation5 + $0x280] sm:$0xff] }
 0x205   :  { %2464 = vmatpush.msrb.mxu0 %v7459_v14  ;;  %2487 = vmatpush.msrb.mxu1 %v7461_v13  ;;  %v7663_v14 = vpop.f32.mrf.mxu2  ;;  %v7665_v13 = vpop.f32.mrf.mxu3  ;;  %v7711_v34 = vld [vmem:[#allocation5 + $0x3a8] sm:$0xff]  ;;  %10630 = vst [vmem:[#allocation16_spill] sm:$0xff] %v7829_v5 }
 0x206   :  { %2510 = vmatpush.msrb.mxu2 %v7465_v15  ;;  %2533 = vmatpush.msrb.mxu3 %v7469_v58  ;;  %10618 = vst [vmem:[#allocation77_spill] sm:$0xff] %v7663_v14  ;;  %v7669_v15 = vpop.f32.mrf.mxu0  ;;  %v7675_v58 = vpop.f32.mrf.mxu1  ;;  %v7869_v14 = vld [vmem:[#allocation5 + $0x240] sm:$0xff] }
 0x207   :  { %2465 = vmatpush.msrb.mxu0 %v10616_v45  ;;  %2488 = vmatpush.msrb.mxu1 %v10617_v52  ;;  %10619 = vst [vmem:[#allocation78_spill] sm:$0xff] %v7665_v13  ;;  %v7833_v45 = vld [vmem:[#allocation5 + $0x80] sm:$0xff]  ;;  %v7835_v52 = vld [vmem:[#allocation5 + $0x88] sm:$0xff] }
 0x208   :  { %2511 = vmatpush.msrb.mxu2 %v7481_v27  ;;  %2534 = vmatpush.msrb.mxu3 %v7483_v9  ;;  %10620 = vst [vmem:[#allocation79_spill] sm:$0xff] %v7669_v15  ;;  %v7679_v9 = vld [vmem:[#allocation5 + $0x1e0] sm:$0xff]  ;;  %v7885_v15 = vld [vmem:[#allocation5 + $0x228] sm:$0xff] }
 0x209   :  { %2466 = vmatpush.msrb.mxu0 %v7487_v50  ;;  %2489 = vmatpush.msrb.mxu1 %v7489_v4  ;;  %10621 = vst [vmem:[#allocation80_spill] sm:$0xff] %v7675_v58  ;;  %v7681_v27 = vld [vmem:[#allocation5 + $0x3e0] sm:$0xff]  ;;  %v7685_v50 = vld [vmem:[#allocation5 + $0x1e8] sm:$0xff] }
 0x20a   :  { %2512 = vmatpush.msrb.mxu2 %v7493_v11  ;;  %2535 = vmatpush.msrb.mxu3 %v7495_v12  ;;  %v7687_v4 = vld [vmem:[#allocation5 + $0x3e8] sm:$0xff]  ;;  %v7691_v11 = vld [vmem:[#allocation5 + $0x1c0] sm:$0xff]  ;;  %v7827_v59 = vld [vmem:[#allocation1] sm:$0xff]  ;;  %10631 = vst [vmem:[#allocation17_spill] sm:$0xff] %v7833_v45 }
 0x20b   :  { %2376 = vmatmul.f32.vlgmr.msra.gmra.mxu0 %v7631_v19  ;;  %2490 = vmatpush.msrb.mxu1 %v7499_v6  ;;  %v7693_v12 = vld [vmem:[#allocation5 + $0x3c0] sm:$0xff]  ;;  %10632 = vst [vmem:[#allocation18_spill] sm:$0xff] %v7835_v52 }
 0x20c   :  { %2467 = vmatpush.msrb.mxu0 %v7503_v63  ;;  %2513 = vmatpush.msrb.mxu2 %v7505_v3  ;;  %v7697_v3 = vld [vmem:[#allocation5 + $0x1c8] sm:$0xff]  ;;  %v7703_v6 = vld [vmem:[#allocation5 + $0x1a0] sm:$0xff]  ;;  %10643 = vst [vmem:[#allocation30_spill] sm:$0xff] %v7869_v14 }
 0x20d   :  { %2536 = vmatpush.msrb.mxu3 %v7509_v2  ;;  %2399 = vmatmul.f32.vlgmr.msra.gmra.mxu1 %v7633_v20  ;;  %v7699_v2 = vld [vmem:[#allocation5 + $0x3c8] sm:$0xff]  ;;  %v7705_v63 = vld [vmem:[#allocation5 + $0x3a0] sm:$0xff]  ;;  %v7721_v57 = vpop.f32.mrf.mxu2  ;;  %v7723_v7 = vpop.f32.mrf.mxu3  ;;  %10649 = vst [vmem:[#allocation35_spill] sm:$0xff] %v7885_v15 }
 0x20e   :  { %2422 = vmatmul.f32.vlgmr.msra.gmra.mxu2 %v7631_v19  ;;  %2445 = vmatmul.f32.vlgmr.msra.gmra.mxu3 %v7633_v20  ;;  %v7713_v53 = vpop.f32.mrf.mxu0  ;;  %10623 = vst [vmem:[#allocation82_spill] sm:$0xff] %v7721_v57  ;;  %v7731_v1 = vpop.f32.mrf.mxu1  ;;  %v7879_v58 = vld [vmem:[#allocation5 + $0x220] sm:$0xff] }
 0x20f   :  { %2769 = vmatpush.msra.mxu0 %v7679_v9  ;;  %2792 = vmatpush.msra.mxu1 %v7681_v27  ;;  %10622 = vst [vmem:[#allocation81_spill] sm:$0xff] %v7713_v53  ;;  %v7871_v53 = vld [vmem:[#allocation5 + $0x48] sm:$0xff] }
 0x210   :  { %2815 = vmatpush.msra.mxu2 %v7685_v50  ;;  %2838 = vmatpush.msra.mxu3 %v7687_v4  ;;  %10624 = vst [vmem:[#allocation83_spill] sm:$0xff] %v7723_v7  ;;  %v7843_v7 = vld [vmem:[#allocation1 + $0x9] sm:$0xff] }
 0x211   :  { %2770 = vmatpush.msra.mxu0 %v7691_v11  ;;  %2793 = vmatpush.msra.mxu1 %v7693_v12  ;;  %10625 = vst [vmem:[#allocation84_spill] sm:$0xff] %v7731_v1 }
 0x212   :  { %2816 = vmatpush.msra.mxu2 %v7697_v3  ;;  %2839 = vmatpush.msra.mxu3 %v7699_v2  ;;  %10644 = vst [vmem:[#allocation28_spill] sm:$0xff] %v7871_v53 }
 0x213   :  { %2771 = vmatpush.msra.mxu0 %v7703_v6  ;;  %2794 = vmatpush.msra.mxu1 %v7705_v63  ;;  %10647 = vst [vmem:[#allocation33_spill] sm:$0xff] %v7879_v58 }
 0x214   :  { %2817 = vmatpush.msra.mxu2 %v7709_v0  ;;  %2840 = vmatpush.msra.mxu3 %v7711_v34 }
 0x215   :  { %2772 = vmatpush.msra.mxu0 %v7717_v60  ;;  %2795 = vmatpush.msra.mxu1 %v7719_v61  ;;  %v7775_v17 = vpop.f32.mrf.mxu2  ;;  %v7777_v18 = vpop.f32.mrf.mxu3 }
 0x216   :  { %2818 = vmatpush.msra.mxu2 %v7727_v54  ;;  %2841 = vmatpush.msra.mxu3 %v7729_v8  ;;  %10626 = vst [vmem:[#allocation85_spill] sm:$0xff] %v7775_v17  ;;  %v7785_v35 = vpop.f32.mrf.mxu0  ;;  %v7799_v48 = vpop.f32.mrf.mxu1  ;;  %v7841_v17 = vld [vmem:[#allocation5 + $0x288] sm:$0xff] }
 0x217   :  { %2773 = vmatpush.msra.mxu0 %v7735_v10  ;;  %2796 = vmatpush.msra.mxu1 %v7737_v31  ;;  %10627 = vst [vmem:[#allocation86_spill] sm:$0xff] %v7777_v18 }
 0x218   :  { %2819 = vmatpush.msra.mxu2 %v7741_v36  ;;  %2842 = vmatpush.msra.mxu3 %v7743_v25  ;;  %10628 = vst [vmem:[#allocation14_spill] sm:$0xff] %v7785_v35  ;;  %v7875_v35 = vld [vmem:[#allocation5 + $0x248] sm:$0xff] }
 0x219   :  { %2774 = vmatpush.msra.mxu0 %v7747_v24  ;;  %2797 = vmatpush.msra.mxu1 %v7749_v21  ;;  %10629 = vst [vmem:[#allocation15_spill] sm:$0xff] %v7799_v48  ;;  %v7857_v48 = vld [vmem:[#allocation5 + $0x260] sm:$0xff] }
 0x21a   :  { %2820 = vmatpush.msra.mxu2 %v7753_v26  ;;  %2843 = vmatpush.msra.mxu3 %v7755_v32  ;;  %10634 = vst [vmem:[#allocation20_spill] sm:$0xff] %v7841_v17 }
 0x21b   :  { %2775 = vmatpush.msra.mxu0 %v7759_v33  ;;  %2798 = vmatpush.msra.mxu1 %v7761_v28  ;;  %10639 = vst [vmem:[#allocation25_spill] sm:$0xff] %v7857_v48 }
 0x21c   :  { %2821 = vmatpush.msra.mxu2 %v7765_v23  ;;  %2844 = vmatpush.msra.mxu3 %v7767_v37  ;;  %10645 = vst [vmem:[#allocation31_spill] sm:$0xff] %v7875_v35 }
 0x21d   :  { %2776 = vmatpush.msra.mxu0 %v7771_v49  ;;  %2799 = vmatpush.msra.mxu1 %v7773_v16  ;;  %v7845_v57 = vpop.f32.mrf.mxu2  ;;  %v7847_v13 = vpop.f32.mrf.mxu3 }
 0x21e   :  { %2822 = vmatpush.msra.mxu2 %v7781_v22  ;;  %2845 = vmatpush.msra.mxu3 %v7783_v29  ;;  %v7837_v18 = vpop.f32.mrf.mxu0  ;;  %10635 = vst [vmem:[#allocation21_spill] sm:$0xff] %v7845_v57  ;;  %v7851_v1 = vpop.f32.mrf.mxu1  ;;  %v7861_v57 = vld [vmem:[#allocation5 + $0x68] sm:$0xff] }
 0x21f   :  { %2777 = vmatpush.msra.mxu0 %v7789_v30  ;;  %2800 = vmatpush.msra.mxu1 %v7791_v62  ;;  %10633 = vst [vmem:[#allocation19_spill] sm:$0xff] %v7837_v18  ;;  %v7855_v18 = vld [vmem:[#allocation5 + $0x60] sm:$0xff] }
 0x220   :  { %2823 = vmatpush.msra.mxu2 %v7795_v51  ;;  %2846 = vmatpush.msra.mxu3 %v7797_v47  ;;  %10636 = vst [vmem:[#allocation22_spill] sm:$0xff] %v7847_v13  ;;  %v7863_v13 = vld [vmem:[#allocation5 + $0x268] sm:$0xff] }
 0x221   :  { %2778 = vmatpush.msra.mxu0 %v7803_v46  ;;  %2801 = vmatpush.msra.mxu1 %v7805_v56  ;;  %10637 = vst [vmem:[#allocation24_spill] sm:$0xff] %v7851_v1  ;;  %v7867_v1 = vld [vmem:[#allocation5 + $0x40] sm:$0xff] }
 0x222   :  { %2824 = vmatpush.msra.mxu2 %v7809_v55  ;;  %2847 = vmatpush.msra.mxu3 %v7811_v40  ;;  %10638 = vst [vmem:[#allocation23_spill] sm:$0xff] %v7855_v18 }
 0x223   :  { %2779 = vmatpush.msra.mxu0 %v7815_v41  ;;  %2802 = vmatpush.msra.mxu1 %v7817_v42  ;;  %10640 = vst [vmem:[#allocation26_spill] sm:$0xff] %v7861_v57 }
 0x224   :  { %2825 = vmatpush.msra.mxu2 %v7821_v43  ;;  %2848 = vmatpush.msra.mxu3 %v7823_v44  ;;  %10641 = vst [vmem:[#allocation27_spill] sm:$0xff] %v7863_v13 }
 0x225   :  { %2379 = vmatmul.f32.gmra.mxu0 %v7827_v59  ;;  %2803 = vmatpush.msra.mxu1 %v7829_v5  ;;  %10642 = vst [vmem:[#allocation29_spill] sm:$0xff] %v7867_v1  ;;  %v8091_v5 = vld [vmem:[#allocation5 + $0x78] sm:$0xff] }
 0x226   :  { %2780 = vmatpush.msra.mxu0 %v7833_v45  ;;  %2826 = vmatpush.msra.mxu2 %v7835_v52  ;;  %v7891_v52 = vld [vmem:[#allocation5] sm:$0xff]  ;;  %v7897_v45 = vpop.f32.mrf.mxu3  ;;  %10714 = vst [vmem:[#allocation112_spill] sm:$0xff] %v8091_v5 }
 0x227   :  { %2849 = vmatpush.msra.mxu3 %v7841_v17  ;;  %2402 = vmatmul.f32.gmra.mxu1 %v7843_v7  ;;  %v2553_v17 = vld [vmem:[#allocation3 + $0x6] ss:$8 sm:$0x3]  ;;  %10650 = vst [vmem:[#allocation36_spill] sm:$0xff] %v7891_v52 }
 0x228   :  { %2425 = vmatmul.f32.gmra.mxu2 %v7827_v59  ;;  %2448 = vmatmul.f32.gmra.mxu3 %v7843_v7  ;;  %2738 = vst [vmem:[#allocation1] ss:$9 sm:$0xff] %v2553_v17  ;;  %v2561_v17 = vld [vmem:[#allocation3 + $0x46] ss:$8 sm:$0x3] }
 0x229   :  { %2781 = vmatpush.msra.mxu0 %v7855_v18  ;;  %2804 = vmatpush.msra.mxu1 %v7857_v48  ;;  %v2555_v48 = vld [vmem:[#allocation3 + $0x16] ss:$8 sm:$0x3]  ;;  %v2557_v18 = vld [vmem:[#allocation3 + $0x26] ss:$8 sm:$0x3] }
 0x22a   :  { %2827 = vmatpush.msra.mxu2 %v7861_v57  ;;  %2850 = vmatpush.msra.mxu3 %v7863_v13  ;;  %v7893_v57 = vld [vmem:[#allocation5 + $0x200] sm:$0xff]  ;;  %v7895_v13 = vpop.f32.mrf.mxu2  ;;  %10653 = vst [vmem:[#allocation39_spill] sm:$0xff] %v7897_v45  ;;  %v7911_v45 = vld [vmem:[#allocation5 + $0x1f0] sm:$0xff] }
 0x22b   :  { %2782 = vmatpush.msra.mxu0 %v7867_v1  ;;  %2805 = vmatpush.msra.mxu1 %v7869_v14  ;;  %10651 = vst [vmem:[#allocation37_spill] sm:$0xff] %v7893_v57  ;;  %v7901_v14 = vld [vmem:[#allocation5 + $0x8] sm:$0xff]  ;;  %v2559_v1 = vld [vmem:[#allocation3 + $0x36] ss:$8 sm:$0x3] }
 0x22c   :  { %2828 = vmatpush.msra.mxu2 %v7871_v53  ;;  %2851 = vmatpush.msra.mxu3 %v7875_v35  ;;  %10652 = vst [vmem:[#allocation38_spill] sm:$0xff] %v7895_v13  ;;  %v7903_v53 = vpop.f32.mrf.mxu0  ;;  %v7907_v35 = vld [vmem:[#allocation5 + $0x208] sm:$0xff]  ;;  %v7913_v13 = vld [vmem:[#allocation5 + $0x3f0] sm:$0xff] }
 0x22d   :  { %2783 = vmatpush.msra.mxu0 %v7877_v39  ;;  %2806 = vmatpush.msra.mxu1 %v7879_v58  ;;  %10654 = vst [vmem:[#allocation40_spill] sm:$0xff] %v7901_v14  ;;  %v2575_v39 = vld [vmem:[#allocation3 + $0xb6] ss:$8 sm:$0x3] }
 0x22e   :  { %2740 = vst [vmem:[#allocation1 + $0x1] ss:$9 sm:$0xff] %v2555_v48  ;;  %2829 = vmatpush.msra.mxu2 %v7883_v38  ;;  %2852 = vmatpush.msra.mxu3 %v7885_v15  ;;  %v7915_v48 = vpop.f32.mrf.mxu1  ;;  %v2563_v15 = vld [vmem:[#allocation3 + $0x56] ss:$8 sm:$0x3] }
 0x22f   :  { %10655 = vst [vmem:[#allocation41_spill] sm:$0xff] %v7903_v53  ;;  %2468 = vmatmul.f32.vlgmr.msrb.gmra.mxu0 %v7631_v19  ;;  %2807 = vmatpush.msra.mxu1 %v7893_v57  ;;  %v7919_v53 = vld [vmem:[#allocation5 + $0x1f8] sm:$0xff]  ;;  %v7925_v57 = vld [vmem:[#allocation5 + $0x1d0] sm:$0xff] }
 0x230   :  { %10656 = vst [vmem:[#allocation42_spill] sm:$0xff] %v7907_v35  ;;  %2784 = vmatpush.msra.mxu0 %v7891_v52  ;;  %2830 = vmatpush.msra.mxu2 %v7901_v14  ;;  %v7927_v38 = vld [vmem:[#allocation5 + $0x3d0] sm:$0xff]  ;;  %v2573_v52 = vld [vmem:[#allocation3 + $0xa6] ss:$8 sm:$0x3] }
 0x231   :  { %2742 = vst [vmem:[#allocation1 + $0x2] ss:$9 sm:$0xff] %v2557_v18  ;;  %2853 = vmatpush.msra.mxu3 %v7907_v35  ;;  %2491 = vmatmul.f32.vlgmr.msrb.gmra.mxu1 %v7633_v20  ;;  %v7923_v18 = vld [vmem:[#allocation5 + $0x3f8] sm:$0xff] }
 0x232   :  { %10657 = vst [vmem:[#allocation43_spill] sm:$0xff] %v7911_v45  ;;  %2514 = vmatmul.f32.vlgmr.msrb.gmra.mxu2 %v7631_v19  ;;  %2537 = vmatmul.f32.vlgmr.msrb.gmra.mxu3 %v7633_v20  ;;  %v7935_v35 = vld [vmem:[#allocation5 + $0x3d8] sm:$0xff]  ;;  %v7941_v19 = vld [vmem:[#allocation5 + $0x3b0] sm:$0xff] }
 0x233   :  { %10658 = vst [vmem:[#allocation44_spill] sm:$0xff] %v7913_v13  ;;  %2861 = vmatpush.msrb.mxu0 %v7911_v45  ;;  %2884 = vmatpush.msrb.mxu1 %v7913_v13  ;;  %v7945_v20 = vld [vmem:[#allocation5 + $0x1b8] sm:$0xff] }
 0x234   :  { %2744 = vst [vmem:[#allocation1 + $0x3] ss:$9 sm:$0xff] %v2559_v1  ;;  %v2565_v1 = vld [vmem:[#allocation3 + $0x66] ss:$8 sm:$0x3]  ;;  %2907 = vmatpush.msrb.mxu2 %v7919_v53  ;;  %2930 = vmatpush.msrb.mxu3 %v7923_v18  ;;  %v7947_v13 = vld [vmem:[#allocation5 + $0x3b8] sm:$0xff]  ;;  %v7949_v45 = vpop.f32.mrf.mxu0 }
 0x235   :  { %10659 = vst [vmem:[#allocation45_spill] sm:$0xff] %v7915_v48  ;;  %v2567_v48 = vld [vmem:[#allocation3 + $0x76] ss:$8 sm:$0x3]  ;;  %2862 = vmatpush.msrb.mxu0 %v7925_v57  ;;  %2885 = vmatpush.msrb.mxu1 %v7927_v38 }
 0x236   :  { %10660 = vst [vmem:[#allocation46_spill] sm:$0xff] %v7919_v53  ;;  %2931 = vmatpush.msrb.mxu3 %v7935_v35  ;;  %v7957_v53 = vpop.f32.mrf.mxu2  ;;  %v2571_v14 = vld [vmem:[#allocation3 + $0x96] ss:$8 sm:$0x3] }
 0x237   :  { %2746 = vst [vmem:[#allocation1 + $0x4] ss:$9 sm:$0xff] %v2561_v17  ;;  %v7933_v17 = vld [vmem:[#allocation5 + $0x1d8] sm:$0xff]  ;;  %2886 = vmatpush.msrb.mxu1 %v7941_v19  ;;  %2471 = vmatmul.f32.gmra.mxu0 %v7827_v59 }
 0x238   :  { %10661 = vst [vmem:[#allocation47_spill] sm:$0xff] %v7923_v18  ;;  %2908 = vmatpush.msrb.mxu2 %v7933_v17  ;;  %v7955_v18 = vld [vmem:[#allocation5 + $0x390] sm:$0xff]  ;;  %2932 = vmatpush.msrb.mxu3 %v7947_v13 }
 0x239   :  { %10662 = vst [vmem:[#allocation48_spill] sm:$0xff] %v7925_v57  ;;  %v7965_v57 = vld [vmem:[#allocation5 + $0x398] sm:$0xff]  ;;  %2887 = vmatpush.msrb.mxu1 %v7955_v18 }
 0x23a   :  { %10663 = vst [vmem:[#allocation49_spill] sm:$0xff] %v7927_v38  ;;  %v7963_v38 = vld [vmem:[#allocation5 + $0x198] sm:$0xff]  ;;  %2909 = vmatpush.msrb.mxu2 %v7945_v20  ;;  %2933 = vmatpush.msrb.mxu3 %v7965_v57 }
 0x23b   :  { %2748 = vst [vmem:[#allocation1 + $0x5] ss:$9 sm:$0xff] %v2563_v15  ;;  %v7939_v15 = vld [vmem:[#allocation5 + $0x1b0] sm:$0xff]  ;;  %2494 = vmatmul.f32.gmra.mxu1 %v7843_v7  ;;  %2517 = vmatmul.f32.gmra.mxu2 %v7827_v59  ;;  %v8123_v59 = vld [vmem:[#allocation5 + $0x238] sm:$0xff] }
 0x23c   :  { %10664 = vst [vmem:[#allocation50_spill] sm:$0xff] %v7933_v17  ;;  %2863 = vmatpush.msrb.mxu0 %v7939_v15  ;;  %v7973_v17 = vld [vmem:[#allocation5 + $0x370] sm:$0xff]  ;;  %2910 = vmatpush.msrb.mxu2 %v7963_v38 }
 0x23d   :  { %10665 = vst [vmem:[#allocation51_spill] sm:$0xff] %v7935_v35  ;;  %v7971_v35 = vld [vmem:[#allocation5 + $0x170] sm:$0xff]  ;;  %2888 = vmatpush.msrb.mxu1 %v7973_v17  ;;  %2540 = vmatmul.f32.gmra.mxu3 %v7843_v7 }
 0x23e   :  { %2750 = vst [vmem:[#allocation1 + $0x6] ss:$9 sm:$0xff] %v2565_v1  ;;  %v7953_v1 = vld [vmem:[#allocation5 + $0x190] sm:$0xff] }
 0x23f   :  { %10666 = vst [vmem:[#allocation52_spill] sm:$0xff] %v7939_v15  ;;  %2864 = vmatpush.msrb.mxu0 %v7953_v1  ;;  %v8021_v15 = vpop.f32.mrf.mxu0  ;;  %v8117_v7 = vld [vmem:[#allocation5 + $0x230] sm:$0xff] }
 0x240   :  { %10667 = vst [vmem:[#allocation53_spill] sm:$0xff] %v7941_v19 }
 0x241   :  { %2752 = vst [vmem:[#allocation1 + $0x7] ss:$9 sm:$0xff] %v2567_v48  ;;  %v7959_v48 = vpop.f32.mrf.mxu3  ;;  %2865 = vmatpush.msrb.mxu0 %v7971_v35 }
 0x242   :  { %10668 = vst [vmem:[#allocation54_spill] sm:$0xff] %v7945_v20  ;;  %v7985_v20 = vld [vmem:[#allocation5 + $0x350] sm:$0xff] }
 0x243   :  { %10669 = vst [vmem:[#allocation55_spill] sm:$0xff] %v7947_v13  ;;  %v7989_v13 = vld [vmem:[#allocation5 + $0x158] sm:$0xff]  ;;  %2889 = vmatpush.msrb.mxu1 %v7985_v20 }
 0x244   :  { %10670 = vst [vmem:[#allocation56_spill] sm:$0xff] %v7949_v45  ;;  %v7967_v45 = vpop.f32.mrf.mxu1 }
 0x245   :  { %10671 = vst [vmem:[#allocation57_spill] sm:$0xff] %v7953_v1  ;;  %v7991_v1 = vld [vmem:[#allocation5 + $0x358] sm:$0xff] }
 0x246   :  { %10672 = vst [vmem:[#allocation58_spill] sm:$0xff] %v7955_v18  ;;  %v7995_v18 = vld [vmem:[#allocation5 + $0x130] sm:$0xff] }
 0x247   :  { %10673 = vst [vmem:[#allocation59_spill] sm:$0xff] %v7957_v53  ;;  %v7979_v53 = vld [vmem:[#allocation5 + $0x378] sm:$0xff]  ;;  %v8077_v58 = vpop.f32.mrf.mxu0 }
 0x248   :  { %10674 = vst [vmem:[#allocation60_spill] sm:$0xff] %v7959_v48  ;;  %v7977_v48 = vld [vmem:[#allocation5 + $0x178] sm:$0xff]  ;;  %2934 = vmatpush.msrb.mxu3 %v7979_v53 }
 0x249   :  { %10675 = vst [vmem:[#allocation61_spill] sm:$0xff] %v7963_v38  ;;  %2911 = vmatpush.msrb.mxu2 %v7977_v48  ;;  %v7997_v38 = vld [vmem:[#allocation5 + $0x330] sm:$0xff]  ;;  %v8013_v19 = vpop.f32.mrf.mxu3 }
 0x24a   :  { %10676 = vst [vmem:[#allocation62_spill] sm:$0xff] %v7965_v57  ;;  %v8001_v57 = vld [vmem:[#allocation5 + $0x138] sm:$0xff]  ;;  %2935 = vmatpush.msrb.mxu3 %v7991_v1  ;;  %2890 = vmatpush.msrb.mxu1 %v7997_v38 }
 0x24b   :  { %10677 = vst [vmem:[#allocation63_spill] sm:$0xff] %v7967_v45  ;;  %v7983_v45 = vld [vmem:[#allocation5 + $0x150] sm:$0xff]  ;;  %2912 = vmatpush.msrb.mxu2 %v7989_v13 }
 0x24c   :  { %10678 = vst [vmem:[#allocation64_spill] sm:$0xff] %v7971_v35  ;;  %2866 = vmatpush.msrb.mxu0 %v7983_v45  ;;  %v8003_v35 = vld [vmem:[#allocation5 + $0x338] sm:$0xff] }
 0x24d   :  { %10679 = vst [vmem:[#allocation65_spill] sm:$0xff] %v7973_v17  ;;  %v8007_v17 = vld [vmem:[#allocation5 + $0x110] sm:$0xff]  ;;  %2913 = vmatpush.msrb.mxu2 %v8001_v57  ;;  %2936 = vmatpush.msrb.mxu3 %v8003_v35 }
 0x24e   :  { %10680 = vst [vmem:[#allocation66_spill] sm:$0xff] %v7977_v48  ;;  %v8009_v48 = vld [vmem:[#allocation5 + $0x310] sm:$0xff]  ;;  %2867 = vmatpush.msrb.mxu0 %v7995_v18 }
 0x24f   :  { %10681 = vst [vmem:[#allocation67_spill] sm:$0xff] %v7979_v53  ;;  %v8011_v53 = vpop.f32.mrf.mxu2  ;;  %2891 = vmatpush.msrb.mxu1 %v8009_v48 }
 0x250   :  { %10682 = vst [vmem:[#allocation68_spill] sm:$0xff] %v7983_v45  ;;  %v8019_v45 = vld [vmem:[#allocation5 + $0x318] sm:$0xff]  ;;  %2868 = vmatpush.msrb.mxu0 %v8007_v17 }
 0x251   :  { %10683 = vst [vmem:[#allocation69_spill] sm:$0xff] %v7985_v20  ;;  %v8017_v20 = vld [vmem:[#allocation5 + $0x118] sm:$0xff]  ;;  %2937 = vmatpush.msrb.mxu3 %v8019_v45 }
 0x252   :  { %10684 = vst [vmem:[#allocation70_spill] sm:$0xff] %v7989_v13  ;;  %v8027_v13 = vld [vmem:[#allocation5 + $0x2f0] sm:$0xff]  ;;  %2914 = vmatpush.msrb.mxu2 %v8017_v20 }
 0x253   :  { %10685 = vst [vmem:[#allocation71_spill] sm:$0xff] %v7991_v1  ;;  %v8025_v1 = vld [vmem:[#allocation5 + $0xf0] sm:$0xff]  ;;  %2892 = vmatpush.msrb.mxu1 %v8027_v13 }
 0x254   :  { %10686 = vst [vmem:[#allocation72_spill] sm:$0xff] %v7995_v18  ;;  %2869 = vmatpush.msrb.mxu0 %v8025_v1  ;;  %v2569_v18 = vld [vmem:[#allocation3 + $0x86] ss:$8 sm:$0x3] }
 0x255   :  { %10687 = vst [vmem:[#allocation73_spill] sm:$0xff] %v7997_v38  ;;  %v8035_v38 = vpop.f32.mrf.mxu1 }
 0x256   :  { %10688 = vst [vmem:[#allocation74_spill] sm:$0xff] %v8001_v57  ;;  %v8049_v57 = vld [vmem:[#allocation5 + $0xb0] sm:$0xff] }
 0x257   :  { %10689 = vst [vmem:[#allocation87_spill] sm:$0xff] %v8003_v35  ;;  %v8041_v35 = vld [vmem:[#allocation5 + $0x2d0] sm:$0xff] }
 0x258   :  { %10690 = vst [vmem:[#allocation88_spill] sm:$0xff] %v8007_v17  ;;  %v8045_v17 = vld [vmem:[#allocation5 + $0xd8] sm:$0xff]  ;;  %2893 = vmatpush.msrb.mxu1 %v8041_v35 }
 0x259   :  { %10691 = vst [vmem:[#allocation89_spill] sm:$0xff] %v8009_v48  ;;  %v8047_v48 = vld [vmem:[#allocation5 + $0x2d8] sm:$0xff] }
 0x25a   :  { %10692 = vst [vmem:[#allocation90_spill] sm:$0xff] %v8011_v53  ;;  %v8033_v53 = vld [vmem:[#allocation5 + $0x2f8] sm:$0xff] }
 0x25b   :  { %10693 = vst [vmem:[#allocation91_spill] sm:$0xff] %v8013_v19  ;;  %v8031_v19 = vld [vmem:[#allocation5 + $0xf8] sm:$0xff]  ;;  %2938 = vmatpush.msrb.mxu3 %v8033_v53 }
 0x25c   :  { %10694 = vst [vmem:[#allocation92_spill] sm:$0xff] %v8017_v20  ;;  %2915 = vmatpush.msrb.mxu2 %v8031_v19  ;;  %v8057_v20 = vld [vmem:[#allocation5 + $0x2b8] sm:$0xff] }
 0x25d   :  { %10695 = vst [vmem:[#allocation93_spill] sm:$0xff] %v8019_v45  ;;  %v8055_v45 = vld [vmem:[#allocation5 + $0xb8] sm:$0xff]  ;;  %2939 = vmatpush.msrb.mxu3 %v8047_v48 }
 0x25e   :  { %10696 = vst [vmem:[#allocation94_spill] sm:$0xff] %v8021_v15  ;;  %v8039_v15 = vld [vmem:[#allocation5 + $0xd0] sm:$0xff]  ;;  %2916 = vmatpush.msrb.mxu2 %v8045_v17 }
 0x25f   :  { %10697 = vst [vmem:[#allocation95_spill] sm:$0xff] %v8025_v1  ;;  %2870 = vmatpush.msrb.mxu0 %v8039_v15  ;;  %v8063_v1 = vld [vmem:[#allocation5 + $0x290] sm:$0xff]  ;;  %2940 = vmatpush.msrb.mxu3 %v8057_v20 }
 0x260   :  { %10698 = vst [vmem:[#allocation96_spill] sm:$0xff] %v8027_v13  ;;  %v8061_v13 = vld [vmem:[#allocation5 + $0x90] sm:$0xff]  ;;  %2917 = vmatpush.msrb.mxu2 %v8055_v45 }
 0x261   :  { %10699 = vst [vmem:[#allocation97_spill] sm:$0xff] %v8031_v19  ;;  %v8069_v19 = vld [vmem:[#allocation5 + $0x298] sm:$0xff]  ;;  %2871 = vmatpush.msrb.mxu0 %v8049_v57 }
 0x262   :  { %10700 = vst [vmem:[#allocation98_spill] sm:$0xff] %v8033_v53  ;;  %v8067_v53 = vld [vmem:[#allocation5 + $0x98] sm:$0xff]  ;;  %2941 = vmatpush.msrb.mxu3 %v8069_v19 }
 0x263   :  { %10701 = vst [vmem:[#allocation99_spill] sm:$0xff] %v8035_v38  ;;  %v8053_v38 = vld [vmem:[#allocation5 + $0x2b0] sm:$0xff]  ;;  %2872 = vmatpush.msrb.mxu0 %v8061_v13  ;;  %2918 = vmatpush.msrb.mxu2 %v8067_v53 }
 0x264   :  { %10702 = vst [vmem:[#allocation100_spill] sm:$0xff] %v8039_v15  ;;  %2894 = vmatpush.msrb.mxu1 %v8053_v38  ;;  %v8073_v15 = vld [vmem:[#allocation1] sm:$0xff] }
 0x265   :  { %10703 = vst [vmem:[#allocation101_spill] sm:$0xff] %v8041_v35  ;;  %v8075_v35 = vld [vmem:[#allocation1 + $0x9] sm:$0xff]  ;;  %2919 = vmatpush.msrb.mxu2 %v8091_v5  ;;  %2785 = vmatmul.f32.vlgmr.msra.gmra.mxu0 %v8073_v15 }
 0x266   :  { %10704 = vst [vmem:[#allocation102_spill] sm:$0xff] %v8045_v17  ;;  %v8083_v17 = vld [vmem:[#allocation5 + $0x270] sm:$0xff]  ;;  %2895 = vmatpush.msrb.mxu1 %v8063_v1  ;;  %2831 = vmatmul.f32.vlgmr.msra.gmra.mxu2 %v8073_v15 }
 0x267   :  { %10705 = vst [vmem:[#allocation103_spill] sm:$0xff] %v8047_v48  ;;  %v8081_v48 = vld [vmem:[#allocation5 + $0x70] sm:$0xff]  ;;  %2808 = vmatmul.f32.vlgmr.msra.gmra.mxu1 %v8075_v35  ;;  %2854 = vmatmul.f32.vlgmr.msra.gmra.mxu3 %v8075_v35 }
 0x268   :  { %10706 = vst [vmem:[#allocation104_spill] sm:$0xff] %v8049_v57  ;;  %v8085_v57 = vpop.f32.mrf.mxu2  ;;  %2873 = vmatpush.msrb.mxu0 %v8081_v48  ;;  %2896 = vmatpush.msrb.mxu1 %v8083_v17 }
 0x269   :  { %10707 = vst [vmem:[#allocation105_spill] sm:$0xff] %v8053_v38  ;;  %v8087_v38 = vpop.f32.mrf.mxu3 }
 0x26a   :  { %10708 = vst [vmem:[#allocation106_spill] sm:$0xff] %v8055_v45  ;;  %v8093_v45 = vpop.f32.mrf.mxu1 }
 0x26b   :  { %10709 = vst [vmem:[#allocation107_spill] sm:$0xff] %v8057_v20  ;;  %v8097_v20 = vld [vmem:[#allocation5 + $0x278] sm:$0xff] }
 0x26c   :  { %10710 = vst [vmem:[#allocation108_spill] sm:$0xff] %v8069_v19  ;;  %v8111_v19 = vld [vmem:[#allocation5 + $0x258] sm:$0xff]  ;;  %2942 = vmatpush.msrb.mxu3 %v8097_v20 }
 0x26d   :  { %10711 = vst [vmem:[#allocation109_spill] sm:$0xff] %v8077_v58  ;;  %v2577_v58 = vld [vmem:[#allocation3 + $0xc6] ss:$8 sm:$0x3] }
 0x26e   :  { %2755 = vst [vmem:[#allocation1] ss:$9 sm:$0xff] %v2569_v18  ;;  %v2579_v18 = vld [vmem:[#allocation3 + $0xd6] ss:$8 sm:$0x3]  ;;  %2943 = vmatpush.msrb.mxu3 %v8111_v19 }
 0x26f   :  { %10712 = vst [vmem:[#allocation110_spill] sm:$0xff] %v8085_v57  ;;  %v2581_v57 = vld [vmem:[#allocation3 + $0xe6] ss:$8 sm:$0x3] }
 0x270   :  { %10713 = vst [vmem:[#allocation111_spill] sm:$0xff] %v8087_v38  ;;  %v8101_v38 = vld [vmem:[#allocation5 + $0x50] sm:$0xff]  ;;  %2944 = vmatpush.msrb.mxu3 %v8123_v59 }
 0x271   :  { %2756 = vst [vmem:[#allocation1 + $0x1] ss:$9 sm:$0xff] %v2571_v14  ;;  %v8105_v14 = vld [vmem:[#allocation5 + $0x250] sm:$0xff]  ;;  %2874 = vmatpush.msrb.mxu0 %v8101_v38  ;;  %v8131_v5 = vpop.f32.mrf.mxu3 }
 0x272   :  { %10715 = vst [vmem:[#allocation113_spill] sm:$0xff] %v8093_v45  ;;  %v2583_v45 = vld [vmem:[#allocation3 + $0xf6] ss:$8 sm:$0x3]  ;;  %2897 = vmatpush.msrb.mxu1 %v8105_v14 }
 0x273   :  { %10716 = vst [vmem:[#allocation114_spill] sm:$0xff] %v8097_v20  ;;  %v8129_v20 = vpop.f32.mrf.mxu2 }
 0x274   :  { %2757 = vst [vmem:[#allocation1 + $0x2] ss:$9 sm:$0xff] %v2573_v52  ;;  %v8109_v52 = vld [vmem:[#allocation5 + $0x58] sm:$0xff]  ;;  %2898 = vmatpush.msrb.mxu1 %v8117_v7 }
 0x275   :  { %10717 = vst [vmem:[#allocation115_spill] sm:$0xff] %v8101_v38  ;;  %2920 = vmatpush.msrb.mxu2 %v8109_v52  ;;  %v8139_v38 = vpop.f32.mrf.mxu0 }
 0x276   :  { %2758 = vst [vmem:[#allocation1 + $0x3] ss:$9 sm:$0xff] %v2575_v39  ;;  %v8115_v39 = vld [vmem:[#allocation5 + $0x30] sm:$0xff] }
 0x277   :  { %10718 = vst [vmem:[#allocation116_spill] sm:$0xff] %v8105_v14  ;;  %2875 = vmatpush.msrb.mxu0 %v8115_v39  ;;  %v8137_v14 = vld [vmem:[#allocation5 + $0x18] sm:$0xff] }
 0x278   :  { %2759 = vst [vmem:[#allocation1 + $0x4] ss:$9 sm:$0xff] %v2577_v58  ;;  %v8121_v58 = vld [vmem:[#allocation5 + $0x38] sm:$0xff] }
 0x279   :  { %2760 = vst [vmem:[#allocation1 + $0x5] ss:$9 sm:$0xff] %v2579_v18  ;;  %v8127_v18 = vld [vmem:[#allocation5 + $0x210] sm:$0xff]  ;;  %2921 = vmatpush.msrb.mxu2 %v8121_v58 }
 0x27a   :  { %2761 = vst [vmem:[#allocation1 + $0x6] ss:$9 sm:$0xff] %v2581_v57  ;;  %v8135_v57 = vld [vmem:[#allocation5 + $0x10] sm:$0xff]  ;;  %2899 = vmatpush.msrb.mxu1 %v8127_v18 }
 0x27b   :  { %2762 = vst [vmem:[#allocation1 + $0x7] ss:$9 sm:$0xff] %v2583_v45  ;;  %v8143_v45 = vld [vmem:[#allocation5 + $0x218] sm:$0xff]  ;;  %2876 = vmatpush.msrb.mxu0 %v8135_v57  ;;  %2922 = vmatpush.msrb.mxu2 %v8137_v14 }
 0x27c   :  { %10719 = vst [vmem:[#allocation117_spill] sm:$0xff] %v8129_v20  ;;  %2945 = vmatpush.msrb.mxu3 %v8143_v45  ;;  %3201 = vmatpush.msra.mxu1 %v7681_v27 }
 0x27d   :  { %10720 = vst [vmem:[#allocation118_spill] sm:$0xff] %v8131_v5  ;;  %v8147_v5 = vpop.f32.mrf.mxu1  ;;  %3178 = vmatpush.msra.mxu0 %v7679_v9  ;;  %3224 = vmatpush.msra.mxu2 %v7685_v50  ;;  %v8161_v20 = vpop.f32.mrf.mxu0 }
 0x27e   :  { %10721 = vst [vmem:[#allocation119_spill] sm:$0xff] %v8139_v38  ;;  %3247 = vmatpush.msra.mxu3 %v7687_v4  ;;  %3202 = vmatpush.msra.mxu1 %v7693_v12  ;;  %v8167_v38 = vpop.f32.mrf.mxu3 }
 0x27f   :  { %10722 = vst [vmem:[#allocation120_spill] sm:$0xff] %v8147_v5  ;;  %3179 = vmatpush.msra.mxu0 %v7691_v11  ;;  %3225 = vmatpush.msra.mxu2 %v7697_v3  ;;  %v8165_v5 = vpop.f32.mrf.mxu2 }
 0x280   :  { %10723 = vst [vmem:[#allocation121_spill] sm:$0xff] %v8161_v20  ;;  %3248 = vmatpush.msra.mxu3 %v7699_v2  ;;  %3203 = vmatpush.msra.mxu1 %v7705_v63  ;;  %v8589_v20 = vld [vmem:[#allocation7 + $0x38] sm:$0xff] }
 0x281   :  { %10724 = vst [vmem:[#allocation122_spill] sm:$0xff] %v8165_v5  ;;  %3180 = vmatpush.msra.mxu0 %v7703_v6  ;;  %3226 = vmatpush.msra.mxu2 %v7709_v0  ;;  %v10734_v0 = vld [vmem:[#allocation16_spill] sm:$0xff] }
 0x282   :  { %10725 = vst [vmem:[#allocation123_spill] sm:$0xff] %v8167_v38  ;;  %3249 = vmatpush.msra.mxu3 %v7711_v34  ;;  %3204 = vmatpush.msra.mxu1 %v7719_v61  ;;  %v8211_v12 = vld [vmem:[#allocation1] sm:$0xff]  ;;  %v8219_v2 = vld [vmem:[#allocation1 + $0x9] sm:$0xff] }
 0x283   :  { %3181 = vmatpush.msra.mxu0 %v7717_v60  ;;  %3227 = vmatpush.msra.mxu2 %v7727_v54  ;;  %v10736_v60 = vld [vmem:[#allocation17_spill] sm:$0xff]  ;;  %v10737_v61 = vld [vmem:[#allocation18_spill] sm:$0xff]  ;;  %v10738_v54 = vld [vmem:[#allocation20_spill] sm:$0xff] }
 0x284   :  { %3250 = vmatpush.msra.mxu3 %v7729_v8  ;;  %3205 = vmatpush.msra.mxu1 %v7737_v31  ;;  %v10739_v8 = vld [vmem:[#allocation23_spill] sm:$0xff]  ;;  %v10741_v31 = vld [vmem:[#allocation26_spill] sm:$0xff]  ;;  %v8571_v38 = vld [vmem:[#allocation7 + $0x58] sm:$0xff] }
 0x285   :  { %v8171_v9 = vpop.f32.mrf.mxu1  ;;  %3182 = vmatpush.msra.mxu0 %v7735_v10  ;;  %3228 = vmatpush.msra.mxu2 %v7741_v36  ;;  %v8193_v4 = vpop.f32.mrf.mxu0  ;;  %v10740_v10 = vld [vmem:[#allocation25_spill] sm:$0xff]  ;;  %v10742_v36 = vld [vmem:[#allocation27_spill] sm:$0xff] }
 0x286   :  { %10726 = vst [vmem:[#allocation124_spill] sm:$0xff] %v8171_v9  ;;  %3251 = vmatpush.msra.mxu3 %v7743_v25  ;;  %3206 = vmatpush.msra.mxu1 %v7749_v21  ;;  %v8189_v50 = vpop.f32.mrf.mxu3  ;;  %v2962_v25 = vld [vmem:[#allocation3 + $0x7] ss:$8 sm:$0x3] }
 0x287   :  { %3183 = vmatpush.msra.mxu0 %v7747_v24  ;;  %3229 = vmatpush.msra.mxu2 %v7753_v26  ;;  %v8187_v27 = vpop.f32.mrf.mxu2  ;;  %10728 = vst [vmem:[#allocation126_spill] sm:$0xff] %v8189_v50  ;;  %v10743_v24 = vld [vmem:[#allocation29_spill] sm:$0xff]  ;;  %v10744_v21 = vld [vmem:[#allocation30_spill] sm:$0xff] }
 0x288   :  { %3252 = vmatpush.msra.mxu3 %v7755_v32  ;;  %10727 = vst [vmem:[#allocation125_spill] sm:$0xff] %v8187_v27  ;;  %3207 = vmatpush.msra.mxu1 %v7761_v28  ;;  %v2964_v26 = vld [vmem:[#allocation3 + $0x17] ss:$8 sm:$0x3]  ;;  %v8563_v50 = vld [vmem:[#allocation7 + $0x40] sm:$0xff]  ;;  %v8565_v27 = vld [vmem:[#allocation7 + $0x48] sm:$0xff] }
 0x289   :  { %3184 = vmatpush.msra.mxu0 %v7759_v33  ;;  %10729 = vst [vmem:[#allocation127_spill] sm:$0xff] %v8193_v4  ;;  %3230 = vmatpush.msra.mxu2 %v7765_v23  ;;  %v10745_v32 = vld [vmem:[#allocation28_spill] sm:$0xff]  ;;  %v10746_v33 = vld [vmem:[#allocation31_spill] sm:$0xff] }
 0x28a   :  { %3253 = vmatpush.msra.mxu3 %v7767_v37  ;;  %3208 = vmatpush.msra.mxu1 %v7773_v16  ;;  %v2966_v28 = vld [vmem:[#allocation3 + $0x27] ss:$8 sm:$0x3]  ;;  %v10750_v16 = vld [vmem:[#allocation33_spill] sm:$0xff]  ;;  %3147 = vst [vmem:[#allocation1] ss:$9 sm:$0xff] %v2962_v25 }
 0x28b   :  { %3185 = vmatpush.msra.mxu0 %v7771_v49  ;;  %3231 = vmatpush.msra.mxu2 %v7781_v22  ;;  %v10749_v49 = vld [vmem:[#allocation32_spill] sm:$0xff]  ;;  %3149 = vst [vmem:[#allocation1 + $0x1] ss:$9 sm:$0xff] %v2964_v26  ;;  %v10773_v26 = vld [vmem:[#allocation54_spill] sm:$0xff] }
 0x28c   :  { %3254 = vmatpush.msra.mxu3 %v7783_v29  ;;  %3209 = vmatpush.msra.mxu1 %v7791_v62  ;;  %v2968_v22 = vld [vmem:[#allocation3 + $0x37] ss:$8 sm:$0x3]  ;;  %v10753_v62 = vld [vmem:[#allocation35_spill] sm:$0xff]  ;;  %3151 = vst [vmem:[#allocation1 + $0x2] ss:$9 sm:$0xff] %v2966_v28 }
 0x28d   :  { %v8199_v11 = vpop.f32.mrf.mxu1  ;;  %3186 = vmatpush.msra.mxu0 %v7789_v30  ;;  %3232 = vmatpush.msra.mxu2 %v7795_v51  ;;  %v8215_v3 = vpop.f32.mrf.mxu0  ;;  %v10752_v30 = vld [vmem:[#allocation34_spill] sm:$0xff]  ;;  %3153 = vst [vmem:[#allocation1 + $0x3] ss:$9 sm:$0xff] %v2968_v22  ;;  %v10770_v25 = vld [vmem:[#allocation52_spill] sm:$0xff] }
 0x28e   :  { %10730 = vst [vmem:[#allocation128_spill] sm:$0xff] %v8199_v11  ;;  %3255 = vmatpush.msra.mxu3 %v7797_v47  ;;  %3210 = vmatpush.msra.mxu1 %v7805_v56  ;;  %v8223_v63 = vpop.f32.mrf.mxu3  ;;  %v2970_v51 = vld [vmem:[#allocation3 + $0x47] ss:$8 sm:$0x3]  ;;  %v10754_v47 = vld [vmem:[#allocation37_spill] sm:$0xff]  ;;  %v8587_v11 = vld [vmem:[#allocation7 + $0x30] sm:$0xff] }
 0x28f   :  { %3187 = vmatpush.msra.mxu0 %v7803_v46  ;;  %3233 = vmatpush.msra.mxu2 %v7809_v55  ;;  %10731 = vst [vmem:[#allocation129_spill] sm:$0xff] %v8215_v3  ;;  %v8221_v6 = vpop.f32.mrf.mxu2  ;;  %v2972_v46 = vld [vmem:[#allocation3 + $0x57] ss:$8 sm:$0x3]  ;;  %v10776_v28 = vld [vmem:[#allocation58_spill] sm:$0xff] }
 0x290   :  { %3256 = vmatpush.msra.mxu3 %v7811_v40  ;;  %3211 = vmatpush.msra.mxu1 %v7817_v42  ;;  %10732 = vst [vmem:[#allocation130_spill] sm:$0xff] %v8221_v6  ;;  %v10756_v55 = vld [vmem:[#allocation36_spill] sm:$0xff]  ;;  %v10758_v42 = vld [vmem:[#allocation42_spill] sm:$0xff] }
 0x291   :  { %3188 = vmatpush.msra.mxu0 %v7815_v41  ;;  %3234 = vmatpush.msra.mxu2 %v7821_v43  ;;  %10733 = vst [vmem:[#allocation131_spill] sm:$0xff] %v8223_v63  ;;  %v10757_v40 = vld [vmem:[#allocation40_spill] sm:$0xff]  ;;  %v2974_v41 = vld [vmem:[#allocation3 + $0x67] ss:$8 sm:$0x3] }
 0x292   :  { %3257 = vmatpush.msra.mxu3 %v7823_v44  ;;  %2788 = vmatmul.f32.gmra.mxu0 %v8211_v12  ;;  %v2976_v43 = vld [vmem:[#allocation3 + $0x77] ss:$8 sm:$0x3]  ;;  %3155 = vst [vmem:[#allocation1 + $0x4] ss:$9 sm:$0xff] %v2970_v51  ;;  %v10759_v44 = vld [vmem:[#allocation43_spill] sm:$0xff] }
 0x293   :  { %3212 = vmatpush.msra.mxu1 %v10734_v0  ;;  %3189 = vmatpush.msra.mxu0 %v10736_v60  ;;  %3157 = vst [vmem:[#allocation1 + $0x5] ss:$9 sm:$0xff] %v2972_v46  ;;  %v10760_v0 = vld [vmem:[#allocation44_spill] sm:$0xff]  ;;  %v10761_v60 = vld [vmem:[#allocation46_spill] sm:$0xff] }
 0x294   :  { %3235 = vmatpush.msra.mxu2 %v10737_v61  ;;  %3258 = vmatpush.msra.mxu3 %v10738_v54  ;;  %3159 = vst [vmem:[#allocation1 + $0x6] ss:$9 sm:$0xff] %v2974_v41  ;;  %v10762_v61 = vld [vmem:[#allocation47_spill] sm:$0xff]  ;;  %v10763_v54 = vld [vmem:[#allocation48_spill] sm:$0xff] }
 0x295   :  { %v8227_v34 = vpop.f32.mrf.mxu1  ;;  %2811 = vmatmul.f32.gmra.mxu1 %v8219_v2  ;;  %2834 = vmatmul.f32.gmra.mxu2 %v8211_v12  ;;  %v8249_v29 = vpop.f32.mrf.mxu0  ;;  %3161 = vst [vmem:[#allocation1 + $0x7] ss:$9 sm:$0xff] %v2976_v43  ;;  %v2978_v22 = vld [vmem:[#allocation3 + $0x87] ss:$8 sm:$0x3]  ;;  %v10784_v43 = vld [vmem:[#allocation69_spill] sm:$0xff] }
 0x296   :  { %10735 = vst [vmem:[#allocation16_spill] sm:$0xff] %v8227_v34  ;;  %2857 = vmatmul.f32.gmra.mxu3 %v8219_v2  ;;  %3190 = vmatpush.msra.mxu0 %v10739_v8  ;;  %v8245_v37 = vpop.f32.mrf.mxu3  ;;  %v10764_v8 = vld [vmem:[#allocation49_spill] sm:$0xff]  ;;  %v2982_v41 = vld [vmem:[#allocation3 + $0xa7] ss:$8 sm:$0x3]  ;;  %v8557_v6 = vld [vmem:[#allocation7 + $0x70] sm:$0xff] }
 0x297   :  { %3213 = vmatpush.msra.mxu1 %v10740_v10  ;;  %3236 = vmatpush.msra.mxu2 %v10741_v31  ;;  %v8243_v23 = vpop.f32.mrf.mxu2  ;;  %10748 = vst [vmem:[#allocation18_spill] sm:$0xff] %v8245_v37  ;;  %v2980_v46 = vld [vmem:[#allocation3 + $0x97] ss:$8 sm:$0x3] }
 0x298   :  { %3259 = vmatpush.msra.mxu3 %v10742_v36  ;;  %3191 = vmatpush.msra.mxu0 %v10743_v24  ;;  %10747 = vst [vmem:[#allocation17_spill] sm:$0xff] %v8243_v23  ;;  %v10771_v24 = vld [vmem:[#allocation53_spill] sm:$0xff]  ;;  %v8569_v34 = vld [vmem:[#allocation7 + $0x50] sm:$0xff] }
 0x299   :  { %3214 = vmatpush.msra.mxu1 %v10744_v21  ;;  %3237 = vmatpush.msra.mxu2 %v10745_v32  ;;  %10751 = vst [vmem:[#allocation20_spill] sm:$0xff] %v8249_v29  ;;  %v10774_v32 = vld [vmem:[#allocation55_spill] sm:$0xff]  ;;  %v8545_v63 = vld [vmem:[#allocation7 + $0x98] sm:$0xff] }
 0x29a   :  { %3260 = vmatpush.msra.mxu3 %v10746_v33  ;;  %3192 = vmatpush.msra.mxu0 %v10749_v49  ;;  %v10775_v33 = vld [vmem:[#allocation57_spill] sm:$0xff]  ;;  %10844 = vst [vmem:[#allocation69_spill] sm:$0xff] %v8587_v11  ;;  %v8601_v4 = vld [vmem:[#allocation7 + $0x10] sm:$0xff] }
 0x29b   :  { %3215 = vmatpush.msra.mxu1 %v10750_v16  ;;  %3238 = vmatpush.msra.mxu2 %v10752_v30  ;;  %v10777_v49 = vld [vmem:[#allocation61_spill] sm:$0xff]  ;;  %v10778_v16 = vld [vmem:[#allocation62_spill] sm:$0xff]  ;;  %v10779_v30 = vld [vmem:[#allocation64_spill] sm:$0xff] }
 0x29c   :  { %3261 = vmatpush.msra.mxu3 %v10753_v62  ;;  %2877 = vmatmul.f32.vlgmr.msrb.gmra.mxu0 %v8073_v15  ;;  %v10780_v62 = vld [vmem:[#allocation65_spill] sm:$0xff]  ;;  %10838 = vst [vmem:[#allocation62_spill] sm:$0xff] %v8565_v27 }
 0x29d   :  { %3216 = vmatpush.msra.mxu1 %v10754_v47  ;;  %v8255_v56 = vpop.f32.mrf.mxu1  ;;  %3193 = vmatpush.msra.mxu0 %v10756_v55  ;;  %v8269_v10 = vpop.f32.mrf.mxu0  ;;  %v8289_v51 = vld [vmem:[#allocation1] sm:$0xff]  ;;  %v8291_v47 = vld [vmem:[#allocation1 + $0x9] sm:$0xff] }
 0x29e   :  { %10755 = vst [vmem:[#allocation23_spill] sm:$0xff] %v8255_v56  ;;  %3239 = vmatpush.msra.mxu2 %v10757_v40  ;;  %3262 = vmatpush.msra.mxu3 %v10758_v42  ;;  %v8275_v36 = vpop.f32.mrf.mxu3  ;;  %v10781_v55 = vld [vmem:[#allocation66_spill] sm:$0xff]  ;;  %v10782_v40 = vld [vmem:[#allocation67_spill] sm:$0xff]  ;;  %v10783_v42 = vld [vmem:[#allocation68_spill] sm:$0xff] }
 0x29f   :  { %2900 = vmatmul.f32.vlgmr.msrb.gmra.mxu1 %v8075_v35  ;;  %2923 = vmatmul.f32.vlgmr.msrb.gmra.mxu2 %v8073_v15  ;;  %10765 = vst [vmem:[#allocation25_spill] sm:$0xff] %v8269_v10  ;;  %v10766_v15 = vld [vmem:[#allocation50_spill] sm:$0xff]  ;;  %v8273_v31 = vpop.f32.mrf.mxu2  ;;  %v8527_v10 = vld [vmem:[#allocation7 + $0xb0] sm:$0xff]  ;;  %v8559_v29 = vld [vmem:[#allocation7 + $0x78] sm:$0xff] }
 0x2a0   :  { %2946 = vmatmul.f32.vlgmr.msrb.gmra.mxu3 %v8075_v35  ;;  %3270 = vmatpush.msrb.mxu0 %v10759_v44  ;;  %v10767_v35 = vld [vmem:[#allocation51_spill] sm:$0xff]  ;;  %10768 = vst [vmem:[#allocation26_spill] sm:$0xff] %v8273_v31  ;;  %v2984_v44 = vld [vmem:[#allocation3 + $0xb7] ss:$8 sm:$0x3] }
 0x2a1   :  { %3293 = vmatpush.msrb.mxu1 %v10760_v0  ;;  %3316 = vmatpush.msrb.mxu2 %v10761_v60  ;;  %10769 = vst [vmem:[#allocation27_spill] sm:$0xff] %v8275_v36  ;;  %v10785_v0 = vld [vmem:[#allocation70_spill] sm:$0xff]  ;;  %v10786_v60 = vld [vmem:[#allocation71_spill] sm:$0xff]  ;;  %v8511_v31 = vld [vmem:[#allocation7 + $0xd8] sm:$0xff] }
 0x2a2   :  { %3339 = vmatpush.msrb.mxu3 %v10762_v61  ;;  %3271 = vmatpush.msrb.mxu0 %v10763_v54  ;;  %3164 = vst [vmem:[#allocation1] ss:$9 sm:$0xff] %v2978_v22  ;;  %v2986_v61 = vld [vmem:[#allocation3 + $0xc7] ss:$8 sm:$0x3] }
 0x2a3   :  { %3294 = vmatpush.msrb.mxu1 %v10764_v8  ;;  %3317 = vmatpush.msrb.mxu2 %v10766_v15  ;;  %3165 = vst [vmem:[#allocation1 + $0x1] ss:$9 sm:$0xff] %v2980_v46  ;;  %v10789_v15 = vld [vmem:[#allocation72_spill] sm:$0xff]  ;;  %v10799_v46 = vld [vmem:[#allocation95_spill] sm:$0xff] }
 0x2a4   :  { %3340 = vmatpush.msrb.mxu3 %v10767_v35  ;;  %3272 = vmatpush.msrb.mxu0 %v10770_v25  ;;  %v10790_v35 = vld [vmem:[#allocation73_spill] sm:$0xff]  ;;  %3166 = vst [vmem:[#allocation1 + $0x2] ss:$9 sm:$0xff] %v2982_v41  ;;  %v10802_v41 = vld [vmem:[#allocation98_spill] sm:$0xff] }
 0x2a5   :  { %3295 = vmatpush.msrb.mxu1 %v10771_v24  ;;  %v8279_v21 = vpop.f32.mrf.mxu1  ;;  %3318 = vmatpush.msrb.mxu2 %v10773_v26  ;;  %v2988_v25 = vld [vmem:[#allocation3 + $0xd7] ss:$8 sm:$0x3]  ;;  %v8305_v24 = vpop.f32.mrf.mxu0  ;;  %v10792_v26 = vld [vmem:[#allocation74_spill] sm:$0xff]  ;;  %3167 = vst [vmem:[#allocation1 + $0x3] ss:$9 sm:$0xff] %v2984_v44 }
 0x2a6   :  { %10772 = vst [vmem:[#allocation29_spill] sm:$0xff] %v8279_v21  ;;  %3341 = vmatpush.msrb.mxu3 %v10774_v32  ;;  %3273 = vmatpush.msrb.mxu0 %v10775_v33  ;;  %v8301_v8 = vpop.f32.mrf.mxu3  ;;  %v10793_v32 = vld [vmem:[#allocation87_spill] sm:$0xff]  ;;  %v10805_v44 = vld [vmem:[#allocation102_spill] sm:$0xff] }
 0x2a7   :  { %3296 = vmatpush.msrb.mxu1 %v10776_v28  ;;  %3319 = vmatpush.msrb.mxu2 %v10777_v49  ;;  %v8299_v54 = vpop.f32.mrf.mxu2  ;;  %10788 = vst [vmem:[#allocation28_spill] sm:$0xff] %v8301_v8  ;;  %v2990_v33 = vld [vmem:[#allocation3 + $0xe7] ss:$8 sm:$0x3]  ;;  %v10794_v28 = vld [vmem:[#allocation88_spill] sm:$0xff]  ;;  %v10795_v49 = vld [vmem:[#allocation89_spill] sm:$0xff] }
 0x2a8   :  { %3342 = vmatpush.msrb.mxu3 %v10778_v16  ;;  %3274 = vmatpush.msrb.mxu0 %v10779_v30  ;;  %10787 = vst [vmem:[#allocation30_spill] sm:$0xff] %v8299_v54  ;;  %v2992_v16 = vld [vmem:[#allocation3 + $0xf7] ss:$8 sm:$0x3]  ;;  %v8493_v8 = vld [vmem:[#allocation7 + $0xe8] sm:$0xff] }
 0x2a9   :  { %3297 = vmatpush.msrb.mxu1 %v10780_v62  ;;  %3320 = vmatpush.msrb.mxu2 %v10781_v55  ;;  %10791 = vst [vmem:[#allocation31_spill] sm:$0xff] %v8305_v24  ;;  %v10797_v30 = vld [vmem:[#allocation92_spill] sm:$0xff]  ;;  %v10798_v62 = vld [vmem:[#allocation93_spill] sm:$0xff]  ;;  %v8505_v36 = vld [vmem:[#allocation7 + $0xc8] sm:$0xff] }
 0x2aa   :  { %3343 = vmatpush.msrb.mxu3 %v10782_v40  ;;  %3275 = vmatpush.msrb.mxu0 %v10783_v42  ;;  %3168 = vst [vmem:[#allocation1 + $0x4] ss:$9 sm:$0xff] %v2986_v61  ;;  %v10800_v55 = vld [vmem:[#allocation96_spill] sm:$0xff]  ;;  %v10801_v40 = vld [vmem:[#allocation97_spill] sm:$0xff]  ;;  %v8535_v24 = vld [vmem:[#allocation7 + $0x88] sm:$0xff] }
 0x2ab   :  { %3298 = vmatpush.msrb.mxu1 %v10784_v43  ;;  %3321 = vmatpush.msrb.mxu2 %v10785_v0  ;;  %3169 = vst [vmem:[#allocation1 + $0x5] ss:$9 sm:$0xff] %v2988_v25  ;;  %v10803_v42 = vld [vmem:[#allocation100_spill] sm:$0xff]  ;;  %v10804_v43 = vld [vmem:[#allocation101_spill] sm:$0xff]  ;;  %v10806_v0 = vld [vmem:[#allocation103_spill] sm:$0xff] }
 0x2ac   :  { %3344 = vmatpush.msrb.mxu3 %v10786_v60  ;;  %3276 = vmatpush.msrb.mxu0 %v10789_v15  ;;  %3170 = vst [vmem:[#allocation1 + $0x6] ss:$9 sm:$0xff] %v2990_v33  ;;  %v10807_v60 = vld [vmem:[#allocation105_spill] sm:$0xff]  ;;  %v10809_v15 = vld [vmem:[#allocation104_spill] sm:$0xff]  ;;  %v8553_v56 = vld [vmem:[#allocation7 + $0x68] sm:$0xff] }
 0x2ad   :  { %3299 = vmatpush.msrb.mxu1 %v10790_v35  ;;  %3322 = vmatpush.msrb.mxu2 %v10792_v26  ;;  %v8311_v22 = vpop.f32.mrf.mxu1  ;;  %3171 = vst [vmem:[#allocation1 + $0x7] ss:$9 sm:$0xff] %v2992_v16  ;;  %v8325_v61 = vpop.f32.mrf.mxu0  ;;  %v10810_v35 = vld [vmem:[#allocation106_spill] sm:$0xff]  ;;  %v8499_v54 = vld [vmem:[#allocation7 + $0xf8] sm:$0xff] }
 0x2ae   :  { %3345 = vmatpush.msrb.mxu3 %v10793_v32  ;;  %3277 = vmatpush.msrb.mxu0 %v10794_v28  ;;  %10796 = vst [vmem:[#allocation32_spill] sm:$0xff] %v8311_v22  ;;  %v8331_v26 = vpop.f32.mrf.mxu3  ;;  %v10813_v32 = vld [vmem:[#allocation107_spill] sm:$0xff]  ;;  %v10815_v28 = vld [vmem:[#allocation108_spill] sm:$0xff]  ;;  %v10817_v16 = vld [vmem:[#allocation114_spill] sm:$0xff] }
 0x2af   :  { %3300 = vmatpush.msrb.mxu1 %v10795_v49  ;;  %3323 = vmatpush.msrb.mxu2 %v10797_v30  ;;  %10808 = vst [vmem:[#allocation33_spill] sm:$0xff] %v8325_v61  ;;  %v8329_v25 = vpop.f32.mrf.mxu2  ;;  %v10816_v49 = vld [vmem:[#allocation112_spill] sm:$0xff]  ;;  %v10818_v30 = vld [vmem:[#allocation115_spill] sm:$0xff] }
 0x2b0   :  { %3346 = vmatpush.msrb.mxu3 %v10798_v62  ;;  %3278 = vmatpush.msrb.mxu0 %v10799_v46  ;;  %10811 = vst [vmem:[#allocation34_spill] sm:$0xff] %v8329_v25  ;;  %v8509_v61 = vld [vmem:[#allocation7 + $0xd0] sm:$0xff]  ;;  %v8529_v22 = vld [vmem:[#allocation7 + $0xb8] sm:$0xff] }
 0x2b1   :  { %3301 = vmatpush.msrb.mxu1 %v10800_v55  ;;  %3324 = vmatpush.msrb.mxu2 %v10801_v40  ;;  %10812 = vst [vmem:[#allocation35_spill] sm:$0xff] %v8331_v26  ;;  %v8407_v55 = vld [vmem:[#allocation7 + $0x188] sm:$0xff] }
 0x2b2   :  { %3347 = vmatpush.msrb.mxu3 %v10802_v41  ;;  %3279 = vmatpush.msrb.mxu0 %v10803_v42  ;;  %v8415_v42 = vld [vmem:[#allocation7 + $0x180] sm:$0xff]  ;;  %10848 = vst [vmem:[#allocation73_spill] sm:$0xff] %v8601_v4 }
 0x2b3   :  { %3302 = vmatpush.msrb.mxu1 %v10804_v43  ;;  %3325 = vmatpush.msrb.mxu2 %v10805_v44  ;;  %v8417_v43 = vld [vmem:[#allocation7 + $0x190] sm:$0xff] }
 0x2b4   :  { %3348 = vmatpush.msrb.mxu3 %v10806_v0  ;;  %2880 = vmatmul.f32.gmra.mxu0 %v8211_v12  ;;  %v8405_v46 = vld [vmem:[#allocation1] sm:$0xff] }
 0x2b5   :  { %3303 = vmatpush.msrb.mxu1 %v10807_v60  ;;  %3280 = vmatpush.msrb.mxu0 %v10809_v15  ;;  %v8335_v33 = vpop.f32.mrf.mxu1  ;;  %v8423_v0 = vld [vmem:[#allocation7 + $0x198] sm:$0xff]  ;;  %v8425_v60 = vld [vmem:[#allocation1 + $0x9] sm:$0xff] }
 0x2b6   :  { %3326 = vmatpush.msrb.mxu2 %v10810_v35  ;;  %3349 = vmatpush.msrb.mxu3 %v10813_v32  ;;  %10814 = vst [vmem:[#allocation37_spill] sm:$0xff] %v8335_v33  ;;  %v8431_v15 = vld [vmem:[#allocation7 + $0x160] sm:$0xff]  ;;  %v8433_v35 = vld [vmem:[#allocation7 + $0x168] sm:$0xff]  ;;  %v8437_v32 = vld [vmem:[#allocation7 + $0x170] sm:$0xff] }
 0x2b7   :  { %2903 = vmatmul.f32.gmra.mxu1 %v8219_v2  ;;  %2926 = vmatmul.f32.gmra.mxu2 %v8211_v12  ;;  %v10819_v12 = vld [vmem:[#allocation116_spill] sm:$0xff]  ;;  %v8503_v33 = vld [vmem:[#allocation7 + $0xc0] sm:$0xff] }
 0x2b8   :  { %2949 = vmatmul.f32.gmra.mxu3 %v8219_v2  ;;  %3281 = vmatpush.msrb.mxu0 %v8061_v13  ;;  %v8351_v13 = vpop.f32.mrf.mxu2  ;;  %v8399_v2 = vld [vmem:[#allocation7 + $0x1b8] sm:$0xff] }
 0x2b9   :  { %3304 = vmatpush.msrb.mxu1 %v8063_v1  ;;  %3327 = vmatpush.msrb.mxu2 %v8067_v53  ;;  %10820 = vst [vmem:[#allocation36_spill] sm:$0xff] %v8351_v13  ;;  %v8353_v53 = vpop.f32.mrf.mxu3  ;;  %v8465_v13 = vld [vmem:[#allocation7 + $0x130] sm:$0xff] }
 0x2ba   :  { %3350 = vmatpush.msrb.mxu3 %v10815_v28  ;;  %3282 = vmatpush.msrb.mxu0 %v8081_v48  ;;  %10821 = vst [vmem:[#allocation40_spill] sm:$0xff] %v8353_v53  ;;  %v8369_v48 = vld [vmem:[#allocation7 + $0x1e8] sm:$0xff]  ;;  %v8439_v28 = vld [vmem:[#allocation7 + $0x178] sm:$0xff] }
 0x2bb   :  { %3305 = vmatpush.msrb.mxu1 %v8083_v17  ;;  %3328 = vmatpush.msrb.mxu2 %v10816_v49  ;;  %v8357_v17 = vpop.f32.mrf.mxu0  ;;  %v8443_v49 = vld [vmem:[#allocation7 + $0x140] sm:$0xff]  ;;  %v8457_v53 = vld [vmem:[#allocation7 + $0x128] sm:$0xff]  ;;  %10830 = vst [vmem:[#allocation51_spill] sm:$0xff] %v8465_v13 }
 0x2bc   :  { %3351 = vmatpush.msrb.mxu3 %v10817_v16  ;;  %3283 = vmatpush.msrb.mxu0 %v10818_v30  ;;  %10822 = vst [vmem:[#allocation42_spill] sm:$0xff] %v8357_v17  ;;  %v8445_v16 = vld [vmem:[#allocation7 + $0x148] sm:$0xff]  ;;  %v8449_v30 = vld [vmem:[#allocation7 + $0x150] sm:$0xff]  ;;  %v8491_v17 = vld [vmem:[#allocation7 + $0xe0] sm:$0xff] }
 0x2bd   :  { %3306 = vmatpush.msrb.mxu1 %v10819_v12  ;;  %3329 = vmatpush.msrb.mxu2 %v8109_v52  ;;  %v8363_v1 = vpop.f32.mrf.mxu1  ;;  %v8373_v52 = vld [vmem:[#allocation7 + $0x1f0] sm:$0xff]  ;;  %v8451_v12 = vld [vmem:[#allocation7 + $0x158] sm:$0xff] }
 0x2be   :  { %3352 = vmatpush.msrb.mxu3 %v8111_v19  ;;  %3194 = vmatmul.f32.vlgmr.msra.gmra.mxu0 %v8289_v51  ;;  %10823 = vst [vmem:[#allocation43_spill] sm:$0xff] %v8363_v1  ;;  %v8367_v19 = vld [vmem:[#allocation7 + $0x1e0] sm:$0xff]  ;;  %v8473_v1 = vld [vmem:[#allocation7 + $0x108] sm:$0xff] }
 0x2bf   :  { %3307 = vmatpush.msrb.mxu1 %v8117_v7  ;;  %3284 = vmatpush.msrb.mxu0 %v8115_v39  ;;  %v8375_v39 = vld [vmem:[#allocation7 + $0x1f8] sm:$0xff]  ;;  %v8379_v7 = vld [vmem:[#allocation7 + $0x1c0] sm:$0xff] }
 0x2c0   :  { %3330 = vmatpush.msrb.mxu2 %v8121_v58  ;;  %3353 = vmatpush.msrb.mxu3 %v8123_v59  ;;  %v8381_v58 = vld [vmem:[#allocation7 + $0x1c8] sm:$0xff]  ;;  %v8385_v59 = vld [vmem:[#allocation7 + $0x1d0] sm:$0xff]  ;;  %v8409_v40 = vpop.f32.mrf.mxu2 }
 0x2c1   :  { %3217 = vmatmul.f32.vlgmr.msra.gmra.mxu1 %v8291_v47  ;;  %3240 = vmatmul.f32.vlgmr.msra.gmra.mxu2 %v8289_v51  ;;  %10825 = vst [vmem:[#allocation46_spill] sm:$0xff] %v8409_v40  ;;  %v8411_v41 = vpop.f32.mrf.mxu3 }
 0x2c2   :  { %3263 = vmatmul.f32.vlgmr.msra.gmra.mxu3 %v8291_v47  ;;  %3285 = vmatpush.msrb.mxu0 %v8135_v57  ;;  %v8387_v57 = vld [vmem:[#allocation7 + $0x1d8] sm:$0xff]  ;;  %10826 = vst [vmem:[#allocation47_spill] sm:$0xff] %v8411_v41  ;;  %v8455_v41 = vld [vmem:[#allocation7 + $0x120] sm:$0xff] }
 0x2c3   :  { %3308 = vmatpush.msrb.mxu1 %v8127_v18  ;;  %3331 = vmatpush.msrb.mxu2 %v8137_v14  ;;  %v8391_v18 = vld [vmem:[#allocation7 + $0x1a0] sm:$0xff]  ;;  %v8393_v14 = vld [vmem:[#allocation7 + $0x1a8] sm:$0xff]  ;;  %v8401_v62 = vpop.f32.mrf.mxu0 }
 0x2c4   :  { %3354 = vmatpush.msrb.mxu3 %v8143_v45  ;;  %3442 = vmatpush.msra.mxu0 %v8367_v19  ;;  %v8397_v45 = vld [vmem:[#allocation7 + $0x1b0] sm:$0xff]  ;;  %10824 = vst [vmem:[#allocation44_spill] sm:$0xff] %v8401_v62  ;;  %v8467_v62 = vld [vmem:[#allocation7 + $0x138] sm:$0xff] }
 0x2c5   :  { %3465 = vmatpush.msra.mxu1 %v8369_v48  ;;  %3488 = vmatpush.msra.mxu2 %v8373_v52  ;;  %v8419_v44 = vpop.f32.mrf.mxu1  ;;  %10831 = vst [vmem:[#allocation52_spill] sm:$0xff] %v8467_v62 }
 0x2c6   :  { %3511 = vmatpush.msra.mxu3 %v8375_v39  ;;  %3443 = vmatpush.msra.mxu0 %v8379_v7  ;;  %10827 = vst [vmem:[#allocation48_spill] sm:$0xff] %v8419_v44 }
 0x2c7   :  { %3466 = vmatpush.msra.mxu1 %v8381_v58  ;;  %3489 = vmatpush.msra.mxu2 %v8385_v59 }
 0x2c8   :  { %3512 = vmatpush.msra.mxu3 %v8387_v57  ;;  %3444 = vmatpush.msra.mxu0 %v8391_v18  ;;  %v8459_v44 = vpop.f32.mrf.mxu2 }
 0x2c9   :  { %3467 = vmatpush.msra.mxu1 %v8393_v14  ;;  %3490 = vmatpush.msra.mxu2 %v8397_v45  ;;  %10828 = vst [vmem:[#allocation49_spill] sm:$0xff] %v8459_v44  ;;  %v8461_v40 = vpop.f32.mrf.mxu3  ;;  %v8479_v44 = vld [vmem:[#allocation7 + $0x110] sm:$0xff] }
 0x2ca   :  { %3513 = vmatpush.msra.mxu3 %v8399_v2  ;;  %3197 = vmatmul.f32.gmra.mxu0 %v8405_v46  ;;  %10829 = vst [vmem:[#allocation50_spill] sm:$0xff] %v8461_v40  ;;  %v8477_v40 = vld [vmem:[#allocation7 + $0x100] sm:$0xff] }
 0x2cb   :  { %3468 = vmatpush.msra.mxu1 %v8407_v55  ;;  %3445 = vmatpush.msra.mxu0 %v8415_v42  ;;  %v8469_v26 = vpop.f32.mrf.mxu0 }
 0x2cc   :  { %3491 = vmatpush.msra.mxu2 %v8417_v43  ;;  %3514 = vmatpush.msra.mxu3 %v8423_v0  ;;  %10832 = vst [vmem:[#allocation53_spill] sm:$0xff] %v8469_v26  ;;  %v8485_v26 = vld [vmem:[#allocation7 + $0x118] sm:$0xff] }
 0x2cd   :  { %3220 = vmatmul.f32.gmra.mxu1 %v8425_v60  ;;  %3243 = vmatmul.f32.gmra.mxu2 %v8405_v46  ;;  %v8481_v25 = vpop.f32.mrf.mxu1 }
 0x2ce   :  { %3266 = vmatmul.f32.gmra.mxu3 %v8425_v60  ;;  %3446 = vmatpush.msra.mxu0 %v8431_v15  ;;  %10833 = vst [vmem:[#allocation54_spill] sm:$0xff] %v8481_v25  ;;  %v8497_v25 = vld [vmem:[#allocation7 + $0xf0] sm:$0xff] }
 0x2cf   :  { %3469 = vmatpush.msra.mxu1 %v8433_v35  ;;  %3492 = vmatpush.msra.mxu2 %v8437_v32 }
 0x2d0   :  { %3515 = vmatpush.msra.mxu3 %v8439_v28  ;;  %3447 = vmatpush.msra.mxu0 %v8443_v49  ;;  %v8521_v21 = vpop.f32.mrf.mxu2 }
 0x2d1   :  { %3470 = vmatpush.msra.mxu1 %v8445_v16  ;;  %3493 = vmatpush.msra.mxu2 %v8449_v30  ;;  %10835 = vst [vmem:[#allocation57_spill] sm:$0xff] %v8521_v21  ;;  %v8523_v23 = vpop.f32.mrf.mxu3  ;;  %v8541_v21 = vld [vmem:[#allocation7 + $0x90] sm:$0xff] }
 0x2d2   :  { %3516 = vmatpush.msra.mxu3 %v8451_v12  ;;  %3448 = vmatpush.msra.mxu0 %v8455_v41  ;;  %10836 = vst [vmem:[#allocation58_spill] sm:$0xff] %v8523_v23  ;;  %v8539_v23 = vld [vmem:[#allocation7 + $0x80] sm:$0xff] }
 0x2d3   :  { %3471 = vmatpush.msra.mxu1 %v8457_v53  ;;  %3494 = vmatpush.msra.mxu2 %v8465_v13  ;;  %v8513_v37 = vpop.f32.mrf.mxu0 }
 0x2d4   :  { %3517 = vmatpush.msra.mxu3 %v8467_v62  ;;  %3286 = vmatmul.f32.vlgmr.msrb.gmra.mxu0 %v8289_v51  ;;  %10834 = vst [vmem:[#allocation55_spill] sm:$0xff] %v8513_v37 }
 0x2d5   :  { %3472 = vmatpush.msra.mxu1 %v8473_v1  ;;  %3449 = vmatpush.msra.mxu0 %v8477_v40  ;;  %v8531_v37 = vpop.f32.mrf.mxu1 }
 0x2d6   :  { %3495 = vmatpush.msra.mxu2 %v8479_v44  ;;  %3518 = vmatpush.msra.mxu3 %v8485_v26  ;;  %10837 = vst [vmem:[#allocation61_spill] sm:$0xff] %v8531_v37  ;;  %v8551_v37 = vld [vmem:[#allocation7 + $0x60] sm:$0xff] }
 0x2d7   :  { %3309 = vmatmul.f32.vlgmr.msrb.gmra.mxu1 %v8291_v47  ;;  %3332 = vmatmul.f32.vlgmr.msrb.gmra.mxu2 %v8289_v51  ;;  %v8517_v51 = vld [vmem:[#allocation7 + $0xa0] sm:$0xff] }
 0x2d8   :  { %3355 = vmatmul.f32.vlgmr.msrb.gmra.mxu3 %v8291_v47  ;;  %3450 = vmatpush.msra.mxu0 %v8491_v17  ;;  %v8519_v47 = vld [vmem:[#allocation7 + $0xa8] sm:$0xff]  ;;  %v8573_v3 = vpop.f32.mrf.mxu2 }
 0x2d9   :  { %3473 = vmatpush.msra.mxu1 %v8493_v8  ;;  %3496 = vmatpush.msra.mxu2 %v8497_v25  ;;  %10839 = vst [vmem:[#allocation64_spill] sm:$0xff] %v8573_v3  ;;  %v8575_v5 = vpop.f32.mrf.mxu3 }
 0x2da   :  { %3519 = vmatpush.msra.mxu3 %v8499_v54  ;;  %3451 = vmatpush.msra.mxu0 %v8503_v33  ;;  %10840 = vst [vmem:[#allocation65_spill] sm:$0xff] %v8575_v5  ;;  %v8595_v5 = vld [vmem:[#allocation7] sm:$0xff] }
 0x2db   :  { %3474 = vmatpush.msra.mxu1 %v8505_v36  ;;  %3497 = vmatpush.msra.mxu2 %v8509_v61  ;;  %v8577_v9 = vpop.f32.mrf.mxu0  ;;  %10846 = vst [vmem:[#allocation71_spill] sm:$0xff] %v8595_v5 }
 0x2dc   :  { %3520 = vmatpush.msra.mxu3 %v8511_v31  ;;  %3452 = vmatpush.msra.mxu0 %v8517_v51  ;;  %10841 = vst [vmem:[#allocation66_spill] sm:$0xff] %v8577_v9  ;;  %v8597_v9 = vld [vmem:[#allocation7 + $0x8] sm:$0xff] }
 0x2dd   :  { %3475 = vmatpush.msra.mxu1 %v8519_v47  ;;  %3498 = vmatpush.msra.mxu2 %v8527_v10  ;;  %v8591_v3 = vpop.f32.mrf.mxu1  ;;  %10847 = vst [vmem:[#allocation72_spill] sm:$0xff] %v8597_v9 }
 0x2de   :  { %3521 = vmatpush.msra.mxu3 %v8529_v22  ;;  %3289 = vmatmul.f32.gmra.mxu0 %v8405_v46  ;;  %10845 = vst [vmem:[#allocation70_spill] sm:$0xff] %v8591_v3  ;;  %v5956_v3 = vmov 0.0  }
 0x2df   :  { %3476 = vmatpush.msra.mxu1 %v8535_v24  ;;  %3453 = vmatpush.msra.mxu0 %v8539_v23 }
 0x2e0   :  { %3499 = vmatpush.msra.mxu2 %v8541_v21  ;;  %3522 = vmatpush.msra.mxu3 %v8545_v63 }
 0x2e1   :  { %3312 = vmatmul.f32.gmra.mxu1 %v8425_v60  ;;  %3335 = vmatmul.f32.gmra.mxu2 %v8405_v46  ;;  %v8581_v46 = vld [vmem:[#allocation7 + $0x20] sm:$0xff] }
 0x2e2   :  { %3358 = vmatmul.f32.gmra.mxu3 %v8425_v60  ;;  %3454 = vmatpush.msra.mxu0 %v8551_v37  ;;  %10842 = vst [vmem:[#allocation67_spill] sm:$0xff] %v8581_v46  ;;  %v8583_v60 = vld [vmem:[#allocation7 + $0x28] sm:$0xff] }
 0x2e3   :  { %3477 = vmatpush.msra.mxu1 %v8553_v56  ;;  %3500 = vmatpush.msra.mxu2 %v8557_v6  ;;  %10843 = vst [vmem:[#allocation68_spill] sm:$0xff] %v8583_v60 }
 0x2e4   :  { %3523 = vmatpush.msra.mxu3 %v8559_v29  ;;  %3455 = vmatpush.msra.mxu0 %v8563_v50 }
 0x2e5   :  { %3478 = vmatpush.msra.mxu1 %v8565_v27  ;;  %3501 = vmatpush.msra.mxu2 %v8569_v34  ;;  %v8603_v27 = vld [vmem:[#allocation7 + $0x18] sm:$0xff] }
 0x2e6   :  { %3524 = vmatpush.msra.mxu3 %v8571_v38  ;;  %3456 = vmatpush.msra.mxu0 %v8581_v46  ;;  %v8613_v46 = vpop.f32.mrf.mxu2 }
 0x2e7   :  { %3479 = vmatpush.msra.mxu1 %v8583_v60  ;;  %3502 = vmatpush.msra.mxu2 %v8587_v11  ;;  %v8611_v60 = vpop.f32.mrf.mxu0  ;;  %10850 = vst [vmem:[#allocation87_spill] sm:$0xff] %v8613_v46  ;;  %v8615_v11 = vpop.f32.mrf.mxu3 }
 0x2e8   :  { %3525 = vmatpush.msra.mxu3 %v8589_v20  ;;  %3457 = vmatpush.msra.mxu0 %v8595_v5  ;;  %10849 = vst [vmem:[#allocation74_spill] sm:$0xff] %v8611_v60 }
 0x2e9   :  { %3480 = vmatpush.msra.mxu1 %v8597_v9  ;;  %3503 = vmatpush.msra.mxu2 %v8601_v4  ;;  %10851 = vst [vmem:[#allocation88_spill] sm:$0xff] %v8615_v11  ;;  %v8619_v9 = vpop.f32.mrf.mxu1 }
 0x2ea   :  { %3526 = vmatpush.msra.mxu3 %v8603_v27  ;;  %3458 = vmatmul.f32.vlgmr.msra.gmra.mxu0 %v5956_v3  ;;  %10852 = vst [vmem:[#allocation89_spill] sm:$0xff] %v8619_v9 }
 0x2eb   :  { %3481 = vmatmul.f32.vlgmr.msra.gmra.mxu1 %v5956_v3  ;;  %3504 = vmatmul.f32.vlgmr.msra.gmra.mxu2 %v5956_v3 }
 0x2ec   :  { %3527 = vmatmul.f32.vlgmr.msra.gmra.mxu3 %v5956_v3  ;;  %3676 = vmatpush.msrb.mxu0 %v8367_v19 }
 0x2ed   :  { %3699 = vmatpush.msrb.mxu1 %v8369_v48  ;;  %3722 = vmatpush.msrb.mxu2 %v8373_v52 }
 0x2ee   :  { %3745 = vmatpush.msrb.mxu3 %v8375_v39  ;;  %3677 = vmatpush.msrb.mxu0 %v8379_v7  ;;  %v8631_v11 = vpop.f32.mrf.mxu2 }
 0x2ef   :  { %3700 = vmatpush.msrb.mxu1 %v8381_v58  ;;  %3723 = vmatpush.msrb.mxu2 %v8385_v59  ;;  %10853 = vst [vmem:[#allocation92_spill] sm:$0xff] %v8631_v11  ;;  %v8633_v9 = vpop.f32.mrf.mxu3  ;;  %v8637_v46 = vpop.f32.mrf.mxu0 }
 0x2f0   :  { %3746 = vmatpush.msrb.mxu3 %v8387_v57  ;;  %3678 = vmatpush.msrb.mxu0 %v8391_v18  ;;  %10854 = vst [vmem:[#allocation93_spill] sm:$0xff] %v8633_v9 }
 0x2f1   :  { %3701 = vmatpush.msrb.mxu1 %v8393_v14  ;;  %3724 = vmatpush.msrb.mxu2 %v8397_v45  ;;  %10855 = vst [vmem:[#allocation95_spill] sm:$0xff] %v8637_v46  ;;  %v8643_v60 = vpop.f32.mrf.mxu1 }
 0x2f2   :  { %3747 = vmatpush.msrb.mxu3 %v8399_v2  ;;  %3461 = vmatmul.f32.gmra.mxu0 %v5956_v3  ;;  %10856 = vst [vmem:[#allocation96_spill] sm:$0xff] %v8643_v60 }
 0x2f3   :  { %3484 = vmatmul.f32.gmra.mxu1 %v5956_v3  ;;  %3507 = vmatmul.f32.gmra.mxu2 %v5956_v3 }
 0x2f4   :  { %3530 = vmatmul.f32.gmra.mxu3 %v5956_v3  ;;  %3679 = vmatpush.msrb.mxu0 %v8415_v42  ;;  %v8651_v3 = vld [vmem:[#allocation8] sm:$0xf] }
 0x2f5   :  { %3702 = vmatpush.msrb.mxu1 %v8407_v55  ;;  %3725 = vmatpush.msrb.mxu2 %v8417_v43  ;;  %10857 = vst [vmem:[#allocation97_spill] sm:$0xff] %v8651_v3 }
 0x2f6   :  { %3748 = vmatpush.msrb.mxu3 %v8423_v0  ;;  %3680 = vmatpush.msrb.mxu0 %v8431_v15  ;;  %v2832_v60 = vpop.f32.mrf.mxu2 }
 0x2f7   :  { %3703 = vmatpush.msrb.mxu1 %v8433_v35  ;;  %3726 = vmatpush.msrb.mxu2 %v8437_v32  ;;  %v8660_v11 = vpop.f32.mrf.mxu0  ;;  %v2855_v46 = vpop.f32.mrf.mxu3 }
 0x2f8   :  { %3749 = vmatpush.msrb.mxu3 %v8439_v28  ;;  %3681 = vmatpush.msrb.mxu0 %v8443_v49  ;;  %10858 = vst [vmem:[#allocation98_spill] sm:$0xff] %v8660_v11 }
 0x2f9   :  { %3704 = vmatpush.msrb.mxu1 %v8445_v16  ;;  %3727 = vmatpush.msrb.mxu2 %v8449_v30  ;;  %v8666_v9 = vpop.f32.mrf.mxu1 }
 0x2fa   :  { %3750 = vmatpush.msrb.mxu3 %v8451_v12  ;;  %3682 = vmatpush.msrb.mxu0 %v8455_v41  ;;  %10859 = vst [vmem:[#allocation100_spill] sm:$0xff] %v8666_v9  ;;  %v10867_v9 = vld [vmem:[#allocation69_spill] sm:$0xff] }
 0x2fb   :  { %3705 = vmatpush.msrb.mxu1 %v8457_v53  ;;  %3728 = vmatpush.msrb.mxu2 %v8465_v13 }
 0x2fc   :  { %3751 = vmatpush.msrb.mxu3 %v8467_v62  ;;  %3683 = vmatpush.msrb.mxu0 %v8477_v40  ;;  %v10860_v62 = vperm.slane %v8651_v3, 1 }
 0x2fd   :  { %3706 = vmatpush.msrb.mxu1 %v8473_v1  ;;  %3729 = vmatpush.msrb.mxu2 %v8479_v44 }
 0x2fe   :  { %3752 = vmatpush.msrb.mxu3 %v8485_v26  ;;  %3684 = vmatpush.msrb.mxu0 %v8491_v17  ;;  %v2833_v13 = vadd.f32 %v2832_v60, %v10860_v62  ;;  %v10863_v62 = vld [vmem:[#allocation62_spill] sm:$0xff]  ;;  %v10865_v60 = vld [vmem:[#allocation67_spill] sm:$0xff] }
 0x2ff   :  { %3707 = vmatpush.msrb.mxu1 %v8493_v8  ;;  %3730 = vmatpush.msrb.mxu2 %v8497_v25 }
 0x300   :  { %3753 = vmatpush.msrb.mxu3 %v8499_v54  ;;  %3685 = vmatpush.msrb.mxu0 %v8503_v33  ;;  %v8674_v11 = vadd.f32 %v2855_v46, %v2833_v13  ;;  %v8688_v13 = vpop.f32.mrf.mxu0 }
 0x301   :  { %3708 = vmatpush.msrb.mxu1 %v8505_v36  ;;  %3731 = vmatpush.msrb.mxu2 %v8509_v61  ;;  %10862 = vst [vmem:[#allocation102_spill] sm:$0xff] %v8688_v13  ;;  %v8694_v46 = vpop.f32.mrf.mxu1  ;;  %v10868_v13 = vld [vmem:[#allocation72_spill] sm:$0xff] }
 0x302   :  { %10861 = vst [vmem:[#allocation101_spill] sm:$0xff] %v8674_v11  ;;  %3754 = vmatpush.msrb.mxu3 %v8511_v31  ;;  %3686 = vmatpush.msrb.mxu0 %v8517_v51  ;;  %v10866_v11 = vld [vmem:[#allocation68_spill] sm:$0xff] }
 0x303   :  { %3709 = vmatpush.msrb.mxu1 %v8519_v47  ;;  %3732 = vmatpush.msrb.mxu2 %v8527_v10  ;;  %10864 = vst [vmem:[#allocation103_spill] sm:$0xff] %v8694_v46  ;;  %v10129_v46 = vperm.slane %v8651_v3, 0 }
 0x304   :  { %3755 = vmatpush.msrb.mxu3 %v8529_v22  ;;  %3687 = vmatpush.msrb.mxu0 %v8539_v23 }
 0x305   :  { %3710 = vmatpush.msrb.mxu1 %v8535_v24  ;;  %3733 = vmatpush.msrb.mxu2 %v8541_v21 }
 0x306   :  { %3756 = vmatpush.msrb.mxu3 %v8545_v63  ;;  %3688 = vmatpush.msrb.mxu0 %v8551_v37 }
 0x307   :  { %3711 = vmatpush.msrb.mxu1 %v8553_v56  ;;  %3734 = vmatpush.msrb.mxu2 %v8557_v6 }
 0x308   :  { %3757 = vmatpush.msrb.mxu3 %v8559_v29  ;;  %3689 = vmatpush.msrb.mxu0 %v8563_v50 }
 0x309   :  { %3712 = vmatpush.msrb.mxu1 %v10863_v62  ;;  %3735 = vmatpush.msrb.mxu2 %v8569_v34 }
 0x30a   :  { %3758 = vmatpush.msrb.mxu3 %v8571_v38  ;;  %3690 = vmatpush.msrb.mxu0 %v10865_v60 }
 0x30b   :  { %3713 = vmatpush.msrb.mxu1 %v10866_v11  ;;  %3736 = vmatpush.msrb.mxu2 %v10867_v9 }
 0x30c   :  { %3759 = vmatpush.msrb.mxu3 %v8589_v20  ;;  %3691 = vmatpush.msrb.mxu0 %v8595_v5 }
 0x30d   :  { %3714 = vmatpush.msrb.mxu1 %v10868_v13  ;;  %3737 = vmatpush.msrb.mxu2 %v8601_v4 }
 0x30e   :  { %3760 = vmatpush.msrb.mxu3 %v8603_v27  ;;  %3910 = vmatpush.msra.mxu0 %v8367_v19 }
 0x30f   :  { %3933 = vmatpush.msra.mxu1 %v8369_v48  ;;  %v2789_v60 = vpop.f32.mrf.mxu0  ;;  %3956 = vmatpush.msra.mxu2 %v8373_v52  ;;  %v2716_v48 = vperm.slane %v8651_v3, 2 }
 0x310   :  { %3979 = vmatpush.msra.mxu3 %v8375_v39  ;;  %v2790_v5 = vadd.f32 %v2789_v60, %v10129_v46  ;;  %3911 = vmatpush.msra.mxu0 %v8379_v7  ;;  %v10870_v39 = vperm.slane %v8651_v3, 1 }
 0x311   :  { %3934 = vmatpush.msra.mxu1 %v8381_v58  ;;  %3957 = vmatpush.msra.mxu2 %v8385_v59 }
 0x312   :  { %v2812_v4 = vpop.f32.mrf.mxu1  ;;  %3980 = vmatpush.msra.mxu3 %v8387_v57  ;;  %3912 = vmatpush.msra.mxu0 %v8391_v18  ;;  %v10872_v18 = vld [vmem:[#allocation51_spill] sm:$0xff] }
 0x313   :  { %v8717_v19 = vadd.f32 %v2812_v4, %v2790_v5  ;;  %3935 = vmatpush.msra.mxu1 %v8393_v14  ;;  %3958 = vmatpush.msra.mxu2 %v8397_v45  ;;  %v10873_v14 = vld [vmem:[#allocation52_spill] sm:$0xff] }
 0x314   :  { %3981 = vmatpush.msra.mxu3 %v8399_v2  ;;  %3913 = vmatpush.msra.mxu0 %v8415_v42  ;;  %v10877_v42 = vld [vmem:[#allocation71_spill] sm:$0xff] }
 0x315   :  { %10869 = vst [vmem:[#allocation105_spill] sm:$0xff] %v8717_v19  ;;  %3936 = vmatpush.msra.mxu1 %v8407_v55  ;;  %3959 = vmatpush.msra.mxu2 %v8417_v43  ;;  %v10878_v43 = vld [vmem:[#allocation73_spill] sm:$0xff] }
 0x316   :  { %3982 = vmatpush.msra.mxu3 %v8423_v0  ;;  %3914 = vmatpush.msra.mxu0 %v8431_v15 }
 0x317   :  { %3937 = vmatpush.msra.mxu1 %v8433_v35  ;;  %3960 = vmatpush.msra.mxu2 %v8437_v32  ;;  %v3121_v32 = vld [vmem:[#allocation8] sm:$0xf] }
 0x318   :  { %3983 = vmatpush.msra.mxu3 %v8439_v28  ;;  %v2835_v5 = vpop.f32.mrf.mxu2  ;;  %3915 = vmatpush.msra.mxu0 %v8443_v49  ;;  %v3123_v28 = vperm.slane %v3121_v32, 0 }
 0x319   :  { %v2858_v4 = vpop.f32.mrf.mxu3  ;;  %3938 = vmatpush.msra.mxu1 %v8445_v16  ;;  %v2878_v52 = vpop.f32.mrf.mxu0  ;;  %v2836_v7 = vadd.f32 %v2835_v5, %v10870_v39  ;;  %3961 = vmatpush.msra.mxu2 %v8449_v30  ;;  %v3124_v39 = vperm.slane %v3121_v32, 1 }
 0x31a   :  { %3984 = vmatpush.msra.mxu3 %v8451_v12  ;;  %v2879_v58 = vadd.f32 %v2878_v52, %v2716_v48  ;;  %3916 = vmatpush.msra.mxu0 %v8455_v41  ;;  %v10876_v41 = vld [vmem:[#allocation67_spill] sm:$0xff] }
 0x31b   :  { %3939 = vmatpush.msra.mxu1 %v8457_v53  ;;  %v8742_v57 = vadd.f32 %v2858_v4, %v2836_v7  ;;  %3962 = vmatpush.msra.mxu2 %v10872_v18  ;;  %v2717_v53 = vperm.slane %v8651_v3, 3  ;;  %v8985_v3 = vld [vmem:[#allocation7 + $0x100] sm:$0xff] }
 0x31c   :  { %v2901_v59 = vpop.f32.mrf.mxu1  ;;  %3985 = vmatpush.msra.mxu3 %v10873_v14  ;;  %3917 = vmatpush.msra.mxu0 %v8477_v40 }
 0x31d   :  { %10871 = vst [vmem:[#allocation104_spill] sm:$0xff] %v8742_v57  ;;  %v8746_v45 = vadd.f32 %v2901_v59, %v2879_v58  ;;  %3940 = vmatpush.msra.mxu1 %v8473_v1  ;;  %3963 = vmatpush.msra.mxu2 %v8479_v44 }
 0x31e   :  { %3986 = vmatpush.msra.mxu3 %v8485_v26  ;;  %3918 = vmatpush.msra.mxu0 %v8491_v17 }
 0x31f   :  { %10874 = vst [vmem:[#allocation106_spill] sm:$0xff] %v8746_v45  ;;  %3941 = vmatpush.msra.mxu1 %v8493_v8  ;;  %3964 = vmatpush.msra.mxu2 %v8497_v25  ;;  %v8982_v45 = vld [vmem:[#allocation7 + $0x138] sm:$0xff] }
 0x320   :  { %3987 = vmatpush.msra.mxu3 %v8499_v54  ;;  %3919 = vmatpush.msra.mxu0 %v8503_v33 }
 0x321   :  { %3942 = vmatpush.msra.mxu1 %v8505_v36  ;;  %3965 = vmatpush.msra.mxu2 %v8509_v61 }
 0x322   :  { %3988 = vmatpush.msra.mxu3 %v8511_v31  ;;  %v2924_v1 = vpop.f32.mrf.mxu2  ;;  %3920 = vmatpush.msra.mxu0 %v8517_v51 }
 0x323   :  { %v2947_v2 = vpop.f32.mrf.mxu3  ;;  %3943 = vmatpush.msra.mxu1 %v8519_v47  ;;  %v2925_v55 = vadd.f32 %v2924_v1, %v2717_v53  ;;  %3966 = vmatpush.msra.mxu2 %v8527_v10 }
 0x324   :  { %3989 = vmatpush.msra.mxu3 %v8529_v22  ;;  %3921 = vmatpush.msra.mxu0 %v8539_v23 }
 0x325   :  { %3944 = vmatpush.msra.mxu1 %v8535_v24  ;;  %v8767_v40 = vadd.f32 %v2947_v2, %v2925_v55  ;;  %3967 = vmatpush.msra.mxu2 %v8541_v21 }
 0x326   :  { %3990 = vmatpush.msra.mxu3 %v8545_v63  ;;  %3922 = vmatpush.msra.mxu0 %v8551_v37 }
 0x327   :  { %10875 = vst [vmem:[#allocation107_spill] sm:$0xff] %v8767_v40  ;;  %3945 = vmatpush.msra.mxu1 %v8553_v56  ;;  %3968 = vmatpush.msra.mxu2 %v8557_v6 }
 0x328   :  { %3991 = vmatpush.msra.mxu3 %v8559_v29  ;;  %3923 = vmatpush.msra.mxu0 %v8563_v50 }
 0x329   :  { %3946 = vmatpush.msra.mxu1 %v10863_v62  ;;  %3969 = vmatpush.msra.mxu2 %v8569_v34 }
 0x32a   :  { %3992 = vmatpush.msra.mxu3 %v8571_v38  ;;  %3924 = vmatpush.msra.mxu0 %v10876_v41 }
 0x32b   :  { %3947 = vmatpush.msra.mxu1 %v10866_v11  ;;  %3970 = vmatpush.msra.mxu2 %v10867_v9 }
 0x32c   :  { %3993 = vmatpush.msra.mxu3 %v8589_v20  ;;  %3925 = vmatpush.msra.mxu0 %v10877_v42 }
 0x32d   :  { %3948 = vmatpush.msra.mxu1 %v10868_v13  ;;  %3971 = vmatpush.msra.mxu2 %v10878_v43 }
 0x32e   :  { %3994 = vmatpush.msra.mxu3 %v8603_v27 }
 0x331   :  { %v2881_v44 = vpop.f32.mrf.mxu0 }
 0x332   :  { %v2882_v0 = vadd.f32 %v2881_v44, %v2716_v48 }
 0x334   :  { %v2904_v15 = vpop.f32.mrf.mxu1 }
 0x335   :  { %v8789_v35 = vadd.f32 %v2904_v15, %v2882_v0 }
 0x337   :  { %10879 = vst [vmem:[#allocation108_spill] sm:$0xff] %v8789_v35 }
 0x33a   :  { %v2927_v49 = vpop.f32.mrf.mxu2 }
 0x33b   :  { %v2928_v16 = vadd.f32 %v2927_v49, %v2717_v53  ;;  %v3195_v30 = vpop.f32.mrf.mxu0  ;;  %v2950_v12 = vpop.f32.mrf.mxu3  ;;  %v3125_v53 = vperm.slane %v3121_v32, 2 }
 0x33c   :  { %v3196_v60 = vadd.f32 %v3195_v30, %v3123_v28 }
 0x33d   :  { %v8791_v5 = vadd.f32 %v2950_v12, %v2928_v16 }
 0x33e   :  { %v3218_v4 = vpop.f32.mrf.mxu1 }
 0x33f   :  { %10880 = vst [vmem:[#allocation112_spill] sm:$0xff] %v8791_v5  ;;  %v8793_v52 = vadd.f32 %v3218_v4, %v3196_v60  ;;  %v3126_v60 = vperm.slane %v3121_v32, 3 }
 0x341   :  { %10881 = vst [vmem:[#allocation114_spill] sm:$0xff] %v8793_v52 }
 0x344   :  { %v3241_v7 = vpop.f32.mrf.mxu2 }
 0x345   :  { %v3242_v58 = vadd.f32 %v3241_v7, %v3124_v39  ;;  %v3264_v59 = vpop.f32.mrf.mxu3  ;;  %v8803_v7 = vld [vmem:[#allocation8] sm:$0xf] }
 0x346   :  { %v262_v46 = vperm.slane %v8803_v7, 2 }
 0x347   :  { %v3198_v48 = vpop.f32.mrf.mxu0  ;;  %v8795_v18 = vadd.f32 %v3264_v59, %v3242_v58 }
 0x348   :  { %v3199_v14 = vadd.f32 %v3198_v48, %v3123_v28 }
 0x349   :  { %10882 = vst [vmem:[#allocation115_spill] sm:$0xff] %v8795_v18 }
 0x34a   :  { %v3221_v1 = vpop.f32.mrf.mxu1 }
 0x34b   :  { %v8797_v2 = vadd.f32 %v3221_v1, %v3199_v14 }
 0x34d   :  { %10883 = vst [vmem:[#allocation116_spill] sm:$0xff] %v8797_v2 }
 0x350   :  { %v3244_v55 = vpop.f32.mrf.mxu2 }
 0x351   :  { %v3245_v44 = vadd.f32 %v3244_v55, %v3124_v39  ;;  %v3287_v0 = vpop.f32.mrf.mxu0  ;;  %v3267_v15 = vpop.f32.mrf.mxu3  ;;  %v260_v39 = vperm.slane %v8803_v7, 0  ;;  %v261_v55 = vperm.slane %v8803_v7, 1 }
 0x352   :  { %v3288_v49 = vadd.f32 %v3287_v0, %v3125_v53  ;;  %v10888_v0 = vld [vmem:[#allocation79_spill] sm:$0xff] }
 0x353   :  { %v8799_v16 = vadd.f32 %v3267_v15, %v3245_v44  ;;  %v333_v15 = vadd.f32 %v10888_v0, %v260_v39  ;;  %v10894_v0 = vld [vmem:[#allocation81_spill] sm:$0xff] }
 0x354   :  { %v3310_v30 = vpop.f32.mrf.mxu1  ;;  %v336_v52 = vadd.f32 %v10894_v0, %v260_v39  ;;  %v263_v39 = vperm.slane %v8803_v7, 3 }
 0x355   :  { %10884 = vst [vmem:[#allocation62_spill] sm:$0xff] %v8799_v16  ;;  %v8801_v12 = vadd.f32 %v3310_v30, %v3288_v49  ;;  %v10889_v49 = vld [vmem:[#allocation76_spill] sm:$0xff] }
 0x356   :  { %v379_v32 = vadd.f32 %v10889_v49, %v261_v55  ;;  %v10895_v49 = vld [vmem:[#allocation77_spill] sm:$0xff] }
 0x357   :  { %10885 = vst [vmem:[#allocation68_spill] sm:$0xff] %v8801_v12  ;;  %v382_v5 = vadd.f32 %v10895_v49, %v261_v55 }
 0x35a   :  { %v3333_v4 = vpop.f32.mrf.mxu2 }
 0x35b   :  { %v3290_v58 = vpop.f32.mrf.mxu0  ;;  %v3334_v28 = vadd.f32 %v3333_v4, %v3126_v60  ;;  %v3356_v48 = vpop.f32.mrf.mxu3  ;;  %v10890_v4 = vld [vmem:[#allocation80_spill] sm:$0xff] }
 0x35c   :  { %v3291_v59 = vadd.f32 %v3290_v58, %v3125_v53  ;;  %v356_v53 = vadd.f32 %v10890_v4, %v333_v15  ;;  %v10891_v58 = vld [vmem:[#allocation75_spill] sm:$0xff] }
 0x35d   :  { %v8805_v14 = vadd.f32 %v3356_v48, %v3334_v28  ;;  %v402_v28 = vadd.f32 %v10891_v58, %v379_v32  ;;  %v10897_v32 = vld [vmem:[#allocation84_spill] sm:$0xff] }
 0x35e   :  { %v3313_v1 = vpop.f32.mrf.mxu1 }
 0x35f   :  { %10886 = vst [vmem:[#allocation69_spill] sm:$0xff] %v8805_v14  ;;  %v8809_v44 = vadd.f32 %v3313_v1, %v3291_v59  ;;  %v10893_v1 = vld [vmem:[#allocation14_spill] sm:$0xff] }
 0x361   :  { %10887 = vst [vmem:[#allocation72_spill] sm:$0xff] %v8809_v44  ;;  %v425_v44 = vadd.f32 %v10893_v1, %v262_v46  ;;  %v10899_v1 = vld [vmem:[#allocation19_spill] sm:$0xff] }
 0x362   :  { %v428_v55 = vadd.f32 %v10899_v1, %v262_v46 }
 0x364   :  { %v3336_v30 = vpop.f32.mrf.mxu2 }
 0x365   :  { %v3337_v16 = vadd.f32 %v3336_v30, %v3126_v60  ;;  %v3359_v48 = vpop.f32.mrf.mxu3  ;;  %v10896_v60 = vld [vmem:[#allocation15_spill] sm:$0xff]  ;;  %v359_v30 = vadd.f32 %v10897_v32, %v336_v52 }
 0x366   :  { %v448_v15 = vadd.f32 %v10896_v60, %v425_v44  ;;  %v10901_v60 = vld [vmem:[#allocation24_spill] sm:$0xff] }
 0x367   :  { %v8816_v14 = vadd.f32 %v3359_v48, %v3337_v16  ;;  %v3459_v2 = vpop.f32.mrf.mxu0  ;;  %v10898_v16 = vld [vmem:[#allocation78_spill] sm:$0xff] }
 0x368   :  { %v3482_v12 = vpop.f32.mrf.mxu1  ;;  %v3534_v18 = vadd.f32 %v3459_v2, %v356_v53  ;;  %v405_v4 = vadd.f32 %v10898_v16, %v382_v5  ;;  %v10900_v5 = vld [vmem:[#allocation82_spill] sm:$0xff]  ;;  %v10902_v16 = vld [vmem:[#allocation83_spill] sm:$0xff] }
 0x369   :  { %10892 = vst [vmem:[#allocation51_spill] sm:$0xff] %v8816_v14  ;;  %v3535_v59 = vadd.f32 %v3482_v12, %v402_v28  ;;  %v471_v49 = vadd.f32 %v10900_v5, %v263_v39 }
 0x36a   :  { %v5358_v35 = vmul.f32 -1.442695, %v3534_v18 }
 0x36b   :  { %v5359_v40 = vmul.f32 -1.442695, %v3535_v59 }
 0x36c   :  { %5435 = vpow2.f32 %v5358_v35 }
 0x36d   :  { %5437 = vpow2.f32 %v5359_v40 }
 0x36e   :  { %v3505_v58 = vpop.f32.mrf.mxu2 }
 0x36f   :  { %v3536_v48 = vadd.f32 %v3505_v58, %v448_v15  ;;  %v3462_v2 = vpop.f32.mrf.mxu0  ;;  %v451_v15 = vadd.f32 %v10901_v60, %v428_v55  ;;  %v3528_v32 = vpop.f32.mrf.mxu3 }
 0x370   :  { %v3485_v12 = vpop.f32.mrf.mxu1  ;;  %v3538_v53 = vadd.f32 %v3462_v2, %v359_v30  ;;  %v10903_v2 = vld [vmem:[#allocation85_spill] sm:$0xff] }
 0x371   :  { %v3539_v28 = vadd.f32 %v3485_v12, %v405_v4  ;;  %v5360_v18 = vmul.f32 -1.442695, %v3536_v48  ;;  %v494_v4 = vadd.f32 %v10902_v16, %v471_v49  ;;  %v474_v12 = vadd.f32 %v10903_v2, %v263_v39 }
 0x372   :  { %v5436_v59 = vpop.eup %5435  ;;  %v5361_v35 = vmul.f32 -1.442695, %v3538_v53 }
 0x373   :  { %v5438_v0 = vpop.eup %5437  ;;  %v3560_v44 = vadd.f32 1.0, %v5436_v59  ;;  %5439 = vpow2.f32 %v5360_v18  ;;  %v5362_v40 = vmul.f32 -1.442695, %v3539_v28  ;;  %v3537_v1 = vadd.f32 %v3528_v32, %v494_v4 }
 0x374   :  { %v3561_v52 = vadd.f32 1.0, %v5438_v0  ;;  %5441 = vpow2.f32 %v5361_v35 }
 0x375   :  { %5443 = vrcp.f32 %v3560_v44  ;;  %v3575_v60 = vand.u32 2147483647, %v3560_v44  ;;  %v3577_v32 = vand.u32 2147483648, %v3560_v44  ;;  %vm3571_vm2 = vweird.f32 %v3560_v44 }
 0x376   :  { %5445 = vrcp.f32 %v3561_v52  ;;  %v3508_v30 = vpop.f32.mrf.mxu2  ;;  %v3590_v16 = vand.u32 2147483647, %v3561_v52  ;;  %vm3586_vm1 = vweird.f32 %v3561_v52 }
 0x377   :  { %5447 = vpow2.f32 %v5362_v40  ;;  %v3540_v7 = vadd.f32 %v3508_v30, %v451_v15  ;;  %v10904_v40 = vld [vmem:[#allocation86_spill] sm:$0xff]  ;;  %v3592_v30 = vand.u32 2147483648, %v3561_v52  ;;  %vm8842_vm4 = vcmp.eq.f32.partialorder %v3575_v60, 8.507059e+37 }
 0x378   :  { %v497_v5 = vadd.f32 %v10904_v40, %v474_v12  ;;  %vm3591_vm7 = vcmp.eq.f32.partialorder %v3590_v16, 8.507059e+37 }
 0x379   :  { %v5440_v46 = vpop.eup %5439  ;;  %v5363_v58 = vmul.f32 -1.442695, %v3540_v7  ;;  %v3531_v7 = vpop.f32.mrf.mxu3 }
 0x37a   :  { %v5442_v48 = vpop.eup %5441  ;;  %v8830_v53 = vadd.f32 1.0, %v5440_v46 }
 0x37b   :  { %v5444_v28 = vpop.eup %5443  ;;  %v8832_v18 = vadd.f32 1.0, %v5442_v48  ;;  %5449 = vpow2.f32 %v5363_v58 }
 0x37c   :  { %v5446_v55 = vpop.eup %5445  ;;  %v3567_v59 = vmul.f32 %v5444_v28, %v3560_v44  ;;  %5451 = vrcp.f32 %v8830_v53  ;;  %vm3572_vm0 = vweird.f32 %v5444_v28  ;;  %vm3601_vm13 = vweird.f32 %v8830_v53 }
 0x37d   :  { %v5448_v35 = vpop.eup %5447  ;;  %v3582_v0 = vmul.f32 %v5446_v55, %v3561_v52  ;;  %5453 = vrcp.f32 %v8832_v18  ;;  %vm3587_vm3 = vweird.f32 %v5446_v55  ;;  %vm3573_vm5 = vmor %vm3571_vm2, %vm3572_vm0  ;;  %vm3616_vm8 = vweird.f32 %v8832_v18 }
 0x37e   :  { %v3568_v49 = vsub.f32 1.0, %v3567_v59  ;;  %v8837_v39 = vadd.f32 1.0, %v5448_v35  ;;  %5455 = vtanh.f32 %v3537_v1  ;;  %v3541_v1 = vadd.f32 %v3531_v7, %v497_v5  ;;  %vm3588_vm6 = vmor %vm3586_vm1, %vm3587_vm3 }
 0x37f   :  { %v3583_v15 = vsub.f32 1.0, %v3582_v0  ;;  %v3593_v0 = vor.u32 1.1754944e-38, %v3592_v30  ;;  %v3622_v7 = vand.u32 2147483648, %v8832_v18 }
 0x380   :  { %v3569_v46 = vmul.f32 %v5444_v28, %v3568_v49  ;;  %5457 = vrcp.f32 %v8837_v39  ;;  %v3578_v49 = vor.u32 1.1754944e-38, %v3577_v32  ;;  %vm3631_vm0 = vweird.f32 %v8837_v39 }
 0x381   :  { %v5450_v4 = vpop.eup %5449  ;;  %v3584_v58 = vmul.f32 %v5446_v55, %v3583_v15 }
 0x382   :  { %v8840_v48 = vpop.eup %5451  ;;  %v3570_v2 = vadd.f32 %v5444_v28, %v3569_v46  ;;  %v8846_v59 = vadd.f32 1.0, %v5450_v4 }
 0x383   :  { %v5454_v35 = vpop.eup %5453  ;;  %v3597_v40 = vmul.f32 %v8840_v48, %v8830_v53  ;;  %v3585_v44 = vadd.f32 %v5446_v55, %v3584_v58  ;;  %vm3602_vm10 = vweird.f32 %v8840_v48 }
 0x384   :  { %v3574_v15 = vsel %vm3573_vm5, %v5444_v28, %v3570_v2  ;;  %v3612_v60 = vmul.f32 %v5454_v35, %v8832_v18  ;;  %5459 = vrcp.f32 %v8846_v59  ;;  %v5456_v46 = vpop.eup %5455  ;;  %v3607_v28 = vand.u32 2147483648, %v8830_v53  ;;  %vm8877_vm15 = vmor %vm3601_vm13, %vm3602_vm10 }
 0x385   :  { %v3598_v4 = vsub.f32 1.0, %v3597_v40  ;;  %v3579_v5 = vsel %vm8842_vm4, %v3578_v49, %v3574_v15  ;;  %v3589_v30 = vsel %vm3588_vm6, %v5446_v55, %v3585_v44  ;;  %5461 = vtanh.f32 %v3541_v1 }
 0x386   :  { %v5458_v14 = vpop.eup %5457  ;;  %v3594_v57 = vsel %vm3591_vm7, %v3593_v0, %v3589_v30  ;;  %v3660_v32 = vmul.f32 %v5456_v46, %v3579_v5  ;;  %v3613_v58 = vsub.f32 1.0, %v3612_v60  ;;  %vm3617_vm9 = vweird.f32 %v5454_v35 }
 0x387   :  { %v3599_v52 = vmul.f32 %v8840_v48, %v3598_v4  ;;  %v3658_v16 = vmul.f32 0.0, %v3594_v57  ;;  %v3627_v2 = vmul.f32 %v5458_v14, %v8837_v39  ;;  %v3620_v55 = vand.u32 2147483647, %v8832_v18  ;;  %vm3618_vm11 = vmor %vm3616_vm8, %vm3617_vm9 }
 0x388   :  { %v3614_v19 = vmul.f32 %v5454_v35, %v3613_v58  ;;  %v3637_v0 = vand.u32 2147483648, %v8837_v39  ;;  %v3623_v49 = vor.u32 1.1754944e-38, %v3622_v7  ;;  %v3635_v57 = vand.u32 2147483647, %v8837_v39 }
 0x389   :  { %v8862_v12 = vadd.f32 %v3660_v32, %v3658_v16  ;;  %v3628_v40 = vsub.f32 1.0, %v3627_v2  ;;  %v3600_v15 = vadd.f32 %v8840_v48, %v3599_v52  ;;  %vm3632_vm12 = vweird.f32 %v5458_v14 }
 0x38a   :  { %v8865_v1 = vpop.eup %5459  ;;  %v3615_v44 = vadd.f32 %v5454_v35, %v3614_v19  ;;  %vm3621_vm14 = vcmp.eq.f32.partialorder %v3620_v55, 8.507059e+37  ;;  %v3605_v19 = vand.u32 2147483647, %v8830_v53  ;;  %v3638_v52 = vor.u32 1.1754944e-38, %v3637_v0  ;;  %vm3633_vm1 = vmor %vm3631_vm0, %vm3632_vm12 }
 0x38b   :  { %5463 = vtanh.f32 %v8862_v12  ;;  %v3629_v60 = vmul.f32 %v5458_v14, %v3628_v40  ;;  %v3642_v46 = vmul.f32 %v8865_v1, %v8846_v59  ;;  %v5462_v4 = vpop.eup %5461  ;;  %v3604_v18 = vsel %vm8877_vm15, %v8840_v48, %v3600_v15  ;;  %v8964_v15 = vld [vmem:[#allocation7 + $0x148] sm:$0xff] }
 0x38c   :  { %v3619_v5 = vsel %vm3618_vm11, %v5454_v35, %v3615_v44  ;;  %v3608_v16 = vor.u32 1.1754944e-38, %v3607_v28  ;;  %vm3636_vm2 = vcmp.eq.f32.partialorder %v3635_v57, 8.507059e+37  ;;  %vm3606_vm3 = vcmp.eq.f32.partialorder %v3605_v19, 8.507059e+37  ;;  %v8894_v28 = vld [vmem:[#allocation7 + $0x1e0] sm:$0xff]  ;;  %v8897_v57 = vld [vmem:[#allocation7 + $0x1e8] sm:$0xff] }
 0x38d   :  { %v3643_v7 = vsub.f32 1.0, %v3642_v46  ;;  %v3624_v32 = vsel %vm3621_vm14, %v3623_v49, %v3619_v5  ;;  %v3630_v58 = vadd.f32 %v5458_v14, %v3629_v60  ;;  %vm3647_vm4 = vweird.f32 %v8865_v1  ;;  %v8904_v60 = vld [vmem:[#allocation7 + $0x1f0] sm:$0xff]  ;;  %v8913_v5 = vld [vmem:[#allocation7 + $0x1c0] sm:$0xff]  ;;  %v8916_v19 = vld [vmem:[#allocation7 + $0x1c8] sm:$0xff] }
 0x38e   :  { %v3661_v2 = vmul.f32 %v5462_v4, %v3624_v32  ;;  %v3609_v39 = vsel %vm3606_vm3, %v3608_v16, %v3604_v18  ;;  %vm3646_vm5 = vweird.f32 %v8846_v59  ;;  %v3650_v48 = vand.u32 2147483647, %v8846_v59  ;;  %v8907_v4 = vld [vmem:[#allocation7 + $0x1f8] sm:$0xff]  ;;  %v8931_v16 = vld [vmem:[#allocation7 + $0x1b0] sm:$0xff] }
 0x38f   :  { %v3634_v35 = vsel %vm3633_vm1, %v5458_v14, %v3630_v58  ;;  %v3644_v55 = vmul.f32 %v8865_v1, %v3643_v7  ;;  %v3652_v14 = vand.u32 2147483648, %v8846_v59  ;;  %vm8900_vm6 = vmor %vm3646_vm5, %vm3647_vm4  ;;  %v8919_v7 = vld [vmem:[#allocation7 + $0x1d0] sm:$0xff]  ;;  %v8922_v32 = vld [vmem:[#allocation7 + $0x1d8] sm:$0xff] }
 0x390   :  { %v3639_v53 = vsel %vm3636_vm2, %v3638_v52, %v3634_v35  ;;  %vm3651_vm7 = vcmp.eq.f32.partialorder %v3650_v48, 8.507059e+37  ;;  %v8925_v58 = vld [vmem:[#allocation7 + $0x1a0] sm:$0xff]  ;;  %v8934_v35 = vld [vmem:[#allocation7 + $0x1b8] sm:$0xff] }
 0x391   :  { %v5464_v40 = vpop.eup %5463  ;;  %v3659_v44 = vmul.f32 0.0, %v3639_v53  ;;  %v3645_v0 = vadd.f32 %v8865_v1, %v3644_v55  ;;  %v3653_v30 = vor.u32 1.1754944e-38, %v3652_v14  ;;  %v8937_v53 = vld [vmem:[#allocation7 + $0x180] sm:$0xff]  ;;  %v8940_v55 = vld [vmem:[#allocation7 + $0x188] sm:$0xff]  ;;  %v8958_v14 = vld [vmem:[#allocation7 + $0x178] sm:$0xff] }
 0x392   :  { %v3666_v46 = vmul.f32 %v5464_v40, %v3609_v39  ;;  %v8943_v40 = vld [vmem:[#allocation7 + $0x190] sm:$0xff]  ;;  %v8949_v39 = vld [vmem:[#allocation7 + $0x160] sm:$0xff] }
 0x393   :  { %v8886_v49 = vadd.f32 %v3661_v2, %v3659_v44  ;;  %v3649_v59 = vsel %vm8900_vm6, %v8865_v1, %v3645_v0  ;;  %v8928_v1 = vld [vmem:[#allocation7 + $0x1a8] sm:$0xff]  ;;  %v8946_v44 = vld [vmem:[#allocation7 + $0x198] sm:$0xff]  ;;  %v8955_v0 = vld [vmem:[#allocation7 + $0x170] sm:$0xff] }
 0x394   :  { %3692 = vmatmul.f32.vlgmr.msrb.gmra.mxu0 %v3666_v46  ;;  %3715 = vmatmul.f32.vlgmr.msrb.gmra.mxu1 %v3666_v46  ;;  %v3654_v18 = vsel %vm3651_vm7, %v3653_v30, %v3649_v59  ;;  %v8961_v48 = vld [vmem:[#allocation7 + $0x140] sm:$0xff]  ;;  %v8967_v59 = vld [vmem:[#allocation7 + $0x150] sm:$0xff]  ;;  %v8970_v30 = vld [vmem:[#allocation7 + $0x158] sm:$0xff] }
 0x395   :  { %5465 = vtanh.f32 %v8886_v49  ;;  %3738 = vmatmul.f32.vlgmr.msrb.gmra.mxu2 %v3666_v46  ;;  %3761 = vmatmul.f32.vlgmr.msrb.gmra.mxu3 %v3666_v46  ;;  %v8952_v46 = vld [vmem:[#allocation7 + $0x168] sm:$0xff]  ;;  %10911 = vst [vmem:[#allocation52_spill] sm:$0xff] %v8970_v30 }
 0x396   :  { %4144 = vmatpush.msrb.mxu0 %v8894_v28  ;;  %4167 = vmatpush.msrb.mxu1 %v8897_v57 }
 0x397   :  { %4190 = vmatpush.msrb.mxu2 %v8904_v60  ;;  %4213 = vmatpush.msrb.mxu3 %v8907_v4 }
 0x398   :  { %4145 = vmatpush.msrb.mxu0 %v8913_v5  ;;  %4168 = vmatpush.msrb.mxu1 %v8916_v19 }
 0x399   :  { %4191 = vmatpush.msrb.mxu2 %v8919_v7  ;;  %4214 = vmatpush.msrb.mxu3 %v8922_v32 }
 0x39a   :  { %4146 = vmatpush.msrb.mxu0 %v8925_v58  ;;  %4169 = vmatpush.msrb.mxu1 %v8928_v1 }
 0x39b   :  { %v5466_v52 = vpop.eup %5465  ;;  %4192 = vmatpush.msrb.mxu2 %v8931_v16  ;;  %4215 = vmatpush.msrb.mxu3 %v8934_v35 }
 0x39c   :  { %v3667_v2 = vmul.f32 %v5466_v52, %v3654_v18  ;;  %4147 = vmatpush.msrb.mxu0 %v8937_v53  ;;  %4170 = vmatpush.msrb.mxu1 %v8940_v55  ;;  %v8973_v52 = vld [vmem:[#allocation7 + $0x120] sm:$0xff]  ;;  %v8976_v18 = vld [vmem:[#allocation7 + $0x128] sm:$0xff] }
 0x39d   :  { %4193 = vmatpush.msrb.mxu2 %v8943_v40  ;;  %4216 = vmatpush.msrb.mxu3 %v8946_v44  ;;  %10912 = vst [vmem:[#allocation67_spill] sm:$0xff] %v8973_v52 }
 0x39e   :  { %3695 = vmatmul.f32.gmra.mxu0 %v3667_v2  ;;  %3718 = vmatmul.f32.gmra.mxu1 %v3667_v2 }
 0x39f   :  { %3741 = vmatmul.f32.gmra.mxu2 %v3667_v2  ;;  %3764 = vmatmul.f32.gmra.mxu3 %v3667_v2  ;;  %v8979_v2 = vld [vmem:[#allocation7 + $0x130] sm:$0xff] }
 0x3a0   :  { %4148 = vmatpush.msrb.mxu0 %v8949_v39  ;;  %4171 = vmatpush.msrb.mxu1 %v8952_v46 }
 0x3a1   :  { %4194 = vmatpush.msrb.mxu2 %v8955_v0  ;;  %4217 = vmatpush.msrb.mxu3 %v8958_v14 }
 0x3a2   :  { %4149 = vmatpush.msrb.mxu0 %v8961_v48  ;;  %4172 = vmatpush.msrb.mxu1 %v8964_v15 }
 0x3a3   :  { %4195 = vmatpush.msrb.mxu2 %v8967_v59  ;;  %4218 = vmatpush.msrb.mxu3 %v8970_v30  ;;  %v8988_v30 = vld [vmem:[#allocation7 + $0x108] sm:$0xff] }
 0x3a4   :  { %4150 = vmatpush.msrb.mxu0 %v8973_v52  ;;  %4173 = vmatpush.msrb.mxu1 %v8976_v18  ;;  %v8991_v52 = vld [vmem:[#allocation7 + $0x110] sm:$0xff] }
 0x3a5   :  { %4196 = vmatpush.msrb.mxu2 %v8979_v2  ;;  %4219 = vmatpush.msrb.mxu3 %v8982_v45 }
 0x3a6   :  { %4151 = vmatpush.msrb.mxu0 %v8985_v3  ;;  %4174 = vmatpush.msrb.mxu1 %v8988_v30 }
 0x3a7   :  { %4197 = vmatpush.msrb.mxu2 %v8991_v52  ;;  %4220 = vmatpush.msrb.mxu3 %v8485_v26 }
 0x3a8   :  { %4152 = vmatpush.msrb.mxu0 %v8491_v17  ;;  %4175 = vmatpush.msrb.mxu1 %v8493_v8 }
 0x3a9   :  { %4198 = vmatpush.msrb.mxu2 %v8497_v25  ;;  %4221 = vmatpush.msrb.mxu3 %v8499_v54  ;;  %v10917_v54 = vld [vmem:[#allocation94_spill] sm:$0xff] }
 0x3aa   :  { %4153 = vmatpush.msrb.mxu0 %v8503_v33  ;;  %4176 = vmatpush.msrb.mxu1 %v8505_v36  ;;  %v10919_v25 = vld [vmem:[#allocation38_spill] sm:$0xff]  ;;  %v10920_v33 = vld [vmem:[#allocation99_spill] sm:$0xff] }
 0x3ab   :  { %4199 = vmatpush.msrb.mxu2 %v8509_v61  ;;  %4222 = vmatpush.msrb.mxu3 %v8511_v31 }
 0x3ac   :  { %4154 = vmatpush.msrb.mxu0 %v8517_v51  ;;  %4177 = vmatpush.msrb.mxu1 %v8519_v47 }
 0x3ad   :  { %4200 = vmatpush.msrb.mxu2 %v8527_v10  ;;  %4223 = vmatpush.msrb.mxu3 %v8529_v22  ;;  %v10918_v22 = vld [vmem:[#allocation56_spill] sm:$0xff] }
 0x3ae   :  { %4155 = vmatpush.msrb.mxu0 %v8539_v23  ;;  %4178 = vmatpush.msrb.mxu1 %v8535_v24  ;;  %v10914_v23 = vld [vmem:[#allocation21_spill] sm:$0xff] }
 0x3af   :  { %4201 = vmatpush.msrb.mxu2 %v8541_v21  ;;  %4224 = vmatpush.msrb.mxu3 %v8545_v63 }
 0x3b0   :  { %4156 = vmatpush.msrb.mxu0 %v8551_v37  ;;  %4179 = vmatpush.msrb.mxu1 %v8553_v56  ;;  %v10916_v56 = vld [vmem:[#allocation22_spill] sm:$0xff] }
 0x3b1   :  { %4202 = vmatpush.msrb.mxu2 %v8557_v6  ;;  %4225 = vmatpush.msrb.mxu3 %v8559_v29  ;;  %v10915_v29 = vld [vmem:[#allocation45_spill] sm:$0xff] }
 0x3b2   :  { %4157 = vmatpush.msrb.mxu0 %v8563_v50  ;;  %4180 = vmatpush.msrb.mxu1 %v10863_v62  ;;  %v667_v50 = vld [vmem:[#allocation8] sm:$0xf] }
 0x3b3   :  { %4203 = vmatpush.msrb.mxu2 %v8569_v34  ;;  %4226 = vmatpush.msrb.mxu3 %v8571_v38  ;;  %v669_v6 = vperm.slane %v667_v50, 0  ;;  %v670_v63 = vperm.slane %v667_v50, 1  ;;  %v10913_v38 = vld [vmem:[#allocation41_spill] sm:$0xff] }
 0x3b4   :  { %4158 = vmatpush.msrb.mxu0 %v10876_v41  ;;  %4181 = vmatpush.msrb.mxu1 %v10866_v11  ;;  %v671_v11 = vperm.slane %v667_v50, 2  ;;  %v10922_v41 = vld [vmem:[#allocation39_spill] sm:$0xff] }
 0x3b5   :  { %4204 = vmatpush.msrb.mxu2 %v10867_v9  ;;  %4227 = vmatpush.msrb.mxu3 %v8589_v20  ;;  %v742_v34 = vadd.f32 %v10913_v38, %v669_v6  ;;  %v788_v37 = vadd.f32 %v10914_v23, %v670_v63  ;;  %v745_v61 = vadd.f32 %v10918_v22, %v669_v6 }
 0x3b6   :  { %4159 = vmatpush.msrb.mxu0 %v10877_v42  ;;  %4182 = vmatpush.msrb.mxu1 %v10868_v13  ;;  %v834_v8 = vadd.f32 %v10917_v54, %v671_v11  ;;  %v791_v26 = vadd.f32 %v10919_v25, %v670_v63  ;;  %v10921_v13 = vld [vmem:[#allocation63_spill] sm:$0xff] }
 0x3b7   :  { %4205 = vmatpush.msrb.mxu2 %v10878_v43  ;;  %4228 = vmatpush.msrb.mxu3 %v8603_v27  ;;  %v765_v9 = vadd.f32 %v10915_v29, %v742_v34  ;;  %v811_v20 = vadd.f32 %v10916_v56, %v788_v37  ;;  %v768_v62 = vadd.f32 %v10921_v13, %v745_v61  ;;  %v672_v43 = vperm.slane %v667_v50, 3  ;;  %v10923_v56 = vld [vmem:[#allocation109_spill] sm:$0xff] }
 0x3b8   :  { %v857_v17 = vadd.f32 %v10920_v33, %v834_v8  ;;  %v814_v42 = vadd.f32 %v10922_v41, %v791_v26  ;;  %v837_v63 = vadd.f32 %v10923_v56, %v671_v11  ;;  %v10925_v8 = vld [vmem:[#allocation113_spill] sm:$0xff] }
 0x3ba   :  { %v860_v50 = vadd.f32 %v10925_v8, %v837_v63  ;;  %v10928_v8 = vld [vmem:[#allocation91_spill] sm:$0xff] }
 0x411   :  { %v3693_v10 = vpop.f32.mrf.mxu0  ;;  %v3716_v31 = vpop.f32.mrf.mxu1 }
 0x412   :  { %v3768_v36 = vadd.f32 %v3693_v10, %v765_v9  ;;  %v3769_v21 = vadd.f32 %v3716_v31, %v811_v20  ;;  %v10924_v10 = vld [vmem:[#allocation59_spill] sm:$0xff] }
 0x413   :  { %v880_v31 = vadd.f32 %v10924_v10, %v672_v43 }
 0x414   :  { %v5364_v24 = vmul.f32 -1.442695, %v3768_v36  ;;  %v5365_v27 = vmul.f32 -1.442695, %v3769_v21 }
 0x416   :  { %5467 = vpow2.f32 %v5364_v24 }
 0x417   :  { %5469 = vpow2.f32 %v5365_v27  ;;  %v10926_v27 = vld [vmem:[#allocation60_spill] sm:$0xff] }
 0x418   :  { %v3739_v51 = vpop.f32.mrf.mxu2  ;;  %v3762_v24 = vpop.f32.mrf.mxu3  ;;  %v903_v22 = vadd.f32 %v10926_v27, %v880_v31 }
 0x419   :  { %v3770_v47 = vadd.f32 %v3739_v51, %v857_v17 }
 0x41a   :  { %v3771_v33 = vadd.f32 %v3762_v24, %v903_v22 }
 0x41b   :  { %v5366_v38 = vmul.f32 -1.442695, %v3770_v47  ;;  %v3696_v34 = vpop.f32.mrf.mxu0  ;;  %v3719_v23 = vpop.f32.mrf.mxu1 }
 0x41c   :  { %v5468_v37 = vpop.eup %5467  ;;  %v3772_v29 = vadd.f32 %v3696_v34, %v768_v62  ;;  %v3773_v9 = vadd.f32 %v3719_v23, %v814_v42 }
 0x41d   :  { %v5470_v6 = vpop.eup %5469  ;;  %v3794_v20 = vadd.f32 1.0, %v5468_v37  ;;  %5471 = vpow2.f32 %v5366_v38  ;;  %v10927_v38 = vld [vmem:[#allocation90_spill] sm:$0xff] }
 0x41e   :  { %v3795_v36 = vadd.f32 1.0, %v5470_v6  ;;  %v5367_v21 = vmul.f32 -1.442695, %v3772_v29  ;;  %v5368_v54 = vmul.f32 -1.442695, %v3773_v9  ;;  %v883_v34 = vadd.f32 %v10927_v38, %v672_v43 }
 0x41f   :  { %5473 = vrcp.f32 %v3794_v20  ;;  %v3809_v9 = vand.u32 2147483647, %v3794_v20  ;;  %v3811_v6 = vand.u32 2147483648, %v3794_v20  ;;  %vm3805_vm11 = vweird.f32 %v3794_v20 }
 0x420   :  { %5475 = vrcp.f32 %v3795_v36  ;;  %v3826_v63 = vand.u32 2147483648, %v3795_v36  ;;  %vm3820_vm10 = vweird.f32 %v3795_v36 }
 0x421   :  { %5477 = vpow2.f32 %v5367_v21  ;;  %v3824_v21 = vand.u32 2147483647, %v3795_v36  ;;  %vm3810_vm13 = vcmp.eq.f32.partialorder %v3809_v9, 8.507059e+37 }
 0x422   :  { %5479 = vpow2.f32 %v5368_v54  ;;  %v3742_v61 = vpop.f32.mrf.mxu2  ;;  %v3765_v43 = vpop.f32.mrf.mxu3 }
 0x423   :  { %v5472_v25 = vpop.eup %5471  ;;  %v3774_v26 = vadd.f32 %v3742_v61, %v860_v50  ;;  %v906_v50 = vadd.f32 %v10928_v8, %v883_v34  ;;  %v3812_v61 = vor.u32 1.1754944e-38, %v3811_v6  ;;  %vm3825_vm15 = vcmp.eq.f32.partialorder %v3824_v21, 8.507059e+37 }
 0x424   :  { %v9041_v11 = vadd.f32 1.0, %v5472_v25 }
 0x425   :  { %v5474_v17 = vpop.eup %5473  ;;  %v5369_v51 = vmul.f32 -1.442695, %v3774_v26 }
 0x426   :  { %v5476_v47 = vpop.eup %5475  ;;  %v3801_v13 = vmul.f32 %v5474_v17, %v3794_v20  ;;  %5481 = vrcp.f32 %v9041_v11  ;;  %vm3806_vm8 = vweird.f32 %v5474_v17  ;;  %vm3835_vm0 = vweird.f32 %v9041_v11 }
 0x427   :  { %v5478_v62 = vpop.eup %5477  ;;  %v3816_v41 = vmul.f32 %v5476_v47, %v3795_v36  ;;  %5483 = vpow2.f32 %v5369_v51  ;;  %vm3821_vm9 = vweird.f32 %v5476_v47  ;;  %vm3807_vm12 = vmor %vm3805_vm11, %vm3806_vm8 }
 0x428   :  { %v5480_v42 = vpop.eup %5479  ;;  %v3802_v23 = vsub.f32 1.0, %v3801_v13  ;;  %5485 = vtanh.f32 %v3771_v33  ;;  %v9045_v37 = vadd.f32 1.0, %v5478_v62  ;;  %vm3822_vm14 = vmor %vm3820_vm10, %vm3821_vm9  ;;  %v3827_v33 = vor.u32 1.1754944e-38, %v3826_v63 }
 0x429   :  { %v3817_v29 = vsub.f32 1.0, %v3816_v41  ;;  %v9047_v56 = vadd.f32 1.0, %v5480_v42  ;;  %v3775_v62 = vadd.f32 %v3765_v43, %v906_v50 }
 0x42a   :  { %v3803_v10 = vmul.f32 %v5474_v17, %v3802_v23  ;;  %5487 = vrcp.f32 %v9045_v37  ;;  %v3856_v43 = vand.u32 2147483648, %v9045_v37  ;;  %vm3850_vm5 = vweird.f32 %v9045_v37 }
 0x42b   :  { %v3818_v31 = vmul.f32 %v5476_v47, %v3817_v29  ;;  %5489 = vrcp.f32 %v9047_v56  ;;  %v3871_v8 = vand.u32 2147483648, %v9047_v56  ;;  %vm3865_vm6 = vweird.f32 %v9047_v56 }
 0x42c   :  { %v9051_v54 = vpop.eup %5481  ;;  %v3804_v24 = vadd.f32 %v5474_v17, %v3803_v10 }
 0x42d   :  { %v5484_v27 = vpop.eup %5483  ;;  %v3831_v22 = vmul.f32 %v9051_v54, %v9041_v11  ;;  %v3819_v25 = vadd.f32 %v5476_v47, %v3818_v31  ;;  %v3854_v31 = vand.u32 2147483647, %v9045_v37  ;;  %vm3836_vm1 = vweird.f32 %v9051_v54 }
 0x42e   :  { %v5486_v26 = vpop.eup %5485  ;;  %v3808_v51 = vsel %vm3807_vm12, %v5474_v17, %v3804_v24  ;;  %v9057_v13 = vadd.f32 1.0, %v5484_v27  ;;  %vm9078_vm4 = vmor %vm3835_vm0, %vm3836_vm1 }
 0x42f   :  { %v3832_v41 = vsub.f32 1.0, %v3831_v22  ;;  %v3813_v36 = vsel %vm3810_vm13, %v3812_v61, %v3808_v51  ;;  %v3823_v42 = vsel %vm3822_vm14, %v5476_v47, %v3819_v25  ;;  %v3841_v47 = vand.u32 2147483648, %v9041_v11  ;;  %v9135_v25 = vld [vmem:[#allocation7 + $0xf0] sm:$0xff] }
 0x430   :  { %v5488_v20 = vpop.eup %5487  ;;  %v3828_v38 = vsel %vm3825_vm15, %v3827_v33, %v3823_v42  ;;  %v3894_v34 = vmul.f32 %v5486_v26, %v3813_v36  ;;  %5491 = vrcp.f32 %v9057_v13  ;;  %v3869_v22 = vand.u32 2147483647, %v9047_v56  ;;  %10935 = vst [vmem:[#allocation79_spill] sm:$0xff] %v9135_v25 }
 0x431   :  { %v5490_v23 = vpop.eup %5489  ;;  %v3833_v29 = vmul.f32 %v9051_v54, %v3832_v41  ;;  %v3892_v9 = vmul.f32 %v3828_v38, %v8862_v12  ;;  %v3846_v6 = vmul.f32 %v5488_v20, %v9045_v37  ;;  %5493 = vtanh.f32 %v3775_v62 }
 0x432   :  { %v3861_v17 = vmul.f32 %v5490_v23, %v9047_v56  ;;  %vm3851_vm2 = vweird.f32 %v5488_v20  ;;  %vm3866_vm3 = vweird.f32 %v5490_v23  ;;  %v3839_v61 = vand.u32 2147483647, %v9041_v11 }
 0x433   :  { %v9066_v63 = vadd.f32 %v3894_v34, %v3892_v9  ;;  %v3847_v10 = vsub.f32 1.0, %v3846_v6  ;;  %v3834_v12 = vadd.f32 %v9051_v54, %v3833_v29  ;;  %v3842_v26 = vor.u32 1.1754944e-38, %v3841_v47  ;;  %vm3852_vm7 = vmor %vm3850_vm5, %vm3851_vm2 }
 0x434   :  { %v3862_v21 = vsub.f32 1.0, %v3861_v17  ;;  %v3857_v41 = vor.u32 1.1754944e-38, %v3856_v43  ;;  %vm3867_vm8 = vmor %vm3865_vm6, %vm3866_vm3  ;;  %v3872_v42 = vor.u32 1.1754944e-38, %v3871_v8  ;;  %vm3855_vm9 = vcmp.eq.f32.partialorder %v3854_v31, 8.507059e+37 }
 0x435   :  { %5495 = vtanh.f32 %v9066_v63  ;;  %v3848_v50 = vmul.f32 %v5488_v20, %v3847_v10  ;;  %v3838_v11 = vsel %vm9078_vm4, %v9051_v54, %v3834_v12  ;;  %vm3870_vm10 = vcmp.eq.f32.partialorder %v3869_v22, 8.507059e+37  ;;  %v9129_v22 = vld [vmem:[#allocation7 + $0xe0] sm:$0xff] }
 0x436   :  { %v5492_v24 = vpop.eup %5491  ;;  %v3863_v27 = vmul.f32 %v5490_v23, %v3862_v21  ;;  %vm3840_vm11 = vcmp.eq.f32.partialorder %v3839_v61, 8.507059e+37  ;;  %vm3880_vm13 = vweird.f32 %v9057_v13  ;;  %10933 = vst [vmem:[#allocation71_spill] sm:$0xff] %v9129_v22  ;;  %v9132_v61 = vld [vmem:[#allocation7 + $0xe8] sm:$0xff] }
 0x437   :  { %v3876_v33 = vmul.f32 %v5492_v24, %v9057_v13  ;;  %v3849_v51 = vadd.f32 %v5488_v20, %v3848_v50  ;;  %v5494_v62 = vpop.eup %5493  ;;  %v3843_v56 = vsel %vm3840_vm11, %v3842_v26, %v3838_v11  ;;  %vm3881_vm12 = vweird.f32 %v5492_v24  ;;  %v10931_v50 = vld [vmem:[#allocation52_spill] sm:$0xff]  ;;  %10934 = vst [vmem:[#allocation73_spill] sm:$0xff] %v9132_v61  ;;  %v9156_v11 = vld [vmem:[#allocation7 + $0xa8] sm:$0xff] }
 0x438   :  { %v3864_v36 = vadd.f32 %v5490_v23, %v3863_v27  ;;  %vm3882_vm14 = vmor %vm3880_vm13, %vm3881_vm12  ;;  %v9126_v27 = vld [vmem:[#allocation7 + $0x118] sm:$0xff]  ;;  %10942 = vst [vmem:[#allocation15_spill] sm:$0xff] %v9156_v11 }
 0x439   :  { %v3877_v38 = vsub.f32 1.0, %v3876_v33  ;;  %v3853_v34 = vsel %vm3852_vm7, %v5488_v20, %v3849_v51  ;;  %v3886_v20 = vand.u32 2147483648, %v9057_v13  ;;  %v9138_v26 = vld [vmem:[#allocation7 + $0xf8] sm:$0xff]  ;;  %v9141_v33 = vld [vmem:[#allocation7 + $0xc0] sm:$0xff]  ;;  %v9144_v51 = vld [vmem:[#allocation7 + $0xc8] sm:$0xff] }
 0x43a   :  { %v3858_v29 = vsel %vm3855_vm9, %v3857_v41, %v3853_v34  ;;  %v3868_v9 = vsel %vm3867_vm8, %v5490_v23, %v3864_v36  ;;  %10936 = vst [vmem:[#allocation76_spill] sm:$0xff] %v9138_v26  ;;  %v9150_v41 = vld [vmem:[#allocation7 + $0xd8] sm:$0xff]  ;;  %v9153_v36 = vld [vmem:[#allocation7 + $0xa0] sm:$0xff] }
 0x43b   :  { %v5496_v37 = vpop.eup %5495  ;;  %v3873_v6 = vsel %vm3870_vm10, %v3872_v42, %v3868_v9  ;;  %v3895_v17 = vmul.f32 %v5494_v62, %v3858_v29  ;;  %v3878_v47 = vmul.f32 %v5492_v24, %v3877_v38  ;;  %v3887_v31 = vor.u32 1.1754944e-38, %v3886_v20  ;;  %10937 = vst [vmem:[#allocation80_spill] sm:$0xff] %v9141_v33  ;;  %v9147_v62 = vld [vmem:[#allocation7 + $0xd0] sm:$0xff]  ;;  %v9162_v38 = vld [vmem:[#allocation7 + $0xb8] sm:$0xff]  ;;  %v9165_v34 = vld [vmem:[#allocation7 + $0x80] sm:$0xff] }
 0x43c   :  { %v3893_v10 = vmul.f32 %v3873_v6, %v8886_v49  ;;  %v3900_v21 = vmul.f32 %v5496_v37, %v3843_v56  ;;  %v3884_v49 = vand.u32 2147483647, %v9057_v13  ;;  %10938 = vst [vmem:[#allocation75_spill] sm:$0xff] %v9144_v51  ;;  %v9159_v42 = vld [vmem:[#allocation7 + $0xb0] sm:$0xff]  ;;  %v9168_v29 = vld [vmem:[#allocation7 + $0x88] sm:$0xff]  ;;  %v9174_v37 = vld [vmem:[#allocation7 + $0x98] sm:$0xff] }
 0x43d   :  { %v3879_v54 = vadd.f32 %v5492_v24, %v3878_v47  ;;  %10939 = vst [vmem:[#allocation14_spill] sm:$0xff] %v9147_v62  ;;  %v9171_v9 = vld [vmem:[#allocation7 + $0x90] sm:$0xff]  ;;  %v9177_v6 = vld [vmem:[#allocation7 + $0x60] sm:$0xff]  ;;  %v9186_v47 = vld [vmem:[#allocation7 + $0x78] sm:$0xff] }
 0x43e   :  { %v9089_v43 = vadd.f32 %v3895_v17, %v3893_v10  ;;  %3926 = vmatmul.f32.vlgmr.msra.gmra.mxu0 %v3900_v21  ;;  %3949 = vmatmul.f32.vlgmr.msra.gmra.mxu1 %v3900_v21  ;;  %vm3885_vm15 = vcmp.eq.f32.partialorder %v3884_v49, 8.507059e+37  ;;  %10940 = vst [vmem:[#allocation81_spill] sm:$0xff] %v9150_v41  ;;  %v9180_v17 = vld [vmem:[#allocation7 + $0x68] sm:$0xff]  ;;  %v9183_v56 = vld [vmem:[#allocation7 + $0x70] sm:$0xff]  ;;  %v9189_v10 = vld [vmem:[#allocation7 + $0x40] sm:$0xff] }
 0x43f   :  { %3972 = vmatmul.f32.vlgmr.msra.gmra.mxu2 %v3900_v21  ;;  %3995 = vmatmul.f32.vlgmr.msra.gmra.mxu3 %v3900_v21  ;;  %v3883_v23 = vsel %vm3882_vm14, %v5492_v24, %v3879_v54  ;;  %v10932_v24 = vld [vmem:[#allocation67_spill] sm:$0xff]  ;;  %10941 = vst [vmem:[#allocation77_spill] sm:$0xff] %v9153_v36  ;;  %v9198_v20 = vld [vmem:[#allocation7 + $0x58] sm:$0xff]  ;;  %v9201_v49 = vld [vmem:[#allocation7 + $0x20] sm:$0xff] }
 0x440   :  { %5497 = vtanh.f32 %v9089_v43  ;;  %4378 = vmatpush.msra.mxu0 %v8894_v28  ;;  %4401 = vmatpush.msra.mxu1 %v8897_v57  ;;  %v3888_v12 = vsel %vm3885_vm15, %v3887_v31, %v3883_v23  ;;  %10943 = vst [vmem:[#allocation84_spill] sm:$0xff] %v9159_v42  ;;  %v9192_v21 = vld [vmem:[#allocation7 + $0x48] sm:$0xff]  ;;  %v9195_v54 = vld [vmem:[#allocation7 + $0x50] sm:$0xff] }
 0x441   :  { %4424 = vmatpush.msra.mxu2 %v8904_v60  ;;  %4447 = vmatpush.msra.mxu3 %v8907_v4  ;;  %10944 = vst [vmem:[#allocation78_spill] sm:$0xff] %v9162_v38  ;;  %v9204_v23 = vld [vmem:[#allocation7 + $0x28] sm:$0xff]  ;;  %v9207_v31 = vld [vmem:[#allocation7 + $0x30] sm:$0xff] }
 0x442   :  { %4379 = vmatpush.msra.mxu0 %v8913_v5  ;;  %4402 = vmatpush.msra.mxu1 %v8916_v19  ;;  %10945 = vst [vmem:[#allocation19_spill] sm:$0xff] %v9165_v34 }
 0x443   :  { %4425 = vmatpush.msra.mxu2 %v8919_v7  ;;  %4448 = vmatpush.msra.mxu3 %v8922_v32  ;;  %10946 = vst [vmem:[#allocation82_spill] sm:$0xff] %v9168_v29 }
 0x444   :  { %4380 = vmatpush.msra.mxu0 %v8925_v58  ;;  %4403 = vmatpush.msra.mxu1 %v8928_v1  ;;  %10947 = vst [vmem:[#allocation24_spill] sm:$0xff] %v9171_v9 }
 0x445   :  { %4426 = vmatpush.msra.mxu2 %v8931_v16  ;;  %4449 = vmatpush.msra.mxu3 %v8934_v35  ;;  %10948 = vst [vmem:[#allocation83_spill] sm:$0xff] %v9174_v37 }
 0x446   :  { %v5498_v13 = vpop.eup %5497  ;;  %4381 = vmatpush.msra.mxu0 %v8937_v53  ;;  %4404 = vmatpush.msra.mxu1 %v8940_v55  ;;  %10949 = vst [vmem:[#allocation85_spill] sm:$0xff] %v9177_v6 }
 0x447   :  { %v3901_v8 = vmul.f32 %v5498_v13, %v3888_v12  ;;  %4427 = vmatpush.msra.mxu2 %v8943_v40  ;;  %4450 = vmatpush.msra.mxu3 %v8946_v44  ;;  %10950 = vst [vmem:[#allocation86_spill] sm:$0xff] %v9180_v17  ;;  %v9210_v13 = vld [vmem:[#allocation7 + $0x38] sm:$0xff]  ;;  %v9213_v12 = vld [vmem:[#allocation7] sm:$0xff] }
 0x448   :  { %4382 = vmatpush.msra.mxu0 %v8949_v39  ;;  %4405 = vmatpush.msra.mxu1 %v8952_v46  ;;  %10951 = vst [vmem:[#allocation41_spill] sm:$0xff] %v9183_v56 }
 0x449   :  { %3929 = vmatmul.f32.gmra.mxu0 %v3901_v8  ;;  %3952 = vmatmul.f32.gmra.mxu1 %v3901_v8  ;;  %10952 = vst [vmem:[#allocation21_spill] sm:$0xff] %v9186_v47 }
 0x44a   :  { %3975 = vmatmul.f32.gmra.mxu2 %v3901_v8  ;;  %3998 = vmatmul.f32.gmra.mxu3 %v3901_v8  ;;  %10953 = vst [vmem:[#allocation45_spill] sm:$0xff] %v9189_v10  ;;  %v9216_v8 = vld [vmem:[#allocation7 + $0x8] sm:$0xff] }
 0x44b   :  { %4428 = vmatpush.msra.mxu2 %v8955_v0  ;;  %4451 = vmatpush.msra.mxu3 %v8958_v14  ;;  %10954 = vst [vmem:[#allocation22_spill] sm:$0xff] %v9192_v21 }
 0x44c   :  { %4383 = vmatpush.msra.mxu0 %v8961_v48  ;;  %4406 = vmatpush.msra.mxu1 %v8964_v15  ;;  %10955 = vst [vmem:[#allocation94_spill] sm:$0xff] %v9195_v54 }
 0x44d   :  { %4429 = vmatpush.msra.mxu2 %v8967_v59  ;;  %4452 = vmatpush.msra.mxu3 %v10931_v50  ;;  %10956 = vst [vmem:[#allocation56_spill] sm:$0xff] %v9198_v20 }
 0x44e   :  { %4384 = vmatpush.msra.mxu0 %v10932_v24  ;;  %4407 = vmatpush.msra.mxu1 %v8976_v18  ;;  %10957 = vst [vmem:[#allocation38_spill] sm:$0xff] %v9201_v49 }
 0x44f   :  { %4430 = vmatpush.msra.mxu2 %v8979_v2  ;;  %4453 = vmatpush.msra.mxu3 %v8982_v45  ;;  %10958 = vst [vmem:[#allocation99_spill] sm:$0xff] %v9204_v23 }
 0x450   :  { %4385 = vmatpush.msra.mxu0 %v8985_v3  ;;  %4408 = vmatpush.msra.mxu1 %v8988_v30  ;;  %10959 = vst [vmem:[#allocation63_spill] sm:$0xff] %v9207_v31 }
 0x451   :  { %4431 = vmatpush.msra.mxu2 %v8991_v52  ;;  %4454 = vmatpush.msra.mxu3 %v9126_v27  ;;  %10960 = vst [vmem:[#allocation39_spill] sm:$0xff] %v9210_v13 }
 0x452   :  { %4386 = vmatpush.msra.mxu0 %v9129_v22  ;;  %4409 = vmatpush.msra.mxu1 %v9132_v61  ;;  %10961 = vst [vmem:[#allocation109_spill] sm:$0xff] %v9213_v12 }
 0x453   :  { %4432 = vmatpush.msra.mxu2 %v9135_v25  ;;  %4455 = vmatpush.msra.mxu3 %v9138_v26  ;;  %10962 = vst [vmem:[#allocation59_spill] sm:$0xff] %v9216_v8 }
 0x454   :  { %4387 = vmatpush.msra.mxu0 %v9141_v33  ;;  %4410 = vmatpush.msra.mxu1 %v9144_v51  ;;  %v10974_v33 = vld [vmem:[#allocation118_spill] sm:$0xff] }
 0x455   :  { %4433 = vmatpush.msra.mxu2 %v9147_v62  ;;  %4456 = vmatpush.msra.mxu3 %v9150_v41  ;;  %v10971_v41 = vld [vmem:[#allocation128_spill] sm:$0xff]  ;;  %v10972_v62 = vld [vmem:[#allocation117_spill] sm:$0xff] }
 0x456   :  { %4388 = vmatpush.msra.mxu0 %v9153_v36  ;;  %4411 = vmatpush.msra.mxu1 %v9156_v11  ;;  %v10970_v11 = vld [vmem:[#allocation121_spill] sm:$0xff] }
 0x457   :  { %4434 = vmatpush.msra.mxu2 %v9159_v42  ;;  %4457 = vmatpush.msra.mxu3 %v9162_v38 }
 0x458   :  { %4389 = vmatpush.msra.mxu0 %v9165_v34  ;;  %4412 = vmatpush.msra.mxu1 %v9168_v29  ;;  %v10969_v34 = vld [vmem:[#allocation127_spill] sm:$0xff] }
 0x459   :  { %4435 = vmatpush.msra.mxu2 %v9171_v9  ;;  %4458 = vmatpush.msra.mxu3 %v9174_v37 }
 0x45a   :  { %4390 = vmatpush.msra.mxu0 %v9177_v6  ;;  %4413 = vmatpush.msra.mxu1 %v9180_v17  ;;  %v10968_v6 = vld [vmem:[#allocation111_spill] sm:$0xff] }
 0x45b   :  { %4436 = vmatpush.msra.mxu2 %v9183_v56  ;;  %4459 = vmatpush.msra.mxu3 %v9186_v47  ;;  %v10967_v56 = vld [vmem:[#allocation120_spill] sm:$0xff] }
 0x45c   :  { %4391 = vmatpush.msra.mxu0 %v9189_v10  ;;  %4414 = vmatpush.msra.mxu1 %v9192_v21  ;;  %v10966_v10 = vld [vmem:[#allocation110_spill] sm:$0xff] }
 0x45d   :  { %4437 = vmatpush.msra.mxu2 %v9195_v54  ;;  %4460 = vmatpush.msra.mxu3 %v9198_v20 }
 0x45e   :  { %4392 = vmatpush.msra.mxu0 %v9201_v49  ;;  %4415 = vmatpush.msra.mxu1 %v9204_v23  ;;  %v9219_v49 = vld [vmem:[#allocation7 + $0x10] sm:$0xff]  ;;  %v9222_v23 = vld [vmem:[#allocation7 + $0x18] sm:$0xff] }
 0x45f   :  { %4438 = vmatpush.msra.mxu2 %v9207_v31  ;;  %4461 = vmatpush.msra.mxu3 %v9210_v13  ;;  %10963 = vst [vmem:[#allocation113_spill] sm:$0xff] %v9219_v49  ;;  %v1076_v31 = vld [vmem:[#allocation8] sm:$0xf]  ;;  %v10965_v13 = vld [vmem:[#allocation119_spill] sm:$0xff] }
 0x460   :  { %4393 = vmatpush.msra.mxu0 %v9213_v12  ;;  %4416 = vmatpush.msra.mxu1 %v9216_v8  ;;  %10964 = vst [vmem:[#allocation60_spill] sm:$0xff] %v9222_v23  ;;  %v1078_v20 = vperm.slane %v1076_v31, 0  ;;  %v1079_v54 = vperm.slane %v1076_v31, 1  ;;  %v1080_v12 = vperm.slane %v1076_v31, 2 }
 0x461   :  { %4439 = vmatpush.msra.mxu2 %v9219_v49  ;;  %4462 = vmatpush.msra.mxu3 %v9222_v23 }
 0x462   :  { %v1151_v21 = vadd.f32 %v10965_v13, %v1078_v20  ;;  %v1197_v47 = vadd.f32 %v10966_v10, %v1079_v54  ;;  %v1243_v38 = vadd.f32 %v10969_v34, %v1080_v12  ;;  %v1154_v36 = vadd.f32 %v10970_v11, %v1078_v20 }
 0x463   :  { %v1200_v10 = vadd.f32 %v10972_v62, %v1079_v54  ;;  %v10976_v62 = vld [vmem:[#allocation129_spill] sm:$0xff] }
 0x464   :  { %v1174_v17 = vadd.f32 %v10967_v56, %v1151_v21  ;;  %v1220_v8 = vadd.f32 %v10968_v6, %v1197_v47  ;;  %v1266_v13 = vadd.f32 %v10971_v41, %v1243_v38  ;;  %v1081_v21 = vperm.slane %v1076_v31, 3  ;;  %v10973_v6 = vld [vmem:[#allocation124_spill] sm:$0xff]  ;;  %v10975_v41 = vld [vmem:[#allocation122_spill] sm:$0xff] }
 0x465   :  { %v1177_v47 = vadd.f32 %v10973_v6, %v1154_v36  ;;  %v1246_v54 = vadd.f32 %v10976_v62, %v1080_v12 }
 0x466   :  { %v1289_v38 = vadd.f32 %v10975_v41, %v1081_v21 }
 0x4bb   :  { %v3927_v37 = vpop.f32.mrf.mxu0  ;;  %v3950_v9 = vpop.f32.mrf.mxu1 }
 0x4bc   :  { %v4002_v29 = vadd.f32 %v3927_v37, %v1174_v17  ;;  %v4003_v49 = vadd.f32 %v3950_v9, %v1220_v8  ;;  %v1223_v37 = vadd.f32 %v10974_v33, %v1200_v10  ;;  %v10977_v33 = vld [vmem:[#allocation123_spill] sm:$0xff] }
 0x4bd   :  { %v1312_v8 = vadd.f32 %v10977_v33, %v1289_v38 }
 0x4be   :  { %v5370_v42 = vmul.f32 -1.442695, %v4002_v29  ;;  %v5371_v23 = vmul.f32 -1.442695, %v4003_v49 }
 0x4c0   :  { %5499 = vpow2.f32 %v5370_v42 }
 0x4c1   :  { %5501 = vpow2.f32 %v5371_v23 }
 0x4c2   :  { %v3973_v51 = vpop.f32.mrf.mxu2 }
 0x4c3   :  { %v4004_v56 = vadd.f32 %v3973_v51, %v1266_v13  ;;  %v3996_v51 = vpop.f32.mrf.mxu3  ;;  %v10978_v13 = vld [vmem:[#allocation16_spill] sm:$0xff] }
 0x4c4   :  { %v1269_v10 = vadd.f32 %v10978_v13, %v1246_v54 }
 0x4c5   :  { %v5372_v9 = vmul.f32 -1.442695, %v4004_v56 }
 0x4c6   :  { %v5500_v17 = vpop.eup %5499  ;;  %v3930_v34 = vpop.f32.mrf.mxu0 }
 0x4c7   :  { %v3953_v29 = vpop.f32.mrf.mxu1  ;;  %v5502_v49 = vpop.eup %5501  ;;  %v4028_v42 = vadd.f32 1.0, %v5500_v17  ;;  %5503 = vpow2.f32 %v5372_v9  ;;  %v4006_v11 = vadd.f32 %v3930_v34, %v1177_v47  ;;  %v4005_v47 = vadd.f32 %v3996_v51, %v1312_v8 }
 0x4c8   :  { %v4007_v20 = vadd.f32 %v3953_v29, %v1223_v37  ;;  %v4029_v23 = vadd.f32 1.0, %v5502_v49 }
 0x4c9   :  { %5505 = vrcp.f32 %v4028_v42  ;;  %v5373_v36 = vmul.f32 -1.442695, %v4006_v11  ;;  %v10979_v11 = vld [vmem:[#allocation125_spill] sm:$0xff]  ;;  %v4043_v54 = vand.u32 2147483647, %v4028_v42  ;;  %vm4039_vm3 = vweird.f32 %v4028_v42 }
 0x4ca   :  { %5507 = vrcp.f32 %v4029_v23  ;;  %v5374_v31 = vmul.f32 -1.442695, %v4007_v20  ;;  %v1292_v20 = vadd.f32 %v10979_v11, %v1081_v21  ;;  %v4060_v51 = vand.u32 2147483648, %v4029_v23 }
 0x4cb   :  { %5509 = vpow2.f32 %v5373_v36  ;;  %v4045_v36 = vand.u32 2147483648, %v4028_v42  ;;  %vm4054_vm2 = vweird.f32 %v4029_v23  ;;  %vm4044_vm6 = vcmp.eq.f32.partialorder %v4043_v54, 8.507059e+37 }
 0x4cc   :  { %5511 = vpow2.f32 %v5374_v31 }
 0x4cd   :  { %v5504_v56 = vpop.eup %5503  ;;  %v3976_v6 = vpop.f32.mrf.mxu2 }
 0x4ce   :  { %v9239_v9 = vadd.f32 1.0, %v5504_v56  ;;  %v4008_v37 = vadd.f32 %v3976_v6, %v1269_v10  ;;  %v4058_v10 = vand.u32 2147483647, %v4029_v23 }
 0x4cf   :  { %v5506_v17 = vpop.eup %5505 }
 0x4d0   :  { %v5508_v12 = vpop.eup %5507  ;;  %v4035_v34 = vmul.f32 %v5506_v17, %v4028_v42  ;;  %5513 = vrcp.f32 %v9239_v9  ;;  %v5375_v49 = vmul.f32 -1.442695, %v4008_v37  ;;  %vm4040_vm0 = vweird.f32 %v5506_v17  ;;  %v3999_v42 = vpop.f32.mrf.mxu3 }
 0x4d1   :  { %v4050_v29 = vmul.f32 %v5508_v12, %v4029_v23  ;;  %5515 = vtanh.f32 %v4005_v47  ;;  %v5510_v38 = vpop.eup %5509  ;;  %vm4055_vm1 = vweird.f32 %v5508_v12  ;;  %vm4041_vm4 = vmor %vm4039_vm3, %vm4040_vm0  ;;  %v4046_v37 = vor.u32 1.1754944e-38, %v4045_v36 }
 0x4d2   :  { %v4036_v41 = vsub.f32 1.0, %v4035_v34  ;;  %5517 = vpow2.f32 %v5375_v49  ;;  %v5512_v33 = vpop.eup %5511  ;;  %v9243_v8 = vadd.f32 1.0, %v5510_v38  ;;  %vm4056_vm5 = vmor %vm4054_vm2, %vm4055_vm1  ;;  %v4061_v49 = vor.u32 1.1754944e-38, %v4060_v51 }
 0x4d3   :  { %v4051_v62 = vsub.f32 1.0, %v4050_v29  ;;  %v9245_v56 = vadd.f32 1.0, %v5512_v33  ;;  %vm4059_vm7 = vcmp.eq.f32.partialorder %v4058_v10, 8.507059e+37  ;;  %v10980_v33 = vld [vmem:[#allocation126_spill] sm:$0xff]  ;;  %v4075_v51 = vand.u32 2147483648, %v9239_v9 }
 0x4d4   :  { %v4037_v31 = vmul.f32 %v5506_v17, %v4036_v41  ;;  %5519 = vrcp.f32 %v9243_v8  ;;  %vm4069_vm9 = vweird.f32 %v9239_v9  ;;  %vm4084_vm13 = vweird.f32 %v9243_v8 }
 0x4d5   :  { %v4052_v13 = vmul.f32 %v5508_v12, %v4051_v62  ;;  %5521 = vrcp.f32 %v9245_v56  ;;  %vm4099_vm15 = vweird.f32 %v9245_v56 }
 0x4d6   :  { %v9247_v6 = vpop.eup %5513  ;;  %v4038_v21 = vadd.f32 %v5506_v17, %v4037_v31  ;;  %v1315_v31 = vadd.f32 %v10980_v33, %v1292_v20 }
 0x4d7   :  { %v4065_v47 = vmul.f32 %v9247_v6, %v9239_v9  ;;  %v4053_v34 = vadd.f32 %v5508_v12, %v4052_v13  ;;  %v5516_v29 = vpop.eup %5515  ;;  %vm4070_vm8 = vweird.f32 %v9247_v6 }
 0x4d8   :  { %v4042_v11 = vsel %vm4041_vm4, %v5506_v17, %v4038_v21  ;;  %v5518_v41 = vpop.eup %5517  ;;  %v4009_v17 = vadd.f32 %v3999_v42, %v1315_v31  ;;  %vm9271_vm10 = vmor %vm4069_vm9, %vm4070_vm8 }
 0x4d9   :  { %v4066_v38 = vsub.f32 1.0, %v4065_v47  ;;  %v4047_v23 = vsel %vm4044_vm6, %v4046_v37, %v4042_v11  ;;  %v4057_v62 = vsel %vm4056_vm5, %v5508_v12, %v4053_v34  ;;  %v9254_v61 = vadd.f32 1.0, %v5518_v41  ;;  %v11011_v34 = vld [vmem:[#allocation109_spill] sm:$0xff] }
 0x4da   :  { %v4062_v26 = vsel %vm4059_vm7, %v4061_v49, %v4057_v62  ;;  %v4128_v25 = vmul.f32 %v5516_v29, %v4047_v23  ;;  %v5520_v22 = vpop.eup %5519  ;;  %v4088_v37 = vand.u32 2147483647, %v9243_v8  ;;  %v4076_v29 = vor.u32 1.1754944e-38, %v4075_v51 }
 0x4db   :  { %v4067_v36 = vmul.f32 %v9247_v6, %v4066_v38  ;;  %v4126_v13 = vmul.f32 %v4062_v26, %v9066_v63  ;;  %5523 = vrcp.f32 %v9254_v61  ;;  %v5522_v54 = vpop.eup %5521  ;;  %v4080_v10 = vmul.f32 %v5520_v22, %v9243_v8 }
 0x4dc   :  { %v4095_v20 = vmul.f32 %v5522_v54, %v9245_v56  ;;  %v4073_v26 = vand.u32 2147483647, %v9239_v9  ;;  %v4105_v49 = vand.u32 2147483648, %v9245_v56  ;;  %vm4085_vm11 = vweird.f32 %v5520_v22 }
 0x4dd   :  { %v9260_v12 = vadd.f32 %v4128_v25, %v4126_v13  ;;  %v4068_v21 = vadd.f32 %v9247_v6, %v4067_v36  ;;  %v4081_v63 = vsub.f32 1.0, %v4080_v10  ;;  %v4090_v25 = vand.u32 2147483648, %v9243_v8  ;;  %vm4086_vm0 = vmor %vm4084_vm13, %vm4085_vm11 }
 0x4de   :  { %v4096_v47 = vsub.f32 1.0, %v4095_v20  ;;  %vm4100_vm12 = vweird.f32 %v5522_v54  ;;  %v4103_v9 = vand.u32 2147483647, %v9245_v56  ;;  %vm4074_vm14 = vcmp.eq.f32.partialorder %v4073_v26, 8.507059e+37 }
 0x4df   :  { %5525 = vtanh.f32 %v9260_v12  ;;  %v4082_v11 = vmul.f32 %v5520_v22, %v4081_v63  ;;  %v4072_v23 = vsel %vm9271_vm10, %v9247_v6, %v4068_v21  ;;  %vm4089_vm1 = vcmp.eq.f32.partialorder %v4088_v37, 8.507059e+37  ;;  %vm4101_vm2 = vmor %vm4099_vm15, %vm4100_vm12 }
 0x4e0   :  { %5527 = vtanh.f32 %v4009_v17  ;;  %v4097_v38 = vmul.f32 %v5522_v54, %v4096_v47  ;;  %v4091_v33 = vor.u32 1.1754944e-38, %v4090_v25  ;;  %v4106_v13 = vor.u32 1.1754944e-38, %v4105_v49  ;;  %v11010_v25 = vld [vmem:[#allocation39_spill] sm:$0xff]  ;;  %v11013_v49 = vld [vmem:[#allocation113_spill] sm:$0xff] }
 0x4e1   :  { %v9276_v41 = vpop.eup %5523  ;;  %v4083_v42 = vadd.f32 %v5520_v22, %v4082_v11  ;;  %v4077_v10 = vsel %vm4074_vm14, %v4076_v29, %v4072_v23  ;;  %vm4104_vm3 = vcmp.eq.f32.partialorder %v4103_v9, 8.507059e+37  ;;  %vm4114_vm5 = vweird.f32 %v9254_v61  ;;  %v11012_v29 = vld [vmem:[#allocation59_spill] sm:$0xff]  ;;  %v11014_v11 = vld [vmem:[#allocation60_spill] sm:$0xff] }
 0x4e2   :  { %v4110_v62 = vmul.f32 %v9276_v41, %v9254_v61  ;;  %v4098_v31 = vadd.f32 %v5522_v54, %v4097_v38  ;;  %vm4115_vm4 = vweird.f32 %v9276_v41  ;;  %v11015_v23 = vld [vmem:[#allocation20_spill] sm:$0xff] }
 0x4e3   :  { %v4087_v51 = vsel %vm4086_vm0, %v5520_v22, %v4083_v42  ;;  %vm4116_vm6 = vmor %vm4114_vm5, %vm4115_vm4  ;;  %v11016_v42 = vld [vmem:[#allocation130_spill] sm:$0xff] }
 0x4e4   :  { %v4111_v17 = vsub.f32 1.0, %v4110_v62  ;;  %v4092_v20 = vsel %vm4089_vm1, %v4091_v33, %v4087_v51  ;;  %v4102_v21 = vsel %vm4101_vm2, %v5522_v54, %v4098_v31  ;;  %v11009_v54 = vld [vmem:[#allocation63_spill] sm:$0xff] }
 0x4e5   :  { %v5526_v36 = vpop.eup %5525  ;;  %v4107_v47 = vsel %vm4104_vm3, %v4106_v13, %v4102_v21 }
 0x4e6   :  { %v5528_v6 = vpop.eup %5527  ;;  %v4134_v63 = vmul.f32 %v5526_v36, %v4077_v10  ;;  %v4112_v26 = vmul.f32 %v9276_v41, %v4111_v17  ;;  %v4127_v56 = vmul.f32 %v4107_v47, %v9089_v43  ;;  %v4120_v43 = vand.u32 2147483648, %v9254_v61  ;;  %v11017_v36 = vld [vmem:[#allocation23_spill] sm:$0xff] }
 0x4e7   :  { %v4129_v8 = vmul.f32 %v5528_v6, %v4092_v20  ;;  %v11018_v17 = vld [vmem:[#allocation131_spill] sm:$0xff] }
 0x4e8   :  { %4160 = vmatmul.f32.vlgmr.msrb.gmra.mxu0 %v4134_v63  ;;  %4183 = vmatmul.f32.vlgmr.msrb.gmra.mxu1 %v4134_v63  ;;  %v4113_v22 = vadd.f32 %v9276_v41, %v4112_v26 }
 0x4e9   :  { %4206 = vmatmul.f32.vlgmr.msrb.gmra.mxu2 %v4134_v63  ;;  %4229 = vmatmul.f32.vlgmr.msrb.gmra.mxu3 %v4134_v63  ;;  %v9288_v37 = vadd.f32 %v4129_v8, %v4127_v56  ;;  %v11019_v63 = vld [vmem:[#allocation31_spill] sm:$0xff]  ;;  %v11020_v56 = vld [vmem:[#allocation32_spill] sm:$0xff] }
 0x4ea   :  { %4612 = vmatpush.msrb.mxu0 %v8894_v28  ;;  %4635 = vmatpush.msrb.mxu1 %v8897_v57  ;;  %v4118_v28 = vand.u32 2147483647, %v9254_v61  ;;  %v4117_v57 = vsel %vm4116_vm6, %v9276_v41, %v4113_v22  ;;  %v11008_v61 = vld [vmem:[#allocation99_spill] sm:$0xff]  ;;  %v1485_v41 = vld [vmem:[#allocation8] sm:$0xf] }
 0x4eb   :  { %4658 = vmatpush.msrb.mxu2 %v8904_v60  ;;  %4681 = vmatpush.msrb.mxu3 %v8907_v4  ;;  %5529 = vtanh.f32 %v9288_v37  ;;  %v4121_v60 = vor.u32 1.1754944e-38, %v4120_v43  ;;  %v1487_v38 = vperm.slane %v1485_v41, 0  ;;  %v1488_v9 = vperm.slane %v1485_v41, 1 }
 0x4ec   :  { %4613 = vmatpush.msrb.mxu0 %v8913_v5  ;;  %4636 = vmatpush.msrb.mxu1 %v8916_v19  ;;  %vm4119_vm7 = vcmp.eq.f32.partialorder %v4118_v28, 8.507059e+37  ;;  %v1489_v31 = vperm.slane %v1485_v41, 2 }
 0x4ed   :  { %4659 = vmatpush.msrb.mxu2 %v8919_v7  ;;  %4682 = vmatpush.msrb.mxu3 %v8922_v32  ;;  %v4122_v5 = vsel %vm4119_vm7, %v4121_v60, %v4117_v57  ;;  %v10983_v7 = vld [vmem:[#allocation71_spill] sm:$0xff]  ;;  %v10984_v32 = vld [vmem:[#allocation73_spill] sm:$0xff]  ;;  %v1560_v62 = vadd.f32 %v11015_v23, %v1487_v38  ;;  %v1606_v33 = vadd.f32 %v11016_v42, %v1488_v9 }
 0x4ee   :  { %4614 = vmatpush.msrb.mxu0 %v8925_v58  ;;  %4637 = vmatpush.msrb.mxu1 %v8928_v1  ;;  %v10985_v58 = vld [vmem:[#allocation79_spill] sm:$0xff]  ;;  %v10986_v1 = vld [vmem:[#allocation76_spill] sm:$0xff]  ;;  %v1652_v47 = vadd.f32 %v11019_v63, %v1489_v31  ;;  %v11021_v57 = vld [vmem:[#allocation25_spill] sm:$0xff] }
 0x4ef   :  { %4660 = vmatpush.msrb.mxu2 %v8931_v16  ;;  %4683 = vmatpush.msrb.mxu3 %v8934_v35  ;;  %v10987_v16 = vld [vmem:[#allocation80_spill] sm:$0xff]  ;;  %v10988_v35 = vld [vmem:[#allocation75_spill] sm:$0xff]  ;;  %v1583_v13 = vadd.f32 %v11017_v36, %v1560_v62  ;;  %v1629_v51 = vadd.f32 %v11018_v17, %v1606_v33  ;;  %v1563_v60 = vadd.f32 %v11021_v57, %v1487_v38 }
 0x4f0   :  { %4615 = vmatpush.msrb.mxu0 %v8937_v53  ;;  %4638 = vmatpush.msrb.mxu1 %v8940_v55  ;;  %v10991_v53 = vld [vmem:[#allocation77_spill] sm:$0xff]  ;;  %v10992_v55 = vld [vmem:[#allocation15_spill] sm:$0xff]  ;;  %v1675_v22 = vadd.f32 %v11020_v56, %v1652_v47 }
 0x4f1   :  { %4661 = vmatpush.msrb.mxu2 %v8943_v40  ;;  %4684 = vmatpush.msrb.mxu3 %v8946_v44  ;;  %v5530_v4 = vpop.eup %5529  ;;  %v10993_v40 = vld [vmem:[#allocation84_spill] sm:$0xff]  ;;  %v10994_v44 = vld [vmem:[#allocation78_spill] sm:$0xff]  ;;  %v11027_v56 = vld [vmem:[#allocation27_spill] sm:$0xff] }
 0x4f2   :  { %4616 = vmatpush.msrb.mxu0 %v8949_v39  ;;  %4639 = vmatpush.msrb.mxu1 %v8952_v46  ;;  %v4135_v19 = vmul.f32 %v5530_v4, %v4122_v5  ;;  %v10995_v39 = vld [vmem:[#allocation19_spill] sm:$0xff]  ;;  %v10996_v46 = vld [vmem:[#allocation82_spill] sm:$0xff]  ;;  %v11022_v4 = vld [vmem:[#allocation17_spill] sm:$0xff] }
 0x4f3   :  { %4662 = vmatpush.msrb.mxu2 %v8955_v0  ;;  %4685 = vmatpush.msrb.mxu3 %v8958_v14  ;;  %v10997_v0 = vld [vmem:[#allocation24_spill] sm:$0xff]  ;;  %v10998_v14 = vld [vmem:[#allocation83_spill] sm:$0xff]  ;;  %v1609_v5 = vadd.f32 %v11022_v4, %v1488_v9  ;;  %v11026_v9 = vld [vmem:[#allocation33_spill] sm:$0xff] }
 0x4f4   :  { %4617 = vmatpush.msrb.mxu0 %v8961_v48  ;;  %4640 = vmatpush.msrb.mxu1 %v8964_v15  ;;  %v10999_v48 = vld [vmem:[#allocation85_spill] sm:$0xff]  ;;  %v11000_v15 = vld [vmem:[#allocation86_spill] sm:$0xff]  ;;  %v1655_v47 = vadd.f32 %v11026_v9, %v1489_v31 }
 0x4f5   :  { %4163 = vmatmul.f32.gmra.mxu0 %v4135_v19  ;;  %4186 = vmatmul.f32.gmra.mxu1 %v4135_v19 }
 0x4f6   :  { %4209 = vmatmul.f32.gmra.mxu2 %v4135_v19  ;;  %4232 = vmatmul.f32.gmra.mxu3 %v4135_v19  ;;  %v1490_v19 = vperm.slane %v1485_v41, 3 }
 0x4f7   :  { %4663 = vmatpush.msrb.mxu2 %v8967_v59  ;;  %4686 = vmatpush.msrb.mxu3 %v10931_v50  ;;  %v11001_v59 = vld [vmem:[#allocation41_spill] sm:$0xff]  ;;  %v11006_v50 = vld [vmem:[#allocation56_spill] sm:$0xff] }
 0x4f8   :  { %4618 = vmatpush.msrb.mxu0 %v10932_v24  ;;  %4641 = vmatpush.msrb.mxu1 %v8976_v18  ;;  %v11004_v18 = vld [vmem:[#allocation22_spill] sm:$0xff] }
 0x4f9   :  { %4664 = vmatpush.msrb.mxu2 %v8979_v2  ;;  %4687 = vmatpush.msrb.mxu3 %v8982_v45  ;;  %v10989_v45 = vld [vmem:[#allocation14_spill] sm:$0xff] }
 0x4fa   :  { %4619 = vmatpush.msrb.mxu0 %v8985_v3  ;;  %4642 = vmatpush.msrb.mxu1 %v8988_v30  ;;  %v10990_v3 = vld [vmem:[#allocation81_spill] sm:$0xff]  ;;  %v11005_v2 = vld [vmem:[#allocation94_spill] sm:$0xff] }
 0x4fb   :  { %4665 = vmatpush.msrb.mxu2 %v8991_v52  ;;  %4688 = vmatpush.msrb.mxu3 %v9126_v27  ;;  %v11002_v30 = vld [vmem:[#allocation21_spill] sm:$0xff]  ;;  %v11007_v24 = vld [vmem:[#allocation38_spill] sm:$0xff] }
 0x4fc   :  { %4620 = vmatpush.msrb.mxu0 %v10983_v7  ;;  %4643 = vmatpush.msrb.mxu1 %v10984_v32  ;;  %v11003_v52 = vld [vmem:[#allocation45_spill] sm:$0xff] }
 0x4fd   :  { %4666 = vmatpush.msrb.mxu2 %v10985_v58  ;;  %4689 = vmatpush.msrb.mxu3 %v10986_v1 }
 0x4fe   :  { %4621 = vmatpush.msrb.mxu0 %v10987_v16  ;;  %4644 = vmatpush.msrb.mxu1 %v10988_v35 }
 0x4ff   :  { %4667 = vmatpush.msrb.mxu2 %v10989_v45  ;;  %4690 = vmatpush.msrb.mxu3 %v10990_v3 }
 0x500   :  { %4622 = vmatpush.msrb.mxu0 %v10991_v53  ;;  %4645 = vmatpush.msrb.mxu1 %v10992_v55 }
 0x501   :  { %4668 = vmatpush.msrb.mxu2 %v10993_v40  ;;  %4691 = vmatpush.msrb.mxu3 %v10994_v44 }
 0x502   :  { %4623 = vmatpush.msrb.mxu0 %v10995_v39  ;;  %4646 = vmatpush.msrb.mxu1 %v10996_v46 }
 0x503   :  { %4669 = vmatpush.msrb.mxu2 %v10997_v0  ;;  %4692 = vmatpush.msrb.mxu3 %v10998_v14 }
 0x504   :  { %4624 = vmatpush.msrb.mxu0 %v10999_v48  ;;  %4647 = vmatpush.msrb.mxu1 %v11000_v15 }
 0x505   :  { %4670 = vmatpush.msrb.mxu2 %v11001_v59  ;;  %4693 = vmatpush.msrb.mxu3 %v11002_v30 }
 0x506   :  { %4625 = vmatpush.msrb.mxu0 %v11003_v52  ;;  %4648 = vmatpush.msrb.mxu1 %v11004_v18 }
 0x507   :  { %4671 = vmatpush.msrb.mxu2 %v11005_v2  ;;  %4694 = vmatpush.msrb.mxu3 %v11006_v50 }
 0x508   :  { %4626 = vmatpush.msrb.mxu0 %v11007_v24  ;;  %4649 = vmatpush.msrb.mxu1 %v11008_v61 }
 0x509   :  { %4672 = vmatpush.msrb.mxu2 %v11009_v54  ;;  %4695 = vmatpush.msrb.mxu3 %v11010_v25 }
 0x50a   :  { %4627 = vmatpush.msrb.mxu0 %v11011_v34  ;;  %4650 = vmatpush.msrb.mxu1 %v11012_v29 }
 0x50b   :  { %4673 = vmatpush.msrb.mxu2 %v11013_v49  ;;  %4696 = vmatpush.msrb.mxu3 %v11014_v11 }
 0x565   :  { %v4161_v10 = vpop.f32.mrf.mxu0  ;;  %v4184_v6 = vpop.f32.mrf.mxu1 }
 0x566   :  { %v4236_v20 = vadd.f32 %v4161_v10, %v1583_v13  ;;  %v4237_v21 = vadd.f32 %v4184_v6, %v1629_v51  ;;  %v11023_v51 = vld [vmem:[#allocation29_spill] sm:$0xff]  ;;  %v11024_v6 = vld [vmem:[#allocation18_spill] sm:$0xff] }
 0x567   :  { %v1586_v10 = vadd.f32 %v11023_v51, %v1563_v60 }
 0x568   :  { %v5376_v8 = vmul.f32 -1.442695, %v4236_v20  ;;  %v5377_v26 = vmul.f32 -1.442695, %v4237_v21  ;;  %v1632_v20 = vadd.f32 %v11024_v6, %v1609_v5  ;;  %v11025_v21 = vld [vmem:[#allocation26_spill] sm:$0xff] }
 0x569   :  { %v1698_v63 = vadd.f32 %v11025_v21, %v1490_v19 }
 0x56a   :  { %5531 = vpow2.f32 %v5376_v8 }
 0x56b   :  { %5533 = vpow2.f32 %v5377_v26 }
 0x56c   :  { %v4207_v43 = vpop.f32.mrf.mxu2  ;;  %v4230_v8 = vpop.f32.mrf.mxu3 }
 0x56d   :  { %v4238_v28 = vadd.f32 %v4207_v43, %v1675_v22  ;;  %v1721_v22 = vadd.f32 %v11027_v56, %v1698_v63 }
 0x56f   :  { %v5378_v23 = vmul.f32 -1.442695, %v4238_v28  ;;  %v4239_v4 = vadd.f32 %v4230_v8, %v1721_v22 }
 0x570   :  { %v5532_v62 = vpop.eup %5531 }
 0x571   :  { %v5534_v42 = vpop.eup %5533  ;;  %v4262_v33 = vadd.f32 1.0, %v5532_v62  ;;  %5535 = vpow2.f32 %v5378_v23  ;;  %v11028_v62 = vld [vmem:[#allocation37_spill] sm:$0xff] }
 0x572   :  { %v9369_v36 = vadd.f32 1.0, %v5534_v42  ;;  %v4164_v13 = vpop.f32.mrf.mxu0  ;;  %v4187_v17 = vpop.f32.mrf.mxu1  ;;  %v1678_v42 = vadd.f32 %v11028_v62, %v1655_v47 }
 0x573   :  { %5537 = vrcp.f32 %v4262_v33  ;;  %v4240_v38 = vadd.f32 %v4164_v13, %v1586_v10  ;;  %v4241_v41 = vadd.f32 %v4187_v17, %v1632_v20  ;;  %v11029_v13 = vld [vmem:[#allocation30_spill] sm:$0xff]  ;;  %v4277_v21 = vand.u32 2147483647, %v4262_v33 }
 0x574   :  { %5539 = vrcp.f32 %v9369_v36  ;;  %v1701_v17 = vadd.f32 %v11029_v13, %v1490_v19  ;;  %v4279_v63 = vand.u32 2147483648, %v4262_v33  ;;  %vm4273_vm10 = vweird.f32 %v4262_v33 }
 0x575   :  { %v5379_v43 = vmul.f32 -1.442695, %v4240_v38  ;;  %v5380_v28 = vmul.f32 -1.442695, %v4241_v41  ;;  %v4294_v38 = vand.u32 2147483648, %v9369_v36  ;;  %vm4288_vm11 = vweird.f32 %v9369_v36 }
 0x576   :  { %vm4278_vm13 = vcmp.eq.f32.partialorder %v4277_v21, 8.507059e+37 }
 0x577   :  { %v5536_v26 = vpop.eup %5535  ;;  %5541 = vpow2.f32 %v5379_v43 }
 0x578   :  { %v9377_v57 = vadd.f32 1.0, %v5536_v26  ;;  %v4292_v26 = vand.u32 2147483647, %v9369_v36 }
 0x579   :  { %v5538_v60 = vpop.eup %5537  ;;  %v4210_v5 = vpop.f32.mrf.mxu2 }
 0x57a   :  { %v5540_v23 = vpop.eup %5539  ;;  %v4269_v51 = vmul.f32 %v5538_v60, %v4262_v33  ;;  %5543 = vrcp.f32 %v9377_v57  ;;  %v4242_v6 = vadd.f32 %v4210_v5, %v1678_v42  ;;  %vm4274_vm8 = vweird.f32 %v5538_v60 }
 0x57b   :  { %v4284_v31 = vmul.f32 %v5540_v23, %v9369_v36  ;;  %5545 = vpow2.f32 %v5380_v28  ;;  %vm4289_vm9 = vweird.f32 %v5540_v23  ;;  %vm4275_vm12 = vmor %vm4273_vm10, %vm4274_vm8  ;;  %v4295_v33 = vor.u32 1.1754944e-38, %v4294_v38 }
 0x57c   :  { %v4270_v10 = vsub.f32 1.0, %v4269_v51  ;;  %5547 = vtanh.f32 %v4239_v4  ;;  %v5381_v9 = vmul.f32 -1.442695, %v4242_v6  ;;  %v4280_v4 = vor.u32 1.1754944e-38, %v4279_v63  ;;  %vm4290_vm14 = vmor %vm4288_vm11, %vm4289_vm9  ;;  %v4233_v63 = vpop.f32.mrf.mxu3 }
 0x57d   :  { %v4285_v20 = vsub.f32 1.0, %v4284_v31  ;;  %v5542_v47 = vpop.eup %5541  ;;  %vm4293_vm15 = vcmp.eq.f32.partialorder %v4292_v26, 8.507059e+37  ;;  %vm4303_vm1 = vweird.f32 %v9377_v57 }
 0x57e   :  { %v4271_v41 = vmul.f32 %v5538_v60, %v4270_v10  ;;  %v9388_v22 = vadd.f32 1.0, %v5542_v47  ;;  %5549 = vpow2.f32 %v5381_v9 }
 0x57f   :  { %v4286_v8 = vmul.f32 %v5540_v23, %v4285_v20 }
 0x580   :  { %v9385_v56 = vpop.eup %5543  ;;  %v4272_v19 = vadd.f32 %v5538_v60, %v4271_v41  ;;  %5551 = vrcp.f32 %v9388_v22  ;;  %vm4318_vm4 = vweird.f32 %v9388_v22 }
 0x581   :  { %v5546_v43 = vpop.eup %5545  ;;  %v4299_v28 = vmul.f32 %v9385_v56, %v9377_v57  ;;  %v4287_v5 = vadd.f32 %v5540_v23, %v4286_v8  ;;  %vm4304_vm0 = vweird.f32 %v9385_v56 }
 0x582   :  { %v4276_v62 = vsel %vm4275_vm12, %v5538_v60, %v4272_v19  ;;  %v9393_v42 = vadd.f32 1.0, %v5546_v43  ;;  %v5548_v36 = vpop.eup %5547  ;;  %v11030_v60 = vld [vmem:[#allocation28_spill] sm:$0xff]  ;;  %vm9411_vm2 = vmor %vm4303_vm1, %vm4304_vm0 }
 0x583   :  { %v4300_v51 = vsub.f32 1.0, %v4299_v28  ;;  %v4281_v31 = vsel %vm4278_vm13, %v4280_v4, %v4276_v62  ;;  %v4291_v13 = vsel %vm4290_vm14, %v5540_v23, %v4287_v5  ;;  %v1724_v41 = vadd.f32 %v11030_v60, %v1701_v17 }
 0x584   :  { %v4296_v10 = vsel %vm4293_vm15, %v4295_v33, %v4291_v13  ;;  %v4362_v6 = vmul.f32 %v5548_v36, %v4281_v31  ;;  %5553 = vrcp.f32 %v9393_v42  ;;  %v5550_v38 = vpop.eup %5549  ;;  %v4309_v23 = vand.u32 2147483648, %v9377_v57 }
 0x585   :  { %v4301_v20 = vmul.f32 %v9385_v56, %v4300_v51  ;;  %v4360_v21 = vmul.f32 %v4296_v10, %v9260_v12  ;;  %v9401_v47 = vadd.f32 1.0, %v5550_v38  ;;  %v4243_v26 = vadd.f32 %v4233_v63, %v1724_v41 }
 0x586   :  { %v5552_v8 = vpop.eup %5551  ;;  %v4307_v17 = vand.u32 2147483647, %v9377_v57  ;;  %v4310_v33 = vor.u32 1.1754944e-38, %v4309_v23  ;;  %v4324_v62 = vand.u32 2147483648, %v9388_v22  ;;  %v4322_v57 = vand.u32 2147483647, %v9388_v22 }
 0x587   :  { %v9399_v9 = vadd.f32 %v4362_v6, %v4360_v21  ;;  %v4302_v19 = vadd.f32 %v9385_v56, %v4301_v20  ;;  %v4314_v12 = vmul.f32 %v5552_v8, %v9388_v22  ;;  %vm4319_vm3 = vweird.f32 %v5552_v8 }
 0x588   :  { %v4339_v13 = vand.u32 2147483648, %v9393_v42  ;;  %v4337_v10 = vand.u32 2147483647, %v9393_v42  ;;  %vm4308_vm5 = vcmp.eq.f32.partialorder %v4307_v17, 8.507059e+37  ;;  %vm4333_vm7 = vweird.f32 %v9393_v42  ;;  %vm4320_vm8 = vmor %vm4318_vm4, %vm4319_vm3 }
 0x589   :  { %5555 = vtanh.f32 %v9399_v9  ;;  %v4315_v4 = vsub.f32 1.0, %v4314_v12  ;;  %v4306_v36 = vsel %vm9411_vm2, %v9385_v56, %v4302_v19  ;;  %v4325_v56 = vor.u32 1.1754944e-38, %v4324_v62 }
 0x58a   :  { %v5554_v43 = vpop.eup %5553  ;;  %5557 = vrcp.f32 %v9401_v47  ;;  %v4311_v63 = vsel %vm4308_vm5, %v4310_v33, %v4306_v36  ;;  %vm4323_vm9 = vcmp.eq.f32.partialorder %v4322_v57, 8.507059e+37  ;;  %v4340_v19 = vor.u32 1.1754944e-38, %v4339_v13  ;;  %v9437_v36 = vld [vmem:[#allocation7 + $0x1f0] sm:$0xff]  ;;  %v9454_v13 = vld [vmem:[#allocation7 + $0x1d8] sm:$0xff] }
 0x58b   :  { %v4329_v5 = vmul.f32 %v5554_v43, %v9393_v42  ;;  %5559 = vtanh.f32 %v4243_v26  ;;  %v4316_v31 = vmul.f32 %v5552_v8, %v4315_v4  ;;  %vm4334_vm6 = vweird.f32 %v5554_v43 }
 0x58c   :  { %vm4335_vm10 = vmor %vm4333_vm7, %vm4334_vm6  ;;  %vm4338_vm11 = vcmp.eq.f32.partialorder %v4337_v10, 8.507059e+37  ;;  %vm4348_vm13 = vweird.f32 %v9401_v47 }
 0x58d   :  { %v4330_v51 = vsub.f32 1.0, %v4329_v5  ;;  %v4317_v21 = vadd.f32 %v5552_v8, %v4316_v31  ;;  %v9429_v5 = vld [vmem:[#allocation7 + $0x1e0] sm:$0xff]  ;;  %v9446_v31 = vld [vmem:[#allocation7 + $0x1c8] sm:$0xff] }
 0x58f   :  { %v5556_v6 = vpop.eup %5555  ;;  %v4331_v20 = vmul.f32 %v5554_v43, %v4330_v51  ;;  %v4321_v23 = vsel %vm4320_vm8, %v5552_v8, %v4317_v21  ;;  %v9432_v8 = vld [vmem:[#allocation7 + $0x1e8] sm:$0xff]  ;;  %v9443_v51 = vld [vmem:[#allocation7 + $0x1c0] sm:$0xff]  ;;  %v4354_v21 = vand.u32 2147483648, %v9401_v47 }
 0x590   :  { %v9424_v38 = vpop.eup %5557  ;;  %v4368_v60 = vmul.f32 %v5556_v6, %v4311_v63  ;;  %v4326_v12 = vsel %vm4323_vm9, %v4325_v56, %v4321_v23  ;;  %v9459_v6 = vld [vmem:[#allocation7 + $0x1a0] sm:$0xff]  ;;  %v9467_v63 = vld [vmem:[#allocation7 + $0x1b0] sm:$0xff]  ;;  %v9470_v56 = vld [vmem:[#allocation7 + $0x1b8] sm:$0xff] }
 0x591   :  { %v4344_v41 = vmul.f32 %v9424_v38, %v9401_v47  ;;  %v4332_v22 = vadd.f32 %v5554_v43, %v4331_v20  ;;  %v5560_v26 = vpop.eup %5559  ;;  %vm4349_vm12 = vweird.f32 %v9424_v38  ;;  %v9462_v20 = vld [vmem:[#allocation7 + $0x1a8] sm:$0xff] }
 0x592   :  { %4394 = vmatmul.f32.vlgmr.msra.gmra.mxu0 %v4368_v60  ;;  %4417 = vmatmul.f32.vlgmr.msra.gmra.mxu1 %v4368_v60  ;;  %v4363_v4 = vmul.f32 %v5560_v26, %v4326_v12  ;;  %v9478_v23 = vld [vmem:[#allocation7 + $0x188] sm:$0xff]  ;;  %vm9483_vm14 = vmor %vm4348_vm13, %vm4349_vm12  ;;  %v9487_v26 = vld [vmem:[#allocation7 + $0x190] sm:$0xff] }
 0x593   :  { %v4345_v17 = vsub.f32 1.0, %v4344_v41  ;;  %v4336_v28 = vsel %vm4335_vm10, %v5554_v43, %v4332_v22  ;;  %4440 = vmatmul.f32.vlgmr.msra.gmra.mxu2 %v4368_v60  ;;  %4463 = vmatmul.f32.vlgmr.msra.gmra.mxu3 %v4368_v60  ;;  %v9440_v43 = vld [vmem:[#allocation7 + $0x1f8] sm:$0xff]  ;;  %v4352_v60 = vand.u32 2147483647, %v9401_v47  ;;  %v9475_v41 = vld [vmem:[#allocation7 + $0x180] sm:$0xff] }
 0x594   :  { %v4341_v42 = vsel %vm4338_vm11, %v4340_v19, %v4336_v28  ;;  %4846 = vmatpush.msra.mxu0 %v9429_v5  ;;  %4869 = vmatpush.msra.mxu1 %v9432_v8  ;;  %v9490_v19 = vld [vmem:[#allocation7 + $0x198] sm:$0xff]  ;;  %v9496_v12 = vld [vmem:[#allocation7 + $0x160] sm:$0xff]  ;;  %v4355_v28 = vor.u32 1.1754944e-38, %v4354_v21  ;;  %v9514_v21 = vld [vmem:[#allocation7 + $0x150] sm:$0xff] }
 0x595   :  { %v4361_v33 = vmul.f32 %v4341_v42, %v9288_v37  ;;  %v4346_v62 = vmul.f32 %v9424_v38, %v4345_v17  ;;  %4892 = vmatpush.msra.mxu2 %v9437_v36  ;;  %4915 = vmatpush.msra.mxu3 %v9440_v43  ;;  %v9451_v37 = vld [vmem:[#allocation7 + $0x1d0] sm:$0xff]  ;;  %v9499_v17 = vld [vmem:[#allocation7 + $0x168] sm:$0xff]  ;;  %v9505_v42 = vld [vmem:[#allocation7 + $0x178] sm:$0xff]  ;;  %vm4353_vm15 = vcmp.eq.f32.partialorder %v4352_v60, 8.507059e+37 }
 0x596   :  { %4847 = vmatpush.msra.mxu0 %v9443_v51  ;;  %4870 = vmatpush.msra.mxu1 %v9446_v31  ;;  %11035 = vst [vmem:[#allocation90_spill] sm:$0xff] %v9505_v42  ;;  %v9517_v22 = vld [vmem:[#allocation7 + $0x158] sm:$0xff]  ;;  %v9520_v60 = vld [vmem:[#allocation7 + $0x120] sm:$0xff] }
 0x597   :  { %v9449_v57 = vadd.f32 %v4363_v4, %v4361_v33  ;;  %4893 = vmatpush.msra.mxu2 %v9451_v37  ;;  %4916 = vmatpush.msra.mxu3 %v9454_v13  ;;  %v4347_v10 = vadd.f32 %v9424_v38, %v4346_v62  ;;  %v9502_v4 = vld [vmem:[#allocation7 + $0x170] sm:$0xff]  ;;  %v9508_v33 = vld [vmem:[#allocation7 + $0x140] sm:$0xff] }
 0x598   :  { %4848 = vmatpush.msra.mxu0 %v9459_v6  ;;  %4871 = vmatpush.msra.mxu1 %v9462_v20  ;;  %11036 = vst [vmem:[#allocation91_spill] sm:$0xff] %v9508_v33 }
 0x599   :  { %5561 = vtanh.f32 %v9449_v57  ;;  %4894 = vmatpush.msra.mxu2 %v9467_v63  ;;  %4917 = vmatpush.msra.mxu3 %v9470_v56  ;;  %v4351_v47 = vsel %vm9483_vm14, %v9424_v38, %v4347_v10  ;;  %v9511_v38 = vld [vmem:[#allocation7 + $0x148] sm:$0xff] }
 0x59a   :  { %4849 = vmatpush.msra.mxu0 %v9475_v41  ;;  %4872 = vmatpush.msra.mxu1 %v9478_v23  ;;  %11037 = vst [vmem:[#allocation52_spill] sm:$0xff] %v9511_v38  ;;  %v4356_v10 = vsel %vm4353_vm15, %v4355_v28, %v4351_v47  ;;  %v9529_v47 = vld [vmem:[#allocation7 + $0x138] sm:$0xff]  ;;  %v9532_v28 = vld [vmem:[#allocation7 + $0x100] sm:$0xff] }
 0x59b   :  { %4895 = vmatpush.msra.mxu2 %v9487_v26  ;;  %4918 = vmatpush.msra.mxu3 %v9490_v19 }
 0x59c   :  { %4850 = vmatpush.msra.mxu0 %v9496_v12  ;;  %4873 = vmatpush.msra.mxu1 %v9499_v17 }
 0x59d   :  { %4896 = vmatpush.msra.mxu2 %v9502_v4  ;;  %4919 = vmatpush.msra.mxu3 %v9505_v42 }
 0x59e   :  { %4851 = vmatpush.msra.mxu0 %v9508_v33  ;;  %4874 = vmatpush.msra.mxu1 %v9511_v38  ;;  %v9523_v33 = vld [vmem:[#allocation7 + $0x128] sm:$0xff]  ;;  %v9526_v38 = vld [vmem:[#allocation7 + $0x130] sm:$0xff] }
 0x59f   :  { %v5562_v62 = vpop.eup %5561  ;;  %4897 = vmatpush.msra.mxu2 %v9514_v21  ;;  %4920 = vmatpush.msra.mxu3 %v9517_v22 }
 0x5a0   :  { %v4369_v42 = vmul.f32 %v5562_v62, %v4356_v10  ;;  %4852 = vmatpush.msra.mxu0 %v9520_v60  ;;  %4875 = vmatpush.msra.mxu1 %v9523_v33  ;;  %v9535_v62 = vld [vmem:[#allocation7 + $0x108] sm:$0xff]  ;;  %v9538_v10 = vld [vmem:[#allocation7 + $0x110] sm:$0xff] }
 0x5a1   :  { %4898 = vmatpush.msra.mxu2 %v9526_v38  ;;  %4921 = vmatpush.msra.mxu3 %v9529_v47 }
 0x5a2   :  { %4397 = vmatmul.f32.gmra.mxu0 %v4369_v42  ;;  %4420 = vmatmul.f32.gmra.mxu1 %v4369_v42 }
 0x5a3   :  { %4443 = vmatmul.f32.gmra.mxu2 %v4369_v42  ;;  %4466 = vmatmul.f32.gmra.mxu3 %v4369_v42 }
 0x5a4   :  { %4853 = vmatpush.msra.mxu0 %v9532_v28  ;;  %4876 = vmatpush.msra.mxu1 %v9535_v62 }
 0x5a5   :  { %4899 = vmatpush.msra.mxu2 %v9538_v10  ;;  %4922 = vmatpush.msra.mxu3 %v9126_v27  ;;  %v9574_v27 = vld [vmem:[#allocation8] sm:$0xf] }
 0x5a6   :  { %4854 = vmatpush.msra.mxu0 %v10983_v7  ;;  %4877 = vmatpush.msra.mxu1 %v10984_v32  ;;  %v1896_v7 = vperm.slane %v9574_v27, 0  ;;  %v1897_v32 = vperm.slane %v9574_v27, 1 }
 0x5a7   :  { %4900 = vmatpush.msra.mxu2 %v10985_v58  ;;  %4923 = vmatpush.msra.mxu3 %v10986_v1  ;;  %v11038_v58 = vld [vmem:[#allocation42_spill] sm:$0xff] }
 0x5a8   :  { %4855 = vmatpush.msra.mxu0 %v10987_v16  ;;  %4878 = vmatpush.msra.mxu1 %v10988_v35  ;;  %v1969_v1 = vadd.f32 %v11038_v58, %v1896_v7  ;;  %v11039_v16 = vld [vmem:[#allocation34_spill] sm:$0xff] }
 0x5a9   :  { %4901 = vmatpush.msra.mxu2 %v10989_v45  ;;  %4924 = vmatpush.msra.mxu3 %v10990_v3  ;;  %v2015_v35 = vadd.f32 %v11039_v16, %v1897_v32  ;;  %v1898_v45 = vperm.slane %v9574_v27, 2  ;;  %v11040_v3 = vld [vmem:[#allocation43_spill] sm:$0xff]  ;;  %v11046_v58 = vld [vmem:[#allocation46_spill] sm:$0xff]  ;;  %v11047_v16 = vld [vmem:[#allocation48_spill] sm:$0xff] }
 0x5aa   :  { %4856 = vmatpush.msra.mxu0 %v10991_v53  ;;  %4879 = vmatpush.msra.mxu1 %v10992_v55  ;;  %v1992_v53 = vadd.f32 %v11040_v3, %v1969_v1  ;;  %v11041_v55 = vld [vmem:[#allocation35_spill] sm:$0xff]  ;;  %v11048_v3 = vld [vmem:[#allocation40_spill] sm:$0xff] }
 0x5ab   :  { %4902 = vmatpush.msra.mxu2 %v10993_v40  ;;  %4925 = vmatpush.msra.mxu3 %v10994_v44  ;;  %v2038_v40 = vadd.f32 %v11041_v55, %v2015_v35 }
 0x5ac   :  { %4857 = vmatpush.msra.mxu0 %v10995_v39  ;;  %4880 = vmatpush.msra.mxu1 %v10996_v46 }
 0x5ad   :  { %4903 = vmatpush.msra.mxu2 %v10997_v0  ;;  %4926 = vmatpush.msra.mxu3 %v10998_v14  ;;  %v11042_v14 = vld [vmem:[#allocation53_spill] sm:$0xff] }
 0x5ae   :  { %4858 = vmatpush.msra.mxu0 %v10999_v48  ;;  %4881 = vmatpush.msra.mxu1 %v11000_v15  ;;  %v2061_v48 = vadd.f32 %v11042_v14, %v1898_v45  ;;  %v11050_v14 = vld [vmem:[#allocation55_spill] sm:$0xff] }
 0x5af   :  { %4904 = vmatpush.msra.mxu2 %v11001_v59  ;;  %4927 = vmatpush.msra.mxu3 %v11002_v30  ;;  %v11043_v30 = vld [vmem:[#allocation54_spill] sm:$0xff] }
 0x5b0   :  { %4859 = vmatpush.msra.mxu0 %v11003_v52  ;;  %4882 = vmatpush.msra.mxu1 %v11004_v18  ;;  %v2084_v52 = vadd.f32 %v11043_v30, %v2061_v48  ;;  %v2064_v48 = vadd.f32 %v11050_v14, %v1898_v45 }
 0x5b1   :  { %4905 = vmatpush.msra.mxu2 %v11005_v2  ;;  %4928 = vmatpush.msra.mxu3 %v11006_v50  ;;  %v1899_v50 = vperm.slane %v9574_v27, 3 }
 0x5b2   :  { %4860 = vmatpush.msra.mxu0 %v11007_v24  ;;  %4883 = vmatpush.msra.mxu1 %v11008_v61 }
 0x5b3   :  { %4906 = vmatpush.msra.mxu2 %v11009_v54  ;;  %4929 = vmatpush.msra.mxu3 %v11010_v25  ;;  %v11044_v54 = vld [vmem:[#allocation44_spill] sm:$0xff]  ;;  %v2107_v1 = vadd.f32 %v11046_v58, %v1899_v50 }
 0x5b4   :  { %4861 = vmatpush.msra.mxu0 %v11011_v34  ;;  %4884 = vmatpush.msra.mxu1 %v11012_v29  ;;  %v1972_v25 = vadd.f32 %v11044_v54, %v1896_v7  ;;  %v11045_v34 = vld [vmem:[#allocation36_spill] sm:$0xff] }
 0x5b5   :  { %4907 = vmatpush.msra.mxu2 %v11013_v49  ;;  %4930 = vmatpush.msra.mxu3 %v11014_v11  ;;  %v2018_v29 = vadd.f32 %v11045_v34, %v1897_v32 }
 0x5b6   :  { %v1995_v35 = vadd.f32 %v11047_v16, %v1972_v25 }
 0x60f   :  { %v4395_v44 = vpop.f32.mrf.mxu0  ;;  %v4418_v39 = vpop.f32.mrf.mxu1 }
 0x610   :  { %v4470_v46 = vadd.f32 %v4395_v44, %v1992_v53  ;;  %v4471_v0 = vadd.f32 %v4418_v39, %v2038_v40  ;;  %v2041_v53 = vadd.f32 %v11048_v3, %v2018_v29 }
 0x612   :  { %v5382_v15 = vmul.f32 -1.442695, %v4470_v46  ;;  %v5383_v59 = vmul.f32 -1.442695, %v4471_v0  ;;  %v11049_v46 = vld [vmem:[#allocation47_spill] sm:$0xff] }
 0x613   :  { %v2130_v0 = vadd.f32 %v11049_v46, %v2107_v1 }
 0x614   :  { %5563 = vpow2.f32 %v5382_v15 }
 0x615   :  { %5565 = vpow2.f32 %v5383_v59 }
 0x616   :  { %v4441_v18 = vpop.f32.mrf.mxu2  ;;  %v4464_v44 = vpop.f32.mrf.mxu3 }
 0x617   :  { %v4472_v2 = vadd.f32 %v4441_v18, %v2084_v52  ;;  %v4473_v18 = vadd.f32 %v4464_v44, %v2130_v0 }
 0x619   :  { %v5384_v24 = vmul.f32 -1.442695, %v4472_v2 }
 0x61a   :  { %v5564_v61 = vpop.eup %5563 }
 0x61b   :  { %v5566_v49 = vpop.eup %5565  ;;  %v4496_v11 = vadd.f32 1.0, %v5564_v61  ;;  %5567 = vpow2.f32 %v5384_v24  ;;  %v11051_v61 = vld [vmem:[#allocation61_spill] sm:$0xff] }
 0x61c   :  { %v4497_v42 = vadd.f32 1.0, %v5566_v49  ;;  %v2087_v54 = vadd.f32 %v11051_v61, %v2064_v48  ;;  %v11052_v61 = vld [vmem:[#allocation49_spill] sm:$0xff] }
 0x61d   :  { %5569 = vrcp.f32 %v4496_v11  ;;  %v4511_v29 = vand.u32 2147483647, %v4496_v11  ;;  %v4513_v45 = vand.u32 2147483648, %v4496_v11  ;;  %vm4507_vm3 = vweird.f32 %v4496_v11 }
 0x61e   :  { %5571 = vrcp.f32 %v4497_v42  ;;  %v4528_v16 = vand.u32 2147483648, %v4497_v42  ;;  %v4526_v3 = vand.u32 2147483647, %v4497_v42  ;;  %vm4522_vm2 = vweird.f32 %v4497_v42 }
 0x61f   :  { %v4398_v55 = vpop.f32.mrf.mxu0  ;;  %v4421_v40 = vpop.f32.mrf.mxu1  ;;  %vm4512_vm4 = vcmp.eq.f32.partialorder %v4511_v29, 8.507059e+37 }
 0x620   :  { %v4474_v7 = vadd.f32 %v4398_v55, %v1995_v35  ;;  %v4475_v39 = vadd.f32 %v4421_v40, %v2041_v53  ;;  %v4529_v14 = vor.u32 1.1754944e-38, %v4528_v16  ;;  %vm4527_vm7 = vcmp.eq.f32.partialorder %v4526_v3, 8.507059e+37 }
 0x621   :  { %v5568_v32 = vpop.eup %5567 }
 0x622   :  { %v9595_v15 = vadd.f32 1.0, %v5568_v32  ;;  %v5385_v59 = vmul.f32 -1.442695, %v4474_v7  ;;  %v5386_v30 = vmul.f32 -1.442695, %v4475_v39  ;;  %v4514_v32 = vor.u32 1.1754944e-38, %v4513_v45 }
 0x623   :  { %v5570_v52 = vpop.eup %5569 }
 0x624   :  { %v5572_v2 = vpop.eup %5571  ;;  %v4503_v24 = vmul.f32 %v5570_v52, %v4496_v11  ;;  %5573 = vrcp.f32 %v9595_v15  ;;  %vm4508_vm0 = vweird.f32 %v5570_v52  ;;  %vm4537_vm9 = vweird.f32 %v9595_v15 }
 0x625   :  { %v4518_v25 = vmul.f32 %v5572_v2, %v4497_v42  ;;  %5575 = vpow2.f32 %v5385_v59  ;;  %vm4523_vm1 = vweird.f32 %v5572_v2  ;;  %vm4509_vm5 = vmor %vm4507_vm3, %vm4508_vm0 }
 0x626   :  { %v4504_v34 = vsub.f32 1.0, %v4503_v24  ;;  %5577 = vpow2.f32 %v5386_v30  ;;  %v4444_v49 = vpop.f32.mrf.mxu2  ;;  %vm4524_vm6 = vmor %vm4522_vm2, %vm4523_vm1  ;;  %v4467_v45 = vpop.f32.mrf.mxu3 }
 0x627   :  { %v4519_v58 = vsub.f32 1.0, %v4518_v25  ;;  %5579 = vtanh.f32 %v4473_v18  ;;  %v4476_v1 = vadd.f32 %v4444_v49, %v2087_v54  ;;  %v2110_v54 = vadd.f32 %v11052_v61, %v1899_v50 }
 0x628   :  { %v4505_v35 = vmul.f32 %v5570_v52, %v4504_v34  ;;  %v4543_v50 = vand.u32 2147483648, %v9595_v15 }
 0x629   :  { %v4520_v53 = vmul.f32 %v5572_v2, %v4519_v58  ;;  %v5387_v55 = vmul.f32 -1.442695, %v4476_v1 }
 0x62a   :  { %v5574_v40 = vpop.eup %5573  ;;  %v4506_v44 = vadd.f32 %v5570_v52, %v4505_v35  ;;  %v4541_v35 = vand.u32 2147483647, %v9595_v15 }
 0x62b   :  { %v5576_v7 = vpop.eup %5575  ;;  %v4533_v39 = vmul.f32 %v5574_v40, %v9595_v15  ;;  %v4521_v46 = vadd.f32 %v5572_v2, %v4520_v53  ;;  %5581 = vpow2.f32 %v5387_v55  ;;  %vm4538_vm8 = vweird.f32 %v5574_v40  ;;  %v5806_v55 = vld [vmem:[#allocation7 + $0x78] sm:$0xff] }
 0x62c   :  { %v5578_v0 = vpop.eup %5577  ;;  %v4510_v48 = vsel %vm4509_vm5, %v5570_v52, %v4506_v44  ;;  %v9600_v59 = vadd.f32 1.0, %v5576_v7  ;;  %vm9620_vm10 = vmor %vm4537_vm9, %vm4538_vm8  ;;  %vm4542_vm11 = vcmp.eq.f32.partialorder %v4541_v35, 8.507059e+37 }
 0x62d   :  { %v5580_v30 = vpop.eup %5579  ;;  %v4534_v18 = vsub.f32 1.0, %v4533_v39  ;;  %v4515_v42 = vsel %vm4512_vm4, %v4514_v32, %v4510_v48  ;;  %v4525_v24 = vsel %vm4524_vm6, %v5572_v2, %v4521_v46  ;;  %v9602_v11 = vadd.f32 1.0, %v5578_v0  ;;  %v11053_v2 = vld [vmem:[#allocation50_spill] sm:$0xff] }
 0x62e   :  { %v4530_v25 = vsel %vm4527_vm7, %v4529_v14, %v4525_v24  ;;  %v4596_v34 = vmul.f32 %v5580_v30, %v4515_v42  ;;  %5583 = vrcp.f32 %v9600_v59  ;;  %v2133_v1 = vadd.f32 %v11053_v2, %v2110_v54 }
 0x62f   :  { %v4535_v29 = vmul.f32 %v5574_v40, %v4534_v18  ;;  %v4594_v52 = vmul.f32 %v4530_v25, %v9399_v9  ;;  %5585 = vrcp.f32 %v9602_v11  ;;  %v4544_v32 = vor.u32 1.1754944e-38, %v4543_v50 }
 0x630   :  { %v4477_v9 = vadd.f32 %v4467_v45, %v2133_v1  ;;  %v4573_v15 = vand.u32 2147483648, %v9602_v11  ;;  %v4558_v14 = vand.u32 2147483648, %v9600_v59  ;;  %v4556_v18 = vand.u32 2147483647, %v9600_v59 }
 0x631   :  { %v5582_v49 = vpop.eup %5581  ;;  %v9610_v58 = vadd.f32 %v4596_v34, %v4594_v52  ;;  %v4536_v27 = vadd.f32 %v5574_v40, %v4535_v29  ;;  %vm4552_vm14 = vweird.f32 %v9600_v59  ;;  %vm4567_vm15 = vweird.f32 %v9602_v11 }
 0x632   :  { %v9613_v16 = vadd.f32 1.0, %v5582_v49  ;;  %v4559_v29 = vor.u32 1.1754944e-38, %v4558_v14  ;;  %v4574_v49 = vor.u32 1.1754944e-38, %v4573_v15  ;;  %vm4557_vm2 = vcmp.eq.f32.partialorder %v4556_v18, 8.507059e+37  ;;  %v5813_v15 = vld [vmem:[#allocation7 + $0x30] sm:$0xff]  ;;  %v5814_v14 = vld [vmem:[#allocation7 + $0x38] sm:$0xff] }
 0x633   :  { %5587 = vtanh.f32 %v9610_v58  ;;  %v4540_v39 = vsel %vm9620_vm10, %v5574_v40, %v4536_v27  ;;  %v4571_v40 = vand.u32 2147483647, %v9602_v11  ;;  %v5817_v18 = vld [vmem:[#allocation7 + $0x10] sm:$0xff] }
 0x634   :  { %v5584_v3 = vpop.eup %5583  ;;  %5589 = vrcp.f32 %v9613_v16  ;;  %v4545_v42 = vsel %vm4542_vm11, %v4544_v32, %v4540_v39  ;;  %vm4582_vm5 = vweird.f32 %v9613_v16  ;;  %v5809_v39 = vld [vmem:[#allocation7 + $0x50] sm:$0xff]  ;;  %v5810_v32 = vld [vmem:[#allocation7 + $0x58] sm:$0xff] }
 0x635   :  { %v5586_v53 = vpop.eup %5585  ;;  %v4548_v44 = vmul.f32 %v5584_v3, %v9600_v59  ;;  %5591 = vtanh.f32 %v4477_v9  ;;  %vm4553_vm12 = vweird.f32 %v5584_v3  ;;  %vm4572_vm3 = vcmp.eq.f32.partialorder %v4571_v40, 8.507059e+37  ;;  %v5804_v9 = vld [vmem:[#allocation7 + $0x68] sm:$0xff] }
 0x636   :  { %v4563_v7 = vmul.f32 %v5586_v53, %v9602_v11  ;;  %vm4568_vm13 = vweird.f32 %v5586_v53  ;;  %vm4554_vm0 = vmor %vm4552_vm14, %vm4553_vm12 }
 0x637   :  { %v4549_v46 = vsub.f32 1.0, %v4548_v44  ;;  %vm4569_vm1 = vmor %vm4567_vm15, %vm4568_vm13  ;;  %v5807_v44 = vld [vmem:[#allocation7 + $0x40] sm:$0xff] }
 0x638   :  { %v4564_v0 = vsub.f32 1.0, %v4563_v7  ;;  %v5808_v7 = vld [vmem:[#allocation7 + $0x48] sm:$0xff] }
 0x639   :  { %v5588_v48 = vpop.eup %5587  ;;  %v4550_v30 = vmul.f32 %v5584_v3, %v4549_v46  ;;  %v5811_v46 = vld [vmem:[#allocation7 + $0x20] sm:$0xff] }
 0x63a   :  { %v9631_v24 = vpop.eup %5589  ;;  %v4565_v61 = vmul.f32 %v5586_v53, %v4564_v0  ;;  %v4602_v54 = vmul.f32 %v5588_v48, %v4545_v42  ;;  %v5812_v0 = vld [vmem:[#allocation7 + $0x28] sm:$0xff]  ;;  %v5815_v48 = vld [vmem:[#allocation7] sm:$0xff]  ;;  %v5818_v42 = vld [vmem:[#allocation7 + $0x18] sm:$0xff] }
 0x63b   :  { %v4578_v25 = vmul.f32 %v9631_v24, %v9613_v16  ;;  %v4551_v34 = vadd.f32 %v5584_v3, %v4550_v30  ;;  %v5592_v1 = vpop.eup %5591  ;;  %vm4583_vm4 = vweird.f32 %v9631_v24  ;;  %v5816_v30 = vld [vmem:[#allocation7 + $0x8] sm:$0xff] }
 0x63c   :  { %v4566_v52 = vadd.f32 %v5586_v53, %v4565_v61  ;;  %4628 = vmatmul.f32.vlgmr.msrb.gmra.mxu0 %v4602_v54  ;;  %4651 = vmatmul.f32.vlgmr.msrb.gmra.mxu1 %v4602_v54  ;;  %vm4584_vm6 = vmor %vm4582_vm5, %vm4583_vm4 }
 0x63d   :  { %v4579_v45 = vsub.f32 1.0, %v4578_v25  ;;  %v4555_v2 = vsel %vm4554_vm0, %v5584_v3, %v4551_v34  ;;  %4674 = vmatmul.f32.vlgmr.msrb.gmra.mxu2 %v4602_v54  ;;  %4697 = vmatmul.f32.vlgmr.msrb.gmra.mxu3 %v4602_v54  ;;  %v11059_v54 = vld [vmem:[#allocation66_spill] sm:$0xff]  ;;  %v11060_v34 = vld [vmem:[#allocation57_spill] sm:$0xff] }
 0x63e   :  { %v4560_v27 = vsel %vm4557_vm2, %v4559_v29, %v4555_v2  ;;  %v4570_v50 = vsel %vm4569_vm1, %v5586_v53, %v4566_v52  ;;  %5080 = vmatpush.msrb.mxu0 %v9429_v5  ;;  %5103 = vmatpush.msrb.mxu1 %v9432_v8  ;;  %v5805_v53 = vld [vmem:[#allocation7 + $0x70] sm:$0xff]  ;;  %v11062_v2 = vld [vmem:[#allocation58_spill] sm:$0xff] }
 0x63f   :  { %v4575_v59 = vsel %vm4572_vm3, %v4574_v49, %v4570_v50  ;;  %v4597_v11 = vmul.f32 %v5592_v1, %v4560_v27  ;;  %v4580_v35 = vmul.f32 %v9631_v24, %v4579_v45  ;;  %5126 = vmatpush.msrb.mxu2 %v9437_v36  ;;  %5149 = vmatpush.msrb.mxu3 %v9440_v43  ;;  %v4588_v36 = vand.u32 2147483648, %v9613_v16  ;;  %v11061_v49 = vld [vmem:[#allocation70_spill] sm:$0xff] }
 0x640   :  { %v4595_v3 = vmul.f32 %v4575_v59, %v9449_v57  ;;  %5081 = vmatpush.msrb.mxu0 %v9443_v51  ;;  %5104 = vmatpush.msrb.mxu1 %v9446_v31  ;;  %v4586_v43 = vand.u32 2147483647, %v9613_v16  ;;  %v11056_v31 = vld [vmem:[#allocation90_spill] sm:$0xff] }
 0x641   :  { %5127 = vmatpush.msrb.mxu2 %v9451_v37  ;;  %5150 = vmatpush.msrb.mxu3 %v9454_v13  ;;  %v4581_v8 = vadd.f32 %v9631_v24, %v4580_v35  ;;  %v4589_v57 = vor.u32 1.1754944e-38, %v4588_v36  ;;  %v11057_v37 = vld [vmem:[#allocation91_spill] sm:$0xff]  ;;  %v11058_v13 = vld [vmem:[#allocation52_spill] sm:$0xff]  ;;  %v5803_v16 = vld [vmem:[#allocation7 + $0x60] sm:$0xff] }
 0x642   :  { %v9648_v5 = vadd.f32 %v4597_v11, %v4595_v3  ;;  %5082 = vmatpush.msrb.mxu0 %v9459_v6  ;;  %5105 = vmatpush.msrb.mxu1 %v9462_v20  ;;  %vm4587_vm7 = vcmp.eq.f32.partialorder %v4586_v43, 8.507059e+37  ;;  %v11063_v35 = vld [vmem:[#allocation95_spill] sm:$0xff]  ;;  %v11064_v43 = vld [vmem:[#allocation96_spill] sm:$0xff] }
 0x643   :  { %5128 = vmatpush.msrb.mxu2 %v9467_v63  ;;  %5151 = vmatpush.msrb.mxu3 %v9470_v56  ;;  %v4585_v51 = vsel %vm4584_vm6, %v9631_v24, %v4581_v8  ;;  %v5786_v56 = vld [vmem:[#allocation7 + $0x118] sm:$0xff]  ;;  %v9680_v24 = vld [vmem:[#allocation8] sm:$0xf] }
 0x644   :  { %5593 = vtanh.f32 %v9648_v5  ;;  %5083 = vmatpush.msrb.mxu0 %v9475_v41  ;;  %5106 = vmatpush.msrb.mxu1 %v9478_v23  ;;  %v4590_v20 = vsel %vm4587_vm7, %v4589_v57, %v4585_v51  ;;  %v5787_v41 = vld [vmem:[#allocation7 + $0xe0] sm:$0xff]  ;;  %v5788_v23 = vld [vmem:[#allocation7 + $0xe8] sm:$0xff]  ;;  %v2305_v61 = vperm.slane %v9680_v24, 0  ;;  %v2306_v40 = vperm.slane %v9680_v24, 1 }
 0x645   :  { %5129 = vmatpush.msrb.mxu2 %v9487_v26  ;;  %5152 = vmatpush.msrb.mxu3 %v9490_v19  ;;  %v5789_v26 = vld [vmem:[#allocation7 + $0xf0] sm:$0xff]  ;;  %v5790_v19 = vld [vmem:[#allocation7 + $0xf8] sm:$0xff]  ;;  %v2307_v52 = vperm.slane %v9680_v24, 2 }
 0x646   :  { %5084 = vmatpush.msrb.mxu0 %v9496_v12  ;;  %5107 = vmatpush.msrb.mxu1 %v9499_v17  ;;  %v5791_v12 = vld [vmem:[#allocation7 + $0xc0] sm:$0xff]  ;;  %v5792_v17 = vld [vmem:[#allocation7 + $0xc8] sm:$0xff]  ;;  %v2378_v25 = vadd.f32 %v11059_v54, %v2305_v61  ;;  %v2424_v29 = vadd.f32 %v11060_v34, %v2306_v40 }
 0x647   :  { %5130 = vmatpush.msrb.mxu2 %v9502_v4  ;;  %5153 = vmatpush.msrb.mxu3 %v11056_v31  ;;  %v5793_v4 = vld [vmem:[#allocation7 + $0xd0] sm:$0xff]  ;;  %v2470_v3 = vadd.f32 %v11063_v35, %v2307_v52 }
 0x648   :  { %5085 = vmatpush.msrb.mxu0 %v11057_v37  ;;  %5108 = vmatpush.msrb.mxu1 %v11058_v13  ;;  %v2401_v45 = vadd.f32 %v11061_v49, %v2378_v25  ;;  %v2447_v1 = vadd.f32 %v11062_v2, %v2424_v29  ;;  %v2308_v37 = vperm.slane %v9680_v24, 3 }
 0x649   :  { %5131 = vmatpush.msrb.mxu2 %v9514_v21  ;;  %5154 = vmatpush.msrb.mxu3 %v9517_v22  ;;  %v5796_v21 = vld [vmem:[#allocation7 + $0xa8] sm:$0xff]  ;;  %v5797_v22 = vld [vmem:[#allocation7 + $0xb0] sm:$0xff]  ;;  %v2493_v51 = vadd.f32 %v11064_v43, %v2470_v3 }
 0x64a   :  { %v5594_v6 = vpop.eup %5593  ;;  %5086 = vmatpush.msrb.mxu0 %v9520_v60  ;;  %5109 = vmatpush.msrb.mxu1 %v9523_v33  ;;  %v5794_v33 = vld [vmem:[#allocation7 + $0xd8] sm:$0xff] }
 0x64b   :  { %v4603_v63 = vmul.f32 %v5594_v6, %v4590_v20  ;;  %5132 = vmatpush.msrb.mxu2 %v9526_v38  ;;  %5155 = vmatpush.msrb.mxu3 %v9529_v47  ;;  %v5795_v38 = vld [vmem:[#allocation7 + $0xa0] sm:$0xff]  ;;  %v5798_v60 = vld [vmem:[#allocation7 + $0xb8] sm:$0xff] }
 0x64c   :  { %5087 = vmatpush.msrb.mxu0 %v9532_v28  ;;  %5110 = vmatpush.msrb.mxu1 %v9535_v62  ;;  %v5799_v47 = vld [vmem:[#allocation7 + $0x80] sm:$0xff]  ;;  %v5800_v28 = vld [vmem:[#allocation7 + $0x88] sm:$0xff]  ;;  %v5801_v62 = vld [vmem:[#allocation7 + $0x90] sm:$0xff] }
 0x64d   :  { %4631 = vmatmul.f32.gmra.mxu0 %v4603_v63  ;;  %4654 = vmatmul.f32.gmra.mxu1 %v4603_v63 }
 0x64e   :  { %4677 = vmatmul.f32.gmra.mxu2 %v4603_v63  ;;  %4700 = vmatmul.f32.gmra.mxu3 %v4603_v63  ;;  %v11065_v63 = vld [vmem:[#allocation74_spill] sm:$0xff] }
 0x64f   :  { %5133 = vmatpush.msrb.mxu2 %v9538_v10  ;;  %5156 = vmatpush.msrb.mxu3 %v5786_v56  ;;  %v5802_v10 = vld [vmem:[#allocation7 + $0x98] sm:$0xff]  ;;  %v2381_v56 = vadd.f32 %v11065_v63, %v2305_v61 }
 0x650   :  { %5088 = vmatpush.msrb.mxu0 %v5787_v41  ;;  %5111 = vmatpush.msrb.mxu1 %v5788_v23  ;;  %v11066_v41 = vld [vmem:[#allocation64_spill] sm:$0xff] }
 0x651   :  { %5134 = vmatpush.msrb.mxu2 %v5789_v26  ;;  %5157 = vmatpush.msrb.mxu3 %v5790_v19  ;;  %v2427_v23 = vadd.f32 %v11066_v41, %v2306_v40 }
 0x652   :  { %5089 = vmatpush.msrb.mxu0 %v5791_v12  ;;  %5112 = vmatpush.msrb.mxu1 %v5792_v17  ;;  %v11067_v12 = vld [vmem:[#allocation87_spill] sm:$0xff] }
 0x653   :  { %5135 = vmatpush.msrb.mxu2 %v5793_v4  ;;  %5158 = vmatpush.msrb.mxu3 %v5794_v33  ;;  %v2516_v17 = vadd.f32 %v11067_v12, %v2308_v37  ;;  %v11068_v4 = vld [vmem:[#allocation89_spill] sm:$0xff] }
 0x654   :  { %5090 = vmatpush.msrb.mxu0 %v5795_v38  ;;  %5113 = vmatpush.msrb.mxu1 %v5796_v21  ;;  %v2404_v33 = vadd.f32 %v11068_v4, %v2381_v56  ;;  %v11069_v38 = vld [vmem:[#allocation65_spill] sm:$0xff] }
 0x655   :  { %5136 = vmatpush.msrb.mxu2 %v5797_v22  ;;  %5159 = vmatpush.msrb.mxu3 %v5798_v60  ;;  %v2450_v21 = vadd.f32 %v11069_v38, %v2427_v23  ;;  %v11076_v4 = vld [vmem:[#allocation93_spill] sm:$0xff] }
 0x656   :  { %5091 = vmatpush.msrb.mxu0 %v5799_v47  ;;  %5114 = vmatpush.msrb.mxu1 %v5800_v28 }
 0x657   :  { %5137 = vmatpush.msrb.mxu2 %v5801_v62  ;;  %5160 = vmatpush.msrb.mxu3 %v5802_v10  ;;  %v11070_v62 = vld [vmem:[#allocation88_spill] sm:$0xff] }
 0x658   :  { %5092 = vmatpush.msrb.mxu0 %v5803_v16  ;;  %5115 = vmatpush.msrb.mxu1 %v5804_v9  ;;  %v2539_v10 = vadd.f32 %v11070_v62, %v2516_v17 }
 0x659   :  { %5138 = vmatpush.msrb.mxu2 %v5805_v53  ;;  %5161 = vmatpush.msrb.mxu3 %v5806_v55  ;;  %v11071_v53 = vld [vmem:[#allocation98_spill] sm:$0xff] }
 0x65a   :  { %5093 = vmatpush.msrb.mxu0 %v5807_v44  ;;  %5116 = vmatpush.msrb.mxu1 %v5808_v7  ;;  %v2473_v55 = vadd.f32 %v11071_v53, %v2307_v52 }
 0x65b   :  { %5139 = vmatpush.msrb.mxu2 %v5809_v39  ;;  %5162 = vmatpush.msrb.mxu3 %v5810_v32 }
 0x65c   :  { %5094 = vmatpush.msrb.mxu0 %v5811_v46  ;;  %5117 = vmatpush.msrb.mxu1 %v5812_v0 }
 0x65d   :  { %5140 = vmatpush.msrb.mxu2 %v5813_v15  ;;  %5163 = vmatpush.msrb.mxu3 %v5814_v14 }
 0x65e   :  { %5095 = vmatpush.msrb.mxu0 %v5815_v48  ;;  %5118 = vmatpush.msrb.mxu1 %v5816_v30  ;;  %v11072_v48 = vld [vmem:[#allocation100_spill] sm:$0xff] }
 0x65f   :  { %5141 = vmatpush.msrb.mxu2 %v5817_v18  ;;  %5164 = vmatpush.msrb.mxu3 %v5818_v42  ;;  %v2496_v30 = vadd.f32 %v11072_v48, %v2473_v55 }
 0x6b9   :  { %v4629_v27 = vpop.f32.mrf.mxu0  ;;  %v4652_v50 = vpop.f32.mrf.mxu1 }
 0x6ba   :  { %v4704_v59 = vadd.f32 %v4629_v27, %v2401_v45  ;;  %v4705_v11 = vadd.f32 %v4652_v50, %v2447_v1 }
 0x6bc   :  { %v5388_v8 = vmul.f32 -1.442695, %v4704_v59  ;;  %v5389_v36 = vmul.f32 -1.442695, %v4705_v11 }
 0x6be   :  { %5595 = vpow2.f32 %v5388_v8 }
 0x6bf   :  { %5597 = vpow2.f32 %v5389_v36 }
 0x6c0   :  { %v4675_v31 = vpop.f32.mrf.mxu2  ;;  %v4698_v22 = vpop.f32.mrf.mxu3 }
 0x6c1   :  { %v4706_v57 = vadd.f32 %v4675_v31, %v2493_v51  ;;  %v4707_v39 = vadd.f32 %v4698_v22, %v2539_v10 }
 0x6c3   :  { %v5390_v13 = vmul.f32 -1.442695, %v4706_v57 }
 0x6c4   :  { %v5596_v6 = vpop.eup %5595 }
 0x6c5   :  { %v5598_v20 = vpop.eup %5597  ;;  %v4730_v26 = vadd.f32 1.0, %v5596_v6  ;;  %5599 = vpow2.f32 %v5390_v13 }
 0x6c6   :  { %v4731_v19 = vadd.f32 1.0, %v5598_v20  ;;  %v11075_v20 = vld [vmem:[#allocation92_spill] sm:$0xff] }
 0x6c7   :  { %5601 = vrcp.f32 %v4730_v26  ;;  %v4745_v42 = vand.u32 2147483647, %v4730_v26  ;;  %v4747_v54 = vand.u32 2147483648, %v4730_v26  ;;  %vm4741_vm10 = vweird.f32 %v4730_v26 }
 0x6c8   :  { %5603 = vrcp.f32 %v4731_v19  ;;  %v4762_v40 = vand.u32 2147483648, %v4731_v19  ;;  %v4760_v29 = vand.u32 2147483647, %v4731_v19  ;;  %vm4756_vm11 = vweird.f32 %v4731_v19 }
 0x6c9   :  { %vm9705_vm12 = vcmp.eq.f32.partialorder %v4745_v42, 8.507059e+37  ;;  %v4748_v35 = vor.u32 1.1754944e-38, %v4747_v54  ;;  %v2519_v63 = vadd.f32 %v11075_v20, %v2308_v37 }
 0x6ca   :  { %v4632_v60 = vpop.f32.mrf.mxu0  ;;  %v4655_v47 = vpop.f32.mrf.mxu1  ;;  %v4763_v59 = vor.u32 1.1754944e-38, %v4762_v40  ;;  %vm4761_vm15 = vcmp.eq.f32.partialorder %v4760_v29, 8.507059e+37 }
 0x6cb   :  { %v5600_v28 = vpop.eup %5599  ;;  %v4708_v16 = vadd.f32 %v4632_v60, %v2404_v33  ;;  %v4709_v9 = vadd.f32 %v4655_v47, %v2450_v21  ;;  %v2542_v33 = vadd.f32 %v11076_v4, %v2519_v63  ;;  %v11084_v4 = vld [vmem:[#allocation106_spill] sm:$0xff] }
 0x6cc   :  { %v9701_v44 = vadd.f32 1.0, %v5600_v28 }
 0x6cd   :  { %v5602_v7 = vpop.eup %5601  ;;  %v5391_v32 = vmul.f32 -1.442695, %v4708_v16  ;;  %v5392_v46 = vmul.f32 -1.442695, %v4709_v9 }
 0x6ce   :  { %v5604_v0 = vpop.eup %5603  ;;  %v4737_v15 = vmul.f32 %v5602_v7, %v4730_v26  ;;  %5605 = vrcp.f32 %v9701_v44  ;;  %vm4742_vm8 = vweird.f32 %v5602_v7  ;;  %v4777_v24 = vand.u32 2147483648, %v9701_v44 }
 0x6cf   :  { %v4752_v14 = vmul.f32 %v5604_v0, %v4731_v19  ;;  %5607 = vpow2.f32 %v5391_v32  ;;  %vm4757_vm9 = vweird.f32 %v5604_v0  ;;  %vm4743_vm13 = vmor %vm4741_vm10, %vm4742_vm8  ;;  %v4775_v21 = vand.u32 2147483647, %v9701_v44 }
 0x6d0   :  { %v4738_v18 = vsub.f32 1.0, %v4737_v15  ;;  %5609 = vpow2.f32 %v5392_v46  ;;  %vm4758_vm14 = vmor %vm4756_vm11, %vm4757_vm9  ;;  %vm4771_vm1 = vweird.f32 %v9701_v44  ;;  %v4778_v16 = vor.u32 1.1754944e-38, %v4777_v24 }
 0x6d1   :  { %v4753_v61 = vsub.f32 1.0, %v4752_v14  ;;  %5611 = vtanh.f32 %v4707_v39  ;;  %v4678_v25 = vpop.f32.mrf.mxu2  ;;  %v4701_v12 = vpop.f32.mrf.mxu3  ;;  %vm4776_vm3 = vcmp.eq.f32.partialorder %v4775_v21, 8.507059e+37 }
 0x6d2   :  { %v4739_v34 = vmul.f32 %v5602_v7, %v4738_v18  ;;  %v4710_v52 = vadd.f32 %v4678_v25, %v2496_v30 }
 0x6d3   :  { %v4754_v49 = vmul.f32 %v5604_v0, %v4753_v61 }
 0x6d4   :  { %v5606_v45 = vpop.eup %5605  ;;  %v4740_v2 = vadd.f32 %v5602_v7, %v4739_v34  ;;  %v5393_v27 = vmul.f32 -1.442695, %v4710_v52 }
 0x6d5   :  { %v5608_v50 = vpop.eup %5607  ;;  %v4767_v11 = vmul.f32 %v5606_v45, %v9701_v44  ;;  %v4755_v3 = vadd.f32 %v5604_v0, %v4754_v49  ;;  %vm4772_vm0 = vweird.f32 %v5606_v45 }
 0x6d6   :  { %v5610_v8 = vpop.eup %5609  ;;  %v4744_v36 = vsel %vm4743_vm13, %v5602_v7, %v4740_v2  ;;  %v9710_v43 = vadd.f32 1.0, %v5608_v50  ;;  %5613 = vpow2.f32 %v5393_v27  ;;  %vm9729_vm2 = vmor %vm4771_vm1, %vm4772_vm0 }
 0x6d7   :  { %v5612_v51 = vpop.eup %5611  ;;  %v4768_v31 = vsub.f32 1.0, %v4767_v11  ;;  %v4749_v57 = vsel %vm9705_vm12, %v4748_v35, %v4744_v36  ;;  %v4759_v13 = vsel %vm4758_vm14, %v5604_v0, %v4755_v3  ;;  %v9714_v6 = vadd.f32 1.0, %v5610_v8 }
 0x6d8   :  { %v4764_v56 = vsel %vm4761_vm15, %v4763_v59, %v4759_v13  ;;  %v4830_v41 = vmul.f32 %v5612_v51, %v4749_v57  ;;  %5615 = vrcp.f32 %v9710_v43  ;;  %v4792_v44 = vand.u32 2147483648, %v9710_v43  ;;  %v11082_v13 = vld [vmem:[#allocation103_spill] sm:$0xff] }
 0x6d9   :  { %v4769_v23 = vmul.f32 %v5606_v45, %v4768_v31  ;;  %v4828_v26 = vmul.f32 %v4764_v56, %v9610_v58  ;;  %5617 = vrcp.f32 %v9714_v6  ;;  %v4711_v58 = vadd.f32 %v4701_v12, %v2542_v33  ;;  %v11081_v31 = vld [vmem:[#allocation102_spill] sm:$0xff] }
 0x6da   :  { %v4807_v55 = vand.u32 2147483648, %v9714_v6  ;;  %v4790_v32 = vand.u32 2147483647, %v9710_v43  ;;  %v4805_v15 = vand.u32 2147483647, %v9714_v6  ;;  %vm4786_vm6 = vweird.f32 %v9710_v43 }
 0x6db   :  { %v9722_v19 = vadd.f32 %v4830_v41, %v4828_v26  ;;  %v4770_v38 = vadd.f32 %v5606_v45, %v4769_v23  ;;  %vm4801_vm7 = vweird.f32 %v9714_v6  ;;  %v4793_v42 = vor.u32 1.1754944e-38, %v4792_v44  ;;  %v11083_v41 = vld [vmem:[#allocation101_spill] sm:$0xff]  ;;  %v11087_v44 = vld [vmem:[#allocation107_spill] sm:$0xff] }
 0x6dc   :  { %v5614_v17 = vpop.eup %5613  ;;  %v4808_v40 = vor.u32 1.1754944e-38, %v4807_v55  ;;  %vm4791_vm10 = vcmp.eq.f32.partialorder %v4790_v32, 8.507059e+37  ;;  %vm4806_vm11 = vcmp.eq.f32.partialorder %v4805_v15, 8.507059e+37 }
 0x6dd   :  { %5619 = vtanh.f32 %v9722_v19  ;;  %v4735_v37 = vadd.f32 1.0, %v5614_v17  ;;  %v4774_v10 = vsel %vm9729_vm2, %v5606_v45, %v4770_v38 }
 0x6de   :  { %v5616_v22 = vpop.eup %5615  ;;  %v4779_v46 = vsel %vm4776_vm3, %v4778_v16, %v4774_v10  ;;  %v11086_v16 = vld [vmem:[#allocation104_spill] sm:$0xff] }
 0x6df   :  { %v5618_v60 = vpop.eup %5617  ;;  %v4782_v28 = vmul.f32 %v5616_v22, %v9710_v43  ;;  %5621 = vrcp.f32 %v4735_v37  ;;  %vm4787_vm4 = vweird.f32 %v5616_v22  ;;  %v4822_v59 = vand.u32 2147483648, %v4735_v37 }
 0x6e0   :  { %v4797_v62 = vmul.f32 %v5618_v60, %v9714_v6  ;;  %5623 = vtanh.f32 %v4711_v58  ;;  %vm4802_vm5 = vweird.f32 %v5618_v60  ;;  %vm4788_vm8 = vmor %vm4786_vm6, %vm4787_vm4  ;;  %vm4816_vm13 = vweird.f32 %v4735_v37 }
 0x6e1   :  { %v4783_v9 = vsub.f32 1.0, %v4782_v28  ;;  %vm4803_vm9 = vmor %vm4801_vm7, %vm4802_vm5  ;;  %v4820_v11 = vand.u32 2147483647, %v4735_v37  ;;  %v4823_v3 = vor.u32 1.1754944e-38, %v4822_v59 }
 0x6e2   :  { %v4798_v53 = vsub.f32 1.0, %v4797_v62  ;;  %v11085_v62 = vld [vmem:[#allocation105_spill] sm:$0xff] }
 0x6e3   :  { %v5620_v7 = vpop.eup %5619  ;;  %v4784_v39 = vmul.f32 %v5616_v22, %v4783_v9  ;;  %vm4821_vm15 = vcmp.eq.f32.partialorder %v4820_v11, 8.507059e+37 }
 0x6e4   :  { %v4799_v0 = vmul.f32 %v5618_v60, %v4798_v53  ;;  %v4836_v14 = vmul.f32 %v5620_v7, %v4779_v46 }
 0x6e5   :  { %v5622_v48 = vpop.eup %5621  ;;  %v4785_v30 = vadd.f32 %v5616_v22, %v4784_v39 }
 0x6e6   :  { %v4812_v18 = vmul.f32 %v5622_v48, %v4735_v37  ;;  %v4800_v61 = vadd.f32 %v5618_v60, %v4799_v0  ;;  %4862 = vmatmul.f32.vlgmr.msra.gmra.mxu0 %v4836_v14  ;;  %4885 = vmatmul.f32.vlgmr.msra.gmra.mxu1 %v4836_v14  ;;  %v5624_v25 = vpop.eup %5623  ;;  %vm4817_vm12 = vweird.f32 %v5622_v48 }
 0x6e7   :  { %v4789_v54 = vsel %vm4788_vm8, %v5616_v22, %v4785_v30  ;;  %4908 = vmatmul.f32.vlgmr.msra.gmra.mxu2 %v4836_v14  ;;  %4931 = vmatmul.f32.vlgmr.msra.gmra.mxu3 %v4836_v14  ;;  %vm4818_vm14 = vmor %vm4816_vm13, %vm4817_vm12 }
 0x6e8   :  { %v4813_v34 = vsub.f32 1.0, %v4812_v18  ;;  %v4794_v29 = vsel %vm4791_vm10, %v4793_v42, %v4789_v54  ;;  %v4804_v52 = vsel %vm4803_vm9, %v5618_v60, %v4800_v61 }
 0x6e9   :  { %v4809_v49 = vsel %vm4806_vm11, %v4808_v40, %v4804_v52  ;;  %v4831_v45 = vmul.f32 %v5624_v25, %v4794_v29  ;;  %v11088_v25 = vld [vmem:[#allocation108_spill] sm:$0xff] }
 0x6ea   :  { %v4829_v2 = vmul.f32 %v4809_v49, %v9648_v5  ;;  %v4814_v1 = vmul.f32 %v5622_v48, %v4813_v34  ;;  %v11079_v5 = vld [vmem:[#allocation97_spill] sm:$0xff] }
 0x6eb   :  { %v11080_v51 = vperm.slane %v11079_v5, 0 }
 0x6ec   :  { %v9744_v27 = vadd.f32 %v4831_v45, %v4829_v2  ;;  %v4815_v50 = vadd.f32 %v5622_v48, %v4814_v1 }
 0x6ed   :  { %v2787_v57 = vadd.f32 %v11081_v31, %v11080_v51 }
 0x6ee   :  { %5625 = vtanh.f32 %v9744_v27  ;;  %v4819_v35 = vsel %vm4818_vm14, %v5622_v48, %v4815_v50 }
 0x6ef   :  { %v4824_v36 = vsel %vm4821_vm15, %v4823_v3, %v4819_v35  ;;  %v2810_v6 = vadd.f32 %v11082_v13, %v2787_v57 }
 0x6f4   :  { %v5626_v8 = vpop.eup %5625 }
 0x6f5   :  { %v4837_v43 = vmul.f32 %v5626_v8, %v4824_v36 }
 0x6f7   :  { %4865 = vmatmul.f32.gmra.mxu0 %v4837_v43  ;;  %4888 = vmatmul.f32.gmra.mxu1 %v4837_v43 }
 0x6f8   :  { %4911 = vmatmul.f32.gmra.mxu2 %v4837_v43  ;;  %4934 = vmatmul.f32.gmra.mxu3 %v4837_v43 }
 0x763   :  { %v4863_v20 = vpop.f32.mrf.mxu0  ;;  %v4886_v63 = vpop.f32.mrf.mxu1 }
 0x764   :  { %v4938_v56 = vadd.f32 %v4863_v20, %v2810_v6  ;;  %v4939_v23 = vadd.f32 %v4886_v63, %v11083_v41 }
 0x766   :  { %v5394_v26 = vmul.f32 -1.442695, %v4938_v56  ;;  %v5395_v12 = vmul.f32 -1.442695, %v4939_v23 }
 0x768   :  { %5627 = vpow2.f32 %v5394_v26 }
 0x769   :  { %5629 = vpow2.f32 %v5395_v12 }
 0x76a   :  { %v4909_v17 = vpop.f32.mrf.mxu2  ;;  %v4932_v58 = vpop.f32.mrf.mxu3 }
 0x76b   :  { %v4940_v33 = vadd.f32 %v4909_v17, %v11084_v4  ;;  %v4941_v7 = vadd.f32 %v4932_v58, %v11087_v44 }
 0x76d   :  { %v5396_v38 = vmul.f32 -1.442695, %v4940_v33 }
 0x76e   :  { %v5628_v24 = vpop.eup %5627 }
 0x76f   :  { %v5630_v37 = vpop.eup %5629  ;;  %v4964_v21 = vadd.f32 1.0, %v5628_v24  ;;  %5631 = vpow2.f32 %v5396_v38  ;;  %v11091_v38 = vld [vmem:[#allocation112_spill] sm:$0xff] }
 0x770   :  { %v4965_v22 = vadd.f32 1.0, %v5630_v37  ;;  %v5311_v37 = vld [vmem:[#allocation10 + $0x28] sm:$0xff] }
 0x771   :  { %5633 = vrcp.f32 %v4964_v21  ;;  %v4979_v48 = vand.u32 2147483647, %v4964_v21  ;;  %v4981_v42 = vand.u32 2147483648, %v4964_v21  ;;  %vm4975_vm2 = vweird.f32 %v4964_v21 }
 0x772   :  { %5635 = vrcp.f32 %v4965_v22  ;;  %v4996_v18 = vand.u32 2147483648, %v4965_v22  ;;  %v4994_v54 = vand.u32 2147483647, %v4965_v22  ;;  %vm4990_vm3 = vweird.f32 %v4965_v22 }
 0x773   :  { %vm9760_vm4 = vcmp.eq.f32.partialorder %v4979_v48, 8.507059e+37  ;;  %v4982_v11 = vor.u32 1.1754944e-38, %v4981_v42 }
 0x774   :  { %v4866_v60 = vpop.f32.mrf.mxu0  ;;  %v4889_v47 = vpop.f32.mrf.mxu1  ;;  %v4997_v50 = vor.u32 1.1754944e-38, %v4996_v18  ;;  %vm4995_vm7 = vcmp.eq.f32.partialorder %v4994_v54, 8.507059e+37 }
 0x775   :  { %v5632_v28 = vpop.eup %5631  ;;  %v4942_v10 = vadd.f32 %v4866_v60, %v11085_v62  ;;  %v4943_v9 = vadd.f32 %v4889_v47, %v11086_v16 }
 0x776   :  { %v9755_v53 = vadd.f32 1.0, %v5632_v28 }
 0x777   :  { %v5634_v55 = vpop.eup %5633  ;;  %v5397_v39 = vmul.f32 -1.442695, %v4942_v10  ;;  %v5398_v32 = vmul.f32 -1.442695, %v4943_v9 }
 0x778   :  { %v5636_v46 = vpop.eup %5635  ;;  %v4971_v0 = vmul.f32 %v5634_v55, %v4964_v21  ;;  %5637 = vrcp.f32 %v9755_v53  ;;  %vm4976_vm0 = vweird.f32 %v5634_v55  ;;  %v5011_v12 = vand.u32 2147483648, %v9755_v53 }
 0x779   :  { %v4986_v15 = vmul.f32 %v5636_v46, %v4965_v22  ;;  %5639 = vpow2.f32 %v5397_v39  ;;  %vm4991_vm1 = vweird.f32 %v5636_v46  ;;  %vm4977_vm5 = vmor %vm4975_vm2, %vm4976_vm0  ;;  %v5009_v4 = vand.u32 2147483647, %v9755_v53 }
 0x77a   :  { %v4972_v14 = vsub.f32 1.0, %v4971_v0  ;;  %5641 = vpow2.f32 %v5398_v32  ;;  %vm4992_vm6 = vmor %vm4990_vm3, %vm4991_vm1  ;;  %vm5005_vm9 = vweird.f32 %v9755_v53  ;;  %v5012_v60 = vor.u32 1.1754944e-38, %v5011_v12 }
 0x77b   :  { %v4987_v30 = vsub.f32 1.0, %v4986_v15  ;;  %5643 = vtanh.f32 %v4941_v7  ;;  %v4912_v61 = vpop.f32.mrf.mxu2  ;;  %v4935_v41 = vpop.f32.mrf.mxu3  ;;  %vm5010_vm11 = vcmp.eq.f32.partialorder %v5009_v4, 8.507059e+37  ;;  %v11096_v4 = vld [vmem:[#allocation68_spill] sm:$0xff] }
 0x77c   :  { %v4973_v40 = vmul.f32 %v5634_v55, %v4972_v14  ;;  %v4944_v34 = vadd.f32 %v4912_v61, %v11088_v25  ;;  %v4945_v24 = vadd.f32 %v4935_v41, %v11091_v38  ;;  %v5312_v38 = vld [vmem:[#allocation10 + $0x30] sm:$0xff] }
 0x77d   :  { %v4988_v29 = vmul.f32 %v5636_v46, %v4987_v30 }
 0x77e   :  { %v5638_v52 = vpop.eup %5637  ;;  %v4974_v49 = vadd.f32 %v5634_v55, %v4973_v40  ;;  %v5399_v2 = vmul.f32 -1.442695, %v4944_v34 }
 0x77f   :  { %v5640_v1 = vpop.eup %5639  ;;  %v5001_v59 = vmul.f32 %v5638_v52, %v9755_v53  ;;  %v4989_v35 = vadd.f32 %v5636_v46, %v4988_v29  ;;  %vm5006_vm8 = vweird.f32 %v5638_v52 }
 0x780   :  { %v5642_v3 = vpop.eup %5641  ;;  %v4978_v8 = vsel %vm4977_vm5, %v5634_v55, %v4974_v49  ;;  %v4967_v36 = vadd.f32 1.0, %v5640_v1  ;;  %5645 = vpow2.f32 %v5399_v2  ;;  %vm9775_vm10 = vmor %vm5005_vm9, %vm5006_vm8 }
 0x781   :  { %v5644_v43 = vpop.eup %5643  ;;  %v5002_v5 = vsub.f32 1.0, %v5001_v59  ;;  %v4983_v51 = vsel %vm9760_vm4, %v4982_v11, %v4978_v8  ;;  %v4993_v31 = vsel %vm4992_vm6, %v5636_v46, %v4989_v35  ;;  %v4968_v57 = vadd.f32 1.0, %v5642_v3  ;;  %v5320_v3 = vld [vmem:[#allocation10 + $0x70] sm:$0xff]  ;;  %v5319_v8 = vld [vmem:[#allocation10 + $0x68] sm:$0xff] }
 0x782   :  { %v4998_v13 = vsel %vm4995_vm7, %v4997_v50, %v4993_v31  ;;  %v5064_v6 = vmul.f32 %v5644_v43, %v4983_v51  ;;  %5647 = vrcp.f32 %v4967_v36  ;;  %v5026_v10 = vand.u32 2147483648, %v4967_v36  ;;  %v5317_v43 = vld [vmem:[#allocation10 + $0x58] sm:$0xff]  ;;  %v11094_v31 = vld [vmem:[#allocation114_spill] sm:$0xff] }
 0x783   :  { %v5003_v20 = vmul.f32 %v5638_v52, %v5002_v5  ;;  %v5062_v63 = vmul.f32 %v4998_v13, %v9722_v19  ;;  %5649 = vrcp.f32 %v4968_v57  ;;  %v5041_v62 = vand.u32 2147483648, %v4968_v57  ;;  %v11095_v13 = vld [vmem:[#allocation115_spill] sm:$0xff] }
 0x784   :  { %v5024_v53 = vand.u32 2147483647, %v4967_v36  ;;  %v5039_v7 = vand.u32 2147483647, %v4968_v57  ;;  %vm5020_vm14 = vweird.f32 %v4967_v36  ;;  %vm5035_vm15 = vweird.f32 %v4968_v57 }
 0x785   :  { %v9768_v56 = vadd.f32 %v5064_v6, %v5062_v63  ;;  %v5004_v26 = vadd.f32 %v5638_v52, %v5003_v20  ;;  %v5027_v15 = vor.u32 1.1754944e-38, %v5026_v10  ;;  %v5042_v48 = vor.u32 1.1754944e-38, %v5041_v62  ;;  %v5316_v20 = vld [vmem:[#allocation10 + $0x50] sm:$0xff] }
 0x786   :  { %v5646_v23 = vpop.eup %5645  ;;  %vm5025_vm2 = vcmp.eq.f32.partialorder %v5024_v53, 8.507059e+37  ;;  %vm5040_vm3 = vcmp.eq.f32.partialorder %v5039_v7, 8.507059e+37  ;;  %v11097_v53 = vld [vmem:[#allocation116_spill] sm:$0xff] }
 0x787   :  { %5651 = vtanh.f32 %v9768_v56  ;;  %v4969_v17 = vadd.f32 1.0, %v5646_v23  ;;  %v5008_v58 = vsel %vm9775_vm10, %v5638_v52, %v5004_v26  ;;  %v5315_v23 = vld [vmem:[#allocation10 + $0x48] sm:$0xff]  ;;  %v5314_v26 = vld [vmem:[#allocation10 + $0x40] sm:$0xff] }
 0x788   :  { %v5648_v33 = vpop.eup %5647  ;;  %v5013_v55 = vsel %vm5010_vm11, %v5012_v60, %v5008_v58  ;;  %v5310_v60 = vld [vmem:[#allocation10 + $0x20] sm:$0xff] }
 0x789   :  { %v5650_v19 = vpop.eup %5649  ;;  %v5016_v21 = vmul.f32 %v5648_v33, %v4967_v36  ;;  %5653 = vrcp.f32 %v4969_v17  ;;  %vm5021_vm12 = vweird.f32 %v5648_v33  ;;  %v5056_v45 = vand.u32 2147483648, %v4969_v17  ;;  %v5318_v36 = vld [vmem:[#allocation10 + $0x60] sm:$0xff] }
 0x78a   :  { %v5031_v22 = vmul.f32 %v5650_v19, %v4968_v57  ;;  %5655 = vtanh.f32 %v4945_v24  ;;  %vm5036_vm13 = vweird.f32 %v5650_v19  ;;  %vm5022_vm0 = vmor %vm5020_vm14, %vm5021_vm12  ;;  %vm5050_vm5 = vweird.f32 %v4969_v17 }
 0x78b   :  { %v5017_v47 = vsub.f32 1.0, %v5016_v21  ;;  %vm5037_vm1 = vmor %vm5035_vm15, %vm5036_vm13  ;;  %v5054_v2 = vand.u32 2147483647, %v4969_v17  ;;  %v5057_v50 = vor.u32 1.1754944e-38, %v5056_v45 }
 0x78c   :  { %v5032_v28 = vsub.f32 1.0, %v5031_v22 }
 0x78d   :  { %v5652_v16 = vpop.eup %5651  ;;  %v5018_v9 = vmul.f32 %v5648_v33, %v5017_v47  ;;  %vm5055_vm7 = vcmp.eq.f32.partialorder %v5054_v2, 8.507059e+37  ;;  %v5309_v47 = vld [vmem:[#allocation10 + $0x18] sm:$0xff] }
 0x78e   :  { %v5033_v44 = vmul.f32 %v5650_v19, %v5032_v28  ;;  %v5070_v39 = vmul.f32 %v5652_v16, %v5013_v55  ;;  %v5308_v16 = vld [vmem:[#allocation10 + $0x10] sm:$0xff] }
 0x78f   :  { %v5654_v32 = vpop.eup %5653  ;;  %v5019_v46 = vadd.f32 %v5648_v33, %v5018_v9 }
 0x790   :  { %v5046_v0 = vmul.f32 %v5654_v32, %v4969_v17  ;;  %v5034_v14 = vadd.f32 %v5650_v19, %v5033_v44  ;;  %5096 = vmatmul.f32.vlgmr.msrb.gmra.mxu0 %v5070_v39  ;;  %5119 = vmatmul.f32.vlgmr.msrb.gmra.mxu1 %v5070_v39  ;;  %v5656_v18 = vpop.eup %5655  ;;  %vm5051_vm4 = vweird.f32 %v5654_v32  ;;  %v5313_v17 = vld [vmem:[#allocation10 + $0x38] sm:$0xff]  ;;  %v11098_v44 = vld [vmem:[#allocation62_spill] sm:$0xff] }
 0x791   :  { %v5023_v30 = vsel %vm5022_vm0, %v5648_v33, %v5019_v46  ;;  %5142 = vmatmul.f32.vlgmr.msrb.gmra.mxu2 %v5070_v39  ;;  %5165 = vmatmul.f32.vlgmr.msrb.gmra.mxu3 %v5070_v39  ;;  %vm5052_vm6 = vmor %vm5050_vm5, %vm5051_vm4 }
 0x792   :  { %v5047_v42 = vsub.f32 1.0, %v5046_v0  ;;  %v5028_v61 = vsel %vm5025_vm2, %v5027_v15, %v5023_v30  ;;  %v5038_v40 = vsel %vm5037_vm1, %v5650_v19, %v5034_v14  ;;  %v11099_v0 = vld [vmem:[#allocation69_spill] sm:$0xff] }
 0x793   :  { %v5043_v54 = vsel %vm5040_vm3, %v5042_v48, %v5038_v40  ;;  %v5065_v25 = vmul.f32 %v5656_v18, %v5028_v61 }
 0x794   :  { %v5063_v34 = vmul.f32 %v5043_v54, %v9744_v27  ;;  %v5048_v29 = vmul.f32 %v5654_v32, %v5047_v42  ;;  %v5321_v27 = vld [vmem:[#allocation10 + $0x78] sm:$0xff]  ;;  %v5306_v42 = vld [vmem:[#allocation10] sm:$0xff] }
 0x795   :  { %5326 = vmatpush.msra.mxu0 %v5321_v27  ;;  %5406 = vmatpush.msra.mxu1 %v5321_v27 }
 0x796   :  { %v9782_v52 = vadd.f32 %v5065_v25, %v5063_v34  ;;  %v5049_v49 = vadd.f32 %v5654_v32, %v5048_v29 }
 0x797   :  { %5327 = vmatpush.msra.mxu0 %v5320_v3  ;;  %5407 = vmatpush.msra.mxu1 %v5320_v3 }
 0x798   :  { %5657 = vtanh.f32 %v9782_v52  ;;  %v5053_v1 = vsel %vm5052_vm6, %v5654_v32, %v5049_v49  ;;  %v5307_v32 = vld [vmem:[#allocation10 + $0x8] sm:$0xff] }
 0x799   :  { %v5058_v11 = vsel %vm5055_vm7, %v5057_v50, %v5053_v1  ;;  %5328 = vmatpush.msra.mxu0 %v5319_v8  ;;  %5408 = vmatpush.msra.mxu1 %v5319_v8  ;;  %v11100_v1 = vld [vmem:[#allocation72_spill] sm:$0xff] }
 0x79b   :  { %5329 = vmatpush.msra.mxu0 %v5318_v36  ;;  %5409 = vmatpush.msra.mxu1 %v5318_v36 }
 0x79d   :  { %5330 = vmatpush.msra.mxu0 %v5317_v43  ;;  %5410 = vmatpush.msra.mxu1 %v5317_v43 }
 0x79e   :  { %v5658_v59 = vpop.eup %5657 }
 0x79f   :  { %v5071_v35 = vmul.f32 %v5658_v59, %v5058_v11  ;;  %5331 = vmatpush.msra.mxu0 %v5316_v20  ;;  %5411 = vmatpush.msra.mxu1 %v5316_v20 }
 0x7a1   :  { %5099 = vmatmul.f32.gmra.mxu0 %v5071_v35  ;;  %5122 = vmatmul.f32.gmra.mxu1 %v5071_v35 }
 0x7a2   :  { %5145 = vmatmul.f32.gmra.mxu2 %v5071_v35  ;;  %5168 = vmatmul.f32.gmra.mxu3 %v5071_v35 }
 0x7a3   :  { %5332 = vmatpush.msra.mxu0 %v5315_v23  ;;  %5412 = vmatpush.msra.mxu1 %v5315_v23 }
 0x7a5   :  { %5333 = vmatpush.msra.mxu0 %v5314_v26  ;;  %5413 = vmatpush.msra.mxu1 %v5314_v26 }
 0x7a7   :  { %5334 = vmatpush.msra.mxu0 %v5313_v17  ;;  %5414 = vmatpush.msra.mxu1 %v5313_v17 }
 0x7a9   :  { %5335 = vmatpush.msra.mxu0 %v5312_v38  ;;  %5415 = vmatpush.msra.mxu1 %v5312_v38 }
 0x7ab   :  { %5336 = vmatpush.msra.mxu0 %v5311_v37  ;;  %5416 = vmatpush.msra.mxu1 %v5311_v37 }
 0x7ad   :  { %5337 = vmatpush.msra.mxu0 %v5310_v60  ;;  %5417 = vmatpush.msra.mxu1 %v5310_v60  ;;  %v11103_v60 = vld [vmem:[#allocation51_spill] sm:$0xff] }
 0x7af   :  { %5338 = vmatpush.msra.mxu0 %v5309_v47  ;;  %5418 = vmatpush.msra.mxu1 %v5309_v47 }
 0x7b1   :  { %5339 = vmatpush.msra.mxu0 %v5308_v16  ;;  %5419 = vmatpush.msra.mxu1 %v5308_v16 }
 0x7b3   :  { %5340 = vmatpush.msra.mxu0 %v5307_v32  ;;  %5420 = vmatpush.msra.mxu1 %v5307_v32 }
 0x7b5   :  { %5341 = vmatpush.msra.mxu0 %v5306_v42  ;;  %5421 = vmatpush.msra.mxu1 %v5306_v42 }
 0x80d   :  { %v5097_v5 = vpop.f32.mrf.mxu0  ;;  %v5120_v51 = vpop.f32.mrf.mxu1 }
 0x80e   :  { %v5172_v57 = vadd.f32 %v5097_v5, %v11094_v31  ;;  %v5173_v6 = vadd.f32 %v5120_v51, %v11095_v13 }
 0x810   :  { %v5400_v63 = vmul.f32 -1.442695, %v5172_v57  ;;  %v5401_v41 = vmul.f32 -1.442695, %v5173_v6 }
 0x812   :  { %5659 = vpow2.f32 %v5400_v63 }
 0x813   :  { %5661 = vpow2.f32 %v5401_v41 }
 0x814   :  { %v5143_v12 = vpop.f32.mrf.mxu2  ;;  %v5166_v28 = vpop.f32.mrf.mxu3 }
 0x815   :  { %v5174_v33 = vadd.f32 %v5143_v12, %v11096_v4  ;;  %v5175_v15 = vadd.f32 %v5166_v28, %v11099_v0 }
 0x817   :  { %v5402_v24 = vmul.f32 -1.442695, %v5174_v33 }
 0x818   :  { %v5660_v19 = vpop.eup %5659 }
 0x819   :  { %v5662_v21 = vpop.eup %5661  ;;  %v5198_v22 = vadd.f32 1.0, %v5660_v19  ;;  %5663 = vpow2.f32 %v5402_v24 }
 0x81a   :  { %v9788_v58 = vadd.f32 1.0, %v5662_v21 }
 0x81b   :  { %5665 = vrcp.f32 %v5198_v22  ;;  %v5213_v54 = vand.u32 2147483647, %v5198_v22  ;;  %v5215_v29 = vand.u32 2147483648, %v5198_v22  ;;  %vm5209_vm10 = vweird.f32 %v5198_v22 }
 0x81c   :  { %5667 = vrcp.f32 %v9788_v58  ;;  %v5230_v34 = vand.u32 2147483648, %v9788_v58  ;;  %v5228_v2 = vand.u32 2147483647, %v9788_v58  ;;  %vm5224_vm11 = vweird.f32 %v9788_v58 }
 0x81d   :  { %vm9802_vm12 = vcmp.eq.f32.partialorder %v5213_v54, 8.507059e+37  ;;  %v5216_v5 = vor.u32 1.1754944e-38, %v5215_v29 }
 0x81e   :  { %v5100_v62 = vpop.f32.mrf.mxu0  ;;  %v5123_v10 = vpop.f32.mrf.mxu1  ;;  %v5231_v36 = vor.u32 1.1754944e-38, %v5230_v34  ;;  %vm5229_vm15 = vcmp.eq.f32.partialorder %v5228_v2, 8.507059e+37 }
 0x81f   :  { %v5664_v9 = vpop.eup %5663  ;;  %v5176_v55 = vadd.f32 %v5100_v62, %v11097_v53  ;;  %v5177_v7 = vadd.f32 %v5123_v10, %v11098_v44 }
 0x820   :  { %v9793_v39 = vadd.f32 1.0, %v5664_v9 }
 0x821   :  { %v5666_v46 = vpop.eup %5665  ;;  %v5403_v14 = vmul.f32 -1.442695, %v5176_v55  ;;  %v5404_v48 = vmul.f32 -1.442695, %v5177_v7 }
 0x822   :  { %v5668_v30 = vpop.eup %5667  ;;  %v5205_v18 = vmul.f32 %v5666_v46, %v5198_v22  ;;  %5669 = vrcp.f32 %v9793_v39  ;;  %vm5210_vm8 = vweird.f32 %v5666_v46  ;;  %v5245_v37 = vand.u32 2147483648, %v9793_v39 }
 0x823   :  { %v5220_v61 = vmul.f32 %v5668_v30, %v9788_v58  ;;  %5671 = vpow2.f32 %v5403_v14  ;;  %vm5225_vm9 = vweird.f32 %v5668_v30  ;;  %vm5211_vm13 = vmor %vm5209_vm10, %vm5210_vm8  ;;  %v5243_v22 = vand.u32 2147483647, %v9793_v39 }
 0x824   :  { %v5206_v40 = vsub.f32 1.0, %v5205_v18  ;;  %5673 = vpow2.f32 %v5404_v48  ;;  %vm5226_vm14 = vmor %vm5224_vm11, %vm5225_vm9  ;;  %vm5239_vm1 = vweird.f32 %v9793_v39  ;;  %v5246_v9 = vor.u32 1.1754944e-38, %v5245_v37 }
 0x825   :  { %v5221_v25 = vsub.f32 1.0, %v5220_v61  ;;  %5675 = vtanh.f32 %v5175_v15  ;;  %v5146_v49 = vpop.f32.mrf.mxu2  ;;  %v5169_v38 = vpop.f32.mrf.mxu3  ;;  %vm5244_vm3 = vcmp.eq.f32.partialorder %v5243_v22, 8.507059e+37 }
 0x826   :  { %v5207_v45 = vmul.f32 %v5666_v46, %v5206_v40  ;;  %v5178_v50 = vadd.f32 %v5146_v49, %v11100_v1  ;;  %v5179_v47 = vadd.f32 %v5169_v38, %v11103_v60 }
 0x827   :  { %v5222_v59 = vmul.f32 %v5668_v30, %v5221_v25 }
 0x828   :  { %v5670_v11 = vpop.eup %5669  ;;  %v5208_v35 = vadd.f32 %v5666_v46, %v5207_v45  ;;  %v5405_v3 = vmul.f32 -1.442695, %v5178_v50 }
 0x829   :  { %v5672_v8 = vpop.eup %5671  ;;  %v5235_v43 = vmul.f32 %v5670_v11, %v9793_v39  ;;  %v5223_v51 = vadd.f32 %v5668_v30, %v5222_v59  ;;  %vm5240_vm0 = vweird.f32 %v5670_v11 }
 0x82a   :  { %v5674_v31 = vpop.eup %5673  ;;  %v5212_v57 = vsel %vm5211_vm13, %v5666_v46, %v5208_v35  ;;  %v5201_v13 = vadd.f32 1.0, %v5672_v8  ;;  %5677 = vpow2.f32 %v5405_v3  ;;  %vm9814_vm2 = vmor %vm5239_vm1, %vm5240_vm0 }
 0x82b   :  { %v5676_v6 = vpop.eup %5675  ;;  %v5236_v20 = vsub.f32 1.0, %v5235_v43  ;;  %v5217_v63 = vsel %vm9802_vm12, %v5216_v5, %v5212_v57  ;;  %v5227_v41 = vsel %vm5226_vm14, %v5668_v30, %v5223_v51  ;;  %v5202_v23 = vadd.f32 1.0, %v5674_v31  ;;  %v5434_v31 = vld [vmem:[%s9835_s5] ss:$0 sm:$0xff] }
 0x82c   :  { %v5232_v26 = vsel %vm5229_vm15, %v5231_v36, %v5227_v41  ;;  %v5298_v12 = vmul.f32 %v5676_v6, %v5217_v63  ;;  %5679 = vrcp.f32 %v5201_v13  ;;  %v5260_v7 = vand.u32 2147483648, %v5201_v13 }
 0x82d   :  { %v5237_v17 = vmul.f32 %v5670_v11, %v5236_v20  ;;  %v5296_v4 = vmul.f32 %v5232_v26, %v9768_v56  ;;  %5681 = vrcp.f32 %v5202_v23  ;;  %v5275_v44 = vand.u32 2147483648, %v5202_v23 }
 0x82e   :  { %v5258_v46 = vand.u32 2147483647, %v5201_v13  ;;  %v5273_v14 = vand.u32 2147483647, %v5202_v23  ;;  %vm5254_vm6 = vweird.f32 %v5201_v13  ;;  %vm5269_vm7 = vweird.f32 %v5202_v23 }
 0x82f   :  { %v5300_v33 = vadd.f32 %v5298_v12, %v5296_v4  ;;  %v5238_v19 = vadd.f32 %v5670_v11, %v5237_v17  ;;  %v5261_v61 = vor.u32 1.1754944e-38, %v5260_v7  ;;  %v5276_v54 = vor.u32 1.1754944e-38, %v5275_v44 }
 0x830   :  { %v5678_v24 = vpop.eup %5677  ;;  %vm5259_vm10 = vcmp.eq.f32.partialorder %v5258_v46, 8.507059e+37  ;;  %vm5274_vm11 = vcmp.eq.f32.partialorder %v5273_v14, 8.507059e+37 }
 0x831   :  { %5683 = vtanh.f32 %v5300_v33  ;;  %v5203_v21 = vadd.f32 1.0, %v5678_v24  ;;  %v5242_v16 = vsel %vm9814_vm2, %v5670_v11, %v5238_v19 }
 0x832   :  { %v5680_v58 = vpop.eup %5679  ;;  %v5247_v0 = vsel %vm5244_vm3, %v5246_v9, %v5242_v16 }
 0x833   :  { %v5682_v28 = vpop.eup %5681  ;;  %v5250_v62 = vmul.f32 %v5680_v58, %v5201_v13  ;;  %5685 = vrcp.f32 %v5203_v21  ;;  %vm5255_vm4 = vweird.f32 %v5680_v58  ;;  %v5290_v27 = vand.u32 2147483648, %v5203_v21 }
 0x834   :  { %v5265_v10 = vmul.f32 %v5682_v28, %v5202_v23  ;;  %5687 = vtanh.f32 %v5179_v47  ;;  %vm5270_vm5 = vweird.f32 %v5682_v28  ;;  %vm5256_vm8 = vmor %vm5254_vm6, %vm5255_vm4  ;;  %vm5284_vm13 = vweird.f32 %v5203_v21 }
 0x835   :  { %v5251_v53 = vsub.f32 1.0, %v5250_v62  ;;  %vm5271_vm9 = vmor %vm5269_vm7, %vm5270_vm5  ;;  %v5288_v3 = vand.u32 2147483647, %v5203_v21  ;;  %v5291_v36 = vor.u32 1.1754944e-38, %v5290_v27 }
 0x836   :  { %v5266_v55 = vsub.f32 1.0, %v5265_v10 }
 0x837   :  { %v5684_v39 = vpop.eup %5683  ;;  %v5252_v32 = vmul.f32 %v5680_v58, %v5251_v53  ;;  %vm5289_vm15 = vcmp.eq.f32.partialorder %v5288_v3, 8.507059e+37 }
 0x838   :  { %v5267_v15 = vmul.f32 %v5682_v28, %v5266_v55  ;;  %v5304_v48 = vmul.f32 %v5684_v39, %v5247_v0 }
 0x839   :  { %v5686_v30 = vpop.eup %5685  ;;  %v5253_v18 = vadd.f32 %v5680_v58, %v5252_v32 }
 0x83a   :  { %v5280_v42 = vmul.f32 %v5686_v30, %v5203_v21  ;;  %v5268_v40 = vadd.f32 %v5682_v28, %v5267_v15  ;;  %5342 = vmatmul.f32.vlgmr.msra.gmra.mxu0 %v5304_v48  ;;  %v5688_v34 = vpop.eup %5687  ;;  %vm5285_vm12 = vweird.f32 %v5686_v30 }
 0x83b   :  { %v5257_v25 = vsel %vm5256_vm8, %v5680_v58, %v5253_v18  ;;  %vm5286_vm14 = vmor %vm5284_vm13, %vm5285_vm12 }
 0x83c   :  { %v5281_v29 = vsub.f32 1.0, %v5280_v42  ;;  %v5262_v49 = vsel %vm5259_vm10, %v5261_v61, %v5257_v25  ;;  %v5272_v45 = vsel %vm5271_vm9, %v5682_v28, %v5268_v40 }
 0x83d   :  { %v5277_v2 = vsel %vm5274_vm11, %v5276_v54, %v5272_v45  ;;  %v5299_v1 = vmul.f32 %v5688_v34, %v5262_v49 }
 0x83e   :  { %v5282_v50 = vmul.f32 %v5686_v30, %v5281_v29  ;;  %v5297_v59 = vmul.f32 %v5277_v2, %v9782_v52 }
 0x840   :  { %v5301_v11 = vadd.f32 %v5299_v1, %v5297_v59  ;;  %v5283_v35 = vadd.f32 %v5686_v30, %v5282_v50 }
 0x842   :  { %5689 = vtanh.f32 %v5301_v11  ;;  %v5287_v8 = vsel %vm5286_vm14, %v5686_v30, %v5283_v35 }
 0x843   :  { %v5292_v5 = vsel %vm5289_vm15, %v5291_v36, %v5287_v8 }
 0x848   :  { %v5690_v43 = vpop.eup %5689 }
 0x849   :  { %v5305_v51 = vmul.f32 %v5690_v43, %v5292_v5 }
 0x84b   :  { %5345 = vmatmul.f32.vlgmr.msra.gmra.mxu1 %v5305_v51 }
 0x8b7   :  { %v5343_v52 = vpop.f32.mrf.mxu0 }
 0x8b8   :  { %v5344_v57 = vadd.f32 %v5434_v31, %v5343_v52 }
 0x8ba   :  { %5349 = vst [vmem:[%s9836_s6] sm:$0xff] %v5344_v57 }
 0x8c8   :  { %v5346_v13 = vpop.f32.mrf.mxu1 }
 0x8c9   :  { %v5347_v6 = vadd.f32 %v5434_v31, %v5346_v13 }
 0x8cb   :  { %5350 = vst [vmem:[%s9836_s6 + $0x8] sm:$0xff] %v5347_v6 }
 0x8cc   :  { %5355 = vsyncpa [#allocation4], 1 }
 0x8cd   :  { %5356 = vsyncpa [#allocation6], 1 }
 0x8ce   :  { %5357 = vsyncpa [#allocation9], 1 }

</bundles_post_ra>
